<compile_context>
chip_gen: v7x
topology: tpu7x:2x2x1
jax: 0.10.0
libtpu: 0.0.40
codegen_flags: <defaults>
</compile_context>

<pallas_src>
import functools

import numpy as np
import jax
import jax.numpy as jnp
from jax import lax
from jax.experimental import pallas as pl
from jax.experimental.pallas import tpu as pltpu

LANE = 128          # lane width; all packed channel dims are padded to this
BN_EPS = 1e-5

NUM_CLASSES = 8
IN_CH = 4
BACKBONE_OUT_CHANNELS = [32, 48, 48]          # feature_extractor.out_channels
MIDDLE_CHANNELS = [16, 16]                    # model_config['feature_out_channels']
NUM_DEFAULTS = [4, 4, 4]                      # head num_defaults


# ----------------------------------------------------------------------------
# In-kernel helpers (pure jnp on values)
# ----------------------------------------------------------------------------
def _bn_relu(x, gamma, beta, eps):
    """Training-mode BatchNorm (biased variance over rows) + ReLU, f32 math."""
    inv_m = 1.0 / x.shape[0]
    mean = jnp.sum(x, axis=0, keepdims=True) * inv_m
    ex2 = jnp.sum(x * x, axis=0, keepdims=True) * inv_m
    var = jnp.maximum(ex2 - mean * mean, 0.0)
    y = gamma * (x - mean) * lax.rsqrt(var + eps) + beta
    return jnp.maximum(y, 0.0)


def _shift_rows(x, delta):
    """y[r] = x[r + delta]; wrapped-around rows contain garbage (caller masks)."""
    m = x.shape[0]
    d = delta % m
    if d == 0:
        return x
    return jnp.concatenate([x[d:, :], x[:d, :]], axis=0)


def _patches_3x3(x_b, masks_b, w_spatial):
    """im2col for a 3x3 / stride-1 / pad-1 conv on a flattened (N*H*W, 128) bf16
    feature.  Returns the (m, 9*128) bf16 patch matrix (taps folded into the
    contraction dim so the whole conv is a single MXU matmul with K = 9*128)."""
    taps = []
    for kh in range(3):
        for kw in range(3):
            t = kh * 3 + kw
            delta = (kh - 1) * w_spatial + (kw - 1)
            tap = _shift_rows(x_b, delta)
            if delta != 0:                       # center tap is always valid
                tap = tap * masks_b[t]
            taps.append(tap)
    return jnp.concatenate(taps, axis=-1)


def _block(fin_b, masks_b, w_spatial, sel, w1, g1, bt1, w2, g2, bt2, eps):
    """Additional block: conv1x1(no bias)+BN+ReLU, conv3x3 s2 p1(no bias)+BN+ReLU."""
    z = jnp.dot(fin_b, w1, preferred_element_type=jnp.float32)
    z_b = _bn_relu(z, g1, bt1, eps).astype(jnp.bfloat16)
    zp = _patches_3x3(z_b, masks_b, w_spatial)                    # stride-1 patches
    zps = jnp.dot(sel, zp, preferred_element_type=jnp.float32)    # stride-2 row select
    y = jnp.dot(zps.astype(jnp.bfloat16), w2, preferred_element_type=jnp.float32)
    return _bn_relu(y, g2, bt2, eps)


# ----------------------------------------------------------------------------
# The single fused Pallas kernel
# ----------------------------------------------------------------------------
def _ssd_kernel(p0_ref, wb_ref, bb_ref, mk0_ref, wh0_ref, bh0_ref,
                w11_ref, g11_ref, bt11_ref, w21_ref, g21_ref, bt21_ref,
                s1_ref, mk1_ref, wh1_ref, bh1_ref,
                w12_ref, g12_ref, bt12_ref, w22_ref, g22_ref, bt22_ref,
                s2_ref, mk2_ref, wh2_ref, bh2_ref,
                h0_ref, h1_ref, h2_ref, *, widths, eps):
    w0, w1s, w2s = widths
    mk0 = mk0_ref[...].astype(jnp.bfloat16)
    mk1 = mk1_ref[...].astype(jnp.bfloat16)
    mk2 = mk2_ref[...].astype(jnp.bfloat16)

    # level 0: backbone conv3x3 s2 p1 (im2col'd in the wrapper) + bias + ReLU
    f0 = jnp.dot(p0_ref[...], wb_ref[...], preferred_element_type=jnp.float32)
    f0_b = jnp.maximum(f0 + bb_ref[...], 0.0).astype(jnp.bfloat16)
    # head 0: fused loc||conf conv3x3 s1 p1 + bias
    h0_ref[...] = jnp.dot(_patches_3x3(f0_b, mk0, w0), wh0_ref[...],
                          preferred_element_type=jnp.float32) + bh0_ref[...]

    # block 1 + head 1
    f1 = _block(f0_b, mk0, w0, s1_ref[...], w11_ref[...], g11_ref[...], bt11_ref[...],
                w21_ref[...], g21_ref[...], bt21_ref[...], eps)
    f1_b = f1.astype(jnp.bfloat16)
    h1_ref[...] = jnp.dot(_patches_3x3(f1_b, mk1, w1s), wh1_ref[...],
                          preferred_element_type=jnp.float32) + bh1_ref[...]

    # block 2 + head 2
    f2 = _block(f1_b, mk1, w1s, s2_ref[...], w12_ref[...], g12_ref[...], bt12_ref[...],
                w22_ref[...], g22_ref[...], bt22_ref[...], eps)
    f2_b = f2.astype(jnp.bfloat16)
    h2_ref[...] = jnp.dot(_patches_3x3(f2_b, mk2, w2s), wh2_ref[...],
                          preferred_element_type=jnp.float32) + bh2_ref[...]


def _full_spec(shape):
    rank = len(shape)
    return pl.BlockSpec(shape, lambda i, _r=rank: (0,) * _r)


def _call_ssd(kernel, args, out_ms):
    return pl.pallas_call(
        kernel,
        grid=(1,),
        in_specs=[_full_spec(a.shape) for a in args],
        out_specs=[_full_spec((m, LANE)) for m in out_ms],
        out_shape=[jax.ShapeDtypeStruct((m, LANE), jnp.float32) for m in out_ms],
        compiler_params=pltpu.CompilerParams(
            dimension_semantics=("arbitrary",),
            vmem_limit_bytes=32 * 1024 * 1024),
    )(*args)


# ----------------------------------------------------------------------------
# Host-side packing: lane-dense (128-padded) weights, masks, selection matrices
# ----------------------------------------------------------------------------
def _pack_backbone_w(w):
    """(OC, IC, 3, 3) -> (128, 128) bf16; rows ordered (kh, kw, ic) to match the
    wrapper-side im2col patch lanes (t*IC + ic)."""
    oc, ic = w.shape[0], w.shape[1]
    wt = jnp.transpose(w, (2, 3, 1, 0)).reshape(9 * ic, oc)
    out = jnp.zeros((LANE, LANE), jnp.float32)
    return out.at[:9 * ic, :oc].set(wt).astype(jnp.bfloat16)


def _pack_conv3x3_folded(w):
    """(OC, IC, 3, 3) -> (9*128, 128) bf16; tap t occupies rows [t*128, t*128+IC)."""
    oc, ic = w.shape[0], w.shape[1]
    taps = jnp.transpose(w, (2, 3, 1, 0)).reshape(9, ic, oc)
    out = jnp.zeros((9, LANE, LANE), jnp.float32)
    out = out.at[:, :ic, :oc].set(taps)
    return out.reshape(9 * LANE, LANE).astype(jnp.bfloat16)


def _pack_mat(w):
    """1x1 conv weight (OC, IC, 1, 1) -> (128, 128) bf16, zero padded."""
    oc, ic = w.shape[0], w.shape[1]
    out = jnp.zeros((LANE, LANE), jnp.float32)
    return out.at[:ic, :oc].set(w.reshape(oc, ic).T).astype(jnp.bfloat16)


def _pack_vec(v):
    out = jnp.zeros((1, LANE), jnp.float32)
    return out.at[0, :v.shape[0]].set(v)


def _make_masks(n, h, w):
    """(9, n*h*w, 1) f32 validity masks for a 3x3 / pad-1 conv on an (n,h,w) grid."""
    m = np.zeros((9, n * h * w, 1), np.float32)
    for kh in range(3):
        for kw in range(3):
            t = kh * 3 + kw
            dh, dw = kh - 1, kw - 1
            for b in range(n):
                for i in range(h):
                    if not (0 <= i + dh < h):
                        continue
                    for j in range(w):
                        if 0 <= j + dw < w:
                            m[t, b * h * w + i * w + j, 0] = 1.0
    return jnp.asarray(m)


def _make_select(n, h, w):
    """0/1 row-selection matrix picking the even-even rows (stride-2 centers)."""
    oh, ow = (h - 1) // 2 + 1, (w - 1) // 2 + 1
    s = np.zeros((n * oh * ow, n * h * w), np.float32)
    for b in range(n):
        for oi in range(oh):
            for oj in range(ow):
                s[b * oh * ow + oi * ow + oj,
                  b * h * w + 2 * oi * w + 2 * oj] = 1.0
    return jnp.asarray(s, jnp.bfloat16)


def build_plan(params, n, h, w):
    """Precompute packed weights, masks and stride-2 selection matrices."""
    def down(s):
        return (s - 1) // 2 + 1

    sh0, sw0 = down(h), down(w)
    sh1, sw1 = down(sh0), down(sw0)
    sh2, sw2 = down(sh1), down(sw1)

    plan = {'wb': _pack_backbone_w(params['bk_w']),
            'bb': _pack_vec(params['bk_b']),
            'mask0': _make_masks(n, sh0, sw0),
            'mask1': _make_masks(n, sh1, sw1),
            'mask2': _make_masks(n, sh2, sw2)}

    blocks = []
    for blk, (sh, sw) in zip(params['blocks'], [(sh0, sw0), (sh1, sw1)]):
        blocks.append({
            'w1': _pack_mat(blk['w1']),
            'g1': _pack_vec(blk['g1']),
            'b1': _pack_vec(blk['b1']),
            'w2': _pack_conv3x3_folded(blk['w2']),
            'g2': _pack_vec(blk['g2']),
            'b2': _pack_vec(blk['b2']),
            'sel': _make_select(n, sh, sw),
        })
    plan['blocks'] = blocks

    heads = []
    for hd in params['heads']:
        w_cat = jnp.concatenate([hd['loc_w'], hd['conf_w']], axis=0)
        b_cat = jnp.concatenate([hd['loc_b'], hd['conf_b']], axis=0)
        heads.append({'w': _pack_conv3x3_folded(w_cat), 'b': _pack_vec(b_cat)})
    plan['heads'] = heads
    return plan


# ----------------------------------------------------------------------------
# Parameters (synthetic small config matching the reference module structure)
# ----------------------------------------------------------------------------
def _xavier(key, shape):
    fan_in = shape[1] * shape[2] * shape[3]
    fan_out = shape[0] * shape[2] * shape[3]
    limit = (6.0 / (fan_in + fan_out)) ** 0.5
    return jax.random.uniform(key, shape, jnp.float32, -limit, limit)


def init_params(key):
    keys = iter(jax.random.split(key, 64))
    params = {'bk_w': _xavier(next(keys), (BACKBONE_OUT_CHANNELS[0], IN_CH, 3, 3)),
              'bk_b': jnp.zeros((BACKBONE_OUT_CHANNELS[0],), jnp.float32)}

    blocks = []
    for cin, cout, cmid in zip(BACKBONE_OUT_CHANNELS[:-1],
                               BACKBONE_OUT_CHANNELS[1:],
                               MIDDLE_CHANNELS):
        blocks.append({
            'w1': _xavier(next(keys), (cmid, cin, 1, 1)),
            'g1': jnp.ones((cmid,), jnp.float32),
            'b1': jnp.zeros((cmid,), jnp.float32),
            'w2': _xavier(next(keys), (cout, cmid, 3, 3)),
            'g2': jnp.ones((cout,), jnp.float32),
            'b2': jnp.zeros((cout,), jnp.float32),
        })
    params['blocks'] = blocks

    heads = []
    for nd, oc in zip(NUM_DEFAULTS, BACKBONE_OUT_CHANNELS):
        heads.append({
            'loc_w': _xavier(next(keys), (nd * 4, oc, 3, 3)),
            'loc_b': jnp.zeros((nd * 4,), jnp.float32),
            'conf_w': _xavier(next(keys), (nd * NUM_CLASSES, oc, 3, 3)),
            'conf_b': jnp.zeros((nd * NUM_CLASSES,), jnp.float32),
        })
    params['heads'] = heads
    return params


# ----------------------------------------------------------------------------
# Forward
# ----------------------------------------------------------------------------
def ssd_forward(plan, x):
    n, c, h, w = x.shape

    def down(s):
        return (s - 1) // 2 + 1

    sh0, sw0 = down(h), down(w)
    sh1, sw1 = down(sh0), down(sw0)
    sh2, sw2 = down(sh1), down(sw1)

    # level-0 im2col in the wrapper: pure layout plumbing (the input comes from
    # HBM anyway), removes the big gather matrix + quadratic VMEM scaling.
    xn = jnp.transpose(x, (0, 2, 3, 1))                         # NHWC
    xp = jnp.pad(xn, ((0, 0), (1, 1), (1, 1), (0, 0)))
    taps = [xp[:, kh:kh + 2 * sh0:2, kw:kw + 2 * sw0:2, :]
            for kh in range(3) for kw in range(3)]
    p0 = jnp.concatenate(taps, axis=-1).reshape(n * sh0 * sw0, 9 * c)
    p0 = jnp.pad(p0, ((0, 0), (0, LANE - 9 * c))).astype(jnp.bfloat16)

    b1p, b2p = plan['blocks']
    hd0, hd1, hd2 = plan['heads']
    args = (p0, plan['wb'], plan['bb'], plan['mask0'], hd0['w'], hd0['b'],
            b1p['w1'], b1p['g1'], b1p['b1'], b1p['w2'], b1p['g2'], b1p['b2'],
            b1p['sel'], plan['mask1'], hd1['w'], hd1['b'],
            b2p['w1'], b2p['g1'], b2p['b1'], b2p['w2'], b2p['g2'], b2p['b2'],
            b2p['sel'], plan['mask2'], hd2['w'], hd2['b'])

    kern = functools.partial(_ssd_kernel, widths=(sw0, sw1, sw2), eps=BN_EPS)
    out0, out1, out2 = _call_ssd(
        kern, args, (n * sh0 * sw0, n * sh1 * sw1, n * sh2 * sw2))

    # bbox_view: reproduce PyTorch's NCHW .view(n, 4, -1) / .view(n, NC, -1)
    per_level = [(out0, sh0, sw0), (out1, sh1, sw1), (out2, sh2, sw2)]
    locs, confs = [], []
    for (hout, sh, sw), nd in zip(per_level, NUM_DEFAULTS):
        hw = sh * sw
        lvl = hout.reshape(n, hw, LANE)
        loc = jnp.transpose(lvl[:, :, :nd * 4], (0, 2, 1))
        conf = jnp.transpose(lvl[:, :, nd * 4:nd * (4 + NUM_CLASSES)], (0, 2, 1))
        locs.append(loc.reshape(n, 4, nd * hw))
        confs.append(conf.reshape(n, NUM_CLASSES, nd * hw))
    return jnp.concatenate(locs, axis=2), jnp.concatenate(confs, axis=2)


if __name__ == "__main__":
    key = jax.random.PRNGKey(0)
    k_param, k_x = jax.random.split(key)
    params = init_params(k_param)
    x = jax.random.normal(k_x, (2, IN_CH, 16, 16), jnp.float32)  # NCHW

    plan = build_plan(params, x.shape[0], x.shape[2], x.shape[3])

    fwd = jax.jit(ssd_forward)
    locs, confs = fwd(plan, x)
    jax.block_until_ready((locs, confs))

    # feature maps: 8x8, 4x4, 2x2  -> 4*(64+16+4) = 336 anchors
    assert locs.shape == (2, 4, 336), locs.shape
    assert confs.shape == (2, NUM_CLASSES, 336), confs.shape
    assert bool(jnp.all(jnp.isfinite(locs))) and bool(jnp.all(jnp.isfinite(confs)))
    print("KERNEL_OK")
</pallas_src>

<mosaic_0001>
module attributes {stable_mosaic.version = 11 : i64} {
  func.func @_ssd_kernel(%arg0: i32, %arg1: memref<128x128xbf16, #tpu.memory_space<vmem>>, %arg2: memref<128x128xbf16, #tpu.memory_space<vmem>>, %arg3: memref<1x128xf32, #tpu.memory_space<vmem>>, %arg4: memref<9x128x1xf32, #tpu.memory_space<vmem>>, %arg5: memref<1152x128xbf16, #tpu.memory_space<vmem>>, %arg6: memref<1x128xf32, #tpu.memory_space<vmem>>, %arg7: memref<128x128xbf16, #tpu.memory_space<vmem>>, %arg8: memref<1x128xf32, #tpu.memory_space<vmem>>, %arg9: memref<1x128xf32, #tpu.memory_space<vmem>>, %arg10: memref<1152x128xbf16, #tpu.memory_space<vmem>>, %arg11: memref<1x128xf32, #tpu.memory_space<vmem>>, %arg12: memref<1x128xf32, #tpu.memory_space<vmem>>, %arg13: memref<32x128xbf16, #tpu.memory_space<vmem>>, %arg14: memref<9x32x1xf32, #tpu.memory_space<vmem>>, %arg15: memref<1152x128xbf16, #tpu.memory_space<vmem>>, %arg16: memref<1x128xf32, #tpu.memory_space<vmem>>, %arg17: memref<128x128xbf16, #tpu.memory_space<vmem>>, %arg18: memref<1x128xf32, #tpu.memory_space<vmem>>, %arg19: memref<1x128xf32, #tpu.memory_space<vmem>>, %arg20: memref<1152x128xbf16, #tpu.memory_space<vmem>>, %arg21: memref<1x128xf32, #tpu.memory_space<vmem>>, %arg22: memref<1x128xf32, #tpu.memory_space<vmem>>, %arg23: memref<8x32xbf16, #tpu.memory_space<vmem>>, %arg24: memref<9x8x1xf32, #tpu.memory_space<vmem>>, %arg25: memref<1152x128xbf16, #tpu.memory_space<vmem>>, %arg26: memref<1x128xf32, #tpu.memory_space<vmem>>, %arg27: memref<128x128xf32, #tpu.memory_space<vmem>>, %arg28: memref<32x128xf32, #tpu.memory_space<vmem>>, %arg29: memref<8x128xf32, #tpu.memory_space<vmem>>) attributes {dimension_semantics = [#tpu.dimension_semantics<arbitrary>], iteration_bounds = array<i64: 1>, scalar_prefetch = 0 : i64, scratch_operands = 0 : i64, tpu.core_type = #tpu.core_type<tc>, window_params = [{pipeline_mode = #tpu.pipeline_mode<synchronous>, transform_indices = @transform_0, window_bounds = array<i64: 128, 128>}, {pipeline_mode = #tpu.pipeline_mode<synchronous>, transform_indices = @transform_1, window_bounds = array<i64: 128, 128>}, {pipeline_mode = #tpu.pipeline_mode<synchronous>, transform_indices = @transform_2, window_bounds = array<i64: 1, 128>}, {pipeline_mode = #tpu.pipeline_mode<synchronous>, transform_indices = @transform_3, window_bounds = array<i64: 9, 128, 1>}, {pipeline_mode = #tpu.pipeline_mode<synchronous>, transform_indices = @transform_4, window_bounds = array<i64: 1152, 128>}, {pipeline_mode = #tpu.pipeline_mode<synchronous>, transform_indices = @transform_5, window_bounds = array<i64: 1, 128>}, {pipeline_mode = #tpu.pipeline_mode<synchronous>, transform_indices = @transform_6, window_bounds = array<i64: 128, 128>}, {pipeline_mode = #tpu.pipeline_mode<synchronous>, transform_indices = @transform_7, window_bounds = array<i64: 1, 128>}, {pipeline_mode = #tpu.pipeline_mode<synchronous>, transform_indices = @transform_8, window_bounds = array<i64: 1, 128>}, {pipeline_mode = #tpu.pipeline_mode<synchronous>, transform_indices = @transform_9, window_bounds = array<i64: 1152, 128>}, {pipeline_mode = #tpu.pipeline_mode<synchronous>, transform_indices = @transform_10, window_bounds = array<i64: 1, 128>}, {pipeline_mode = #tpu.pipeline_mode<synchronous>, transform_indices = @transform_11, window_bounds = array<i64: 1, 128>}, {pipeline_mode = #tpu.pipeline_mode<synchronous>, transform_indices = @transform_12, window_bounds = array<i64: 32, 128>}, {pipeline_mode = #tpu.pipeline_mode<synchronous>, transform_indices = @transform_13, window_bounds = array<i64: 9, 32, 1>}, {pipeline_mode = #tpu.pipeline_mode<synchronous>, transform_indices = @transform_14, window_bounds = array<i64: 1152, 128>}, {pipeline_mode = #tpu.pipeline_mode<synchronous>, transform_indices = @transform_15, window_bounds = array<i64: 1, 128>}, {pipeline_mode = #tpu.pipeline_mode<synchronous>, transform_indices = @transform_16, window_bounds = array<i64: 128, 128>}, {pipeline_mode = #tpu.pipeline_mode<synchronous>, transform_indices = @transform_17, window_bounds = array<i64: 1, 128>}, {pipeline_mode = #tpu.pipeline_mode<synchronous>, transform_indices = @transform_18, window_bounds = array<i64: 1, 128>}, {pipeline_mode = #tpu.pipeline_mode<synchronous>, transform_indices = @transform_19, window_bounds = array<i64: 1152, 128>}, {pipeline_mode = #tpu.pipeline_mode<synchronous>, transform_indices = @transform_20, window_bounds = array<i64: 1, 128>}, {pipeline_mode = #tpu.pipeline_mode<synchronous>, transform_indices = @transform_21, window_bounds = array<i64: 1, 128>}, {pipeline_mode = #tpu.pipeline_mode<synchronous>, transform_indices = @transform_22, window_bounds = array<i64: 8, 32>}, {pipeline_mode = #tpu.pipeline_mode<synchronous>, transform_indices = @transform_23, window_bounds = array<i64: 9, 8, 1>}, {pipeline_mode = #tpu.pipeline_mode<synchronous>, transform_indices = @transform_24, window_bounds = array<i64: 1152, 128>}, {pipeline_mode = #tpu.pipeline_mode<synchronous>, transform_indices = @transform_25, window_bounds = array<i64: 1, 128>}, {pipeline_mode = #tpu.pipeline_mode<synchronous>, transform_indices = @transform_26, window_bounds = array<i64: 128, 128>}, {pipeline_mode = #tpu.pipeline_mode<synchronous>, transform_indices = @transform_27, window_bounds = array<i64: 32, 128>}, {pipeline_mode = #tpu.pipeline_mode<synchronous>, transform_indices = @transform_28, window_bounds = array<i64: 8, 128>}]} {
    %c0 = arith.constant 0 : index
    %c0_0 = arith.constant 0 : index
    %c0_1 = arith.constant 0 : index
    %0 = vector.load %arg4[%c0, %c0_0, %c0_1] : memref<9x128x1xf32, #tpu.memory_space<vmem>>, vector<9x128x1xf32>
    %1 = arith.truncf %0 : vector<9x128x1xf32> to vector<9x128x1xbf16>
    %c0_2 = arith.constant 0 : index
    %c0_3 = arith.constant 0 : index
    %c0_4 = arith.constant 0 : index
    %2 = vector.load %arg14[%c0_2, %c0_3, %c0_4] : memref<9x32x1xf32, #tpu.memory_space<vmem>>, vector<9x32x1xf32>
    %3 = arith.truncf %2 : vector<9x32x1xf32> to vector<9x32x1xbf16>
    %c0_5 = arith.constant 0 : index
    %c0_6 = arith.constant 0 : index
    %c0_7 = arith.constant 0 : index
    %4 = vector.load %arg24[%c0_5, %c0_6, %c0_7] : memref<9x8x1xf32, #tpu.memory_space<vmem>>, vector<9x8x1xf32>
    %5 = arith.truncf %4 : vector<9x8x1xf32> to vector<9x8x1xbf16>
    %c0_8 = arith.constant 0 : index
    %c0_9 = arith.constant 0 : index
    %6 = vector.load %arg1[%c0_8, %c0_9] : memref<128x128xbf16, #tpu.memory_space<vmem>>, vector<128x128xbf16>
    %c0_10 = arith.constant 0 : index
    %c0_11 = arith.constant 0 : index
    %7 = vector.load %arg2[%c0_10, %c0_11] : memref<128x128xbf16, #tpu.memory_space<vmem>>, vector<128x128xbf16>
    %cst = arith.constant dense<0.000000e+00> : vector<128x128xf32>
    %8 = tpu.matmul %6, %7, %cst {dimension_numbers = #tpu.dot_dimension_numbers<[1], [0], [0], [1], [0, 0, 1, 1], [], []>} : vector<128x128xbf16>, vector<128x128xbf16>, vector<128x128xf32> -> vector<128x128xf32>
    %c0_12 = arith.constant 0 : index
    %c0_13 = arith.constant 0 : index
    %9 = vector.load %arg3[%c0_12, %c0_13] : memref<1x128xf32, #tpu.memory_space<vmem>>, vector<1x128xf32>
    %10 = vector.broadcast %9 : vector<1x128xf32> to vector<128x128xf32>
    %11 = arith.addf %8, %10 : vector<128x128xf32>
    %cst_14 = arith.constant 0.000000e+00 : f32
    %12 = vector.broadcast %cst_14 : f32 to vector<128x128xf32>
    %13 = arith.maximumf %11, %12 : vector<128x128xf32>
    %14 = arith.truncf %13 : vector<128x128xf32> to vector<128x128xbf16>
    %15 = vector.extract_strided_slice %14 {offsets = [119, 0], sizes = [9, 128], strides = [1, 1]} : vector<128x128xbf16> to vector<9x128xbf16>
    %16 = vector.extract_strided_slice %14 {offsets = [0, 0], sizes = [119, 128], strides = [1, 1]} : vector<128x128xbf16> to vector<119x128xbf16>
    %17 = tpu.concatenate %15, %16 in 0 : vector<9x128xbf16>, vector<119x128xbf16> -> vector<128x128xbf16>
    %18 = vector.extract_strided_slice %1 {offsets = [0, 0, 0], sizes = [1, 128, 1], strides = [1, 1, 1]} : vector<9x128x1xbf16> to vector<1x128x1xbf16>
    %19 = vector.shape_cast %18 : vector<1x128x1xbf16> to vector<128x1xbf16>
    %20 = vector.broadcast %19 : vector<128x1xbf16> to vector<128x128xbf16>
    %21 = arith.mulf %17, %20 : vector<128x128xbf16>
    %22 = vector.extract_strided_slice %14 {offsets = [120, 0], sizes = [8, 128], strides = [1, 1]} : vector<128x128xbf16> to vector<8x128xbf16>
    %23 = vector.extract_strided_slice %14 {offsets = [0, 0], sizes = [120, 128], strides = [1, 1]} : vector<128x128xbf16> to vector<120x128xbf16>
    %24 = tpu.concatenate %22, %23 in 0 : vector<8x128xbf16>, vector<120x128xbf16> -> vector<128x128xbf16>
    %25 = vector.extract_strided_slice %1 {offsets = [1, 0, 0], sizes = [1, 128, 1], strides = [1, 1, 1]} : vector<9x128x1xbf16> to vector<1x128x1xbf16>
    %26 = vector.shape_cast %25 : vector<1x128x1xbf16> to vector<128x1xbf16>
    %27 = vector.broadcast %26 : vector<128x1xbf16> to vector<128x128xbf16>
    %28 = arith.mulf %24, %27 : vector<128x128xbf16>
    %29 = vector.extract_strided_slice %14 {offsets = [121, 0], sizes = [7, 128], strides = [1, 1]} : vector<128x128xbf16> to vector<7x128xbf16>
    %30 = vector.extract_strided_slice %14 {offsets = [0, 0], sizes = [121, 128], strides = [1, 1]} : vector<128x128xbf16> to vector<121x128xbf16>
    %31 = tpu.concatenate %29, %30 in 0 : vector<7x128xbf16>, vector<121x128xbf16> -> vector<128x128xbf16>
    %32 = vector.extract_strided_slice %1 {offsets = [2, 0, 0], sizes = [1, 128, 1], strides = [1, 1, 1]} : vector<9x128x1xbf16> to vector<1x128x1xbf16>
    %33 = vector.shape_cast %32 : vector<1x128x1xbf16> to vector<128x1xbf16>
    %34 = vector.broadcast %33 : vector<128x1xbf16> to vector<128x128xbf16>
    %35 = arith.mulf %31, %34 : vector<128x128xbf16>
    %36 = vector.extract_strided_slice %14 {offsets = [127, 0], sizes = [1, 128], strides = [1, 1]} : vector<128x128xbf16> to vector<1x128xbf16>
    %37 = vector.extract_strided_slice %14 {offsets = [0, 0], sizes = [127, 128], strides = [1, 1]} : vector<128x128xbf16> to vector<127x128xbf16>
    %38 = tpu.concatenate %36, %37 in 0 : vector<1x128xbf16>, vector<127x128xbf16> -> vector<128x128xbf16>
    %39 = vector.extract_strided_slice %1 {offsets = [3, 0, 0], sizes = [1, 128, 1], strides = [1, 1, 1]} : vector<9x128x1xbf16> to vector<1x128x1xbf16>
    %40 = vector.shape_cast %39 : vector<1x128x1xbf16> to vector<128x1xbf16>
    %41 = vector.broadcast %40 : vector<128x1xbf16> to vector<128x128xbf16>
    %42 = arith.mulf %38, %41 : vector<128x128xbf16>
    %43 = vector.extract_strided_slice %14 {offsets = [1, 0], sizes = [127, 128], strides = [1, 1]} : vector<128x128xbf16> to vector<127x128xbf16>
    %44 = vector.extract_strided_slice %14 {offsets = [0, 0], sizes = [1, 128], strides = [1, 1]} : vector<128x128xbf16> to vector<1x128xbf16>
    %45 = tpu.concatenate %43, %44 in 0 : vector<127x128xbf16>, vector<1x128xbf16> -> vector<128x128xbf16>
    %46 = vector.extract_strided_slice %1 {offsets = [5, 0, 0], sizes = [1, 128, 1], strides = [1, 1, 1]} : vector<9x128x1xbf16> to vector<1x128x1xbf16>
    %47 = vector.shape_cast %46 : vector<1x128x1xbf16> to vector<128x1xbf16>
    %48 = vector.broadcast %47 : vector<128x1xbf16> to vector<128x128xbf16>
    %49 = arith.mulf %45, %48 : vector<128x128xbf16>
    %50 = vector.extract_strided_slice %14 {offsets = [7, 0], sizes = [121, 128], strides = [1, 1]} : vector<128x128xbf16> to vector<121x128xbf16>
    %51 = vector.extract_strided_slice %14 {offsets = [0, 0], sizes = [7, 128], strides = [1, 1]} : vector<128x128xbf16> to vector<7x128xbf16>
    %52 = tpu.concatenate %50, %51 in 0 : vector<121x128xbf16>, vector<7x128xbf16> -> vector<128x128xbf16>
    %53 = vector.extract_strided_slice %1 {offsets = [6, 0, 0], sizes = [1, 128, 1], strides = [1, 1, 1]} : vector<9x128x1xbf16> to vector<1x128x1xbf16>
    %54 = vector.shape_cast %53 : vector<1x128x1xbf16> to vector<128x1xbf16>
    %55 = vector.broadcast %54 : vector<128x1xbf16> to vector<128x128xbf16>
    %56 = arith.mulf %52, %55 : vector<128x128xbf16>
    %57 = vector.extract_strided_slice %14 {offsets = [8, 0], sizes = [120, 128], strides = [1, 1]} : vector<128x128xbf16> to vector<120x128xbf16>
    %58 = vector.extract_strided_slice %14 {offsets = [0, 0], sizes = [8, 128], strides = [1, 1]} : vector<128x128xbf16> to vector<8x128xbf16>
    %59 = tpu.concatenate %57, %58 in 0 : vector<120x128xbf16>, vector<8x128xbf16> -> vector<128x128xbf16>
    %60 = vector.extract_strided_slice %1 {offsets = [7, 0, 0], sizes = [1, 128, 1], strides = [1, 1, 1]} : vector<9x128x1xbf16> to vector<1x128x1xbf16>
    %61 = vector.shape_cast %60 : vector<1x128x1xbf16> to vector<128x1xbf16>
    %62 = vector.broadcast %61 : vector<128x1xbf16> to vector<128x128xbf16>
    %63 = arith.mulf %59, %62 : vector<128x128xbf16>
    %64 = vector.extract_strided_slice %14 {offsets = [9, 0], sizes = [119, 128], strides = [1, 1]} : vector<128x128xbf16> to vector<119x128xbf16>
    %65 = vector.extract_strided_slice %14 {offsets = [0, 0], sizes = [9, 128], strides = [1, 1]} : vector<128x128xbf16> to vector<9x128xbf16>
    %66 = tpu.concatenate %64, %65 in 0 : vector<119x128xbf16>, vector<9x128xbf16> -> vector<128x128xbf16>
    %67 = vector.extract_strided_slice %1 {offsets = [8, 0, 0], sizes = [1, 128, 1], strides = [1, 1, 1]} : vector<9x128x1xbf16> to vector<1x128x1xbf16>
    %68 = vector.shape_cast %67 : vector<1x128x1xbf16> to vector<128x1xbf16>
    %69 = vector.broadcast %68 : vector<128x1xbf16> to vector<128x128xbf16>
    %70 = arith.mulf %66, %69 : vector<128x128xbf16>
    %71 = tpu.concatenate %21, %28, %35, %42, %14, %49, %56, %63, %70 in 1 : vector<128x128xbf16>, vector<128x128xbf16>, vector<128x128xbf16>, vector<128x128xbf16>, vector<128x128xbf16>, vector<128x128xbf16>, vector<128x128xbf16>, vector<128x128xbf16>, vector<128x128xbf16> -> vector<128x1152xbf16>
    %c0_15 = arith.constant 0 : index
    %c0_16 = arith.constant 0 : index
    %72 = vector.load %arg5[%c0_15, %c0_16] : memref<1152x128xbf16, #tpu.memory_space<vmem>>, vector<1152x128xbf16>
    %cst_17 = arith.constant dense<0.000000e+00> : vector<128x128xf32>
    %73 = tpu.matmul %71, %72, %cst_17 {dimension_numbers = #tpu.dot_dimension_numbers<[1], [0], [0], [1], [0, 0, 1, 1], [], []>} : vector<128x1152xbf16>, vector<1152x128xbf16>, vector<128x128xf32> -> vector<128x128xf32>
    %c0_18 = arith.constant 0 : index
    %c0_19 = arith.constant 0 : index
    %74 = vector.load %arg6[%c0_18, %c0_19] : memref<1x128xf32, #tpu.memory_space<vmem>>, vector<1x128xf32>
    %75 = vector.broadcast %74 : vector<1x128xf32> to vector<128x128xf32>
    %76 = arith.addf %73, %75 : vector<128x128xf32>
    %c0_20 = arith.constant 0 : index
    %c0_21 = arith.constant 0 : index
    %77 = vector.load %arg27[%c0_20, %c0_21] : memref<128x128xf32, #tpu.memory_space<vmem>>, vector<128x128xf32>
    tpu.vector_store %arg27[%c0_20, %c0_21], %76 {strides = array<i32>} : memref<128x128xf32, #tpu.memory_space<vmem>>, vector<128x128xf32>,
    %c0_22 = arith.constant 0 : index
    %c0_23 = arith.constant 0 : index
    %78 = vector.load %arg13[%c0_22, %c0_23] : memref<32x128xbf16, #tpu.memory_space<vmem>>, vector<32x128xbf16>
    %c0_24 = arith.constant 0 : index
    %c0_25 = arith.constant 0 : index
    %79 = vector.load %arg7[%c0_24, %c0_25] : memref<128x128xbf16, #tpu.memory_space<vmem>>, vector<128x128xbf16>
    %c0_26 = arith.constant 0 : index
    %c0_27 = arith.constant 0 : index
    %80 = vector.load %arg8[%c0_26, %c0_27] : memref<1x128xf32, #tpu.memory_space<vmem>>, vector<1x128xf32>
    %c0_28 = arith.constant 0 : index
    %c0_29 = arith.constant 0 : index
    %81 = vector.load %arg9[%c0_28, %c0_29] : memref<1x128xf32, #tpu.memory_space<vmem>>, vector<1x128xf32>
    %c0_30 = arith.constant 0 : index
    %c0_31 = arith.constant 0 : index
    %82 = vector.load %arg10[%c0_30, %c0_31] : memref<1152x128xbf16, #tpu.memory_space<vmem>>, vector<1152x128xbf16>
    %c0_32 = arith.constant 0 : index
    %c0_33 = arith.constant 0 : index
    %83 = vector.load %arg11[%c0_32, %c0_33] : memref<1x128xf32, #tpu.memory_space<vmem>>, vector<1x128xf32>
    %c0_34 = arith.constant 0 : index
    %c0_35 = arith.constant 0 : index
    %84 = vector.load %arg12[%c0_34, %c0_35] : memref<1x128xf32, #tpu.memory_space<vmem>>, vector<1x128xf32>
    %cst_36 = arith.constant dense<0.000000e+00> : vector<128x128xf32>
    %85 = tpu.matmul %14, %79, %cst_36 {dimension_numbers = #tpu.dot_dimension_numbers<[1], [0], [0], [1], [0, 0, 1, 1], [], []>} : vector<128x128xbf16>, vector<128x128xbf16>, vector<128x128xf32> -> vector<128x128xf32>
    %cst_37 = arith.constant dense<0.000000e+00> : vector<128xf32>
    %86 = vector.multi_reduction <add>, %85, %cst_37 [0] : vector<128x128xf32> to vector<128xf32>
    %87 = vector.shape_cast %86 : vector<128xf32> to vector<1x128xf32>
    %cst_38 = arith.constant 7.812500e-03 : f32
    %88 = vector.broadcast %cst_38 : f32 to vector<1x128xf32>
    %89 = arith.mulf %87, %88 : vector<1x128xf32>
    %90 = arith.mulf %85, %85 : vector<128x128xf32>
    %cst_39 = arith.constant dense<0.000000e+00> : vector<128xf32>
    %91 = vector.multi_reduction <add>, %90, %cst_39 [0] : vector<128x128xf32> to vector<128xf32>
    %92 = vector.shape_cast %91 : vector<128xf32> to vector<1x128xf32>
    %cst_40 = arith.constant 7.812500e-03 : f32
    %93 = vector.broadcast %cst_40 : f32 to vector<1x128xf32>
    %94 = arith.mulf %92, %93 : vector<1x128xf32>
    %95 = arith.mulf %89, %89 : vector<1x128xf32>
    %96 = arith.subf %94, %95 : vector<1x128xf32>
    %cst_41 = arith.constant 0.000000e+00 : f32
    %97 = vector.broadcast %cst_41 : f32 to vector<1x128xf32>
    %98 = arith.maximumf %96, %97 : vector<1x128xf32>
    %99 = vector.broadcast %89 : vector<1x128xf32> to vector<128x128xf32>
    %100 = arith.subf %85, %99 : vector<128x128xf32>
    %101 = vector.broadcast %80 : vector<1x128xf32> to vector<128x128xf32>
    %102 = arith.mulf %101, %100 : vector<128x128xf32>
    %cst_42 = arith.constant 9.99999974E-6 : f32
    %103 = vector.broadcast %cst_42 : f32 to vector<1x128xf32>
    %104 = arith.addf %98, %103 : vector<1x128xf32>
    %105 = math.rsqrt %104 : vector<1x128xf32>
    %106 = vector.broadcast %105 : vector<1x128xf32> to vector<128x128xf32>
    %107 = arith.mulf %102, %106 : vector<128x128xf32>
    %108 = vector.broadcast %81 : vector<1x128xf32> to vector<128x128xf32>
    %109 = arith.addf %107, %108 : vector<128x128xf32>
    %cst_43 = arith.constant 0.000000e+00 : f32
    %110 = vector.broadcast %cst_43 : f32 to vector<128x128xf32>
    %111 = arith.maximumf %109, %110 : vector<128x128xf32>
    %112 = arith.truncf %111 : vector<128x128xf32> to vector<128x128xbf16>
    %113 = vector.extract_strided_slice %112 {offsets = [119, 0], sizes = [9, 128], strides = [1, 1]} : vector<128x128xbf16> to vector<9x128xbf16>
    %114 = vector.extract_strided_slice %112 {offsets = [0, 0], sizes = [119, 128], strides = [1, 1]} : vector<128x128xbf16> to vector<119x128xbf16>
    %115 = tpu.concatenate %113, %114 in 0 : vector<9x128xbf16>, vector<119x128xbf16> -> vector<128x128xbf16>
    %116 = vector.extract_strided_slice %1 {offsets = [0, 0, 0], sizes = [1, 128, 1], strides = [1, 1, 1]} : vector<9x128x1xbf16> to vector<1x128x1xbf16>
    %117 = vector.shape_cast %116 : vector<1x128x1xbf16> to vector<128x1xbf16>
    %118 = vector.broadcast %117 : vector<128x1xbf16> to vector<128x128xbf16>
    %119 = arith.mulf %115, %118 : vector<128x128xbf16>
    %120 = vector.extract_strided_slice %112 {offsets = [120, 0], sizes = [8, 128], strides = [1, 1]} : vector<128x128xbf16> to vector<8x128xbf16>
    %121 = vector.extract_strided_slice %112 {offsets = [0, 0], sizes = [120, 128], strides = [1, 1]} : vector<128x128xbf16> to vector<120x128xbf16>
    %122 = tpu.concatenate %120, %121 in 0 : vector<8x128xbf16>, vector<120x128xbf16> -> vector<128x128xbf16>
    %123 = vector.extract_strided_slice %1 {offsets = [1, 0, 0], sizes = [1, 128, 1], strides = [1, 1, 1]} : vector<9x128x1xbf16> to vector<1x128x1xbf16>
    %124 = vector.shape_cast %123 : vector<1x128x1xbf16> to vector<128x1xbf16>
    %125 = vector.broadcast %124 : vector<128x1xbf16> to vector<128x128xbf16>
    %126 = arith.mulf %122, %125 : vector<128x128xbf16>
    %127 = vector.extract_strided_slice %112 {offsets = [121, 0], sizes = [7, 128], strides = [1, 1]} : vector<128x128xbf16> to vector<7x128xbf16>
    %128 = vector.extract_strided_slice %112 {offsets = [0, 0], sizes = [121, 128], strides = [1, 1]} : vector<128x128xbf16> to vector<121x128xbf16>
    %129 = tpu.concatenate %127, %128 in 0 : vector<7x128xbf16>, vector<121x128xbf16> -> vector<128x128xbf16>
    %130 = vector.extract_strided_slice %1 {offsets = [2, 0, 0], sizes = [1, 128, 1], strides = [1, 1, 1]} : vector<9x128x1xbf16> to vector<1x128x1xbf16>
    %131 = vector.shape_cast %130 : vector<1x128x1xbf16> to vector<128x1xbf16>
    %132 = vector.broadcast %131 : vector<128x1xbf16> to vector<128x128xbf16>
    %133 = arith.mulf %129, %132 : vector<128x128xbf16>
    %134 = vector.extract_strided_slice %112 {offsets = [127, 0], sizes = [1, 128], strides = [1, 1]} : vector<128x128xbf16> to vector<1x128xbf16>
    %135 = vector.extract_strided_slice %112 {offsets = [0, 0], sizes = [127, 128], strides = [1, 1]} : vector<128x128xbf16> to vector<127x128xbf16>
    %136 = tpu.concatenate %134, %135 in 0 : vector<1x128xbf16>, vector<127x128xbf16> -> vector<128x128xbf16>
    %137 = vector.extract_strided_slice %1 {offsets = [3, 0, 0], sizes = [1, 128, 1], strides = [1, 1, 1]} : vector<9x128x1xbf16> to vector<1x128x1xbf16>
    %138 = vector.shape_cast %137 : vector<1x128x1xbf16> to vector<128x1xbf16>
    %139 = vector.broadcast %138 : vector<128x1xbf16> to vector<128x128xbf16>
    %140 = arith.mulf %136, %139 : vector<128x128xbf16>
    %141 = vector.extract_strided_slice %112 {offsets = [1, 0], sizes = [127, 128], strides = [1, 1]} : vector<128x128xbf16> to vector<127x128xbf16>
    %142 = vector.extract_strided_slice %112 {offsets = [0, 0], sizes = [1, 128], strides = [1, 1]} : vector<128x128xbf16> to vector<1x128xbf16>
    %143 = tpu.concatenate %141, %142 in 0 : vector<127x128xbf16>, vector<1x128xbf16> -> vector<128x128xbf16>
    %144 = vector.extract_strided_slice %1 {offsets = [5, 0, 0], sizes = [1, 128, 1], strides = [1, 1, 1]} : vector<9x128x1xbf16> to vector<1x128x1xbf16>
    %145 = vector.shape_cast %144 : vector<1x128x1xbf16> to vector<128x1xbf16>
    %146 = vector.broadcast %145 : vector<128x1xbf16> to vector<128x128xbf16>
    %147 = arith.mulf %143, %146 : vector<128x128xbf16>
    %148 = vector.extract_strided_slice %112 {offsets = [7, 0], sizes = [121, 128], strides = [1, 1]} : vector<128x128xbf16> to vector<121x128xbf16>
    %149 = vector.extract_strided_slice %112 {offsets = [0, 0], sizes = [7, 128], strides = [1, 1]} : vector<128x128xbf16> to vector<7x128xbf16>
    %150 = tpu.concatenate %148, %149 in 0 : vector<121x128xbf16>, vector<7x128xbf16> -> vector<128x128xbf16>
    %151 = vector.extract_strided_slice %1 {offsets = [6, 0, 0], sizes = [1, 128, 1], strides = [1, 1, 1]} : vector<9x128x1xbf16> to vector<1x128x1xbf16>
    %152 = vector.shape_cast %151 : vector<1x128x1xbf16> to vector<128x1xbf16>
    %153 = vector.broadcast %152 : vector<128x1xbf16> to vector<128x128xbf16>
    %154 = arith.mulf %150, %153 : vector<128x128xbf16>
    %155 = vector.extract_strided_slice %112 {offsets = [8, 0], sizes = [120, 128], strides = [1, 1]} : vector<128x128xbf16> to vector<120x128xbf16>
    %156 = vector.extract_strided_slice %112 {offsets = [0, 0], sizes = [8, 128], strides = [1, 1]} : vector<128x128xbf16> to vector<8x128xbf16>
    %157 = tpu.concatenate %155, %156 in 0 : vector<120x128xbf16>, vector<8x128xbf16> -> vector<128x128xbf16>
    %158 = vector.extract_strided_slice %1 {offsets = [7, 0, 0], sizes = [1, 128, 1], strides = [1, 1, 1]} : vector<9x128x1xbf16> to vector<1x128x1xbf16>
    %159 = vector.shape_cast %158 : vector<1x128x1xbf16> to vector<128x1xbf16>
    %160 = vector.broadcast %159 : vector<128x1xbf16> to vector<128x128xbf16>
    %161 = arith.mulf %157, %160 : vector<128x128xbf16>
    %162 = vector.extract_strided_slice %112 {offsets = [9, 0], sizes = [119, 128], strides = [1, 1]} : vector<128x128xbf16> to vector<119x128xbf16>
    %163 = vector.extract_strided_slice %112 {offsets = [0, 0], sizes = [9, 128], strides = [1, 1]} : vector<128x128xbf16> to vector<9x128xbf16>
    %164 = tpu.concatenate %162, %163 in 0 : vector<119x128xbf16>, vector<9x128xbf16> -> vector<128x128xbf16>
    %165 = vector.extract_strided_slice %1 {offsets = [8, 0, 0], sizes = [1, 128, 1], strides = [1, 1, 1]} : vector<9x128x1xbf16> to vector<1x128x1xbf16>
    %166 = vector.shape_cast %165 : vector<1x128x1xbf16> to vector<128x1xbf16>
    %167 = vector.broadcast %166 : vector<128x1xbf16> to vector<128x128xbf16>
    %168 = arith.mulf %164, %167 : vector<128x128xbf16>
    %169 = tpu.concatenate %119, %126, %133, %140, %112, %147, %154, %161, %168 in 1 : vector<128x128xbf16>, vector<128x128xbf16>, vector<128x128xbf16>, vector<128x128xbf16>, vector<128x128xbf16>, vector<128x128xbf16>, vector<128x128xbf16>, vector<128x128xbf16>, vector<128x128xbf16> -> vector<128x1152xbf16>
    %cst_44 = arith.constant dense<0.000000e+00> : vector<32x1152xf32>
    %170 = tpu.matmul %78, %169, %cst_44 {dimension_numbers = #tpu.dot_dimension_numbers<[1], [0], [0], [1], [0, 0, 1, 1], [], []>} : vector<32x128xbf16>, vector<128x1152xbf16>, vector<32x1152xf32> -> vector<32x1152xf32>
    %171 = arith.truncf %170 : vector<32x1152xf32> to vector<32x1152xbf16>
    %cst_45 = arith.constant dense<0.000000e+00> : vector<32x128xf32>
    %172 = tpu.matmul %171, %82, %cst_45 {dimension_numbers = #tpu.dot_dimension_numbers<[1], [0], [0], [1], [0, 0, 1, 1], [], []>} : vector<32x1152xbf16>, vector<1152x128xbf16>, vector<32x128xf32> -> vector<32x128xf32>
    %cst_46 = arith.constant dense<0.000000e+00> : vector<128xf32>
    %173 = vector.multi_reduction <add>, %172, %cst_46 [0] : vector<32x128xf32> to vector<128xf32>
    %174 = vector.shape_cast %173 : vector<128xf32> to vector<1x128xf32>
    %cst_47 = arith.constant 3.125000e-02 : f32
    %175 = vector.broadcast %cst_47 : f32 to vector<1x128xf32>
    %176 = arith.mulf %174, %175 : vector<1x128xf32>
    %177 = arith.mulf %172, %172 : vector<32x128xf32>
    %cst_48 = arith.constant dense<0.000000e+00> : vector<128xf32>
    %178 = vector.multi_reduction <add>, %177, %cst_48 [0] : vector<32x128xf32> to vector<128xf32>
    %179 = vector.shape_cast %178 : vector<128xf32> to vector<1x128xf32>
    %cst_49 = arith.constant 3.125000e-02 : f32
    %180 = vector.broadcast %cst_49 : f32 to vector<1x128xf32>
    %181 = arith.mulf %179, %180 : vector<1x128xf32>
    %182 = arith.mulf %176, %176 : vector<1x128xf32>
    %183 = arith.subf %181, %182 : vector<1x128xf32>
    %cst_50 = arith.constant 0.000000e+00 : f32
    %184 = vector.broadcast %cst_50 : f32 to vector<1x128xf32>
    %185 = arith.maximumf %183, %184 : vector<1x128xf32>
    %186 = vector.broadcast %176 : vector<1x128xf32> to vector<32x128xf32>
    %187 = arith.subf %172, %186 : vector<32x128xf32>
    %188 = vector.broadcast %83 : vector<1x128xf32> to vector<32x128xf32>
    %189 = arith.mulf %188, %187 : vector<32x128xf32>
    %cst_51 = arith.constant 9.99999974E-6 : f32
    %190 = vector.broadcast %cst_51 : f32 to vector<1x128xf32>
    %191 = arith.addf %185, %190 : vector<1x128xf32>
    %192 = math.rsqrt %191 : vector<1x128xf32>
    %193 = vector.broadcast %192 : vector<1x128xf32> to vector<32x128xf32>
    %194 = arith.mulf %189, %193 : vector<32x128xf32>
    %195 = vector.broadcast %84 : vector<1x128xf32> to vector<32x128xf32>
    %196 = arith.addf %194, %195 : vector<32x128xf32>
    %cst_52 = arith.constant 0.000000e+00 : f32
    %197 = vector.broadcast %cst_52 : f32 to vector<32x128xf32>
    %198 = arith.maximumf %196, %197 : vector<32x128xf32>
    %199 = arith.truncf %198 : vector<32x128xf32> to vector<32x128xbf16>
    %200 = vector.extract_strided_slice %199 {offsets = [27, 0], sizes = [5, 128], strides = [1, 1]} : vector<32x128xbf16> to vector<5x128xbf16>
    %201 = vector.extract_strided_slice %199 {offsets = [0, 0], sizes = [27, 128], strides = [1, 1]} : vector<32x128xbf16> to vector<27x128xbf16>
    %202 = tpu.concatenate %200, %201 in 0 : vector<5x128xbf16>, vector<27x128xbf16> -> vector<32x128xbf16>
    %203 = vector.extract_strided_slice %3 {offsets = [0, 0, 0], sizes = [1, 32, 1], strides = [1, 1, 1]} : vector<9x32x1xbf16> to vector<1x32x1xbf16>
    %204 = vector.shape_cast %203 : vector<1x32x1xbf16> to vector<32x1xbf16>
    %205 = vector.broadcast %204 : vector<32x1xbf16> to vector<32x128xbf16>
    %206 = arith.mulf %202, %205 : vector<32x128xbf16>
    %207 = vector.extract_strided_slice %199 {offsets = [28, 0], sizes = [4, 128], strides = [1, 1]} : vector<32x128xbf16> to vector<4x128xbf16>
    %208 = vector.extract_strided_slice %199 {offsets = [0, 0], sizes = [28, 128], strides = [1, 1]} : vector<32x128xbf16> to vector<28x128xbf16>
    %209 = tpu.concatenate %207, %208 in 0 : vector<4x128xbf16>, vector<28x128xbf16> -> vector<32x128xbf16>
    %210 = vector.extract_strided_slice %3 {offsets = [1, 0, 0], sizes = [1, 32, 1], strides = [1, 1, 1]} : vector<9x32x1xbf16> to vector<1x32x1xbf16>
    %211 = vector.shape_cast %210 : vector<1x32x1xbf16> to vector<32x1xbf16>
    %212 = vector.broadcast %211 : vector<32x1xbf16> to vector<32x128xbf16>
    %213 = arith.mulf %209, %212 : vector<32x128xbf16>
    %214 = vector.extract_strided_slice %199 {offsets = [29, 0], sizes = [3, 128], strides = [1, 1]} : vector<32x128xbf16> to vector<3x128xbf16>
    %215 = vector.extract_strided_slice %199 {offsets = [0, 0], sizes = [29, 128], strides = [1, 1]} : vector<32x128xbf16> to vector<29x128xbf16>
    %216 = tpu.concatenate %214, %215 in 0 : vector<3x128xbf16>, vector<29x128xbf16> -> vector<32x128xbf16>
    %217 = vector.extract_strided_slice %3 {offsets = [2, 0, 0], sizes = [1, 32, 1], strides = [1, 1, 1]} : vector<9x32x1xbf16> to vector<1x32x1xbf16>
    %218 = vector.shape_cast %217 : vector<1x32x1xbf16> to vector<32x1xbf16>
    %219 = vector.broadcast %218 : vector<32x1xbf16> to vector<32x128xbf16>
    %220 = arith.mulf %216, %219 : vector<32x128xbf16>
    %221 = vector.extract_strided_slice %199 {offsets = [31, 0], sizes = [1, 128], strides = [1, 1]} : vector<32x128xbf16> to vector<1x128xbf16>
    %222 = vector.extract_strided_slice %199 {offsets = [0, 0], sizes = [31, 128], strides = [1, 1]} : vector<32x128xbf16> to vector<31x128xbf16>
    %223 = tpu.concatenate %221, %222 in 0 : vector<1x128xbf16>, vector<31x128xbf16> -> vector<32x128xbf16>
    %224 = vector.extract_strided_slice %3 {offsets = [3, 0, 0], sizes = [1, 32, 1], strides = [1, 1, 1]} : vector<9x32x1xbf16> to vector<1x32x1xbf16>
    %225 = vector.shape_cast %224 : vector<1x32x1xbf16> to vector<32x1xbf16>
    %226 = vector.broadcast %225 : vector<32x1xbf16> to vector<32x128xbf16>
    %227 = arith.mulf %223, %226 : vector<32x128xbf16>
    %228 = vector.extract_strided_slice %199 {offsets = [1, 0], sizes = [31, 128], strides = [1, 1]} : vector<32x128xbf16> to vector<31x128xbf16>
    %229 = vector.extract_strided_slice %199 {offsets = [0, 0], sizes = [1, 128], strides = [1, 1]} : vector<32x128xbf16> to vector<1x128xbf16>
    %230 = tpu.concatenate %228, %229 in 0 : vector<31x128xbf16>, vector<1x128xbf16> -> vector<32x128xbf16>
    %231 = vector.extract_strided_slice %3 {offsets = [5, 0, 0], sizes = [1, 32, 1], strides = [1, 1, 1]} : vector<9x32x1xbf16> to vector<1x32x1xbf16>
    %232 = vector.shape_cast %231 : vector<1x32x1xbf16> to vector<32x1xbf16>
    %233 = vector.broadcast %232 : vector<32x1xbf16> to vector<32x128xbf16>
    %234 = arith.mulf %230, %233 : vector<32x128xbf16>
    %235 = vector.extract_strided_slice %199 {offsets = [3, 0], sizes = [29, 128], strides = [1, 1]} : vector<32x128xbf16> to vector<29x128xbf16>
    %236 = vector.extract_strided_slice %199 {offsets = [0, 0], sizes = [3, 128], strides = [1, 1]} : vector<32x128xbf16> to vector<3x128xbf16>
    %237 = tpu.concatenate %235, %236 in 0 : vector<29x128xbf16>, vector<3x128xbf16> -> vector<32x128xbf16>
    %238 = vector.extract_strided_slice %3 {offsets = [6, 0, 0], sizes = [1, 32, 1], strides = [1, 1, 1]} : vector<9x32x1xbf16> to vector<1x32x1xbf16>
    %239 = vector.shape_cast %238 : vector<1x32x1xbf16> to vector<32x1xbf16>
    %240 = vector.broadcast %239 : vector<32x1xbf16> to vector<32x128xbf16>
    %241 = arith.mulf %237, %240 : vector<32x128xbf16>
    %242 = vector.extract_strided_slice %199 {offsets = [4, 0], sizes = [28, 128], strides = [1, 1]} : vector<32x128xbf16> to vector<28x128xbf16>
    %243 = vector.extract_strided_slice %199 {offsets = [0, 0], sizes = [4, 128], strides = [1, 1]} : vector<32x128xbf16> to vector<4x128xbf16>
    %244 = tpu.concatenate %242, %243 in 0 : vector<28x128xbf16>, vector<4x128xbf16> -> vector<32x128xbf16>
    %245 = vector.extract_strided_slice %3 {offsets = [7, 0, 0], sizes = [1, 32, 1], strides = [1, 1, 1]} : vector<9x32x1xbf16> to vector<1x32x1xbf16>
    %246 = vector.shape_cast %245 : vector<1x32x1xbf16> to vector<32x1xbf16>
    %247 = vector.broadcast %246 : vector<32x1xbf16> to vector<32x128xbf16>
    %248 = arith.mulf %244, %247 : vector<32x128xbf16>
    %249 = vector.extract_strided_slice %199 {offsets = [5, 0], sizes = [27, 128], strides = [1, 1]} : vector<32x128xbf16> to vector<27x128xbf16>
    %250 = vector.extract_strided_slice %199 {offsets = [0, 0], sizes = [5, 128], strides = [1, 1]} : vector<32x128xbf16> to vector<5x128xbf16>
    %251 = tpu.concatenate %249, %250 in 0 : vector<27x128xbf16>, vector<5x128xbf16> -> vector<32x128xbf16>
    %252 = vector.extract_strided_slice %3 {offsets = [8, 0, 0], sizes = [1, 32, 1], strides = [1, 1, 1]} : vector<9x32x1xbf16> to vector<1x32x1xbf16>
    %253 = vector.shape_cast %252 : vector<1x32x1xbf16> to vector<32x1xbf16>
    %254 = vector.broadcast %253 : vector<32x1xbf16> to vector<32x128xbf16>
    %255 = arith.mulf %251, %254 : vector<32x128xbf16>
    %256 = tpu.concatenate %206, %213, %220, %227, %199, %234, %241, %248, %255 in 1 : vector<32x128xbf16>, vector<32x128xbf16>, vector<32x128xbf16>, vector<32x128xbf16>, vector<32x128xbf16>, vector<32x128xbf16>, vector<32x128xbf16>, vector<32x128xbf16>, vector<32x128xbf16> -> vector<32x1152xbf16>
    %c0_53 = arith.constant 0 : index
    %c0_54 = arith.constant 0 : index
    %257 = vector.load %arg15[%c0_53, %c0_54] : memref<1152x128xbf16, #tpu.memory_space<vmem>>, vector<1152x128xbf16>
    %cst_55 = arith.constant dense<0.000000e+00> : vector<32x128xf32>
    %258 = tpu.matmul %256, %257, %cst_55 {dimension_numbers = #tpu.dot_dimension_numbers<[1], [0], [0], [1], [0, 0, 1, 1], [], []>} : vector<32x1152xbf16>, vector<1152x128xbf16>, vector<32x128xf32> -> vector<32x128xf32>
    %c0_56 = arith.constant 0 : index
    %c0_57 = arith.constant 0 : index
    %259 = vector.load %arg16[%c0_56, %c0_57] : memref<1x128xf32, #tpu.memory_space<vmem>>, vector<1x128xf32>
    %260 = vector.broadcast %259 : vector<1x128xf32> to vector<32x128xf32>
    %261 = arith.addf %258, %260 : vector<32x128xf32>
    %c0_58 = arith.constant 0 : index
    %c0_59 = arith.constant 0 : index
    %262 = vector.load %arg28[%c0_58, %c0_59] : memref<32x128xf32, #tpu.memory_space<vmem>>, vector<32x128xf32>
    tpu.vector_store %arg28[%c0_58, %c0_59], %261 {strides = array<i32>} : memref<32x128xf32, #tpu.memory_space<vmem>>, vector<32x128xf32>,
    %c0_60 = arith.constant 0 : index
    %c0_61 = arith.constant 0 : index
    %263 = vector.load %arg23[%c0_60, %c0_61] : memref<8x32xbf16, #tpu.memory_space<vmem>>, vector<8x32xbf16>
    %c0_62 = arith.constant 0 : index
    %c0_63 = arith.constant 0 : index
    %264 = vector.load %arg17[%c0_62, %c0_63] : memref<128x128xbf16, #tpu.memory_space<vmem>>, vector<128x128xbf16>
    %c0_64 = arith.constant 0 : index
    %c0_65 = arith.constant 0 : index
    %265 = vector.load %arg18[%c0_64, %c0_65] : memref<1x128xf32, #tpu.memory_space<vmem>>, vector<1x128xf32>
    %c0_66 = arith.constant 0 : index
    %c0_67 = arith.constant 0 : index
    %266 = vector.load %arg19[%c0_66, %c0_67] : memref<1x128xf32, #tpu.memory_space<vmem>>, vector<1x128xf32>
    %c0_68 = arith.constant 0 : index
    %c0_69 = arith.constant 0 : index
    %267 = vector.load %arg20[%c0_68, %c0_69] : memref<1152x128xbf16, #tpu.memory_space<vmem>>, vector<1152x128xbf16>
    %c0_70 = arith.constant 0 : index
    %c0_71 = arith.constant 0 : index
    %268 = vector.load %arg21[%c0_70, %c0_71] : memref<1x128xf32, #tpu.memory_space<vmem>>, vector<1x128xf32>
    %c0_72 = arith.constant 0 : index
    %c0_73 = arith.constant 0 : index
    %269 = vector.load %arg22[%c0_72, %c0_73] : memref<1x128xf32, #tpu.memory_space<vmem>>, vector<1x128xf32>
    %cst_74 = arith.constant dense<0.000000e+00> : vector<32x128xf32>
    %270 = tpu.matmul %199, %264, %cst_74 {dimension_numbers = #tpu.dot_dimension_numbers<[1], [0], [0], [1], [0, 0, 1, 1], [], []>} : vector<32x128xbf16>, vector<128x128xbf16>, vector<32x128xf32> -> vector<32x128xf32>
    %cst_75 = arith.constant dense<0.000000e+00> : vector<128xf32>
    %271 = vector.multi_reduction <add>, %270, %cst_75 [0] : vector<32x128xf32> to vector<128xf32>
    %272 = vector.shape_cast %271 : vector<128xf32> to vector<1x128xf32>
    %cst_76 = arith.constant 3.125000e-02 : f32
    %273 = vector.broadcast %cst_76 : f32 to vector<1x128xf32>
    %274 = arith.mulf %272, %273 : vector<1x128xf32>
    %275 = arith.mulf %270, %270 : vector<32x128xf32>
    %cst_77 = arith.constant dense<0.000000e+00> : vector<128xf32>
    %276 = vector.multi_reduction <add>, %275, %cst_77 [0] : vector<32x128xf32> to vector<128xf32>
    %277 = vector.shape_cast %276 : vector<128xf32> to vector<1x128xf32>
    %cst_78 = arith.constant 3.125000e-02 : f32
    %278 = vector.broadcast %cst_78 : f32 to vector<1x128xf32>
    %279 = arith.mulf %277, %278 : vector<1x128xf32>
    %280 = arith.mulf %274, %274 : vector<1x128xf32>
    %281 = arith.subf %279, %280 : vector<1x128xf32>
    %cst_79 = arith.constant 0.000000e+00 : f32
    %282 = vector.broadcast %cst_79 : f32 to vector<1x128xf32>
    %283 = arith.maximumf %281, %282 : vector<1x128xf32>
    %284 = vector.broadcast %274 : vector<1x128xf32> to vector<32x128xf32>
    %285 = arith.subf %270, %284 : vector<32x128xf32>
    %286 = vector.broadcast %265 : vector<1x128xf32> to vector<32x128xf32>
    %287 = arith.mulf %286, %285 : vector<32x128xf32>
    %cst_80 = arith.constant 9.99999974E-6 : f32
    %288 = vector.broadcast %cst_80 : f32 to vector<1x128xf32>
    %289 = arith.addf %283, %288 : vector<1x128xf32>
    %290 = math.rsqrt %289 : vector<1x128xf32>
    %291 = vector.broadcast %290 : vector<1x128xf32> to vector<32x128xf32>
    %292 = arith.mulf %287, %291 : vector<32x128xf32>
    %293 = vector.broadcast %266 : vector<1x128xf32> to vector<32x128xf32>
    %294 = arith.addf %292, %293 : vector<32x128xf32>
    %cst_81 = arith.constant 0.000000e+00 : f32
    %295 = vector.broadcast %cst_81 : f32 to vector<32x128xf32>
    %296 = arith.maximumf %294, %295 : vector<32x128xf32>
    %297 = arith.truncf %296 : vector<32x128xf32> to vector<32x128xbf16>
    %298 = vector.extract_strided_slice %297 {offsets = [27, 0], sizes = [5, 128], strides = [1, 1]} : vector<32x128xbf16> to vector<5x128xbf16>
    %299 = vector.extract_strided_slice %297 {offsets = [0, 0], sizes = [27, 128], strides = [1, 1]} : vector<32x128xbf16> to vector<27x128xbf16>
    %300 = tpu.concatenate %298, %299 in 0 : vector<5x128xbf16>, vector<27x128xbf16> -> vector<32x128xbf16>
    %301 = vector.extract_strided_slice %3 {offsets = [0, 0, 0], sizes = [1, 32, 1], strides = [1, 1, 1]} : vector<9x32x1xbf16> to vector<1x32x1xbf16>
    %302 = vector.shape_cast %301 : vector<1x32x1xbf16> to vector<32x1xbf16>
    %303 = vector.broadcast %302 : vector<32x1xbf16> to vector<32x128xbf16>
    %304 = arith.mulf %300, %303 : vector<32x128xbf16>
    %305 = vector.extract_strided_slice %297 {offsets = [28, 0], sizes = [4, 128], strides = [1, 1]} : vector<32x128xbf16> to vector<4x128xbf16>
    %306 = vector.extract_strided_slice %297 {offsets = [0, 0], sizes = [28, 128], strides = [1, 1]} : vector<32x128xbf16> to vector<28x128xbf16>
    %307 = tpu.concatenate %305, %306 in 0 : vector<4x128xbf16>, vector<28x128xbf16> -> vector<32x128xbf16>
    %308 = vector.extract_strided_slice %3 {offsets = [1, 0, 0], sizes = [1, 32, 1], strides = [1, 1, 1]} : vector<9x32x1xbf16> to vector<1x32x1xbf16>
    %309 = vector.shape_cast %308 : vector<1x32x1xbf16> to vector<32x1xbf16>
    %310 = vector.broadcast %309 : vector<32x1xbf16> to vector<32x128xbf16>
    %311 = arith.mulf %307, %310 : vector<32x128xbf16>
    %312 = vector.extract_strided_slice %297 {offsets = [29, 0], sizes = [3, 128], strides = [1, 1]} : vector<32x128xbf16> to vector<3x128xbf16>
    %313 = vector.extract_strided_slice %297 {offsets = [0, 0], sizes = [29, 128], strides = [1, 1]} : vector<32x128xbf16> to vector<29x128xbf16>
    %314 = tpu.concatenate %312, %313 in 0 : vector<3x128xbf16>, vector<29x128xbf16> -> vector<32x128xbf16>
    %315 = vector.extract_strided_slice %3 {offsets = [2, 0, 0], sizes = [1, 32, 1], strides = [1, 1, 1]} : vector<9x32x1xbf16> to vector<1x32x1xbf16>
    %316 = vector.shape_cast %315 : vector<1x32x1xbf16> to vector<32x1xbf16>
    %317 = vector.broadcast %316 : vector<32x1xbf16> to vector<32x128xbf16>
    %318 = arith.mulf %314, %317 : vector<32x128xbf16>
    %319 = vector.extract_strided_slice %297 {offsets = [31, 0], sizes = [1, 128], strides = [1, 1]} : vector<32x128xbf16> to vector<1x128xbf16>
    %320 = vector.extract_strided_slice %297 {offsets = [0, 0], sizes = [31, 128], strides = [1, 1]} : vector<32x128xbf16> to vector<31x128xbf16>
    %321 = tpu.concatenate %319, %320 in 0 : vector<1x128xbf16>, vector<31x128xbf16> -> vector<32x128xbf16>
    %322 = vector.extract_strided_slice %3 {offsets = [3, 0, 0], sizes = [1, 32, 1], strides = [1, 1, 1]} : vector<9x32x1xbf16> to vector<1x32x1xbf16>
    %323 = vector.shape_cast %322 : vector<1x32x1xbf16> to vector<32x1xbf16>
    %324 = vector.broadcast %323 : vector<32x1xbf16> to vector<32x128xbf16>
    %325 = arith.mulf %321, %324 : vector<32x128xbf16>
    %326 = vector.extract_strided_slice %297 {offsets = [1, 0], sizes = [31, 128], strides = [1, 1]} : vector<32x128xbf16> to vector<31x128xbf16>
    %327 = vector.extract_strided_slice %297 {offsets = [0, 0], sizes = [1, 128], strides = [1, 1]} : vector<32x128xbf16> to vector<1x128xbf16>
    %328 = tpu.concatenate %326, %327 in 0 : vector<31x128xbf16>, vector<1x128xbf16> -> vector<32x128xbf16>
    %329 = vector.extract_strided_slice %3 {offsets = [5, 0, 0], sizes = [1, 32, 1], strides = [1, 1, 1]} : vector<9x32x1xbf16> to vector<1x32x1xbf16>
    %330 = vector.shape_cast %329 : vector<1x32x1xbf16> to vector<32x1xbf16>
    %331 = vector.broadcast %330 : vector<32x1xbf16> to vector<32x128xbf16>
    %332 = arith.mulf %328, %331 : vector<32x128xbf16>
    %333 = vector.extract_strided_slice %297 {offsets = [3, 0], sizes = [29, 128], strides = [1, 1]} : vector<32x128xbf16> to vector<29x128xbf16>
    %334 = vector.extract_strided_slice %297 {offsets = [0, 0], sizes = [3, 128], strides = [1, 1]} : vector<32x128xbf16> to vector<3x128xbf16>
    %335 = tpu.concatenate %333, %334 in 0 : vector<29x128xbf16>, vector<3x128xbf16> -> vector<32x128xbf16>
    %336 = vector.extract_strided_slice %3 {offsets = [6, 0, 0], sizes = [1, 32, 1], strides = [1, 1, 1]} : vector<9x32x1xbf16> to vector<1x32x1xbf16>
    %337 = vector.shape_cast %336 : vector<1x32x1xbf16> to vector<32x1xbf16>
    %338 = vector.broadcast %337 : vector<32x1xbf16> to vector<32x128xbf16>
    %339 = arith.mulf %335, %338 : vector<32x128xbf16>
    %340 = vector.extract_strided_slice %297 {offsets = [4, 0], sizes = [28, 128], strides = [1, 1]} : vector<32x128xbf16> to vector<28x128xbf16>
    %341 = vector.extract_strided_slice %297 {offsets = [0, 0], sizes = [4, 128], strides = [1, 1]} : vector<32x128xbf16> to vector<4x128xbf16>
    %342 = tpu.concatenate %340, %341 in 0 : vector<28x128xbf16>, vector<4x128xbf16> -> vector<32x128xbf16>
    %343 = vector.extract_strided_slice %3 {offsets = [7, 0, 0], sizes = [1, 32, 1], strides = [1, 1, 1]} : vector<9x32x1xbf16> to vector<1x32x1xbf16>
    %344 = vector.shape_cast %343 : vector<1x32x1xbf16> to vector<32x1xbf16>
    %345 = vector.broadcast %344 : vector<32x1xbf16> to vector<32x128xbf16>
    %346 = arith.mulf %342, %345 : vector<32x128xbf16>
    %347 = vector.extract_strided_slice %297 {offsets = [5, 0], sizes = [27, 128], strides = [1, 1]} : vector<32x128xbf16> to vector<27x128xbf16>
    %348 = vector.extract_strided_slice %297 {offsets = [0, 0], sizes = [5, 128], strides = [1, 1]} : vector<32x128xbf16> to vector<5x128xbf16>
    %349 = tpu.concatenate %347, %348 in 0 : vector<27x128xbf16>, vector<5x128xbf16> -> vector<32x128xbf16>
    %350 = vector.extract_strided_slice %3 {offsets = [8, 0, 0], sizes = [1, 32, 1], strides = [1, 1, 1]} : vector<9x32x1xbf16> to vector<1x32x1xbf16>
    %351 = vector.shape_cast %350 : vector<1x32x1xbf16> to vector<32x1xbf16>
    %352 = vector.broadcast %351 : vector<32x1xbf16> to vector<32x128xbf16>
    %353 = arith.mulf %349, %352 : vector<32x128xbf16>
    %354 = tpu.concatenate %304, %311, %318, %325, %297, %332, %339, %346, %353 in 1 : vector<32x128xbf16>, vector<32x128xbf16>, vector<32x128xbf16>, vector<32x128xbf16>, vector<32x128xbf16>, vector<32x128xbf16>, vector<32x128xbf16>, vector<32x128xbf16>, vector<32x128xbf16> -> vector<32x1152xbf16>
    %cst_82 = arith.constant dense<0.000000e+00> : vector<8x1152xf32>
    %355 = tpu.matmul %263, %354, %cst_82 {dimension_numbers = #tpu.dot_dimension_numbers<[1], [0], [0], [1], [0, 0, 1, 1], [], []>} : vector<8x32xbf16>, vector<32x1152xbf16>, vector<8x1152xf32> -> vector<8x1152xf32>
    %356 = arith.truncf %355 : vector<8x1152xf32> to vector<8x1152xbf16>
    %cst_83 = arith.constant dense<0.000000e+00> : vector<8x128xf32>
    %357 = tpu.matmul %356, %267, %cst_83 {dimension_numbers = #tpu.dot_dimension_numbers<[1], [0], [0], [1], [0, 0, 1, 1], [], []>} : vector<8x1152xbf16>, vector<1152x128xbf16>, vector<8x128xf32> -> vector<8x128xf32>
    %cst_84 = arith.constant dense<0.000000e+00> : vector<128xf32>
    %358 = vector.multi_reduction <add>, %357, %cst_84 [0] : vector<8x128xf32> to vector<128xf32>
    %359 = vector.shape_cast %358 : vector<128xf32> to vector<1x128xf32>
    %cst_85 = arith.constant 1.250000e-01 : f32
    %360 = vector.broadcast %cst_85 : f32 to vector<1x128xf32>
    %361 = arith.mulf %359, %360 : vector<1x128xf32>
    %362 = arith.mulf %357, %357 : vector<8x128xf32>
    %cst_86 = arith.constant dense<0.000000e+00> : vector<128xf32>
    %363 = vector.multi_reduction <add>, %362, %cst_86 [0] : vector<8x128xf32> to vector<128xf32>
    %364 = vector.shape_cast %363 : vector<128xf32> to vector<1x128xf32>
    %cst_87 = arith.constant 1.250000e-01 : f32
    %365 = vector.broadcast %cst_87 : f32 to vector<1x128xf32>
    %366 = arith.mulf %364, %365 : vector<1x128xf32>
    %367 = arith.mulf %361, %361 : vector<1x128xf32>
    %368 = arith.subf %366, %367 : vector<1x128xf32>
    %cst_88 = arith.constant 0.000000e+00 : f32
    %369 = vector.broadcast %cst_88 : f32 to vector<1x128xf32>
    %370 = arith.maximumf %368, %369 : vector<1x128xf32>
    %371 = vector.broadcast %361 : vector<1x128xf32> to vector<8x128xf32>
    %372 = arith.subf %357, %371 : vector<8x128xf32>
    %373 = vector.broadcast %268 : vector<1x128xf32> to vector<8x128xf32>
    %374 = arith.mulf %373, %372 : vector<8x128xf32>
    %cst_89 = arith.constant 9.99999974E-6 : f32
    %375 = vector.broadcast %cst_89 : f32 to vector<1x128xf32>
    %376 = arith.addf %370, %375 : vector<1x128xf32>
    %377 = math.rsqrt %376 : vector<1x128xf32>
    %378 = vector.broadcast %377 : vector<1x128xf32> to vector<8x128xf32>
    %379 = arith.mulf %374, %378 : vector<8x128xf32>
    %380 = vector.broadcast %269 : vector<1x128xf32> to vector<8x128xf32>
    %381 = arith.addf %379, %380 : vector<8x128xf32>
    %cst_90 = arith.constant 0.000000e+00 : f32
    %382 = vector.broadcast %cst_90 : f32 to vector<8x128xf32>
    %383 = arith.maximumf %381, %382 : vector<8x128xf32>
    %384 = arith.truncf %383 : vector<8x128xf32> to vector<8x128xbf16>
    %385 = vector.extract_strided_slice %384 {offsets = [5, 0], sizes = [3, 128], strides = [1, 1]} : vector<8x128xbf16> to vector<3x128xbf16>
    %386 = vector.extract_strided_slice %384 {offsets = [0, 0], sizes = [5, 128], strides = [1, 1]} : vector<8x128xbf16> to vector<5x128xbf16>
    %387 = tpu.concatenate %385, %386 in 0 : vector<3x128xbf16>, vector<5x128xbf16> -> vector<8x128xbf16>
    %388 = vector.extract_strided_slice %5 {offsets = [0, 0, 0], sizes = [1, 8, 1], strides = [1, 1, 1]} : vector<9x8x1xbf16> to vector<1x8x1xbf16>
    %389 = vector.shape_cast %388 : vector<1x8x1xbf16> to vector<8x1xbf16>
    %390 = vector.broadcast %389 : vector<8x1xbf16> to vector<8x128xbf16>
    %391 = arith.mulf %387, %390 : vector<8x128xbf16>
    %392 = vector.extract_strided_slice %384 {offsets = [6, 0], sizes = [2, 128], strides = [1, 1]} : vector<8x128xbf16> to vector<2x128xbf16>
    %393 = vector.extract_strided_slice %384 {offsets = [0, 0], sizes = [6, 128], strides = [1, 1]} : vector<8x128xbf16> to vector<6x128xbf16>
    %394 = tpu.concatenate %392, %393 in 0 : vector<2x128xbf16>, vector<6x128xbf16> -> vector<8x128xbf16>
    %395 = vector.extract_strided_slice %5 {offsets = [1, 0, 0], sizes = [1, 8, 1], strides = [1, 1, 1]} : vector<9x8x1xbf16> to vector<1x8x1xbf16>
    %396 = vector.shape_cast %395 : vector<1x8x1xbf16> to vector<8x1xbf16>
    %397 = vector.broadcast %396 : vector<8x1xbf16> to vector<8x128xbf16>
    %398 = arith.mulf %394, %397 : vector<8x128xbf16>
    %399 = vector.extract_strided_slice %384 {offsets = [7, 0], sizes = [1, 128], strides = [1, 1]} : vector<8x128xbf16> to vector<1x128xbf16>
    %400 = vector.extract_strided_slice %384 {offsets = [0, 0], sizes = [7, 128], strides = [1, 1]} : vector<8x128xbf16> to vector<7x128xbf16>
    %401 = tpu.concatenate %399, %400 in 0 : vector<1x128xbf16>, vector<7x128xbf16> -> vector<8x128xbf16>
    %402 = vector.extract_strided_slice %5 {offsets = [2, 0, 0], sizes = [1, 8, 1], strides = [1, 1, 1]} : vector<9x8x1xbf16> to vector<1x8x1xbf16>
    %403 = vector.shape_cast %402 : vector<1x8x1xbf16> to vector<8x1xbf16>
    %404 = vector.broadcast %403 : vector<8x1xbf16> to vector<8x128xbf16>
    %405 = arith.mulf %401, %404 : vector<8x128xbf16>
    %406 = vector.extract_strided_slice %384 {offsets = [7, 0], sizes = [1, 128], strides = [1, 1]} : vector<8x128xbf16> to vector<1x128xbf16>
    %407 = vector.extract_strided_slice %384 {offsets = [0, 0], sizes = [7, 128], strides = [1, 1]} : vector<8x128xbf16> to vector<7x128xbf16>
    %408 = tpu.concatenate %406, %407 in 0 : vector<1x128xbf16>, vector<7x128xbf16> -> vector<8x128xbf16>
    %409 = vector.extract_strided_slice %5 {offsets = [3, 0, 0], sizes = [1, 8, 1], strides = [1, 1, 1]} : vector<9x8x1xbf16> to vector<1x8x1xbf16>
    %410 = vector.shape_cast %409 : vector<1x8x1xbf16> to vector<8x1xbf16>
    %411 = vector.broadcast %410 : vector<8x1xbf16> to vector<8x128xbf16>
    %412 = arith.mulf %408, %411 : vector<8x128xbf16>
    %413 = vector.extract_strided_slice %384 {offsets = [1, 0], sizes = [7, 128], strides = [1, 1]} : vector<8x128xbf16> to vector<7x128xbf16>
    %414 = vector.extract_strided_slice %384 {offsets = [0, 0], sizes = [1, 128], strides = [1, 1]} : vector<8x128xbf16> to vector<1x128xbf16>
    %415 = tpu.concatenate %413, %414 in 0 : vector<7x128xbf16>, vector<1x128xbf16> -> vector<8x128xbf16>
    %416 = vector.extract_strided_slice %5 {offsets = [5, 0, 0], sizes = [1, 8, 1], strides = [1, 1, 1]} : vector<9x8x1xbf16> to vector<1x8x1xbf16>
    %417 = vector.shape_cast %416 : vector<1x8x1xbf16> to vector<8x1xbf16>
    %418 = vector.broadcast %417 : vector<8x1xbf16> to vector<8x128xbf16>
    %419 = arith.mulf %415, %418 : vector<8x128xbf16>
    %420 = vector.extract_strided_slice %384 {offsets = [1, 0], sizes = [7, 128], strides = [1, 1]} : vector<8x128xbf16> to vector<7x128xbf16>
    %421 = vector.extract_strided_slice %384 {offsets = [0, 0], sizes = [1, 128], strides = [1, 1]} : vector<8x128xbf16> to vector<1x128xbf16>
    %422 = tpu.concatenate %420, %421 in 0 : vector<7x128xbf16>, vector<1x128xbf16> -> vector<8x128xbf16>
    %423 = vector.extract_strided_slice %5 {offsets = [6, 0, 0], sizes = [1, 8, 1], strides = [1, 1, 1]} : vector<9x8x1xbf16> to vector<1x8x1xbf16>
    %424 = vector.shape_cast %423 : vector<1x8x1xbf16> to vector<8x1xbf16>
    %425 = vector.broadcast %424 : vector<8x1xbf16> to vector<8x128xbf16>
    %426 = arith.mulf %422, %425 : vector<8x128xbf16>
    %427 = vector.extract_strided_slice %384 {offsets = [2, 0], sizes = [6, 128], strides = [1, 1]} : vector<8x128xbf16> to vector<6x128xbf16>
    %428 = vector.extract_strided_slice %384 {offsets = [0, 0], sizes = [2, 128], strides = [1, 1]} : vector<8x128xbf16> to vector<2x128xbf16>
    %429 = tpu.concatenate %427, %428 in 0 : vector<6x128xbf16>, vector<2x128xbf16> -> vector<8x128xbf16>
    %430 = vector.extract_strided_slice %5 {offsets = [7, 0, 0], sizes = [1, 8, 1], strides = [1, 1, 1]} : vector<9x8x1xbf16> to vector<1x8x1xbf16>
    %431 = vector.shape_cast %430 : vector<1x8x1xbf16> to vector<8x1xbf16>
    %432 = vector.broadcast %431 : vector<8x1xbf16> to vector<8x128xbf16>
    %433 = arith.mulf %429, %432 : vector<8x128xbf16>
    %434 = vector.extract_strided_slice %384 {offsets = [3, 0], sizes = [5, 128], strides = [1, 1]} : vector<8x128xbf16> to vector<5x128xbf16>
    %435 = vector.extract_strided_slice %384 {offsets = [0, 0], sizes = [3, 128], strides = [1, 1]} : vector<8x128xbf16> to vector<3x128xbf16>
    %436 = tpu.concatenate %434, %435 in 0 : vector<5x128xbf16>, vector<3x128xbf16> -> vector<8x128xbf16>
    %437 = vector.extract_strided_slice %5 {offsets = [8, 0, 0], sizes = [1, 8, 1], strides = [1, 1, 1]} : vector<9x8x1xbf16> to vector<1x8x1xbf16>
    %438 = vector.shape_cast %437 : vector<1x8x1xbf16> to vector<8x1xbf16>
    %439 = vector.broadcast %438 : vector<8x1xbf16> to vector<8x128xbf16>
    %440 = arith.mulf %436, %439 : vector<8x128xbf16>
    %441 = tpu.concatenate %391, %398, %405, %412, %384, %419, %426, %433, %440 in 1 : vector<8x128xbf16>, vector<8x128xbf16>, vector<8x128xbf16>, vector<8x128xbf16>, vector<8x128xbf16>, vector<8x128xbf16>, vector<8x128xbf16>, vector<8x128xbf16>, vector<8x128xbf16> -> vector<8x1152xbf16>
    %c0_91 = arith.constant 0 : index
    %c0_92 = arith.constant 0 : index
    %442 = vector.load %arg25[%c0_91, %c0_92] : memref<1152x128xbf16, #tpu.memory_space<vmem>>, vector<1152x128xbf16>
    %cst_93 = arith.constant dense<0.000000e+00> : vector<8x128xf32>
    %443 = tpu.matmul %441, %442, %cst_93 {dimension_numbers = #tpu.dot_dimension_numbers<[1], [0], [0], [1], [0, 0, 1, 1], [], []>} : vector<8x1152xbf16>, vector<1152x128xbf16>, vector<8x128xf32> -> vector<8x128xf32>
    %c0_94 = arith.constant 0 : index
    %c0_95 = arith.constant 0 : index
    %444 = vector.load %arg26[%c0_94, %c0_95] : memref<1x128xf32, #tpu.memory_space<vmem>>, vector<1x128xf32>
    %445 = vector.broadcast %444 : vector<1x128xf32> to vector<8x128xf32>
    %446 = arith.addf %443, %445 : vector<8x128xf32>
    %c0_96 = arith.constant 0 : index
    %c0_97 = arith.constant 0 : index
    %447 = vector.load %arg29[%c0_96, %c0_97] : memref<8x128xf32, #tpu.memory_space<vmem>>, vector<8x128xf32>
    tpu.vector_store %arg29[%c0_96, %c0_97], %446 {strides = array<i32>} : memref<8x128xf32, #tpu.memory_space<vmem>>, vector<8x128xf32>,
    return
  }
  func.func @transform_0(%arg0: i32) -> (i32, i32) {
    %c0_i32 = arith.constant 0 : i32
    %c0_i32_0 = arith.constant 0 : i32
    %c0_i32_1 = arith.constant 0 : i32
    return %c0_i32, %c0_i32_0 : i32, i32
  }
  func.func @transform_1(%arg0: i32) -> (i32, i32) {
    %c0_i32 = arith.constant 0 : i32
    %c0_i32_0 = arith.constant 0 : i32
    %c0_i32_1 = arith.constant 0 : i32
    return %c0_i32, %c0_i32_0 : i32, i32
  }
  func.func @transform_2(%arg0: i32) -> (i32, i32) {
    %c0_i32 = arith.constant 0 : i32
    %c0_i32_0 = arith.constant 0 : i32
    %c0_i32_1 = arith.constant 0 : i32
    return %c0_i32, %c0_i32_0 : i32, i32
  }
  func.func @transform_3(%arg0: i32) -> (i32, i32, i32) {
    %c0_i32 = arith.constant 0 : i32
    %c0_i32_0 = arith.constant 0 : i32
    %c0_i32_1 = arith.constant 0 : i32
    %c0_i32_2 = arith.constant 0 : i32
    return %c0_i32, %c0_i32_0, %c0_i32_1 : i32, i32, i32
  }
  func.func @transform_4(%arg0: i32) -> (i32, i32) {
    %c0_i32 = arith.constant 0 : i32
    %c0_i32_0 = arith.constant 0 : i32
    %c0_i32_1 = arith.constant 0 : i32
    return %c0_i32, %c0_i32_0 : i32, i32
  }
  func.func @transform_5(%arg0: i32) -> (i32, i32) {
    %c0_i32 = arith.constant 0 : i32
    %c0_i32_0 = arith.constant 0 : i32
    %c0_i32_1 = arith.constant 0 : i32
    return %c0_i32, %c0_i32_0 : i32, i32
  }
  func.func @transform_6(%arg0: i32) -> (i32, i32) {
    %c0_i32 = arith.constant 0 : i32
    %c0_i32_0 = arith.constant 0 : i32
    %c0_i32_1 = arith.constant 0 : i32
    return %c0_i32, %c0_i32_0 : i32, i32
  }
  func.func @transform_7(%arg0: i32) -> (i32, i32) {
    %c0_i32 = arith.constant 0 : i32
    %c0_i32_0 = arith.constant 0 : i32
    %c0_i32_1 = arith.constant 0 : i32
    return %c0_i32, %c0_i32_0 : i32, i32
  }
  func.func @transform_8(%arg0: i32) -> (i32, i32) {
    %c0_i32 = arith.constant 0 : i32
    %c0_i32_0 = arith.constant 0 : i32
    %c0_i32_1 = arith.constant 0 : i32
    return %c0_i32, %c0_i32_0 : i32, i32
  }
  func.func @transform_9(%arg0: i32) -> (i32, i32) {
    %c0_i32 = arith.constant 0 : i32
    %c0_i32_0 = arith.constant 0 : i32
    %c0_i32_1 = arith.constant 0 : i32
    return %c0_i32, %c0_i32_0 : i32, i32
  }
  func.func @transform_10(%arg0: i32) -> (i32, i32) {
    %c0_i32 = arith.constant 0 : i32
    %c0_i32_0 = arith.constant 0 : i32
    %c0_i32_1 = arith.constant 0 : i32
    return %c0_i32, %c0_i32_0 : i32, i32
  }
  func.func @transform_11(%arg0: i32) -> (i32, i32) {
    %c0_i32 = arith.constant 0 : i32
    %c0_i32_0 = arith.constant 0 : i32
    %c0_i32_1 = arith.constant 0 : i32
    return %c0_i32, %c0_i32_0 : i32, i32
  }
  func.func @transform_12(%arg0: i32) -> (i32, i32) {
    %c0_i32 = arith.constant 0 : i32
    %c0_i32_0 = arith.constant 0 : i32
    %c0_i32_1 = arith.constant 0 : i32
    return %c0_i32, %c0_i32_0 : i32, i32
  }
  func.func @transform_13(%arg0: i32) -> (i32, i32, i32) {
    %c0_i32 = arith.constant 0 : i32
    %c0_i32_0 = arith.constant 0 : i32
    %c0_i32_1 = arith.constant 0 : i32
    %c0_i32_2 = arith.constant 0 : i32
    return %c0_i32, %c0_i32_0, %c0_i32_1 : i32, i32, i32
  }
  func.func @transform_14(%arg0: i32) -> (i32, i32) {
    %c0_i32 = arith.constant 0 : i32
    %c0_i32_0 = arith.constant 0 : i32
    %c0_i32_1 = arith.constant 0 : i32
    return %c0_i32, %c0_i32_0 : i32, i32
  }
  func.func @transform_15(%arg0: i32) -> (i32, i32) {
    %c0_i32 = arith.constant 0 : i32
    %c0_i32_0 = arith.constant 0 : i32
    %c0_i32_1 = arith.constant 0 : i32
    return %c0_i32, %c0_i32_0 : i32, i32
  }
  func.func @transform_16(%arg0: i32) -> (i32, i32) {
    %c0_i32 = arith.constant 0 : i32
    %c0_i32_0 = arith.constant 0 : i32
    %c0_i32_1 = arith.constant 0 : i32
    return %c0_i32, %c0_i32_0 : i32, i32
  }
  func.func @transform_17(%arg0: i32) -> (i32, i32) {
    %c0_i32 = arith.constant 0 : i32
    %c0_i32_0 = arith.constant 0 : i32
    %c0_i32_1 = arith.constant 0 : i32
    return %c0_i32, %c0_i32_0 : i32, i32
  }
  func.func @transform_18(%arg0: i32) -> (i32, i32) {
    %c0_i32 = arith.constant 0 : i32
    %c0_i32_0 = arith.constant 0 : i32
    %c0_i32_1 = arith.constant 0 : i32
    return %c0_i32, %c0_i32_0 : i32, i32
  }
  func.func @transform_19(%arg0: i32) -> (i32, i32) {
    %c0_i32 = arith.constant 0 : i32
    %c0_i32_0 = arith.constant 0 : i32
    %c0_i32_1 = arith.constant 0 : i32
    return %c0_i32, %c0_i32_0 : i32, i32
  }
  func.func @transform_20(%arg0: i32) -> (i32, i32) {
    %c0_i32 = arith.constant 0 : i32
    %c0_i32_0 = arith.constant 0 : i32
    %c0_i32_1 = arith.constant 0 : i32
    return %c0_i32, %c0_i32_0 : i32, i32
  }
  func.func @transform_21(%arg0: i32) -> (i32, i32) {
    %c0_i32 = arith.constant 0 : i32
    %c0_i32_0 = arith.constant 0 : i32
    %c0_i32_1 = arith.constant 0 : i32
    return %c0_i32, %c0_i32_0 : i32, i32
  }
  func.func @transform_22(%arg0: i32) -> (i32, i32) {
    %c0_i32 = arith.constant 0 : i32
    %c0_i32_0 = arith.constant 0 : i32
    %c0_i32_1 = arith.constant 0 : i32
    return %c0_i32, %c0_i32_0 : i32, i32
  }
  func.func @transform_23(%arg0: i32) -> (i32, i32, i32) {
    %c0_i32 = arith.constant 0 : i32
    %c0_i32_0 = arith.constant 0 : i32
    %c0_i32_1 = arith.constant 0 : i32
    %c0_i32_2 = arith.constant 0 : i32
    return %c0_i32, %c0_i32_0, %c0_i32_1 : i32, i32, i32
  }
  func.func @transform_24(%arg0: i32) -> (i32, i32) {
    %c0_i32 = arith.constant 0 : i32
    %c0_i32_0 = arith.constant 0 : i32
    %c0_i32_1 = arith.constant 0 : i32
    return %c0_i32, %c0_i32_0 : i32, i32
  }
  func.func @transform_25(%arg0: i32) -> (i32, i32) {
    %c0_i32 = arith.constant 0 : i32
    %c0_i32_0 = arith.constant 0 : i32
    %c0_i32_1 = arith.constant 0 : i32
    return %c0_i32, %c0_i32_0 : i32, i32
  }
  func.func @transform_26(%arg0: i32) -> (i32, i32) {
    %c0_i32 = arith.constant 0 : i32
    %c0_i32_0 = arith.constant 0 : i32
    %c0_i32_1 = arith.constant 0 : i32
    return %c0_i32, %c0_i32_0 : i32, i32
  }
  func.func @transform_27(%arg0: i32) -> (i32, i32) {
    %c0_i32 = arith.constant 0 : i32
    %c0_i32_0 = arith.constant 0 : i32
    %c0_i32_1 = arith.constant 0 : i32
    return %c0_i32, %c0_i32_0 : i32, i32
  }
  func.func @transform_28(%arg0: i32) -> (i32, i32) {
    %c0_i32 = arith.constant 0 : i32
    %c0_i32_0 = arith.constant 0 : i32
    %c0_i32_1 = arith.constant 0 : i32
    return %c0_i32, %c0_i32_0 : i32, i32
  }
}

</mosaic_0001>

<bundles_post_ra>
// kernel: ssd_forward.1
= control target key start
LH: loop header
LB: loop body
LE: loop exit
PB: predicated region body
PF: predicated region fallthrough
CT: control target
= control target key end

     0   :  { %v12696_v0 = vmov 0   ;;  %vm740_vm0 = vcmask 1043456   ;;  %vm12793_vm1 = vcmask 1040384   ;;  %vm680_vm2 = vcmask 1044480   ;;  %s12658_s3 = inlined_call_operand.vmem [shape: f32[9,128,1], index: 3, kind: input, shape index: {}]   ;;  %s12659_s1 = inlined_call_operand.vmem [shape: bf16[128,128], index: 1, kind: input, shape index: {}]   ;;  %s12660_s0 = inlined_call_operand.vmem [shape: bf16[128,128], index: 0, kind: input, shape index: {}]   ;;  %s12661_s13 = inlined_call_operand.vmem [shape: f32[9,32,1], index: 13, kind: input, shape index: {}]   ;;  %s12662_s4 = inlined_call_operand.vmem [shape: bf16[1152,128], index: 4, kind: input, shape index: {}]   ;;  %s12663_s23 = inlined_call_operand.vmem [shape: f32[9,8,1], index: 23, kind: input, shape index: {}]   ;;  %s12664_s6 = inlined_call_operand.vmem [shape: bf16[128,128], index: 6, kind: input, shape index: {}]   ;;  %s12665_s2 = inlined_call_operand.vmem [shape: f32[1,128], index: 2, kind: input, shape index: {}]   ;;  %s12666_s5 = inlined_call_operand.vmem [shape: f32[1,128], index: 5, kind: input, shape index: {}]   ;;  %s12667_s26 = inlined_call_operand.vmem [shape: f32[128,128], index: 26, kind: output, shape index: {0}]   ;;  %s12668_s12 = inlined_call_operand.vmem [shape: bf16[32,128], index: 12, kind: input, shape index: {}]   ;;  %s12669_s7 = inlined_call_operand.vmem [shape: f32[1,128], index: 7, kind: input, shape index: {}]   ;;  %s12670_s8 = inlined_call_operand.vmem [shape: f32[1,128], index: 8, kind: input, shape index: {}]   ;;  %s12671_s9 = inlined_call_operand.vmem [shape: bf16[1152,128], index: 9, kind: input, shape index: {}]   ;;  %s12672_s14 = inlined_call_operand.vmem [shape: bf16[1152,128], index: 14, kind: input, shape index: {}]   ;;  %s12673_s16 = inlined_call_operand.vmem [shape: bf16[128,128], index: 16, kind: input, shape index: {}]   ;;  %s12674_s10 = inlined_call_operand.vmem [shape: f32[1,128], index: 10, kind: input, shape index: {}]   ;;  %s12675_s11 = inlined_call_operand.vmem [shape: f32[1,128], index: 11, kind: input, shape index: {}]   ;;  %s12676_s15 = inlined_call_operand.vmem [shape: f32[1,128], index: 15, kind: input, shape index: {}]   ;;  %s12677_s19 = inlined_call_operand.vmem [shape: bf16[1152,128], index: 19, kind: input, shape index: {}]   ;;  %s12678_s27 = inlined_call_operand.vmem [shape: f32[32,128], index: 27, kind: output, shape index: {1}]   ;;  %s12679_s17 = inlined_call_operand.vmem [shape: f32[1,128], index: 17, kind: input, shape index: {}]   ;;  %s12680_s18 = inlined_call_operand.vmem [shape: f32[1,128], index: 18, kind: input, shape index: {}]   ;;  %s12681_s22 = inlined_call_operand.vmem [shape: bf16[8,32], index: 22, kind: input, shape index: {}]   ;;  %s12682_s24 = inlined_call_operand.vmem [shape: bf16[1152,128], index: 24, kind: input, shape index: {}]   ;;  %s12683_s20 = inlined_call_operand.vmem [shape: f32[1,128], index: 20, kind: input, shape index: {}]   ;;  %s12684_s21 = inlined_call_operand.vmem [shape: f32[1,128], index: 21, kind: input, shape index: {}]   ;;  %s12685_s25 = inlined_call_operand.vmem [shape: f32[1,128], index: 25, kind: input, shape index: {}]   ;;  %s12686_s28 = inlined_call_operand.vmem [shape: f32[8,128], index: 28, kind: output, shape index: {2}]  }
   0x1   :  { %12794 = sst [smem:[#allocation58_spill]] %s12658_s3  ;;  %8745 = vset.pattern.permute.xlu1 %v12696_v0  ;;  %8744 = vset.pattern.permute.xlu0 %v12696_v0  ;;  %vm908_vm3 = vsmask.f32 256  ;;  %vm608_vm4 = vsmask.f32 4352  ;;  %vm1023_vm10 = vcmask 1047552  }
   0x2   :  { %12795 = sst [smem:[#allocation59_spill]] %s12659_s1  ;;  %vm819_vm5 = vsmask.f32 3328  ;;  %vm10089_vm6 = vmand %vm12793_vm1, %vm908_vm3  ;;  %vm990_vm9 = vsmask.f32 7424  ;;  %vm4136_vm12 = vcmask 1041408  }
   0x3   :  { %12796 = sst [smem:[#allocation60_spill]] %s12660_s0  ;;  %vm10113_vm7 = vmand %vm680_vm2, %vm608_vm4  ;;  %vm4106_vm13 = vsmask.f32 2304  ;;  %vm12792_vm14 = vcmask 1042432   ;;  %vm9150_vm1 = vmmov 0  }
   0x4   :  { %12797 = sst [smem:[#allocation61_spill]] %s12661_s13  ;;  %vm10127_vm8 = vmand %vm740_vm0, %vm819_vm5 }
   0x5   :  { %12798 = sst [smem:[#allocation62_spill]] %s12662_s4  ;;  %s12810_s1 = sld [smem:[#allocation61_spill]]  ;;  %vm10632_vm11 = vmand %vm1023_vm10, %vm990_vm9  ;;  %vm4272_vm10 = vsmask.f32 5376 }
   0x6   :  { %12799 = sst [smem:[#allocation63_spill]] %s12663_s23  ;;  %vm11767_vm15 = vmand %vm12792_vm14, %vm4106_vm13 }
   0x7   :  { %12800 = sst [smem:[#allocation64_spill]] %s12664_s6 }
   0x8   :  { %12801 = sst [smem:[#allocation65_spill]] %s12665_s2  ;;  %s12808_s2 = sld [smem:[#allocation59_spill]] }
   0x9   :  { %12802 = sst [smem:[#allocation66_spill]] %s12666_s5  ;;  %s12811_s5 = sld [smem:[#allocation62_spill]] }
   0xa   :  { %12803 = sst [smem:[#allocation67_spill]] %s12667_s26  ;;  %s12807_s26 = sld [smem:[#allocation58_spill]] }
   0xb   :  { %12804 = sst [smem:[#allocation68_spill]] %s12668_s12  ;;  %s12880_s0 = sld [smem:[#allocation64_spill]] }
   0xc   :  { %12805 = sst [smem:[#allocation69_spill]] %s12669_s7  ;;  %s12933_s30 = sld [smem:[#allocation67_spill]] }
   0xd   :  { %12806 = sst [smem:[#allocation70_spill]] %s12670_s8  ;;  %s12809_s8 = sld [smem:[#allocation60_spill]] }
   0xe   :  { %v8746_v7 = vld [vmem:[%s12808_s2] sm:$0xff]   ;;  %v8747_v14 = vld [vmem:[%s12808_s2 + $0x8] sm:$0xff]   ;;  %v8748_v19 = vld [vmem:[%s12808_s2 + $0x10] sm:$0xff]   ;;  %s12934_s13 = sld [smem:[#allocation69_spill]]  ;;  %s12935_s29 = sld [smem:[#allocation70_spill]] }
   0xf   :  { %8517 = vmatprep.subr.bf16.mxu0 %v8746_v7  ;;  %v8749_v26 = vld [vmem:[%s12808_s2 + $0x18] sm:$0xff]   ;;  %v8750_v33 = vld [vmem:[%s12808_s2 + $0x20] sm:$0xff]   ;;  %v8751_v40 = vld [vmem:[%s12808_s2 + $0x28] sm:$0xff]  }
  0x10   :  { %v137_v1 = vld [vmem:[%s12807_s26 + $0x190] sm:$0xff]  ;;  %v138_v2 = vld [vmem:[%s12807_s26 + $0x198] sm:$0xff]  ;;  %v135_v3 = vld [vmem:[%s12807_s26 + $0x180] sm:$0xff]  ;;  %8518 = vmatpush3.bf16.msra.mxu0 %v8746_v7 }
  0x11   :  { %v240_v4 = vpack.c.bf16 %v138_v2, %v137_v1  ;;  %v136_v5 = vld [vmem:[%s12807_s26 + $0x188] sm:$0xff]  ;;  %v121_v8 = vld [vmem:[%s12807_s26 + $0x110] sm:$0xff]  ;;  %v122_v9 = vld [vmem:[%s12807_s26 + $0x118] sm:$0xff]  ;;  %8519 = vmatprep.subr.bf16.mxu0 %v8747_v14 }
  0x12   :  { %v239_v6 = vpack.c.bf16 %v136_v5, %v135_v3  ;;  %v232_v10 = vpack.c.bf16 %v122_v9, %v121_v8  ;;  %v119_v11 = vld [vmem:[%s12807_s26 + $0x100] sm:$0xff]  ;;  %v120_v12 = vld [vmem:[%s12807_s26 + $0x108] sm:$0xff]  ;;  %v125_v21 = vld [vmem:[%s12807_s26 + $0x130] sm:$0xff] }
  0x13   :  { %949 = vperm.xlu1 %8745, %v240_v4   ;;  %v231_v13 = vpack.c.bf16 %v120_v12, %v119_v11  ;;  %v123_v15 = vld [vmem:[%s12807_s26 + $0x120] sm:$0xff]  ;;  %v124_v16 = vld [vmem:[%s12807_s26 + $0x128] sm:$0xff]  ;;  %v126_v23 = vld [vmem:[%s12807_s26 + $0x138] sm:$0xff] }
  0x14   :  { %944 = vperm.xlu0 %8744, %v239_v6   ;;  %v139_v17 = vld [vmem:[%s12807_s26 + $0x1a0] sm:$0xff]  ;;  %v140_v18 = vld [vmem:[%s12807_s26 + $0x1a8] sm:$0xff]  ;;  %v233_v20 = vpack.c.bf16 %v124_v16, %v123_v15  ;;  %8520 = vmatpush3.bf16.msra.mxu0 %v8747_v14  ;;  %v141_v24 = vld [vmem:[%s12807_s26 + $0x1b0] sm:$0xff]  ;;  %v234_v27 = vpack.c.bf16 %v126_v23, %v125_v21 }
  0x15   :  { %v241_v22 = vpack.c.bf16 %v140_v18, %v139_v17  ;;  %v142_v25 = vld [vmem:[%s12807_s26 + $0x1b8] sm:$0xff]  ;;  %8521 = vmatprep.subr.bf16.mxu0 %v8748_v19  ;;  %v127_v29 = vld [vmem:[%s12807_s26 + $0x140] sm:$0xff]  ;;  %v128_v30 = vld [vmem:[%s12807_s26 + $0x148] sm:$0xff] }
  0x16   :  { %v242_v28 = vpack.c.bf16 %v142_v25, %v141_v24  ;;  %v143_v31 = vld [vmem:[%s12807_s26 + $0x1c0] sm:$0xff]  ;;  %v144_v32 = vld [vmem:[%s12807_s26 + $0x1c8] sm:$0xff]  ;;  %v235_v34 = vpack.c.bf16 %v128_v30, %v127_v29  ;;  %v129_v36 = vld [vmem:[%s12807_s26 + $0x150] sm:$0xff] }
  0x17   :  { %865 = vperm.xlu1 %8745, %v232_v10   ;;  %v243_v35 = vpack.c.bf16 %v144_v32, %v143_v31  ;;  %v130_v37 = vld [vmem:[%s12807_s26 + $0x158] sm:$0xff]  ;;  %v145_v38 = vld [vmem:[%s12807_s26 + $0x1d0] sm:$0xff]  ;;  %v8754_v42 = vld [vmem:[%s12809_s8] sm:$0xff]  }
  0x18   :  { %860 = vperm.xlu0 %8744, %v231_v13   ;;  %8522 = vmatpush3.bf16.msra.mxu0 %v8748_v19  ;;  %v146_v39 = vld [vmem:[%s12807_s26 + $0x1d8] sm:$0xff]  ;;  %v236_v41 = vpack.c.bf16 %v130_v37, %v129_v36  ;;  %v131_v44 = vld [vmem:[%s12807_s26 + $0x160] sm:$0xff]  ;;  %v132_v45 = vld [vmem:[%s12807_s26 + $0x168] sm:$0xff] }
  0x19   :  { %8523 = vmatprep.subr.bf16.mxu0 %v8749_v26  ;;  %v244_v43 = vpack.c.bf16 %v146_v39, %v145_v38  ;;  %v147_v46 = vld [vmem:[%s12807_s26 + $0x1e0] sm:$0xff]  ;;  %v148_v47 = vld [vmem:[%s12807_s26 + $0x1e8] sm:$0xff]  ;;  %8533 = vmatprep.mubr.bf16.mxu0 %v8754_v42  ;;  %v8752_v48 = vld [vmem:[%s12808_s2 + $0x30] sm:$0xff]   ;;  %v237_v49 = vpack.c.bf16 %v132_v45, %v131_v44 }
  0x1a   :  { %v245_v50 = vpack.c.bf16 %v148_v47, %v147_v46  ;;  %v133_v51 = vld [vmem:[%s12807_s26 + $0x170] sm:$0xff]  ;;  %v134_v52 = vld [vmem:[%s12807_s26 + $0x178] sm:$0xff]  ;;  %v167_v57 = vld [vmem:[%s12807_s26 + $0x300] sm:$0xff] }
  0x1b   :  { %870 = vperm.xlu1 %8745, %v233_v20   ;;  %v149_v53 = vld [vmem:[%s12807_s26 + $0x1f0] sm:$0xff]  ;;  %v150_v54 = vld [vmem:[%s12807_s26 + $0x1f8] sm:$0xff]  ;;  %v238_v56 = vpack.c.bf16 %v134_v52, %v133_v51  ;;  %v168_v59 = vld [vmem:[%s12807_s26 + $0x308] sm:$0xff] }
  0x1c   :  { %954 = vperm.xlu0 %8744, %v241_v22   ;;  %8524 = vmatpush3.bf16.msra.mxu0 %v8749_v26  ;;  %v8753_v55 = vld [vmem:[%s12808_s2 + $0x38] sm:$0xff]   ;;  %v246_v58 = vpack.c.bf16 %v150_v54, %v149_v53  ;;  %v183_v60 = vld [vmem:[%s12807_s26 + $0x380] sm:$0xff]  ;;  %v184_v61 = vld [vmem:[%s12807_s26 + $0x388] sm:$0xff]  ;;  %v255_v62 = vpack.c.bf16 %v168_v59, %v167_v57  ;;  %s12827_s2 = sld [smem:[#allocation65_spill]] }
  0x1d   :  { %8525 = vmatprep.subr.bf16.mxu0 %v8750_v33  ;;  %v8755_v63 = vld [vmem:[%s12809_s8 + $0x8] sm:$0xff]   ;;  %v169_v1 = vld [vmem:[%s12807_s26 + $0x310] sm:$0xff]  ;;  %v263_v2 = vpack.c.bf16 %v184_v61, %v183_v60  ;;  %v170_v3 = vld [vmem:[%s12807_s26 + $0x318] sm:$0xff] }
  0x1e   :  { %v185_v4 = vld [vmem:[%s12807_s26 + $0x390] sm:$0xff]  ;;  %v186_v5 = vld [vmem:[%s12807_s26 + $0x398] sm:$0xff]  ;;  %v256_v7 = vpack.c.bf16 %v170_v3, %v169_v1  ;;  %v171_v9 = vld [vmem:[%s12807_s26 + $0x320] sm:$0xff] }
  0x1f   :  { %875 = vperm.xlu1 %8745, %v234_v27   ;;  %v8756_v6 = vld [vmem:[%s12809_s8 + $0x10] sm:$0xff]   ;;  %v264_v8 = vpack.c.bf16 %v186_v5, %v185_v4  ;;  %v172_v10 = vld [vmem:[%s12807_s26 + $0x328] sm:$0xff]  ;;  %v187_v11 = vld [vmem:[%s12807_s26 + $0x3a0] sm:$0xff] }
  0x20   :  { %959 = vperm.xlu0 %8744, %v242_v28   ;;  %8526 = vmatpush3.bf16.msra.mxu0 %v8750_v33  ;;  %v188_v12 = vld [vmem:[%s12807_s26 + $0x3a8] sm:$0xff]  ;;  %v257_v13 = vpack.c.bf16 %v172_v10, %v171_v9  ;;  %v8757_v15 = vld [vmem:[%s12809_s8 + $0x18] sm:$0xff]   ;;  %v173_v16 = vld [vmem:[%s12807_s26 + $0x330] sm:$0xff] }
  0x21   :  { %8527 = vmatprep.subr.bf16.mxu0 %v8751_v40  ;;  %v265_v14 = vpack.c.bf16 %v188_v12, %v187_v11  ;;  %v174_v17 = vld [vmem:[%s12807_s26 + $0x338] sm:$0xff]  ;;  %v189_v18 = vld [vmem:[%s12807_s26 + $0x3b0] sm:$0xff]  ;;  %v8758_v20 = vld [vmem:[%s12809_s8 + $0x20] sm:$0xff]  }
  0x22   :  { %v190_v19 = vld [vmem:[%s12807_s26 + $0x3b8] sm:$0xff]  ;;  %v258_v21 = vpack.c.bf16 %v174_v17, %v173_v16  ;;  %v175_v23 = vld [vmem:[%s12807_s26 + $0x340] sm:$0xff]  ;;  %v176_v24 = vld [vmem:[%s12807_s26 + $0x348] sm:$0xff] }
  0x23   :  { %880 = vperm.xlu1 %8745, %v235_v34   ;;  %v266_v22 = vpack.c.bf16 %v190_v19, %v189_v18  ;;  %v191_v25 = vld [vmem:[%s12807_s26 + $0x3c0] sm:$0xff]  ;;  %v192_v26 = vld [vmem:[%s12807_s26 + $0x3c8] sm:$0xff]  ;;  %v259_v27 = vpack.c.bf16 %v176_v24, %v175_v23  ;;  %v177_v30 = vld [vmem:[%s12807_s26 + $0x350] sm:$0xff] }
  0x24   :  { %964 = vperm.xlu0 %8744, %v243_v35   ;;  %8528 = vmatpush3.bf16.msra.mxu0 %v8751_v40  ;;  %v267_v28 = vpack.c.bf16 %v192_v26, %v191_v25  ;;  %v8759_v29 = vld [vmem:[%s12809_s8 + $0x28] sm:$0xff]   ;;  %v178_v31 = vld [vmem:[%s12807_s26 + $0x358] sm:$0xff]  ;;  %v193_v32 = vld [vmem:[%s12807_s26 + $0x3d0] sm:$0xff] }
  0x25   :  { %8529 = vmatprep.subr.bf16.mxu0 %v8752_v48  ;;  %v194_v33 = vld [vmem:[%s12807_s26 + $0x3d8] sm:$0xff]  ;;  %v8760_v34 = vld [vmem:[%s12809_s8 + $0x30] sm:$0xff]   ;;  %v260_v35 = vpack.c.bf16 %v178_v31, %v177_v30  ;;  %v179_v37 = vld [vmem:[%s12807_s26 + $0x360] sm:$0xff] }
  0x26   :  { %v268_v36 = vpack.c.bf16 %v194_v33, %v193_v32  ;;  %v180_v38 = vld [vmem:[%s12807_s26 + $0x368] sm:$0xff]  ;;  %v195_v39 = vld [vmem:[%s12807_s26 + $0x3e0] sm:$0xff]  ;;  %v181_v44 = vld [vmem:[%s12807_s26 + $0x370] sm:$0xff] }
  0x27   :  { %885 = vperm.xlu1 %8745, %v236_v41   ;;  %v196_v40 = vld [vmem:[%s12807_s26 + $0x3e8] sm:$0xff]  ;;  %v261_v41 = vpack.c.bf16 %v180_v38, %v179_v37  ;;  %v182_v45 = vld [vmem:[%s12807_s26 + $0x378] sm:$0xff]  ;;  %v197_v46 = vld [vmem:[%s12807_s26 + $0x3f0] sm:$0xff] }
  0x28   :  { %969 = vperm.xlu0 %8744, %v244_v43   ;;  %8530 = vmatpush3.bf16.msra.mxu0 %v8752_v48  ;;  %v269_v42 = vpack.c.bf16 %v196_v40, %v195_v39  ;;  %v8761_v43 = vld [vmem:[%s12809_s8 + $0x38] sm:$0xff]   ;;  %v262_v48 = vpack.c.bf16 %v182_v45, %v181_v44  ;;  %v88_v51 = vld [vmem:[%s12807_s26 + $0x8] sm:$0xff]  ;;  %v103_v52 = vld [vmem:[%s12807_s26 + $0x80] sm:$0xff] }
  0x29   :  { %8531 = vmatprep.subr.bf16.mxu0 %v8753_v55  ;;  %v198_v47 = vld [vmem:[%s12807_s26 + $0x3f8] sm:$0xff]  ;;  %v104_v53 = vld [vmem:[%s12807_s26 + $0x88] sm:$0xff]  ;;  %v107_v1 = vld [vmem:[%s12807_s26 + $0xa0] sm:$0xff] }
  0x2a   :  { %v90_v57 = vld [vmem:[%s12807_s26 + $0x18] sm:$0xff]  ;;  %v93_v5 = vld [vmem:[%s12807_s26 + $0x30] sm:$0xff]  ;;  %v95_v11 = vld [vmem:[%s12807_s26 + $0x40] sm:$0xff] }
  0x2b   :  { %890 = vperm.xlu1 %8745, %v237_v49   ;;  %v270_v49 = vpack.c.bf16 %v198_v47, %v197_v46  ;;  %v106_v59 = vld [vmem:[%s12807_s26 + $0x98] sm:$0xff]  ;;  %v96_v12 = vld [vmem:[%s12807_s26 + $0x48] sm:$0xff]  ;;  %v97_v17 = vld [vmem:[%s12807_s26 + $0x50] sm:$0xff] }
  0x2c   :  { %974 = vperm.xlu0 %8744, %v245_v50   ;;  %8532 = vmatpush3.bf16.msra.mxu0 %v8753_v55  ;;  %v87_v50 = vld [vmem:[%s12807_s26] sm:$0xff]  ;;  %v223_v55 = vpack.c.bf16 %v104_v53, %v103_v52  ;;  %v98_v18 = vld [vmem:[%s12807_s26 + $0x58] sm:$0xff]  ;;  %v113_v19 = vld [vmem:[%s12807_s26 + $0xd0] sm:$0xff] }
  0x2d   :  { %v215_v54 = vpack.c.bf16 %v88_v51, %v87_v50  ;;  %v99_v23 = vld [vmem:[%s12807_s26 + $0x60] sm:$0xff]  ;;  %v100_v24 = vld [vmem:[%s12807_s26 + $0x68] sm:$0xff]  ;;  %v102_v30 = vld [vmem:[%s12807_s26 + $0x78] sm:$0xff] }
  0x2e   :  { %v115_v25 = vld [vmem:[%s12807_s26 + $0xe0] sm:$0xff]  ;;  %v116_v26 = vld [vmem:[%s12807_s26 + $0xe8] sm:$0xff]  ;;  %v117_v31 = vld [vmem:[%s12807_s26 + $0xf0] sm:$0xff] }
  0x2f   :  { %895 = vperm.xlu1 %8745, %v238_v56   ;;  %8534 = vmatmul.mubr.bf16.vlgmr.msra.gmra.mrb[0].mxu0 %v8755_v63  ;;  %v89_v56 = vld [vmem:[%s12807_s26 + $0x10] sm:$0xff]  ;;  %v92_v63 = vld [vmem:[%s12807_s26 + $0x28] sm:$0xff]  ;;  %v118_v32 = vld [vmem:[%s12807_s26 + $0xf8] sm:$0xff] }
  0x30   :  { %979 = vperm.xlu0 %8744, %v246_v58   ;;  %8537 = vmatprep.mubr.bf16.mxu0 %v8756_v6  ;;  %v105_v58 = vld [vmem:[%s12807_s26 + $0x90] sm:$0xff]  ;;  %v216_v60 = vpack.c.bf16 %v90_v57, %v89_v56  ;;  %v94_v6 = vld [vmem:[%s12807_s26 + $0x38] sm:$0xff]  ;;  %v151_v37 = vld [vmem:[%s12807_s26 + $0x280] sm:$0xff] }
  0x31   :  { %v224_v61 = vpack.c.bf16 %v106_v59, %v105_v58  ;;  %v218_v9 = vpack.c.bf16 %v94_v6, %v93_v5  ;;  %v152_v38 = vld [vmem:[%s12807_s26 + $0x288] sm:$0xff]  ;;  %v161_v47 = vld [vmem:[%s12807_s26 + $0x2d0] sm:$0xff] }
  0x32   :  { %v247_v40 = vpack.c.bf16 %v152_v38, %v151_v37  ;;  %v156_v44 = vld [vmem:[%s12807_s26 + $0x2a8] sm:$0xff]  ;;  %v165_v53 = vld [vmem:[%s12807_s26 + $0x2f0] sm:$0xff]  ;;  %v303_v37 = vld [vmem:[%s12810_s1 + $0xe0] sm:$0xff] }
  0x33   :  { %1076 = vperm.xlu1 %8745, %v255_v62   ;;  %v91_v62 = vld [vmem:[%s12807_s26 + $0x20] sm:$0xff]  ;;  %v160_v50 = vld [vmem:[%s12807_s26 + $0x2c8] sm:$0xff]  ;;  %v201_v59 = vld [vmem:[%s12807_s26 + $0x410] sm:$0xff] }
  0x34   :  { %1124 = vperm.xlu0 %8744, %v263_v2   ;;  %v108_v2 = vld [vmem:[%s12807_s26 + $0xa8] sm:$0xff]  ;;  %v217_v3 = vpack.c.bf16 %v92_v63, %v91_v62 }
  0x35   :  { %v225_v4 = vpack.c.bf16 %v108_v2, %v107_v1  ;;  %v164_v56 = vld [vmem:[%s12807_s26 + $0x2e8] sm:$0xff]  ;;  %v205_v2 = vld [vmem:[%s12807_s26 + $0x430] sm:$0xff] }
  0x36   :  { %v200_v62 = vld [vmem:[%s12807_s26 + $0x408] sm:$0xff] }
  0x37   :  { %1081 = vperm.xlu1 %8745, %v256_v7   ;;  %8538 = vmatmul.mubr.bf16.gmra.mrb[4].mxu0 %v8757_v15  ;;  %v109_v7 = vld [vmem:[%s12807_s26 + $0xb0] sm:$0xff]  ;;  %v219_v15 = vpack.c.bf16 %v96_v12, %v95_v11  ;;  %v204_v5 = vld [vmem:[%s12807_s26 + $0x428] sm:$0xff] }
  0x38   :  { %1129 = vperm.xlu0 %8744, %v264_v8   ;;  %8541 = vmatprep.mubr.bf16.mxu0 %v8758_v20  ;;  %v110_v8 = vld [vmem:[%s12807_s26 + $0xb8] sm:$0xff]  ;;  %v208_v11 = vld [vmem:[%s12807_s26 + $0x448] sm:$0xff] }
  0x39   :  { %v226_v10 = vpack.c.bf16 %v110_v8, %v109_v7  ;;  %v114_v20 = vld [vmem:[%s12807_s26 + $0xd8] sm:$0xff]  ;;  %v209_v8 = vld [vmem:[%s12807_s26 + $0x450] sm:$0xff]  ;;  %v304_v38 = vld [vmem:[%s12810_s1 + $0xe8] sm:$0xff] }
  0x3b   :  { %1086 = vperm.xlu1 %8745, %v257_v13   ;;  %v111_v13 = vld [vmem:[%s12807_s26 + $0xc0] sm:$0xff] }
  0x3c   :  { %1134 = vperm.xlu0 %8744, %v265_v14   ;;  %v112_v14 = vld [vmem:[%s12807_s26 + $0xc8] sm:$0xff] }
  0x3d   :  { %v227_v16 = vpack.c.bf16 %v112_v14, %v111_v13  ;;  %v213_v14 = vld [vmem:[%s12807_s26 + $0x470] sm:$0xff] }
  0x3f   :  { %1091 = vperm.xlu1 %8745, %v258_v21   ;;  %8542 = vmatmul.mubr.bf16.gmra.mrb[8].mxu0 %v8759_v29  ;;  %v220_v21 = vpack.c.bf16 %v98_v18, %v97_v17  ;;  %v101_v29 = vld [vmem:[%s12807_s26 + $0x70] sm:$0xff]  ;;  %v212_v17 = vld [vmem:[%s12807_s26 + $0x468] sm:$0xff] }
  0x40   :  { %1139 = vperm.xlu0 %8744, %v266_v22   ;;  %8545 = vmatprep.mubr.bf16.mxu0 %v8760_v34  ;;  %v228_v22 = vpack.c.bf16 %v114_v20, %v113_v19  ;;  %v222_v33 = vpack.c.bf16 %v102_v30, %v101_v29  ;;  %v230_v34 = vpack.c.bf16 %v118_v32, %v117_v31  ;;  %v287_v20 = vld [vmem:[%s12810_s1 + $0x40] sm:$0xff] }
  0x41   :  { %v8762_v29 = vld [vmem:[%s12811_s5 + $0x40] sm:$0xff]  }
  0x42   :  { %v8763_v31 = vld [vmem:[%s12811_s5 + $0xc0] sm:$0xff]   ;;  %7768 = vmatprep.subr.bf16.mxu1 %v8762_v29  ;;  %v8788_v29 = vld [vmem:[%s12811_s5 + $0x30] sm:$0xff]  }
  0x43   :  { %1096 = vperm.xlu1 %8745, %v259_v27   ;;  %v221_v27 = vpack.c.bf16 %v100_v24, %v99_v23  ;;  %v292_v23 = vld [vmem:[%s12810_s1 + $0x68] sm:$0xff]  ;;  %v289_v24 = vld [vmem:[%s12810_s1 + $0x50] sm:$0xff]  ;;  %v8764_v32 = vld [vmem:[%s12811_s5] sm:$0xff]   ;;  %7832 = vmatprep.subr.bf16.mxu0 %v8763_v31 }
  0x44   :  { %1144 = vperm.xlu0 %8744, %v267_v28   ;;  %v229_v28 = vpack.c.bf16 %v116_v26, %v115_v25  ;;  %v290_v25 = vld [vmem:[%s12810_s1 + $0x58] sm:$0xff]  ;;  %7769 = vmatpush3.bf16.msra.mxu1 %v8764_v32  ;;  %v8789_v31 = vld [vmem:[%s12811_s5 + $0xb0] sm:$0xff]  }
  0x47   :  { %1101 = vperm.xlu1 %8745, %v260_v35   ;;  %8546 = vmatmul.mubr.bf16.gmra.mrb[12].mxu0 %v8761_v43  ;;  %v153_v35 = vld [vmem:[%s12807_s26 + $0x290] sm:$0xff]  ;;  %v155_v43 = vld [vmem:[%s12807_s26 + $0x2a0] sm:$0xff] }
  0x48   :  { %1149 = vperm.xlu0 %8744, %v268_v36   ;;  %v154_v36 = vld [vmem:[%s12807_s26 + $0x298] sm:$0xff]  ;;  %v249_v46 = vpack.c.bf16 %v156_v44, %v155_v43  ;;  %v301_v43 = vld [vmem:[%s12810_s1 + $0xd0] sm:$0xff] }
  0x49   :  { %v248_v39 = vpack.c.bf16 %v154_v36, %v153_v35  ;;  %v8765_v35 = vld [vmem:[%s12811_s5 + $0x80] sm:$0xff]   ;;  %v316_v36 = vpack.c.bf16 %v290_v25, %v289_v24  ;;  %v302_v44 = vld [vmem:[%s12810_s1 + $0xd8] sm:$0xff]  ;;  %v308_v25 = vld [vmem:[%s12810_s1 + $0x108] sm:$0xff] }
  0x4a   :  { %7833 = vmatpush3.bf16.msra.mxu0 %v8765_v35  ;;  %v307_v24 = vld [vmem:[%s12810_s1 + $0x100] sm:$0xff] }
  0x4b   :  { %1106 = vperm.xlu1 %8745, %v261_v41   ;;  %v157_v41 = vld [vmem:[%s12807_s26 + $0x2b0] sm:$0xff]  ;;  %v325_v35 = vpack.c.bf16 %v308_v25, %v307_v24 }
  0x4c   :  { %1154 = vperm.xlu0 %8744, %v269_v42   ;;  %v158_v42 = vld [vmem:[%s12807_s26 + $0x2b8] sm:$0xff] }
  0x4d   :  { %v250_v45 = vpack.c.bf16 %v158_v42, %v157_v41  ;;  %v8767_v41 = vld [vmem:[%s12811_s5 + $0xc8] sm:$0xff]  }
  0x4e   :  { %v8768_v42 = vld [vmem:[%s12811_s5 + $0x8] sm:$0xff]   ;;  %7834 = vmatprep.subr.bf16.mxu0 %v8767_v41 }
  0x4f   :  { %1111 = vperm.xlu1 %8745, %v262_v48   ;;  %v162_v48 = vld [vmem:[%s12807_s26 + $0x2d8] sm:$0xff] }
  0x50   :  { %1159 = vperm.xlu0 %8744, %v270_v49   ;;  %v159_v49 = vld [vmem:[%s12807_s26 + $0x2c0] sm:$0xff]  ;;  %v252_v51 = vpack.c.bf16 %v162_v48, %v161_v47  ;;  %v305_v47 = vld [vmem:[%s12810_s1 + $0xf0] sm:$0xff]  ;;  %v306_v48 = vld [vmem:[%s12810_s1 + $0xf8] sm:$0xff] }
  0x51   :  { %v251_v52 = vpack.c.bf16 %v160_v50, %v159_v49  ;;  %v8770_v49 = vld [vmem:[%s12811_s5 + $0x50] sm:$0xff]   ;;  %v323_v50 = vpack.c.bf16 %v304_v38, %v303_v37  ;;  %v8792_v37 = vld [vmem:[%s12811_s5 + $0x38] sm:$0xff]  }
  0x52   :  { %v8793_v38 = vld [vmem:[%s12811_s5 + $0xb8] sm:$0xff]  }
  0x53   :  { %685 = vperm.xlu1 %8745, %v215_v54   ;;  %v166_v54 = vld [vmem:[%s12807_s26 + $0x2f8] sm:$0xff] }
  0x54   :  { %769 = vperm.xlu0 %8744, %v223_v55   ;;  %v163_v55 = vld [vmem:[%s12807_s26 + $0x2e0] sm:$0xff]  ;;  %v254_v57 = vpack.c.bf16 %v166_v54, %v165_v53  ;;  %v280_v54 = vld [vmem:[%s12810_s1 + $0x8] sm:$0xff] }
  0x55   :  { %v253_v58 = vpack.c.bf16 %v164_v56, %v163_v55  ;;  %v279_v53 = vld [vmem:[%s12810_s1] sm:$0xff]  ;;  %v8773_v55 = vld [vmem:[%s12811_s5 + $0x90] sm:$0xff]   ;;  %v322_v56 = vpack.c.bf16 %v302_v44, %v301_v43 }
  0x56   :  { %v8794_v43 = vld [vmem:[%s12811_s5 + $0x1c0] sm:$0xff]  }
  0x57   :  { %690 = vperm.xlu1 %8745, %v216_v60   ;;  %v202_v60 = vld [vmem:[%s12807_s26 + $0x418] sm:$0xff] }
  0x58   :  { %774 = vperm.xlu0 %8744, %v224_v61   ;;  %v199_v61 = vld [vmem:[%s12807_s26 + $0x400] sm:$0xff]  ;;  %v272_v63 = vpack.c.bf16 %v202_v60, %v201_v59  ;;  %v8774_v59 = vld [vmem:[%s12811_s5 + $0x58] sm:$0xff]   ;;  %v324_v60 = vpack.c.bf16 %v306_v48, %v305_v47 }
  0x59   :  { %v271_v1 = vpack.c.bf16 %v200_v62, %v199_v61  ;;  %v8775_v61 = vld [vmem:[%s12811_s5 + $0xd8] sm:$0xff]  }
  0x5a   :  { %v8776_v62 = vld [vmem:[%s12811_s5 + $0x18] sm:$0xff]  }
  0x5b   :  { %695 = vperm.xlu1 %8745, %v217_v3   ;;  %v206_v3 = vld [vmem:[%s12807_s26 + $0x438] sm:$0xff] }
  0x5c   :  { %779 = vperm.xlu0 %8744, %v225_v4   ;;  %v203_v4 = vld [vmem:[%s12807_s26 + $0x420] sm:$0xff]  ;;  %v274_v6 = vpack.c.bf16 %v206_v3, %v205_v2  ;;  %v8777_v2 = vld [vmem:[%s12811_s5 + $0x98] sm:$0xff]   ;;  %v311_v3 = vpack.c.bf16 %v280_v54, %v279_v53 }
  0x5d   :  { %v273_v7 = vpack.c.bf16 %v204_v5, %v203_v4  ;;  %v285_v4 = vld [vmem:[%s12810_s1 + $0x30] sm:$0xff]  ;;  %v286_v5 = vld [vmem:[%s12810_s1 + $0x38] sm:$0xff] }
  0x5f   :  { %700 = vperm.xlu1 %8745, %v218_v9   ;;  %v210_v9 = vld [vmem:[%s12807_s26 + $0x458] sm:$0xff] }
  0x60   :  { %784 = vperm.xlu0 %8744, %v226_v10   ;;  %v207_v10 = vld [vmem:[%s12807_s26 + $0x440] sm:$0xff]  ;;  %v276_v12 = vpack.c.bf16 %v210_v9, %v209_v8 }
  0x61   :  { %v275_v13 = vpack.c.bf16 %v208_v11, %v207_v10  ;;  %v8779_v8 = vld [vmem:[%s12811_s5 + $0xe0] sm:$0xff]   ;;  %v297_v10 = vld [vmem:[%s12810_s1 + $0xb0] sm:$0xff]  ;;  %v298_v11 = vld [vmem:[%s12810_s1 + $0xb8] sm:$0xff] }
  0x62   :  { %v8780_v9 = vld [vmem:[%s12811_s5 + $0x20] sm:$0xff]  }
  0x63   :  { %705 = vperm.xlu1 %8745, %v219_v15   ;;  %v214_v15 = vld [vmem:[%s12807_s26 + $0x478] sm:$0xff] }
  0x64   :  { %789 = vperm.xlu0 %8744, %v227_v16   ;;  %v211_v16 = vld [vmem:[%s12807_s26 + $0x460] sm:$0xff]  ;;  %v278_v18 = vpack.c.bf16 %v214_v15, %v213_v14  ;;  %v296_v15 = vld [vmem:[%s12810_s1 + $0xa8] sm:$0xff] }
  0x65   :  { %v277_v19 = vpack.c.bf16 %v212_v17, %v211_v16  ;;  %v295_v14 = vld [vmem:[%s12810_s1 + $0xa0] sm:$0xff]  ;;  %v8782_v16 = vld [vmem:[%s12811_s5 + $0x68] sm:$0xff]   ;;  %v314_v17 = vpack.c.bf16 %v286_v5, %v285_v4 }
  0x67   :  { %710 = vperm.xlu1 %8745, %v220_v21   ;;  %v288_v21 = vld [vmem:[%s12810_s1 + $0x48] sm:$0xff] }
  0x68   :  { %794 = vperm.xlu0 %8744, %v228_v22   ;;  %v291_v22 = vld [vmem:[%s12810_s1 + $0x60] sm:$0xff]  ;;  %v315_v26 = vpack.c.bf16 %v288_v21, %v287_v20  ;;  %v309_v20 = vld [vmem:[%s12810_s1 + $0x110] sm:$0xff]  ;;  %v310_v21 = vld [vmem:[%s12810_s1 + $0x118] sm:$0xff] }
  0x69   :  { %v317_v30 = vpack.c.bf16 %v292_v23, %v291_v22  ;;  %v8785_v22 = vld [vmem:[%s12811_s5 + $0xa8] sm:$0xff]   ;;  %v320_v23 = vpack.c.bf16 %v298_v11, %v297_v10  ;;  %v326_v32 = vpack.c.bf16 %v310_v21, %v309_v20 }
  0x6b   :  { %715 = vperm.xlu1 %8745, %v221_v27   ;;  %v293_v27 = vld [vmem:[%s12810_s1 + $0x70] sm:$0xff] }
  0x6c   :  { %799 = vperm.xlu0 %8744, %v229_v28   ;;  %v294_v28 = vld [vmem:[%s12810_s1 + $0x78] sm:$0xff] }
  0x6f   :  { %720 = vperm.xlu1 %8745, %v222_v33   ;;  %v299_v33 = vld [vmem:[%s12810_s1 + $0xc0] sm:$0xff] }
  0x70   :  { %804 = vperm.xlu0 %8744, %v230_v34   ;;  %v300_v34 = vld [vmem:[%s12810_s1 + $0xc8] sm:$0xff] }
  0x73   :  { %1033 = vperm.xlu1 %8745, %v248_v39   ;;  %v8766_v39 = vld [vmem:[%s12811_s5 + $0x48] sm:$0xff]  }
  0x74   :  { %1028 = vperm.xlu0 %8744, %v247_v40   ;;  %v318_v40 = vpack.c.bf16 %v294_v28, %v293_v27  ;;  %7770 = vmatprep.subr.bf16.mxu1 %v8766_v39  ;;  %v319_v27 = vpack.c.bf16 %v296_v15, %v295_v14  ;;  %v8787_v28 = vld [vmem:[%s12811_s5 + $0xf0] sm:$0xff]  }
  0x75   :  { %7771 = vmatpush3.bf16.msra.mxu1 %v8768_v42 }
  0x76   :  { %7772 = vmatprep.subr.bf16.mxu1 %v8770_v49 }
  0x77   :  { %1043 = vperm.xlu1 %8745, %v250_v45   ;;  %v8769_v45 = vld [vmem:[%s12811_s5 + $0x88] sm:$0xff]  }
  0x78   :  { %1038 = vperm.xlu0 %8744, %v249_v46   ;;  %v321_v46 = vpack.c.bf16 %v300_v34, %v299_v33  ;;  %7835 = vmatpush3.bf16.msra.mxu0 %v8769_v45  ;;  %v8790_v34 = vld [vmem:[%s12811_s5 + $0x78] sm:$0xff]  }
  0x7b   :  { %1053 = vperm.xlu1 %8745, %v252_v51   ;;  %v8771_v51 = vld [vmem:[%s12811_s5 + $0xd0] sm:$0xff]  }
  0x7c   :  { %1048 = vperm.xlu0 %8744, %v251_v52   ;;  %v8772_v52 = vld [vmem:[%s12811_s5 + $0x10] sm:$0xff]   ;;  %7836 = vmatprep.subr.bf16.mxu0 %v8771_v51 }
  0x7d   :  { %7773 = vmatpush3.bf16.msra.mxu1 %v8772_v52  ;;  %7837 = vmatpush3.bf16.msra.mxu0 %v8773_v55 }
  0x7e   :  { %7774 = vmatprep.subr.bf16.mxu1 %v8774_v59  ;;  %7838 = vmatprep.subr.bf16.mxu0 %v8775_v61 }
  0x7f   :  { %1063 = vperm.xlu1 %8745, %v254_v57   ;;  %v283_v57 = vld [vmem:[%s12810_s1 + $0x20] sm:$0xff] }
  0x80   :  { %1058 = vperm.xlu0 %8744, %v253_v58   ;;  %v284_v58 = vld [vmem:[%s12810_s1 + $0x28] sm:$0xff] }
  0x81   :  { %7775 = vmatpush3.bf16.msra.mxu1 %v8776_v62  ;;  %7839 = vmatpush3.bf16.msra.mxu0 %v8777_v2 }
  0x82   :  { %7840 = vmatprep.subr.bf16.mxu0 %v8779_v8 }
  0x83   :  { %1177 = vperm.xlu1 %8745, %v272_v63   ;;  %v281_v63 = vld [vmem:[%s12810_s1 + $0x10] sm:$0xff] }
  0x84   :  { %1172 = vperm.xlu0 %8744, %v271_v1   ;;  %v282_v1 = vld [vmem:[%s12810_s1 + $0x18] sm:$0xff]  ;;  %s12812_s1 = sld [smem:[#allocation63_spill]] }
  0x87   :  { %1187 = vperm.xlu1 %8745, %v274_v6   ;;  %v8778_v6 = vld [vmem:[%s12811_s5 + $0x60] sm:$0xff]  }
  0x88   :  { %1182 = vperm.xlu0 %8744, %v273_v7   ;;  %v313_v7 = vpack.c.bf16 %v284_v58, %v283_v57  ;;  %7776 = vmatprep.subr.bf16.mxu1 %v8778_v6  ;;  %v8802_v57 = vld [vmem:[%s12811_s5 + $0x140] sm:$0xff]  }
  0x89   :  { %7777 = vmatpush3.bf16.msra.mxu1 %v8780_v9 }
  0x8a   :  { %7778 = vmatprep.subr.bf16.mxu1 %v8782_v16  ;;  %v328_v33 = vld [vmem:[%s12812_s1 + $0x8] sm:$0xff]  ;;  %v329_v41 = vld [vmem:[%s12812_s1 + $0x10] sm:$0xff]  ;;  %v330_v42 = vld [vmem:[%s12812_s1 + $0x18] sm:$0xff] }
  0x8b   :  { %1197 = vperm.xlu1 %8745, %v276_v12   ;;  %v8781_v12 = vld [vmem:[%s12811_s5 + $0xa0] sm:$0xff]   ;;  %v337_v44 = vpack.c.bf16 %v329_v41, %v329_v41  ;;  %v331_v45 = vld [vmem:[%s12812_s1 + $0x28] sm:$0xff]  ;;  %v338_v47 = vpack.c.bf16 %v330_v42, %v330_v42 }
  0x8c   :  { %1192 = vperm.xlu0 %8744, %v275_v13   ;;  %v312_v13 = vpack.c.bf16 %v282_v1, %v281_v63  ;;  %7841 = vmatpush3.bf16.msra.mxu0 %v8781_v12  ;;  %v334_v48 = vld [vmem:[%s12812_s1 + $0x40] sm:$0xff]  ;;  %v339_v51 = vpack.c.bf16 %v331_v45, %v331_v45 }
  0x8d   :  { %v342_v52 = vpack.c.bf16 %v334_v48, %v334_v48 }
  0x8f   :  { %1207 = vperm.xlu1 %8745, %v278_v18   ;;  %v8783_v18 = vld [vmem:[%s12811_s5 + $0xe8] sm:$0xff]  }
  0x90   :  { %1202 = vperm.xlu0 %8744, %v277_v19   ;;  %v8784_v19 = vld [vmem:[%s12811_s5 + $0x28] sm:$0xff]   ;;  %7842 = vmatprep.subr.bf16.mxu0 %v8783_v18 }
  0x91   :  { %7779 = vmatpush3.bf16.msra.mxu1 %v8784_v19  ;;  %7843 = vmatpush3.bf16.msra.mxu0 %v8785_v22 }
  0x92   :  { %7844 = vmatprep.subr.bf16.mxu0 %v8787_v28  ;;  %v9951_v55 = vpop.permute.xlu1 %949 }
  0x93   :  { %4172 = vperm.xlu1 %8745, %v315_v26   ;;  %v8786_v26 = vld [vmem:[%s12811_s5 + $0x70] sm:$0xff]   ;;  %v9949_v54 = vpop.permute.xlu0 %944  ;;  %12814 = vst [vmem:[#allocation3_spill] sm:$0xff] %v9951_v55 }
  0x94   :  { %4193 = vperm.xlu0 %8744, %v317_v30   ;;  %7780 = vmatprep.subr.bf16.mxu1 %v8786_v26  ;;  %v327_v30 = vld [vmem:[%s12812_s1] sm:$0xff]  ;;  %12813 = vst [vmem:[#allocation2_spill] sm:$0xff] %v9949_v54 }
  0x95   :  { %7781 = vmatpush3.bf16.msra.mxu1 %v8788_v29  ;;  %7845 = vmatpush3.bf16.msra.mxu0 %v8789_v31  ;;  %v335_v39 = vpack.c.bf16 %v327_v30, %v327_v30 }
  0x96   :  { %7782 = vmatprep.subr.bf16.mxu1 %v8790_v34  ;;  %v9958_v58 = vpop.permute.xlu1 %865 }
  0x97   :  { %4177 = vperm.xlu1 %8745, %v316_v36   ;;  %v8791_v36 = vld [vmem:[%s12811_s5 + $0xf8] sm:$0xff]   ;;  %12816 = vst [vmem:[#allocation5_spill] sm:$0xff] %v9958_v58 }
  0x98   :  { %4198 = vperm.xlu0 %8744, %v318_v40   ;;  %7846 = vmatprep.subr.bf16.mxu0 %v8791_v36  ;;  %v336_v40 = vpack.c.bf16 %v328_v33, %v328_v33 }
  0x99   :  { %7783 = vmatpush3.bf16.msra.mxu1 %v8792_v37  ;;  %7847 = vmatpush3.bf16.msra.mxu0 %v8793_v38 }
  0x9a   :  { %7960 = vmatprep.subr.bf16.mxu0 %v8794_v43  ;;  %7896 = vmatprep.subr.bf16.mxu1 %v8802_v57 }
  0x9b   :  { %4240 = vperm.xlu1 %8745, %v321_v46   ;;  %v333_v46 = vld [vmem:[%s12812_s1 + $0x38] sm:$0xff] }
  0x9c   :  { %4262 = vperm.xlu0 %8744, %v323_v50   ;;  %v341_v49 = vpack.c.bf16 %v333_v46, %v333_v46  ;;  %v332_v50 = vld [vmem:[%s12812_s1 + $0x30] sm:$0xff]  ;;  %s12932_s1 = sld [smem:[#allocation66_spill]] }
  0x9d   :  { %v340_v53 = vpack.c.bf16 %v332_v50, %v332_v50 }
  0x9f   :  { %4245 = vperm.xlu1 %8745, %v322_v56   ;;  %v9953_v56 = vpop.permute.xlu0 %860 }
  0xa0   :  { %4267 = vperm.xlu0 %8744, %v324_v60   ;;  %12815 = vst [vmem:[#allocation4_spill] sm:$0xff] %v9953_v56  ;;  %v9962_v60 = vpop.permute.xlu1 %870 }
  0xa1   :  { %12818 = vst [vmem:[#allocation7_spill] sm:$0xff] %v9962_v60 }
  0xa3   :  { %4123 = vperm.xlu1 %8745, %v311_v3   ;;  %v9960_v59 = vpop.permute.xlu0 %954 }
  0xa4   :  { %4147 = vperm.xlu0 %8744, %v313_v7   ;;  %12817 = vst [vmem:[#allocation6_spill] sm:$0xff] %v9960_v59  ;;  %v9966_v62 = vpop.permute.xlu1 %875 }
  0xa5   :  { %12820 = vst [vmem:[#allocation9_spill] sm:$0xff] %v9966_v62 }
  0xa7   :  { %4128 = vperm.xlu1 %8745, %v312_v13   ;;  %v9964_v61 = vpop.permute.xlu0 %959  ;;  %v9997_v13 = vld [vmem:[%s12827_s2] ss:$0 sm:$0xff] }
  0xa8   :  { %4152 = vperm.xlu0 %8744, %v314_v17   ;;  %12819 = vst [vmem:[#allocation8_spill] sm:$0xff] %v9964_v61  ;;  %v9970_v1 = vpop.permute.xlu1 %880 }
  0xa9   :  { %12822 = vst [vmem:[#allocation11_spill] sm:$0xff] %v9970_v1 }
  0xab   :  { %4219 = vperm.xlu1 %8745, %v320_v23   ;;  %v9968_v63 = vpop.permute.xlu0 %964 }
  0xac   :  { %4214 = vperm.xlu0 %8744, %v319_v27   ;;  %12821 = vst [vmem:[#allocation10_spill] sm:$0xff] %v9968_v63  ;;  %v9974_v3 = vpop.permute.xlu1 %885 }
  0xad   :  { %12824 = vst [vmem:[#allocation13_spill] sm:$0xff] %v9974_v3 }
  0xaf   :  { %4292 = vperm.xlu1 %8745, %v326_v32   ;;  %v9972_v2 = vpop.permute.xlu0 %969 }
  0xb0   :  { %4287 = vperm.xlu0 %8744, %v325_v35   ;;  %12823 = vst [vmem:[#allocation12_spill] sm:$0xff] %v9972_v2  ;;  %v9978_v5 = vpop.permute.xlu1 %890 }
  0xb3   :  { %6463 = vperm.xlu1 %8745, %v335_v39   ;;  %v9976_v4 = vpop.permute.xlu0 %974 }
  0xb4   :  { %6477 = vperm.xlu0 %8744, %v336_v40   ;;  %v9982_v7 = vpop.permute.xlu1 %895 }
  0xb7   :  { %6489 = vperm.xlu1 %8745, %v337_v44   ;;  %v9980_v6 = vpop.permute.xlu0 %979 }
  0xb8   :  { %6495 = vperm.xlu0 %8744, %v338_v47   ;;  %v9986_v9 = vpop.permute.xlu1 %1076 }
  0xbb   :  { %6526 = vperm.xlu1 %8745, %v341_v49   ;;  %v9984_v8 = vpop.permute.xlu0 %1124 }
  0xbc   :  { %6507 = vperm.xlu0 %8744, %v339_v51   ;;  %v9990_v11 = vpop.permute.xlu1 %1081 }
  0xbd   :  { %12825 = vst [vmem:[#allocation14_spill] sm:$0xff] %v9990_v11 }
  0xbf   :  { %6541 = vperm.xlu1 %8745, %v342_v52   ;;  %v9988_v10 = vpop.permute.xlu0 %1129 }
  0xc0   :  { %6513 = vperm.xlu0 %8744, %v340_v53   ;;  %v10001_v19 = vpop.permute.xlu1 %1086 }
  0xc1   :  { %12828 = vst [vmem:[#allocation16_spill] sm:$0xff] %v10001_v19 }
  0xc3   :  { %v9992_v12 = vpop.permute.xlu0 %1134 }
  0xc4   :  { %12826 = vst [vmem:[#allocation15_spill] sm:$0xff] %v9992_v12  ;;  %v10011_v31 = vpop.permute.xlu1 %1091 }
  0xc5   :  { %12830 = vst [vmem:[#allocation18_spill] sm:$0xff] %v10011_v31 }
  0xc7   :  { %v10004_v22 = vpop.permute.xlu0 %1139 }
  0xc8   :  { %12829 = vst [vmem:[#allocation17_spill] sm:$0xff] %v10004_v22  ;;  %v10019_v44 = vpop.permute.xlu1 %1096 }
  0xc9   :  { %12832 = vst [vmem:[#allocation20_spill] sm:$0xff] %v10019_v44 }
  0xcb   :  { %v10014_v34 = vpop.permute.xlu0 %1144 }
  0xcc   :  { %12831 = vst [vmem:[#allocation19_spill] sm:$0xff] %v10014_v34  ;;  %v8799_v34 = vld [vmem:[%s12811_s5 + $0x190] sm:$0xff]  }
  0xcf   :  { %v10023_v46 = vpop.permute.xlu0 %1149 }
  0xd0   :  { %12834 = vst [vmem:[#allocation22_spill] sm:$0xff] %v10023_v46 }
 0x102   :  { %v8535_v14 = vpop.f32.mrb[0].mxu0 }
 0x103   :  { %v521_v15 = vadd.f32 %v8535_v14, %v9997_v13  ;;  %v512_v16 = vpop.f32.mrb[1].mxu0 }
 0x104   :  { %v513_v17 = vadd.f32 %v9997_v13, %v512_v16  ;;  %v8536_v18 = vpop.f32.mrb[2].mxu0 }
 0x105   :  { %v524_v20 = vadd.f32 %v8536_v18, %v9997_v13  ;;  %v515_v21 = vpop.f32.mrb[3].mxu0  ;;  %v577_v24 = vmax.f32 %v521_v15, 0.0  ;;  %v10031_v15 = vpop.permute.xlu1 %1101 }
 0x106   :  { %v516_v23 = vadd.f32 %v9997_v13, %v515_v21  ;;  %v575_v26 = vmax.f32 %v513_v17, 0.0  ;;  %12836 = vst [vmem:[#allocation24_spill] sm:$0xff] %v10031_v15  ;;  %v10033_v18 = vpop.permute.xlu0 %1154 }
 0x107   :  { %v578_v25 = vmax.f32 %v524_v20, 0.0  ;;  %12837 = vst [vmem:[#allocation25_spill] sm:$0xff] %v10033_v18  ;;  %v12847_v18 = vmov 0 }
 0x108   :  { %v576_v27 = vmax.f32 %v516_v23, 0.0  ;;  %v12848_v18 = vsel %vm10113_vm7, 4294967295, %v12847_v18 }
 0x109   :  { %v10007_v28 = vpack.c.bf16 %v578_v25, %v577_v24  ;;  %12849 = vst [vmem:[#allocation33_spill] sm:$0xff] %v12848_v18 }
 0x10a   :  { %v10009_v29 = vpack.c.bf16 %v576_v27, %v575_v26  ;;  %v8539_v30 = vpop.f32.mrb[4].mxu0 }
 0x10b   :  { %v537_v32 = vadd.f32 %v8539_v30, %v9997_v13  ;;  %v528_v33 = vpop.f32.mrb[5].mxu0  ;;  %v10041_v30 = vshrl.u32 %v10007_v28, 16 }
 0x10c   :  { %v529_v35 = vadd.f32 %v9997_v13, %v528_v33  ;;  %v8540_v36 = vpop.f32.mrb[6].mxu0 }
 0x10d   :  { %v540_v37 = vadd.f32 %v8540_v36, %v9997_v13  ;;  %v531_v38 = vpop.f32.mrb[7].mxu0  ;;  %v581_v40 = vmax.f32 %v537_v32, 0.0  ;;  %v10044_v32 = vshrl.u32 %v10009_v29, 16  ;;  %v10047_v36 = vpop.permute.xlu1 %1106  ;;  %v823_v44 = vrot.slane %v10041_v30, 4 }
 0x10e   :  { %v532_v39 = vadd.f32 %v9997_v13, %v531_v38  ;;  %v579_v42 = vmax.f32 %v529_v35, 0.0  ;;  %12839 = vst [vmem:[#allocation27_spill] sm:$0xff] %v10047_v36 }
 0x10f   :  { %v582_v41 = vmax.f32 %v540_v37, 0.0 }
 0x110   :  { %v580_v43 = vmax.f32 %v532_v39, 0.0  ;;  %v10050_v39 = vpop.permute.xlu0 %1159 }
 0x111   :  { %v10021_v45 = vpack.c.bf16 %v582_v41, %v581_v40  ;;  %12840 = vst [vmem:[#allocation28_spill] sm:$0xff] %v10050_v39  ;;  %v10053_v40 = vshll.u32 %v10009_v29, 16 }
 0x112   :  { %v10025_v47 = vpack.c.bf16 %v580_v43, %v579_v42  ;;  %v8543_v48 = vpop.f32.mrb[8].mxu0 }
 0x113   :  { %12833 = vst [vmem:[#allocation21_spill] sm:$0xff] %v10021_v45  ;;  %v553_v49 = vadd.f32 %v8543_v48, %v9997_v13  ;;  %v544_v50 = vpop.f32.mrb[9].mxu0  ;;  %v741_v48 = vrot.slane %v10009_v29, 4 }
 0x114   :  { %12835 = vst [vmem:[#allocation23_spill] sm:$0xff] %v10025_v47  ;;  %v545_v51 = vadd.f32 %v9997_v13, %v544_v50  ;;  %v8544_v52 = vpop.f32.mrb[10].mxu0  ;;  %v744_v18 = vrot.slane %v10025_v47, 4 }
 0x115   :  { %v556_v53 = vadd.f32 %v8544_v52, %v9997_v13  ;;  %v547_v57 = vpop.f32.mrb[11].mxu0  ;;  %v585_v16 = vmax.f32 %v553_v49, 0.0  ;;  %v12701_v49 = vrot.slane %v10007_v28, 4  ;;  %v909_v52 = vrot.slane %v10044_v32, 7 }
 0x116   :  { %v548_v14 = vadd.f32 %v9997_v13, %v547_v57  ;;  %v583_v20 = vmax.f32 %v545_v51, 0.0  ;;  %v10061_v57 = vshll.u32 %v10007_v28, 16 }
 0x117   :  { %v586_v17 = vmax.f32 %v556_v53, 0.0  ;;  %v12703_v53 = vrot.slane %v10041_v30, 7 }
 0x118   :  { %v584_v21 = vmax.f32 %v548_v14, 0.0 }
 0x119   :  { %v10035_v23 = vpack.c.bf16 %v586_v17, %v585_v16  ;;  %v612_v17 = vrot.slane %v10044_v32, 3 }
 0x11a   :  { %v10037_v24 = vpack.c.bf16 %v584_v21, %v583_v20  ;;  %v8547_v25 = vpop.f32.mrb[12].mxu0  ;;  %v615_v20 = vrot.slane %v10053_v40, 4  ;;  %v820_v21 = vrot.slane %v10044_v32, 4 }
 0x11b   :  { %12838 = vst [vmem:[#allocation26_spill] sm:$0xff] %v10035_v23  ;;  %v569_v26 = vadd.f32 %v8547_v25, %v9997_v13  ;;  %v560_v27 = vpop.f32.mrb[13].mxu0  ;;  %v10071_v25 = vpop.permute.xlu1 %1111 }
 0x11c   :  { %v561_v33 = vadd.f32 %v9997_v13, %v560_v27  ;;  %v8548_v35 = vpop.f32.mrb[14].mxu0  ;;  %12841 = vst [vmem:[#allocation29_spill] sm:$0xff] %v10071_v25 }
 0x11d   :  { %v572_v37 = vadd.f32 %v8548_v35, %v9997_v13  ;;  %v563_v38 = vpop.f32.mrb[15].mxu0  ;;  %v589_v42 = vmax.f32 %v569_v26, 0.0  ;;  %v821_v35 = vrot.slane %v10053_v40, 5 }
 0x11e   :  { %v564_v41 = vadd.f32 %v9997_v13, %v563_v38  ;;  %v587_v50 = vmax.f32 %v561_v33, 0.0  ;;  %v620_v13 = vrot.slane %v10041_v30, 3  ;;  %v10084_v38 = vshrl.u32 %v10025_v47, 16 }
 0x11f   :  { %v590_v43 = vmax.f32 %v572_v37, 0.0  ;;  %v10081_v37 = vpop.permute.xlu0 %769  ;;  %v822_v46 = vor.u32 %v821_v35, %v820_v21  ;;  %v8796_v35 = vld [vmem:[%s12811_s5 + $0x1c8] sm:$0xff]  }
 0x120   :  { %v588_v51 = vmax.f32 %v564_v41, 0.0  ;;  %12842 = vst [vmem:[#allocation30_spill] sm:$0xff] %v10081_v37  ;;  %v910_v41 = vor.u32 %v909_v52, %v10053_v40 }
 0x121   :  { %v10063_v14 = vpack.c.bf16 %v590_v43, %v589_v42  ;;  %v12843_v42 = vmov 0  ;;  %v10096_v43 = vsel %vm740_vm0, %v741_v48, %v12701_v49  ;;  %v616_v49 = vor.u32 %v615_v20, %v612_v17 }
 0x122   :  { %v10066_v16 = vpack.c.bf16 %v588_v51, %v587_v50  ;;  %v12844_v42 = vsel %vm10089_vm6, 4294967295, %v12843_v42  ;;  %v912_v50 = vor.u32 %v12703_v53, %v10061_v57  ;;  %v12850_v17 = vmov 0 }
 0x123   :  { %v10074_v26 = vshrl.u32 %v10063_v14, 16  ;;  %v10077_v27 = vshll.u32 %v10063_v14, 16  ;;  %v12704_v33 = vrot.slane %v10063_v14, 4  ;;  %12845 = vst [vmem:[#allocation31_spill] sm:$0xff] %v12844_v42  ;;  %v12851_v17 = vsel %vm10127_vm8, 4294967295, %v12850_v17 }
 0x124   :  { %12852 = vst [vmem:[#allocation34_spill] sm:$0xff] %v12851_v17  ;;  %v623_v20 = vrot.slane %v10061_v57, 4  ;;  %v8804_v17 = vld [vmem:[%s12811_s5 + $0x100] sm:$0xff]  }
 0x125   :  { %v10104_v51 = vsel %vm740_vm0, %v12704_v33, %v741_v48  ;;  %v12710_v0 = vrot.slane %v10074_v26, 7  ;;  %v602_v25 = vrot.slane %v10074_v26, 3  ;;  %v605_v39 = vrot.slane %v10077_v27, 4 }
 0x126   :  { %12846 = vst [vmem:[#allocation32_spill] sm:$0xff] %v10104_v51  ;;  %v807_v36 = vmul.bf16 %v10081_v37, %v10104_v51  ;;  %v815_v53 = vrot.slane %v10074_v26, 4  ;;  %v816_v48 = vrot.slane %v10077_v27, 5 }
 0x127   :  { %v941_v33 = vsel %vm10089_vm6, %v12710_v0, %v910_v41  ;;  %v10123_v15 = vor.u32 %v605_v39, %v602_v25  ;;  %v824_v41 = vrot.slane %v10061_v57, 5  ;;  %v10137_v39 = vpop.permute.xlu1 %685  ;;  %v913_v25 = vsel %vm908_vm3, %v909_v52, %v912_v50 }
 0x128   :  { %1833 = vmatprep.mubr.bf16.mxu1 %v807_v36  ;;  %v982_v37 = vmul.bf16 %v9949_v54, %v941_v33  ;;  %v10133_v51 = vor.u32 %v816_v48, %v815_v53  ;;  %12853 = vst [vmem:[#allocation35_spill] sm:$0xff] %v10137_v39  ;;  %v10146_v36 = vpop.permute.xlu0 %774  ;;  %v8795_v48 = vld [vmem:[%s12811_s5 + $0x180] sm:$0xff]   ;;  %v10159_v0 = vshll.u32 %v10025_v47, 16  ;;  %v624_v50 = vor.u32 %v623_v20, %v620_v13 }
 0x129   :  { %v10142_v21 = vsel %vm10113_vm7, %v10123_v15, %v616_v49  ;;  %12855 = vst [vmem:[#allocation37_spill] sm:$0xff] %v10146_v36  ;;  %v825_v54 = vor.u32 %v824_v41, %v823_v44  ;;  %v10177_v13 = vshrl.u32 %v10021_v45, 16  ;;  %v12857_v20 = vrot.slane %v10084_v38, 7  ;;  %v8797_v44 = vld [vmem:[%s12811_s5 + $0x188] sm:$0xff]   ;;  %v8805_v47 = vld [vmem:[%s12811_s5 + $0x1a0] sm:$0xff]  }
 0x12a   :  { %12854 = vst [vmem:[#allocation36_spill] sm:$0xff] %v10142_v21  ;;  %1930 = vmatprep.mubr.bf16.mxu0 %v982_v37  ;;  %v723_v53 = vmul.bf16 %v10137_v39, %v10142_v21  ;;  %v10153_v33 = vsel %vm10127_vm8, %v10133_v51, %v822_v46  ;;  %v808_v37 = vmul.bf16 %v10146_v36, %v10096_v43  ;;  %v12861_v36 = vrot.slane %v10041_v30, 7 }
 0x12b   :  { %12856 = vst [vmem:[#allocation38_spill] sm:$0xff] %v10153_v33  ;;  %v898_v52 = vmul.bf16 %v9953_v56, %v10153_v33  ;;  %v983_v39 = vmul.bf16 %v9951_v55, %v913_v25  ;;  %v8806_v56 = vld [vmem:[%s12811_s5 + $0x148] sm:$0xff]   ;;  %v915_v42 = vor.u32 %v12857_v20, %v10159_v0  ;;  %v10186_v41 = vsel %vm608_vm4, %v616_v49, %v624_v50  ;;  %v10209_v55 = vpop.permute.xlu1 %690  ;;  %v8800_v33 = vld [vmem:[%s12811_s5 + $0x1d8] sm:$0xff]  }
 0x12c   :  { %1834 = vmatmul.mubr.bf16.vlgmr.msra.gmra.mrb[0].mxu1 %v723_v53  ;;  %v629_v25 = vrot.slane %v10084_v38, 3  ;;  %v632_v53 = vrot.slane %v10159_v0, 4  ;;  %v12859_v49 = vrot.slane %v10007_v28, 4  ;;  %v828_v20 = vrot.slane %v10159_v0, 5  ;;  %12860 = vst [vmem:[#allocation40_spill] sm:$0xff] %v10209_v55  ;;  %v10215_v21 = vpop.permute.xlu0 %779 }
 0x12d   :  { %1931 = vmatmul.mubr.bf16.vlgmr.msra.gmra.mrb[16].mxu0 %v898_v52  ;;  %1841 = vmatprep.mubr.bf16.mxu1 %v808_v37  ;;  %v8798_v52 = vld [vmem:[%s12811_s5 + $0x1d0] sm:$0xff]   ;;  %v827_v37 = vrot.slane %v10084_v38, 4  ;;  %12862 = vst [vmem:[#allocation41_spill] sm:$0xff] %v10215_v21 }
 0x12e   :  { %1938 = vmatprep.mubr.bf16.mxu0 %v983_v39  ;;  %7961 = vmatpush3.bf16.msra.mxu0 %v8795_v48  ;;  %v8807_v39 = vld [vmem:[%s12811_s5 + $0x108] sm:$0xff]   ;;  %v10197_v48 = vsel %vm819_vm5, %v822_v46, %v825_v54  ;;  %v916_v46 = vsel %vm908_vm3, %v12861_v36, %v915_v42  ;;  %v633_v36 = vor.u32 %v632_v53, %v629_v25  ;;  %v8812_v25 = vld [vmem:[%s12811_s5 + $0x158] sm:$0xff]   ;;  %v10241_v53 = vshrl.u32 %v10037_v24, 16 }
 0x12f   :  { %7962 = vmatprep.subr.bf16.mxu0 %v8796_v35  ;;  %7897 = vmatpush3.bf16.msra.mxu1 %v8804_v17  ;;  %12858 = vst [vmem:[#allocation39_spill] sm:$0xff] %v10197_v48  ;;  %v10202_v35 = vsel %vm740_vm0, %v12859_v49, %v744_v18  ;;  %v8808_v17 = vld [vmem:[%s12811_s5 + $0x150] sm:$0xff]   ;;  %v10218_v49 = vshll.u32 %v10021_v45, 16  ;;  %v899_v31 = vmul.bf16 %v9958_v58, %v10197_v48  ;;  %v746_v58 = vrot.slane %v10021_v45, 4 }
 0x130   :  { %7898 = vmatprep.subr.bf16.mxu1 %v8806_v56  ;;  %v724_v56 = vmul.bf16 %v10209_v55, %v10186_v41  ;;  %v809_v42 = vmul.bf16 %v10215_v21, %v10202_v35  ;;  %v984_v55 = vmul.bf16 %v9960_v59, %v916_v46  ;;  %v829_v22 = vor.u32 %v828_v20, %v827_v37  ;;  %v10277_v48 = vpop.permute.xlu0 %784 }
 0x131   :  { %v638_v37 = vrot.slane %v10177_v13, 3  ;;  %v641_v20 = vrot.slane %v10218_v49, 4  ;;  %v832_v46 = vrot.slane %v10218_v49, 5  ;;  %v12867_v59 = vrot.slane %v10084_v38, 7  ;;  %12868 = vst [vmem:[#allocation45_spill] sm:$0xff] %v10277_v48 }
 0x132   :  { %7963 = vmatpush3.bf16.msra.mxu0 %v8797_v44  ;;  %v8810_v44 = vld [vmem:[%s12811_s5 + $0x110] sm:$0xff]  }
 0x133   :  { %7964 = vmatprep.subr.bf16.mxu0 %v8798_v52  ;;  %7899 = vmatpush3.bf16.msra.mxu1 %v8807_v39  ;;  %v12863_v52 = vrot.slane %v10177_v13, 7 }
 0x134   :  { %1842 = vmatmul.mubr.bf16.gmra.mrb[4].mxu1 %v724_v56  ;;  %7900 = vmatprep.subr.bf16.mxu1 %v8808_v17  ;;  %v831_v17 = vrot.slane %v10177_v13, 4  ;;  %v8801_v56 = vld [vmem:[%s12811_s5 + $0x198] sm:$0xff]  }
 0x135   :  { %1939 = vmatmul.mubr.bf16.gmra.mrb[20].mxu0 %v899_v31  ;;  %1849 = vmatprep.mubr.bf16.mxu1 %v809_v42  ;;  %v918_v39 = vor.u32 %v12863_v52, %v10218_v49  ;;  %v10254_v31 = vsel %vm608_vm4, %v624_v50, %v633_v36  ;;  %v10263_v42 = vsel %vm819_vm5, %v825_v54, %v829_v22  ;;  %v10271_v50 = vpop.permute.xlu1 %695  ;;  %v10280_v54 = vshll.u32 %v10066_v16, 16 }
 0x136   :  { %1946 = vmatprep.mubr.bf16.mxu0 %v984_v55  ;;  %7965 = vmatpush3.bf16.msra.mxu0 %v8799_v34  ;;  %v8803_v55 = vld [vmem:[%s12811_s5 + $0x1e0] sm:$0xff]   ;;  %v8813_v34 = vld [vmem:[%s12811_s5 + $0x118] sm:$0xff]   ;;  %12864 = vst [vmem:[#allocation42_spill] sm:$0xff] %v10263_v42  ;;  %v10266_v52 = vsel %vm740_vm0, %v744_v18, %v746_v58  ;;  %12866 = vst [vmem:[#allocation44_spill] sm:$0xff] %v10271_v50  ;;  %v725_v18 = vmul.bf16 %v10271_v50, %v10254_v31  ;;  %v10316_v50 = vshrl.u32 %v10066_v16, 16 }
 0x137   :  { %7966 = vmatprep.subr.bf16.mxu0 %v8800_v33  ;;  %7901 = vmatpush3.bf16.msra.mxu1 %v8810_v44  ;;  %12865 = vst [vmem:[#allocation43_spill] sm:$0xff] %v10266_v52  ;;  %v8814_v33 = vld [vmem:[%s12811_s5 + $0x160] sm:$0xff]   ;;  %v919_v44 = vsel %vm908_vm3, %v12867_v59, %v918_v39  ;;  %v10286_v45 = vor.u32 %v832_v46, %v831_v17  ;;  %v10292_v59 = vshll.u32 %v10037_v24, 16  ;;  %v8818_v46 = vld [vmem:[%s12811_s5 + $0x168] sm:$0xff]   ;;  %v12876_v19 = vrot.slane %v10280_v54, 1 }
 0x138   :  { %7902 = vmatprep.subr.bf16.mxu1 %v8812_v25  ;;  %v10284_v25 = vor.u32 %v641_v20, %v638_v37  ;;  %v900_v39 = vmul.bf16 %v9962_v60, %v10263_v42  ;;  %v810_v21 = vmul.bf16 %v10277_v48, %v10266_v52  ;;  %v8809_v37 = vld [vmem:[%s12811_s5 + $0x1e8] sm:$0xff]   ;;  %v8816_v20 = vld [vmem:[%s12811_s5 + $0x120] sm:$0xff]   ;;  %v985_v17 = vmul.bf16 %v9964_v61, %v919_v44  ;;  %v10351_v60 = vpop.permute.xlu0 %789 }
 0x139   :  { %12869 = vst [vmem:[#allocation46_spill] sm:$0xff] %v10292_v59  ;;  %v10324_v44 = vsel %vm819_vm5, %v829_v22, %v10286_v45  ;;  %v8815_v22 = vld [vmem:[%s12811_s5 + $0x1f0] sm:$0xff]   ;;  %v835_v61 = vrot.slane %v10241_v53, 4  ;;  %12874 = vst [vmem:[#allocation49_spill] sm:$0xff] %v10351_v60  ;;  %v1010_v12 = vor.u32 %v12876_v19, %v10316_v50  ;;  %v8821_v19 = vld [vmem:[%s12811_s5 + $0x1f8] sm:$0xff]  }
 0x13a   :  { %7967 = vmatpush3.bf16.msra.mxu0 %v8801_v56  ;;  %v10310_v56 = vshrl.u32 %v10035_v23, 16  ;;  %12871 = vst [vmem:[#allocation47_spill] sm:$0xff] %v10324_v44 }
 0x13b   :  { %7968 = vmatprep.subr.bf16.mxu0 %v8803_v55  ;;  %7903 = vmatpush3.bf16.msra.mxu1 %v8813_v34  ;;  %v12870_v55 = vrot.slane %v10241_v53, 7 }
 0x13c   :  { %1850 = vmatmul.mubr.bf16.gmra.mrb[8].mxu1 %v725_v18  ;;  %7904 = vmatprep.subr.bf16.mxu1 %v8814_v33  ;;  %v10320_v33 = vsel %vm608_vm4, %v633_v36, %v10284_v25  ;;  %v650_v36 = vrot.slane %v10292_v59, 4  ;;  %v1011_v18 = vrot.slane %v10077_v27, 1 }
 0x13d   :  { %1947 = vmatmul.mubr.bf16.gmra.mrb[24].mxu0 %v900_v39  ;;  %1857 = vmatprep.mubr.bf16.mxu1 %v810_v21  ;;  %v921_v34 = vor.u32 %v12870_v55, %v10292_v59  ;;  %v8811_v21 = vld [vmem:[%s12811_s5 + $0x1a8] sm:$0xff]   ;;  %v12872_v39 = vrot.slane %v10037_v24, 4 }
 0x13e   :  { %1954 = vmatprep.mubr.bf16.mxu0 %v985_v17  ;;  %7969 = vmatpush3.bf16.msra.mxu0 %v8805_v47  ;;  %v647_v17 = vrot.slane %v10241_v53, 3  ;;  %v8819_v47 = vld [vmem:[%s12811_s5 + $0x128] sm:$0xff]  }
 0x13f   :  { %v10333_v55 = vsel %vm740_vm0, %v746_v58, %v12872_v39  ;;  %7970 = vmatprep.subr.bf16.mxu0 %v8809_v37  ;;  %7905 = vmatpush3.bf16.msra.mxu1 %v8816_v20  ;;  %v836_v58 = vrot.slane %v10292_v59, 5  ;;  %v8820_v37 = vld [vmem:[%s12811_s5 + $0x170] sm:$0xff]   ;;  %v10349_v39 = vpop.permute.xlu1 %700  ;;  %v12875_v20 = vrot.slane %v10177_v13, 7  ;;  %v901_v59 = vmul.bf16 %v9966_v62, %v10324_v44 }
 0x140   :  { %7906 = vmatprep.subr.bf16.mxu1 %v8818_v46  ;;  %12873 = vst [vmem:[#allocation48_spill] sm:$0xff] %v10349_v39  ;;  %v726_v46 = vmul.bf16 %v10349_v39, %v10320_v33  ;;  %v811_v52 = vmul.bf16 %v10351_v60, %v10333_v55  ;;  %v651_v42 = vor.u32 %v650_v36, %v647_v17  ;;  %v8822_v60 = vld [vmem:[%s12811_s5 + $0x130] sm:$0xff]   ;;  %v750_v36 = vrot.slane %v10035_v23, 4 }
 0x141   :  { %v922_v48 = vsel %vm908_vm3, %v12875_v20, %v921_v34  ;;  %v8817_v34 = vld [vmem:[%s12811_s5 + $0x1b0] sm:$0xff]   ;;  %v10370_v20 = vshll.u32 %v10035_v23, 16  ;;  %v10382_v62 = vor.u32 %v1011_v18, %v10074_v26  ;;  %v837_v17 = vor.u32 %v836_v58, %v835_v61 }
 0x142   :  { %7971 = vmatpush3.bf16.msra.mxu0 %v8811_v21  ;;  %v10379_v21 = vsel %vm990_vm9, %v1010_v12, %v1011_v18  ;;  %v986_v39 = vmul.bf16 %v9968_v63, %v922_v48  ;;  %v12879_v12 = vrot.slane %v10310_v56, 7  ;;  %v8823_v48 = vld [vmem:[%s12811_s5 + $0x1b8] sm:$0xff]   ;;  %v10397_v61 = vsel %vm608_vm4, %v10284_v25, %v651_v42 }
 0x143   :  { %7972 = vmatprep.subr.bf16.mxu0 %v8815_v22  ;;  %7907 = vmatpush3.bf16.msra.mxu1 %v8819_v47  ;;  %12877 = vst [vmem:[#allocation50_spill] sm:$0xff] %v10379_v21  ;;  %12878 = vst [vmem:[#allocation51_spill] sm:$0xff] %v10382_v62  ;;  %v8824_v22 = vld [vmem:[%s12811_s5 + $0x178] sm:$0xff]   ;;  %v656_v18 = vrot.slane %v10310_v56, 3  ;;  %v659_v58 = vrot.slane %v10370_v20, 4  ;;  %v12881_v25 = vrot.slane %v10037_v24, 4 }
 0x144   :  { %1858 = vmatmul.mubr.bf16.gmra.mrb[12].mxu1 %v726_v46  ;;  %7908 = vmatprep.subr.bf16.mxu1 %v8820_v37  ;;  %v924_v47 = vor.u32 %v12879_v12, %v10370_v20  ;;  %v10411_v37 = vsel %vm819_vm5, %v10286_v45, %v837_v17  ;;  %v840_v46 = vrot.slane %v10370_v20, 5  ;;  %v12882_v45 = vrot.slane %v10241_v53, 7 }
 0x145   :  { %1955 = vmatmul.mubr.bf16.gmra.mrb[28].mxu0 %v901_v59  ;;  %1865 = vmatprep.mubr.bf16.mxu1 %v811_v52  ;;  %v8825_v52 = vld [vmem:[%s12811_s5 + $0x138] sm:$0xff]   ;;  %v10407_v59 = vld [vmem:[%s12880_s0] sm:$0xff]   ;;  %v926_v63 = vrot.slane %v10316_v50, 7  ;;  %v660_v23 = vor.u32 %v659_v58, %v656_v18  ;;  %v752_v21 = vrot.slane %v10066_v16, 4  ;;  %v665_v18 = vrot.slane %v10316_v50, 3 }
 0x146   :  { %1962 = vmatprep.mubr.bf16.mxu0 %v986_v39  ;;  %7973 = vmatpush3.bf16.msra.mxu0 %v8817_v34  ;;  %v10416_v39 = vsel %vm740_vm0, %v12881_v25, %v750_v36  ;;  %v10423_v34 = vld [vmem:[%s12811_s5 + $0x200] sm:$0xff]   ;;  %v925_v12 = vsel %vm908_vm3, %v12882_v45, %v924_v47  ;;  %v10431_v25 = vpop.permute.xlu0 %794  ;;  %v668_v58 = vrot.slane %v10280_v54, 4 }
 0x147   :  { %7974 = vmatprep.subr.bf16.mxu0 %v8821_v19  ;;  %7909 = vmatpush3.bf16.msra.mxu1 %v8822_v60  ;;  %v839_v60 = vrot.slane %v10310_v56, 4  ;;  %v10425_v19 = vpop.permute.xlu1 %705  ;;  %12883 = vst [vmem:[#allocation52_spill] sm:$0xff] %v10431_v25  ;;  %v812_v62 = vmul.bf16 %v10431_v25, %v10416_v39  ;;  %v987_v47 = vmul.bf16 %v9972_v2, %v925_v12  ;;  %v12885_v12 = vrot.slane %v10310_v56, 7 }
 0x148   :  { %7910 = vmatprep.subr.bf16.mxu1 %v8824_v22  ;;  %v727_v44 = vmul.bf16 %v10425_v19, %v10397_v61  ;;  %v902_v22 = vmul.bf16 %v9970_v1, %v10411_v37  ;;  %v10445_v1 = vsel %vm608_vm4, %v651_v42, %v660_v23 }
 0x149   :  { %v841_v45 = vor.u32 %v840_v46, %v839_v60  ;;  %v843_v60 = vrot.slane %v10316_v50, 4  ;;  %v669_v50 = vor.u32 %v668_v58, %v665_v18  ;;  %v991_v58 = vrot.slane %v10053_v40, 1 }
 0x14a   :  { %7975 = vmatpush3.bf16.msra.mxu0 %v8823_v48  ;;  %v927_v48 = vor.u32 %v926_v63, %v10280_v54 }
 0x14b   :  { %7911 = vmatpush3.bf16.msra.mxu1 %v8825_v52  ;;  %8581 = vmatprep.subr.bf16.mxu0 %v10407_v59  ;;  %v10453_v52 = vsel %vm740_vm0, %v750_v36, %v752_v21  ;;  %v10457_v46 = vpop.permute.xlu1 %710 }
 0x14c   :  { %1866 = vmatmul.mubr.bf16.gmra.mrb[16].mxu1 %v727_v44  ;;  %8549 = vmatprep.subr.bf16.mxu1 %v10423_v34  ;;  %v10450_v44 = vsel %vm819_vm5, %v837_v17, %v841_v45  ;;  %12884 = vst [vmem:[#allocation53_spill] sm:$0xff] %v10457_v46  ;;  %v928_v42 = vsel %vm908_vm3, %v12885_v12, %v927_v48  ;;  %v12887_v48 = vrot.slane %v10074_v26, 7 }
 0x14d   :  { %1963 = vmatmul.mubr.bf16.gmra.mrb[32].mxu0 %v902_v22  ;;  %1873 = vmatprep.mubr.bf16.mxu1 %v812_v62  ;;  %v844_v62 = vrot.slane %v10280_v54, 5  ;;  %v10462_v22 = vpop.permute.xlu0 %799  ;;  %v903_v17 = vmul.bf16 %v9974_v3, %v10450_v44  ;;  %v988_v2 = vmul.bf16 %v9976_v4, %v928_v42  ;;  %v10504_v42 = vsel %vm608_vm4, %v669_v50, %v10123_v15 }
 0x14e   :  { %1970 = vmatprep.mubr.bf16.mxu0 %v987_v47  ;;  %12886 = vst [vmem:[#allocation54_spill] sm:$0xff] %v10462_v22  ;;  %v728_v47 = vmul.bf16 %v10457_v46, %v10445_v1  ;;  %v813_v36 = vmul.bf16 %v10462_v22, %v10453_v52  ;;  %v929_v12 = vor.u32 %v12887_v48, %v10077_v27  ;;  %v12888_v22 = vrot.slane %v10063_v14, 4 }
 0x14f   :  { %v845_v25 = vor.u32 %v844_v62, %v843_v60  ;;  %v10475_v46 = vsel %vm608_vm4, %v660_v23, %v669_v50  ;;  %v10486_v60 = vpop.permute.xlu1 %715  ;;  %v1162_v15 = vmul.bf16 %v9984_v8, %v10096_v43  ;;  %v8827_v43 = vld [vmem:[%s12880_s0 + $0x8] sm:$0xff]  }
 0x150   :  { %v10483_v18 = vsel %vm740_vm0, %v752_v21, %v12888_v22  ;;  %v930_v62 = vsel %vm908_vm3, %v926_v63, %v929_v12  ;;  %v993_v63 = vrot.slane %v10061_v57, 1 }
 0x151   :  { %v10478_v3 = vsel %vm819_vm5, %v841_v45, %v845_v25  ;;  %v10489_v26 = vpop.permute.xlu0 %804  ;;  %v989_v21 = vmul.bf16 %v9980_v6, %v930_v62  ;;  %v992_v45 = vor.u32 %v991_v58, %v10044_v32  ;;  %v10508_v22 = vsel %vm819_vm5, %v845_v25, %v10133_v51 }
 0x152   :  { %v904_v23 = vmul.bf16 %v9978_v5, %v10478_v3  ;;  %v814_v27 = vmul.bf16 %v10489_v26, %v10483_v18  ;;  %v905_v57 = vmul.bf16 %v9982_v7, %v10508_v22  ;;  %v996_v51 = vrot.slane %v10159_v0, 1 }
 0x153   :  { %v995_v25 = vor.u32 %v993_v63, %v10041_v30  ;;  %v1114_v62 = vmul.bf16 %v9986_v9, %v10186_v41  ;;  %v1163_v0 = vmul.bf16 %v9988_v10, %v10202_v35  ;;  %v999_v41 = vrot.slane %v10218_v49, 1  ;;  %v8833_v35 = vld [vmem:[%s12811_s5 + $0x210] sm:$0xff]  }
 0x154   :  { %1874 = vmatmul.mubr.bf16.gmra.mrb[20].mxu1 %v728_v47  ;;  %v994_v47 = vsel %vm990_vm9, %v992_v45, %v993_v63  ;;  %v998_v30 = vor.u32 %v996_v51, %v10084_v38  ;;  %v1115_v49 = vmul.bf16 %v9990_v11, %v10254_v31  ;;  %v12890_v45 = vld [vmem:[#allocation43_spill] sm:$0xff]  ;;  %v8835_v31 = vld [vmem:[%s12811_s5 + $0x218] sm:$0xff]  }
 0x155   :  { %1971 = vmatmul.mubr.bf16.gmra.mrb[36].mxu0 %v903_v17  ;;  %1881 = vmatprep.mubr.bf16.mxu1 %v813_v36  ;;  %v10511_v17 = vpop.permute.xlu1 %720  ;;  %v10513_v36 = vpop.permute.xlu0 %1028  ;;  %v997_v50 = vsel %vm990_vm9, %v995_v25, %v996_v51  ;;  %v12891_v63 = vld [vmem:[#allocation15_spill] sm:$0xff]  ;;  %v8836_v25 = vld [vmem:[%s12811_s5 + $0x220] sm:$0xff]  }
 0x156   :  { %1978 = vmatprep.mubr.bf16.mxu0 %v988_v2  ;;  %v729_v2 = vmul.bf16 %v10486_v60, %v10475_v46  ;;  %v730_v32 = vmul.bf16 %v10511_v17, %v10504_v42  ;;  %v1066_v48 = vmul.bf16 %v10513_v36, %v994_v47  ;;  %v1000_v38 = vsel %vm990_vm9, %v998_v30, %v999_v41  ;;  %v12896_v30 = vld [vmem:[#allocation17_spill] sm:$0xff] }
 0x157   :  { %v1164_v47 = vmul.bf16 %v12891_v63, %v12890_v45  ;;  %v12899_v45 = vld [vmem:[#allocation21_spill] sm:$0xff] }
 0x159   :  { %v10525_v12 = vpop.permute.xlu1 %1033 }
 0x15c   :  { %1882 = vmatmul.mubr.bf16.gmra.mrb[24].mxu1 %v729_v2  ;;  %v1067_v2 = vmul.bf16 %v10525_v12, %v997_v50 }
 0x15d   :  { %1979 = vmatmul.mubr.bf16.gmra.mrb[40].mxu0 %v904_v23  ;;  %1889 = vmatprep.mubr.bf16.mxu1 %v814_v27  ;;  %v8832_v23 = vld [vmem:[%s12811_s5 + $0x208] sm:$0xff]   ;;  %v8828_v27 = vld [vmem:[%s12880_s0 + $0x10] sm:$0xff]   ;;  %v10573_v50 = vpop.permute.xlu1 %1043 }
 0x15e   :  { %1986 = vmatprep.mubr.bf16.mxu0 %v989_v21  ;;  %v10550_v21 = vpop.permute.xlu0 %1038  ;;  %12893 = vst [vmem:[#allocation43_spill] sm:$0xff] %v10573_v50 }
 0x15f   :  { %12889 = vst [vmem:[#allocation55_spill] sm:$0xff] %v10550_v21 }
 0x164   :  { %1890 = vmatmul.mubr.bf16.gmra.mrb[28].mxu1 %v730_v32  ;;  %v12892_v32 = vld [vmem:[#allocation46_spill] sm:$0xff] }
 0x165   :  { %1987 = vmatmul.mubr.bf16.gmra.mrb[44].mxu0 %v905_v57  ;;  %2027 = vmatprep.mubr.bf16.mxu1 %v1066_v48  ;;  %v1002_v57 = vrot.slane %v12892_v32, 1  ;;  %v1001_v48 = vor.u32 %v999_v41, %v10177_v13 }
 0x166   :  { %2124 = vmatprep.mubr.bf16.mxu0 %v1162_v15  ;;  %v8831_v15 = vld [vmem:[%s12880_s0 + $0x20] sm:$0xff]  }
 0x167   :  { %v1003_v51 = vsel %vm990_vm9, %v1001_v48, %v1002_v57  ;;  %v1004_v41 = vor.u32 %v1002_v57, %v10241_v53  ;;  %v8839_v53 = vld [vmem:[%s12811_s5 + $0x230] sm:$0xff]   ;;  %v8841_v57 = vld [vmem:[%s12811_s5 + $0x238] sm:$0xff]  }
 0x16c   :  { %2028 = vmatmul.mubr.bf16.vlgmr.msra.gmra.mrb[32].mxu1 %v10009_v29 }
 0x16d   :  { %2125 = vmatmul.mubr.bf16.vlgmr.msra.gmra.mrb[48].mxu0 %v1114_v62  ;;  %2035 = vmatprep.mubr.bf16.mxu1 %v1067_v2  ;;  %v12894_v62 = vld [vmem:[#allocation16_spill] sm:$0xff]  ;;  %v1069_v2 = vmul.bf16 %v10573_v50, %v1003_v51  ;;  %v12949_v50 = vld [vmem:[#allocation3_spill] sm:$0xff] }
 0x16e   :  { %2132 = vmatprep.mubr.bf16.mxu0 %v1163_v0  ;;  %8582 = vmatpush3.bf16.msra.mxu0 %v10407_v59  ;;  %v1068_v59 = vmul.bf16 %v10550_v21, %v1000_v38  ;;  %v1116_v13 = vmul.bf16 %v12894_v62, %v10320_v33  ;;  %v12895_v0 = vld [vmem:[#allocation23_spill] sm:$0xff]  ;;  %v8837_v38 = vld [vmem:[%s12880_s0 + $0x30] sm:$0xff]  }
 0x16f   :  { %8583 = vmatprep.subr.bf16.mxu0 %v8827_v43  ;;  %8550 = vmatpush3.bf16.msra.mxu1 %v10423_v34  ;;  %v8829_v34 = vld [vmem:[%s12880_s0 + $0x18] sm:$0xff]   ;;  %v8838_v33 = vld [vmem:[%s12811_s5 + $0x228] sm:$0xff]   ;;  %s12985_s5 = sld [smem:[#allocation68_spill]] }
 0x170   :  { %8551 = vmatprep.subr.bf16.mxu1 %v8832_v23 }
 0x172   :  { %8584 = vmatpush3.bf16.msra.mxu0 %v8827_v43  ;;  %v8834_v43 = vld [vmem:[%s12880_s0 + $0x28] sm:$0xff]  }
 0x173   :  { %8585 = vmatprep.subr.bf16.mxu0 %v8828_v27  ;;  %8552 = vmatpush3.bf16.msra.mxu1 %v8832_v23  ;;  %v1165_v23 = vmul.bf16 %v12896_v30, %v10333_v55 }
 0x174   :  { %2036 = vmatmul.mubr.bf16.gmra.mrb[36].mxu1 %v10007_v28  ;;  %8553 = vmatprep.subr.bf16.mxu1 %v8833_v35 }
 0x175   :  { %2133 = vmatmul.mubr.bf16.gmra.mrb[52].mxu0 %v1115_v49  ;;  %2043 = vmatprep.mubr.bf16.mxu1 %v1068_v59  ;;  %v12898_v49 = vld [vmem:[#allocation18_spill] sm:$0xff] }
 0x176   :  { %2140 = vmatprep.mubr.bf16.mxu0 %v1164_v47  ;;  %8586 = vmatpush3.bf16.msra.mxu0 %v8828_v27  ;;  %v1005_v27 = vrot.slane %v10370_v20, 1  ;;  %v1117_v20 = vmul.bf16 %v12898_v49, %v10397_v61  ;;  %v12900_v47 = vld [vmem:[#allocation19_spill] sm:$0xff] }
 0x177   :  { %8587 = vmatprep.subr.bf16.mxu0 %v8829_v34  ;;  %8554 = vmatpush3.bf16.msra.mxu1 %v8833_v35  ;;  %v10596_v35 = vpop.permute.xlu0 %1048  ;;  %v1166_v32 = vmul.bf16 %v12900_v47, %v10416_v39  ;;  %v12903_v39 = vld [vmem:[#allocation20_spill] sm:$0xff] }
 0x178   :  { %8555 = vmatprep.subr.bf16.mxu1 %v8835_v31  ;;  %v1006_v55 = vsel %vm990_vm9, %v1004_v41, %v1005_v27  ;;  %12897 = vst [vmem:[#allocation46_spill] sm:$0xff] %v10596_v35  ;;  %v1007_v61 = vor.u32 %v1005_v27, %v10310_v56  ;;  %v1118_v51 = vmul.bf16 %v12903_v39, %v10445_v1  ;;  %v12904_v56 = vld [vmem:[#allocation22_spill] sm:$0xff] }
 0x179   :  { %v1070_v59 = vmul.bf16 %v10596_v35, %v1006_v55  ;;  %v12908_v41 = vld [vmem:[#allocation26_spill] sm:$0xff] }
 0x17a   :  { %8588 = vmatpush3.bf16.msra.mxu0 %v8829_v34  ;;  %v8840_v34 = vld [vmem:[%s12880_s0 + $0x38] sm:$0xff]  }
 0x17b   :  { %8589 = vmatprep.subr.bf16.mxu0 %v8831_v15  ;;  %8556 = vmatpush3.bf16.msra.mxu1 %v8835_v31  ;;  %v12901_v31 = vrot.slane %v10280_v54, 1  ;;  %v10622_v54 = vpop.permute.xlu0 %1058 }
 0x17c   :  { %2044 = vmatmul.mubr.bf16.gmra.mrb[40].mxu1 %v12895_v0  ;;  %8557 = vmatprep.subr.bf16.mxu1 %v8836_v25  ;;  %12905 = vst [vmem:[#allocation21_spill] sm:$0xff] %v10622_v54 }
 0x17d   :  { %2141 = vmatmul.mubr.bf16.gmra.mrb[56].mxu0 %v1116_v13  ;;  %2051 = vmatprep.mubr.bf16.mxu1 %v1069_v2  ;;  %v1009_v48 = vsel %vm990_vm9, %v1007_v61, %v12901_v31  ;;  %v1167_v13 = vmul.bf16 %v12904_v56, %v10453_v52  ;;  %v12906_v2 = vld [vmem:[#allocation24_spill] sm:$0xff]  ;;  %v12919_v61 = vld [vmem:[#allocation29_spill] sm:$0xff]  ;;  %v12920_v31 = vld [vmem:[#allocation39_spill] sm:$0xff] }
 0x17e   :  { %2148 = vmatprep.mubr.bf16.mxu0 %v1165_v23  ;;  %8590 = vmatpush3.bf16.msra.mxu0 %v8831_v15  ;;  %v10614_v15 = vpop.permute.xlu1 %1053  ;;  %v12907_v23 = vld [vmem:[#allocation50_spill] sm:$0xff]  ;;  %v9005_v52 = vld [vmem:[%s12677_s19 + $0xc8] sm:$0xff]  }
 0x17f   :  { %8591 = vmatprep.subr.bf16.mxu0 %v8834_v43  ;;  %8558 = vmatpush3.bf16.msra.mxu1 %v8836_v25  ;;  %12902 = vst [vmem:[#allocation23_spill] sm:$0xff] %v10614_v15  ;;  %v1071_v25 = vmul.bf16 %v10614_v15, %v1009_v48  ;;  %v1072_v1 = vmul.bf16 %v10622_v54, %v12907_v23  ;;  %v10649_v40 = vpop.permute.xlu0 %1172 }
 0x180   :  { %8559 = vmatprep.subr.bf16.mxu1 %v8838_v33  ;;  %12917 = vst [vmem:[#allocation26_spill] sm:$0xff] %v10649_v40  ;;  %v1210_v48 = vmul.bf16 %v10649_v40, %v12920_v31 }
 0x182   :  { %8592 = vmatpush3.bf16.msra.mxu0 %v8834_v43  ;;  %v1119_v43 = vmul.bf16 %v12906_v2, %v10475_v46  ;;  %v10641_v55 = vpop.permute.xlu1 %1063 }
 0x183   :  { %8593 = vmatprep.subr.bf16.mxu0 %v8837_v38  ;;  %8560 = vmatpush3.bf16.msra.mxu1 %v8838_v33  ;;  %v12909_v33 = vld [vmem:[#allocation25_spill] sm:$0xff]  ;;  %12913 = vst [vmem:[#allocation50_spill] sm:$0xff] %v10641_v55 }
 0x184   :  { %2052 = vmatmul.mubr.bf16.gmra.mrb[44].mxu1 %v12899_v45  ;;  %8561 = vmatprep.subr.bf16.mxu1 %v8839_v53  ;;  %v1168_v27 = vmul.bf16 %v12909_v33, %v10483_v18 }
 0x185   :  { %2149 = vmatmul.mubr.bf16.gmra.mrb[60].mxu0 %v1117_v20  ;;  %2059 = vmatprep.mubr.bf16.mxu1 %v1070_v59  ;;  %v12915_v59 = vld [vmem:[#allocation32_spill] sm:$0xff] }
 0x186   :  { %2156 = vmatprep.mubr.bf16.mxu0 %v1166_v32  ;;  %8594 = vmatpush3.bf16.msra.mxu0 %v8837_v38  ;;  %v12912_v38 = vld [vmem:[#allocation51_spill] sm:$0xff] }
 0x187   :  { %8595 = vmatprep.subr.bf16.mxu0 %v8840_v34  ;;  %8562 = vmatpush3.bf16.msra.mxu1 %v8839_v53  ;;  %v1025_v46 = vsel %vm10632_vm11, %v12912_v38, %v991_v58  ;;  %v12914_v53 = vld [vmem:[#allocation27_spill] sm:$0xff] }
 0x188   :  { %8563 = vmatprep.subr.bf16.mxu1 %v8841_v57  ;;  %v1120_v20 = vmul.bf16 %v12914_v53, %v10504_v42  ;;  %v1073_v18 = vmul.bf16 %v10641_v55, %v1025_v46  ;;  %v10657_v42 = vpop.permute.xlu1 %1177 }
 0x189   :  { %12921 = vst [vmem:[#allocation51_spill] sm:$0xff] %v10657_v42 }
 0x18a   :  { %8596 = vmatpush3.bf16.msra.mxu0 %v8840_v34  ;;  %v12916_v34 = vld [vmem:[#allocation28_spill] sm:$0xff] }
 0x18b   :  { %8564 = vmatpush3.bf16.msra.mxu1 %v8841_v57  ;;  %v1169_v32 = vmul.bf16 %v12916_v34, %v12915_v59  ;;  %v12918_v57 = vld [vmem:[#allocation36_spill] sm:$0xff] }
 0x18c   :  { %2060 = vmatmul.mubr.bf16.gmra.mrb[48].mxu1 %v10037_v24  ;;  %v1121_v58 = vmul.bf16 %v12919_v61, %v12918_v57 }
 0x18d   :  { %2157 = vmatmul.mubr.bf16.gmra.mrb[64].mxu0 %v1118_v51  ;;  %2067 = vmatprep.mubr.bf16.mxu1 %v1071_v25  ;;  %v10659_v51 = vpop.permute.xlu0 %1182  ;;  %v12923_v25 = vld [vmem:[#allocation42_spill] sm:$0xff] }
 0x18e   :  { %2164 = vmatprep.mubr.bf16.mxu0 %v1167_v13  ;;  %12922 = vst [vmem:[#allocation32_spill] sm:$0xff] %v10659_v51  ;;  %v1211_v13 = vmul.bf16 %v10657_v42, %v12923_v25 }
 0x194   :  { %2068 = vmatmul.mubr.bf16.gmra.mrb[52].mxu1 %v12908_v41 }
 0x195   :  { %2165 = vmatmul.mubr.bf16.gmra.mrb[68].mxu0 %v1119_v43  ;;  %2075 = vmatprep.mubr.bf16.mxu1 %v1072_v1  ;;  %v12924_v43 = vld [vmem:[#allocation47_spill] sm:$0xff]  ;;  %v10667_v1 = vpop.permute.xlu1 %1187 }
 0x196   :  { %2172 = vmatprep.mubr.bf16.mxu0 %v1168_v27  ;;  %v1212_v23 = vmul.bf16 %v10659_v51, %v12924_v43  ;;  %12925 = vst [vmem:[#allocation36_spill] sm:$0xff] %v10667_v1  ;;  %v10669_v27 = vpop.permute.xlu0 %1192 }
 0x197   :  { %12926 = vst [vmem:[#allocation39_spill] sm:$0xff] %v10669_v27  ;;  %v1214_v38 = vmul.bf16 %v10669_v27, %v10450_v44  ;;  %v12930_v44 = vld [vmem:[#allocation38_spill] sm:$0xff] }
 0x19a   :  { %v10679_v46 = vpop.permute.xlu0 %1202 }
 0x19b   :  { %12928 = vst [vmem:[#allocation47_spill] sm:$0xff] %v10679_v46 }
 0x19c   :  { %2076 = vmatmul.mubr.bf16.gmra.mrb[56].mxu1 %v10066_v16 }
 0x19d   :  { %2173 = vmatmul.mubr.bf16.gmra.mrb[72].mxu0 %v1120_v20  ;;  %2083 = vmatprep.mubr.bf16.mxu1 %v1073_v18  ;;  %v1216_v20 = vmul.bf16 %v10679_v46, %v10508_v22 }
 0x19e   :  { %2180 = vmatprep.mubr.bf16.mxu0 %v1169_v32 }
 0x1a4   :  { %2084 = vmatmul.mubr.bf16.gmra.mrb[60].mxu1 %v10063_v14 }
 0x1a5   :  { %2181 = vmatmul.mubr.bf16.gmra.mrb[76].mxu0 %v1121_v58  ;;  %8565 = vmatprep.mubr.bf16.mxu1 %v1210_v48 }
 0x1a6   :  { %8597 = vmatprep.mubr.bf16.mxu0 %v10009_v29  ;;  %v1213_v29 = vmul.bf16 %v10667_v1, %v10411_v37 }
 0x1ac   :  { %8566 = vmatmul.mubr.bf16.vlgmr.msra.gmra.mrb[64].mxu1 %v1211_v13 }
 0x1ad   :  { %8598 = vmatmul.mubr.bf16.vlgmr.msra.gmra.mrb[80].mxu0 %v10007_v28  ;;  %8569 = vmatprep.mubr.bf16.mxu1 %v1212_v23  ;;  %v10677_v28 = vpop.permute.xlu1 %1197 }
 0x1ae   :  { %8601 = vmatprep.mubr.bf16.mxu0 %v12895_v0  ;;  %12927 = vst [vmem:[#allocation42_spill] sm:$0xff] %v10677_v28  ;;  %v1215_v0 = vmul.bf16 %v10677_v28, %v10478_v3 }
 0x1b1   :  { %v10687_v37 = vpop.permute.xlu1 %1207 }
 0x1b2   :  { %12929 = vst [vmem:[#allocation56_spill] sm:$0xff] %v10687_v37 }
 0x1b4   :  { %8570 = vmatmul.mubr.bf16.gmra.mrb[68].mxu1 %v1213_v29 }
 0x1b5   :  { %8602 = vmatmul.mubr.bf16.gmra.mrb[84].mxu0 %v12899_v45  ;;  %8573 = vmatprep.mubr.bf16.mxu1 %v1214_v38  ;;  %v12931_v45 = vmov 0  }
 0x1b6   :  { %8605 = vmatprep.mubr.bf16.mxu0 %v10037_v24  ;;  %v1217_v24 = vmul.bf16 %v10687_v37, %v12930_v44 }
 0x1bc   :  { %8574 = vmatmul.mubr.bf16.gmra.mrb[72].mxu1 %v1215_v0 }
 0x1bd   :  { %8606 = vmatmul.mubr.bf16.gmra.mrb[88].mxu0 %v12908_v41  ;;  %8577 = vmatprep.mubr.bf16.mxu1 %v1216_v20  ;;  %v10697_v41 = vld [vmem:[%s12932_s1] ss:$0 sm:$0xff] }
 0x1be   :  { %8609 = vmatprep.mubr.bf16.mxu0 %v10066_v16 }
 0x1c4   :  { %8578 = vmatmul.mubr.bf16.gmra.mrb[76].mxu1 %v1217_v24 }
 0x1c5   :  { %8610 = vmatmul.mubr.bf16.gmra.mrb[92].mxu0 %v10063_v14  ;;  %3110 = vmatprep.mubr.bf16.mxu1 %v12931_v45 }
 0x1c6   :  { %3163 = vmatprep.mubr.bf16.mxu0 %v12931_v45 }
 0x1ff   :  { %v7784_v3 = vpop.f32.mrb[0].mxu1 }
 0x200   :  { %v7848_v22 = vpop.f32.mrb[16].mxu0  ;;  %v7785_v16 = vpop.f32.mrb[1].mxu1 }
 0x201   :  { %v7786_v18 = vadd.f32 %v7785_v16, %v7784_v3  ;;  %v7849_v59 = vpop.f32.mrb[17].mxu0  ;;  %v7787_v32 = vpop.f32.mrb[2].mxu1 }
 0x202   :  { %v7850_v57 = vadd.f32 %v7849_v59, %v7848_v22  ;;  %v7851_v58 = vpop.f32.mrb[18].mxu0  ;;  %v7788_v31 = vpop.f32.mrb[3].mxu1 }
 0x203   :  { %v1836_v14 = vadd.f32 %v7786_v18, %v10697_v41  ;;  %v7789_v48 = vadd.f32 %v7788_v31, %v7787_v32  ;;  %v7852_v25 = vpop.f32.mrb[19].mxu0 }
 0x204   :  { %v7853_v13 = vadd.f32 %v7852_v25, %v7851_v58 }
 0x205   :  { %v10700_v43 = vadd.f32 %v7850_v57, %v1836_v14  ;;  %v1839_v23 = vadd.f32 %v7789_v48, %v10697_v41 }
 0x207   :  { %v10703_v29 = vadd.f32 %v7853_v13, %v1839_v23  ;;  %v7790_v38 = vpop.f32.mrb[4].mxu1 }
 0x208   :  { %v7854_v0 = vpop.f32.mrb[20].mxu0  ;;  %v7791_v20 = vpop.f32.mrb[5].mxu1 }
 0x209   :  { %v7792_v44 = vadd.f32 %v7791_v20, %v7790_v38  ;;  %v7855_v24 = vpop.f32.mrb[21].mxu0  ;;  %v7793_v3 = vpop.f32.mrb[6].mxu1 }
 0x20a   :  { %v7856_v22 = vadd.f32 %v7855_v24, %v7854_v0  ;;  %v7857_v16 = vpop.f32.mrb[22].mxu0  ;;  %v7794_v59 = vpop.f32.mrb[7].mxu1 }
 0x20b   :  { %v1844_v18 = vadd.f32 %v7792_v44, %v10697_v41  ;;  %v7795_v32 = vadd.f32 %v7794_v59, %v7793_v3  ;;  %v7858_v31 = vpop.f32.mrb[23].mxu0 }
 0x20c   :  { %v7859_v58 = vadd.f32 %v7858_v31, %v7857_v16 }
 0x20d   :  { %v10706_v57 = vadd.f32 %v7856_v22, %v1844_v18  ;;  %v1847_v14 = vadd.f32 %v7795_v32, %v10697_v41 }
 0x20f   :  { %v10709_v48 = vadd.f32 %v7859_v58, %v1847_v14  ;;  %v7796_v25 = vpop.f32.mrb[8].mxu1 }
 0x210   :  { %v7860_v13 = vpop.f32.mrb[24].mxu0  ;;  %v7797_v23 = vpop.f32.mrb[9].mxu1 }
 0x211   :  { %v7798_v38 = vadd.f32 %v7797_v23, %v7796_v25  ;;  %v7861_v20 = vpop.f32.mrb[25].mxu0  ;;  %v7799_v37 = vpop.f32.mrb[10].mxu1 }
 0x212   :  { %v7862_v0 = vadd.f32 %v7861_v20, %v7860_v13  ;;  %v7863_v24 = vpop.f32.mrb[26].mxu0  ;;  %v7800_v46 = vpop.f32.mrb[11].mxu1 }
 0x213   :  { %v1852_v44 = vadd.f32 %v7798_v38, %v10697_v41  ;;  %v7801_v3 = vadd.f32 %v7800_v46, %v7799_v37  ;;  %v7864_v59 = vpop.f32.mrb[27].mxu0 }
 0x214   :  { %v7865_v16 = vadd.f32 %v7864_v59, %v7863_v24 }
 0x215   :  { %v10712_v22 = vadd.f32 %v7862_v0, %v1852_v44  ;;  %v1855_v18 = vadd.f32 %v7801_v3, %v10697_v41 }
 0x217   :  { %v10715_v32 = vadd.f32 %v7865_v16, %v1855_v18  ;;  %v7802_v31 = vpop.f32.mrb[12].mxu1 }
 0x218   :  { %v7866_v58 = vpop.f32.mrb[28].mxu0  ;;  %v7803_v14 = vpop.f32.mrb[13].mxu1 }
 0x219   :  { %v7804_v25 = vadd.f32 %v7803_v14, %v7802_v31  ;;  %v7867_v23 = vpop.f32.mrb[29].mxu0  ;;  %v7805_v28 = vpop.f32.mrb[14].mxu1 }
 0x21a   :  { %v7868_v13 = vadd.f32 %v7867_v23, %v7866_v58  ;;  %v7869_v20 = vpop.f32.mrb[30].mxu0  ;;  %v7806_v27 = vpop.f32.mrb[15].mxu1 }
 0x21b   :  { %v1860_v38 = vadd.f32 %v7804_v25, %v10697_v41  ;;  %v7807_v46 = vadd.f32 %v7806_v27, %v7805_v28  ;;  %v7870_v37 = vpop.f32.mrb[31].mxu0 }
 0x21c   :  { %v7871_v24 = vadd.f32 %v7870_v37, %v7869_v20 }
 0x21d   :  { %v10718_v0 = vadd.f32 %v7868_v13, %v1860_v38  ;;  %v1863_v44 = vadd.f32 %v7807_v46, %v10697_v41 }
 0x21f   :  { %v10721_v3 = vadd.f32 %v7871_v24, %v1863_v44  ;;  %v7808_v59 = vpop.f32.mrb[16].mxu1 }
 0x220   :  { %v7872_v16 = vpop.f32.mrb[32].mxu0  ;;  %v7809_v18 = vpop.f32.mrb[17].mxu1 }
 0x221   :  { %v7810_v31 = vadd.f32 %v7809_v18, %v7808_v59  ;;  %v7873_v14 = vpop.f32.mrb[33].mxu0  ;;  %v7811_v1 = vpop.f32.mrb[18].mxu1 }
 0x222   :  { %v7874_v58 = vadd.f32 %v7873_v14, %v7872_v16  ;;  %v7875_v23 = vpop.f32.mrb[34].mxu0  ;;  %v7812_v51 = vpop.f32.mrb[19].mxu1 }
 0x223   :  { %v1868_v25 = vadd.f32 %v7810_v31, %v10697_v41  ;;  %v7813_v27 = vadd.f32 %v7812_v51, %v7811_v1  ;;  %v7876_v28 = vpop.f32.mrb[35].mxu0 }
 0x224   :  { %v7877_v20 = vadd.f32 %v7876_v28, %v7875_v23 }
 0x225   :  { %v10724_v13 = vadd.f32 %v7874_v58, %v1868_v25  ;;  %v1871_v38 = vadd.f32 %v7813_v27, %v10697_v41 }
 0x227   :  { %v10727_v46 = vadd.f32 %v7877_v20, %v1871_v38  ;;  %v7814_v37 = vpop.f32.mrb[20].mxu1 }
 0x228   :  { %v7878_v24 = vpop.f32.mrb[36].mxu0  ;;  %v7815_v44 = vpop.f32.mrb[21].mxu1 }
 0x229   :  { %v7816_v59 = vadd.f32 %v7815_v44, %v7814_v37  ;;  %v7879_v18 = vpop.f32.mrb[37].mxu0  ;;  %v7817_v42 = vpop.f32.mrb[22].mxu1 }
 0x22a   :  { %v7880_v16 = vadd.f32 %v7879_v18, %v7878_v24  ;;  %v7881_v14 = vpop.f32.mrb[38].mxu0  ;;  %v7818_v40 = vpop.f32.mrb[23].mxu1 }
 0x22b   :  { %v1876_v31 = vadd.f32 %v7816_v59, %v10697_v41  ;;  %v7819_v51 = vadd.f32 %v7818_v40, %v7817_v42  ;;  %v7882_v1 = vpop.f32.mrb[39].mxu0 }
 0x22c   :  { %v7883_v23 = vadd.f32 %v7882_v1, %v7881_v14 }
 0x22d   :  { %v10730_v58 = vadd.f32 %v7880_v16, %v1876_v31  ;;  %v1879_v25 = vadd.f32 %v7819_v51, %v10697_v41 }
 0x22f   :  { %v10733_v27 = vadd.f32 %v7883_v23, %v1879_v25  ;;  %v7820_v28 = vpop.f32.mrb[24].mxu1 }
 0x230   :  { %v7884_v20 = vpop.f32.mrb[40].mxu0  ;;  %v7821_v38 = vpop.f32.mrb[25].mxu1 }
 0x231   :  { %v7822_v37 = vadd.f32 %v7821_v38, %v7820_v28  ;;  %v7885_v44 = vpop.f32.mrb[41].mxu0  ;;  %v7823_v61 = vpop.f32.mrb[26].mxu1 }
 0x232   :  { %v7886_v24 = vadd.f32 %v7885_v44, %v7884_v20  ;;  %v7887_v18 = vpop.f32.mrb[42].mxu0  ;;  %v7824_v34 = vpop.f32.mrb[27].mxu1 }
 0x233   :  { %v1884_v59 = vadd.f32 %v7822_v37, %v10697_v41  ;;  %v7825_v40 = vadd.f32 %v7824_v34, %v7823_v61  ;;  %v7888_v42 = vpop.f32.mrb[43].mxu0 }
 0x234   :  { %v7889_v14 = vadd.f32 %v7888_v42, %v7887_v18 }
 0x235   :  { %v10736_v16 = vadd.f32 %v7886_v24, %v1884_v59  ;;  %v1887_v31 = vadd.f32 %v7825_v40, %v10697_v41 }
 0x237   :  { %v10739_v51 = vadd.f32 %v7889_v14, %v1887_v31  ;;  %v7826_v1 = vpop.f32.mrb[28].mxu1 }
 0x238   :  { %v7890_v23 = vpop.f32.mrb[44].mxu0  ;;  %v7827_v25 = vpop.f32.mrb[29].mxu1 }
 0x239   :  { %v7828_v28 = vadd.f32 %v7827_v25, %v7826_v1  ;;  %v7891_v38 = vpop.f32.mrb[45].mxu0  ;;  %v7829_v53 = vpop.f32.mrb[30].mxu1 }
 0x23a   :  { %v7892_v20 = vadd.f32 %v7891_v38, %v7890_v23  ;;  %v7893_v44 = vpop.f32.mrb[46].mxu0  ;;  %v7830_v55 = vpop.f32.mrb[31].mxu1 }
 0x23b   :  { %v1892_v37 = vadd.f32 %v7828_v28, %v10697_v41  ;;  %v7831_v34 = vadd.f32 %v7830_v55, %v7829_v53  ;;  %v7894_v61 = vpop.f32.mrb[47].mxu0 }
 0x23c   :  { %v7895_v18 = vadd.f32 %v7894_v61, %v7893_v44 }
 0x23d   :  { %v10742_v24 = vadd.f32 %v7892_v20, %v1892_v37  ;;  %v1895_v59 = vadd.f32 %v7831_v34, %v10697_v41 }
 0x23f   :  { %v10745_v40 = vadd.f32 %v7895_v18, %v1895_v59  ;;  %v7912_v42 = vpop.f32.mrb[32].mxu1 }
 0x240   :  { %v7976_v14 = vpop.f32.mrb[48].mxu0  ;;  %v7913_v31 = vpop.f32.mrb[33].mxu1 }
 0x241   :  { %v7914_v1 = vadd.f32 %v7913_v31, %v7912_v42  ;;  %v7977_v25 = vpop.f32.mrb[49].mxu0  ;;  %v7915_v33 = vpop.f32.mrb[34].mxu1 }
 0x242   :  { %v7978_v23 = vadd.f32 %v7977_v25, %v7976_v14  ;;  %v7979_v38 = vpop.f32.mrb[50].mxu0  ;;  %v7916_v2 = vpop.f32.mrb[35].mxu1 }
 0x243   :  { %v2030_v28 = vadd.f32 %v7914_v1, %v10700_v43  ;;  %v7917_v55 = vadd.f32 %v7916_v2, %v7915_v33  ;;  %v7980_v53 = vpop.f32.mrb[51].mxu0 }
 0x244   :  { %v7981_v44 = vadd.f32 %v7980_v53, %v7979_v38 }
 0x245   :  { %v2033_v20 = vadd.f32 %v7917_v55, %v10703_v29  ;;  %v10749_v37 = vadd.f32 %v7978_v23, %v2030_v28 }
 0x247   :  { %v7918_v41 = vpop.f32.mrb[36].mxu1  ;;  %v10751_v34 = vadd.f32 %v7981_v44, %v2033_v20 }
 0x248   :  { %v7982_v61 = vpop.f32.mrb[52].mxu0  ;;  %v7919_v18 = vpop.f32.mrb[37].mxu1 }
 0x249   :  { %v7920_v59 = vadd.f32 %v7919_v18, %v7918_v41  ;;  %v7983_v42 = vpop.f32.mrb[53].mxu0  ;;  %v7921_v31 = vpop.f32.mrb[38].mxu1 }
 0x24a   :  { %v7984_v14 = vadd.f32 %v7983_v42, %v7982_v61  ;;  %v7985_v25 = vpop.f32.mrb[54].mxu0  ;;  %v7922_v54 = vpop.f32.mrb[39].mxu1 }
 0x24b   :  { %v2038_v43 = vadd.f32 %v7920_v59, %v10706_v57  ;;  %v7923_v2 = vadd.f32 %v7922_v54, %v7921_v31  ;;  %v7986_v33 = vpop.f32.mrb[55].mxu0 }
 0x24c   :  { %v7987_v1 = vadd.f32 %v7986_v33, %v7985_v25 }
 0x24d   :  { %v2041_v29 = vadd.f32 %v7923_v2, %v10709_v48  ;;  %v10755_v23 = vadd.f32 %v7984_v14, %v2038_v43 }
 0x24f   :  { %v7924_v38 = vpop.f32.mrb[40].mxu1  ;;  %v10757_v28 = vadd.f32 %v7987_v1, %v2041_v29 }
 0x250   :  { %v7988_v55 = vpop.f32.mrb[56].mxu0  ;;  %v7925_v53 = vpop.f32.mrb[41].mxu1 }
 0x251   :  { %v7926_v44 = vadd.f32 %v7925_v53, %v7924_v38  ;;  %v7989_v20 = vpop.f32.mrb[57].mxu0  ;;  %v7927_v41 = vpop.f32.mrb[42].mxu1 }
 0x252   :  { %v7990_v61 = vadd.f32 %v7989_v20, %v7988_v55  ;;  %v7991_v18 = vpop.f32.mrb[58].mxu0  ;;  %v7928_v42 = vpop.f32.mrb[43].mxu1 }
 0x253   :  { %v2046_v57 = vadd.f32 %v7926_v44, %v10712_v22  ;;  %v7929_v54 = vadd.f32 %v7928_v42, %v7927_v41  ;;  %v7992_v59 = vpop.f32.mrb[59].mxu0 }
 0x254   :  { %v7993_v31 = vadd.f32 %v7992_v59, %v7991_v18 }
 0x255   :  { %v2049_v48 = vadd.f32 %v7929_v54, %v10715_v32  ;;  %v10761_v14 = vadd.f32 %v7990_v61, %v2046_v57 }
 0x257   :  { %v7930_v25 = vpop.f32.mrb[44].mxu1  ;;  %v10763_v43 = vadd.f32 %v7993_v31, %v2049_v48 }
 0x258   :  { %v7994_v2 = vpop.f32.mrb[60].mxu0  ;;  %v7931_v33 = vpop.f32.mrb[45].mxu1 }
 0x259   :  { %v7932_v1 = vadd.f32 %v7931_v33, %v7930_v25  ;;  %v7995_v29 = vpop.f32.mrb[61].mxu0  ;;  %v7933_v38 = vpop.f32.mrb[46].mxu1 }
 0x25a   :  { %v7996_v55 = vadd.f32 %v7995_v29, %v7994_v2  ;;  %v7997_v53 = vpop.f32.mrb[62].mxu0  ;;  %v7934_v20 = vpop.f32.mrb[47].mxu1 }
 0x25b   :  { %v2054_v22 = vadd.f32 %v7932_v1, %v10718_v0  ;;  %v7935_v44 = vadd.f32 %v7934_v20, %v7933_v38  ;;  %v7998_v41 = vpop.f32.mrb[63].mxu0 }
 0x25c   :  { %v7999_v18 = vadd.f32 %v7998_v41, %v7997_v53 }
 0x25d   :  { %v2057_v32 = vadd.f32 %v7935_v44, %v10721_v3  ;;  %v10767_v61 = vadd.f32 %v7996_v55, %v2054_v22 }
 0x25f   :  { %v7936_v42 = vpop.f32.mrb[48].mxu1  ;;  %v10769_v57 = vadd.f32 %v7999_v18, %v2057_v32 }
 0x260   :  { %v8000_v54 = vpop.f32.mrb[64].mxu0  ;;  %v7937_v59 = vpop.f32.mrb[49].mxu1 }
 0x261   :  { %v7938_v31 = vadd.f32 %v7937_v59, %v7936_v42  ;;  %v8001_v48 = vpop.f32.mrb[65].mxu0  ;;  %v7939_v25 = vpop.f32.mrb[50].mxu1 }
 0x262   :  { %v8002_v2 = vadd.f32 %v8001_v48, %v8000_v54  ;;  %v8003_v33 = vpop.f32.mrb[66].mxu0  ;;  %v7940_v29 = vpop.f32.mrb[51].mxu1 }
 0x263   :  { %v2062_v0 = vadd.f32 %v7938_v31, %v10724_v13  ;;  %v7941_v1 = vadd.f32 %v7940_v29, %v7939_v25  ;;  %v8004_v38 = vpop.f32.mrb[67].mxu0 }
 0x264   :  { %v8005_v53 = vadd.f32 %v8004_v38, %v8003_v33 }
 0x265   :  { %v2065_v3 = vadd.f32 %v7941_v1, %v10727_v46  ;;  %v10773_v55 = vadd.f32 %v8002_v2, %v2062_v0 }
 0x267   :  { %v7942_v20 = vpop.f32.mrb[52].mxu1  ;;  %v10775_v22 = vadd.f32 %v8005_v53, %v2065_v3 }
 0x268   :  { %v8006_v44 = vpop.f32.mrb[68].mxu0  ;;  %v7943_v41 = vpop.f32.mrb[53].mxu1 }
 0x269   :  { %v7944_v18 = vadd.f32 %v7943_v41, %v7942_v20  ;;  %v8007_v32 = vpop.f32.mrb[69].mxu0  ;;  %v7945_v42 = vpop.f32.mrb[54].mxu1 }
 0x26a   :  { %v8008_v54 = vadd.f32 %v8007_v32, %v8006_v44  ;;  %v8009_v59 = vpop.f32.mrb[70].mxu0  ;;  %v7946_v48 = vpop.f32.mrb[55].mxu1 }
 0x26b   :  { %v2070_v13 = vadd.f32 %v7944_v18, %v10730_v58  ;;  %v7947_v31 = vadd.f32 %v7946_v48, %v7945_v42  ;;  %v8010_v25 = vpop.f32.mrb[71].mxu0 }
 0x26c   :  { %v8011_v33 = vadd.f32 %v8010_v25, %v8009_v59 }
 0x26d   :  { %v2073_v46 = vadd.f32 %v7947_v31, %v10733_v27  ;;  %v10779_v2 = vadd.f32 %v8008_v54, %v2070_v13 }
 0x26f   :  { %v7948_v29 = vpop.f32.mrb[56].mxu1  ;;  %v10781_v0 = vadd.f32 %v8011_v33, %v2073_v46 }
 0x270   :  { %v8012_v1 = vpop.f32.mrb[72].mxu0  ;;  %v7949_v38 = vpop.f32.mrb[57].mxu1 }
 0x271   :  { %v7950_v53 = vadd.f32 %v7949_v38, %v7948_v29  ;;  %v8013_v3 = vpop.f32.mrb[73].mxu0  ;;  %v7951_v20 = vpop.f32.mrb[58].mxu1 }
 0x272   :  { %v8014_v44 = vadd.f32 %v8013_v3, %v8012_v1  ;;  %v8015_v41 = vpop.f32.mrb[74].mxu0  ;;  %v7952_v32 = vpop.f32.mrb[59].mxu1 }
 0x273   :  { %v2078_v58 = vadd.f32 %v7950_v53, %v10736_v16  ;;  %v7953_v18 = vadd.f32 %v7952_v32, %v7951_v20  ;;  %v8016_v42 = vpop.f32.mrb[75].mxu0 }
 0x274   :  { %v8017_v59 = vadd.f32 %v8016_v42, %v8015_v41 }
 0x275   :  { %v2081_v27 = vadd.f32 %v7953_v18, %v10739_v51  ;;  %v10785_v54 = vadd.f32 %v8014_v44, %v2078_v58 }
 0x277   :  { %v7954_v48 = vpop.f32.mrb[60].mxu1  ;;  %v10787_v13 = vadd.f32 %v8017_v59, %v2081_v27 }
 0x278   :  { %v8018_v31 = vpop.f32.mrb[76].mxu0  ;;  %v7955_v25 = vpop.f32.mrb[61].mxu1 }
 0x279   :  { %v7956_v33 = vadd.f32 %v7955_v25, %v7954_v48  ;;  %v8019_v46 = vpop.f32.mrb[77].mxu0  ;;  %v7957_v29 = vpop.f32.mrb[62].mxu1 }
 0x27a   :  { %v8020_v1 = vadd.f32 %v8019_v46, %v8018_v31  ;;  %v8021_v38 = vpop.f32.mrb[78].mxu0  ;;  %v7958_v3 = vpop.f32.mrb[63].mxu1 }
 0x27b   :  { %v2086_v16 = vadd.f32 %v7956_v33, %v10742_v24  ;;  %v7959_v53 = vadd.f32 %v7958_v3, %v7957_v29  ;;  %v8022_v20 = vpop.f32.mrb[79].mxu0 }
 0x27c   :  { %v8023_v41 = vadd.f32 %v8022_v20, %v8021_v38 }
 0x27d   :  { %v2089_v51 = vadd.f32 %v7959_v53, %v10745_v40  ;;  %v10791_v44 = vadd.f32 %v8020_v1, %v2086_v16 }
 0x27f   :  { %v8567_v32 = vpop.f32.mrb[64].mxu1  ;;  %v10793_v58 = vadd.f32 %v8023_v41, %v2089_v51 }
 0x280   :  { %v2232_v18 = vadd.f32 %v8567_v32, %v10755_v23  ;;  %v10796_v42 = vpop.f32.mrb[80].mxu0  ;;  %v2223_v59 = vpop.f32.mrb[65].mxu1 }
 0x281   :  { %v2224_v27 = vadd.f32 %v2223_v59, %v10749_v37  ;;  %v10799_v48 = vpop.f32.mrb[81].mxu0  ;;  %v8568_v24 = vpop.f32.mrb[66].mxu1 }
 0x282   :  { %2288 = vst [vmem:[%s12933_s30 + $0x10] sm:$0xff] %v2232_v18  ;;  %v2235_v40 = vadd.f32 %v8568_v24, %v10757_v28  ;;  %v10805_v31 = vpop.f32.mrb[82].mxu0  ;;  %v2226_v25 = vpop.f32.mrb[67].mxu1  ;;  %v2637_v37 = vmul.f32 %v10799_v48, %v10799_v48 }
 0x283   :  { %2286 = vst [vmem:[%s12933_s30] sm:$0xff] %v2224_v27  ;;  %v2227_v23 = vadd.f32 %v2226_v25, %v10751_v34  ;;  %v10811_v33 = vpop.f32.mrb[83].mxu0  ;;  %v2639_v34 = vmul.f32 %v10796_v42, %v10796_v42  ;;  %v2640_v3 = vmul.f32 %v10805_v31, %v10805_v31 }
 0x284   :  { %2289 = vst [vmem:[%s12933_s30 + $0x18] sm:$0xff] %v2235_v40  ;;  %v2615_v28 = vadd.f32 %v10811_v33, %v10799_v48  ;;  %v2638_v46 = vmul.f32 %v10811_v33, %v10811_v33 }
 0x285   :  { %2287 = vst [vmem:[%s12933_s30 + $0x8] sm:$0xff] %v2227_v23 }
 0x286   :  { %v2616_v29 = vadd.f32 %v10796_v42, %v2615_v28  ;;  %v2653_v1 = vadd.f32 %v2638_v46, %v2637_v37 }
 0x287   :  { %v8571_v38 = vpop.f32.mrb[68].mxu1 }
 0x288   :  { %v2654_v16 = vadd.f32 %v2653_v1, %v2639_v34  ;;  %v2248_v53 = vadd.f32 %v8571_v38, %v10767_v61  ;;  %v10831_v20 = vpop.f32.mrb[84].mxu0  ;;  %v2239_v41 = vpop.f32.mrb[69].mxu1  ;;  %v2617_v51 = vadd.f32 %v10805_v31, %v2616_v29 }
 0x289   :  { %v2240_v32 = vadd.f32 %v2239_v41, %v10761_v14  ;;  %v10835_v18 = vpop.f32.mrb[85].mxu0  ;;  %v8572_v59 = vpop.f32.mrb[70].mxu1  ;;  %v2643_v34 = vmul.f32 %v10831_v20, %v10831_v20 }
 0x28a   :  { %2292 = vst [vmem:[%s12933_s30 + $0x30] sm:$0xff] %v2248_v53  ;;  %v2618_v27 = vadd.f32 %v2617_v51, %v10835_v18  ;;  %v2641_v24 = vmul.f32 %v10835_v18, %v10835_v18  ;;  %v2655_v61 = vadd.f32 %v2654_v16, %v2640_v3  ;;  %v2251_v40 = vadd.f32 %v8572_v59, %v10769_v57  ;;  %v10844_v25 = vpop.f32.mrb[86].mxu0  ;;  %v2242_v23 = vpop.f32.mrb[71].mxu1 }
 0x28b   :  { %2290 = vst [vmem:[%s12933_s30 + $0x20] sm:$0xff] %v2240_v32  ;;  %v2243_v14 = vadd.f32 %v2242_v23, %v10763_v43  ;;  %v10850_v37 = vpop.f32.mrb[87].mxu0  ;;  %v2644_v38 = vmul.f32 %v10844_v25, %v10844_v25 }
 0x28c   :  { %v2656_v28 = vadd.f32 %v2655_v61, %v2641_v24  ;;  %2293 = vst [vmem:[%s12933_s30 + $0x38] sm:$0xff] %v2251_v40  ;;  %v2619_v46 = vadd.f32 %v2618_v27, %v10850_v37  ;;  %v2642_v57 = vmul.f32 %v10850_v37, %v10850_v37 }
 0x28d   :  { %2291 = vst [vmem:[%s12933_s30 + $0x28] sm:$0xff] %v2243_v14 }
 0x28e   :  { %v2620_v43 = vadd.f32 %v10831_v20, %v2619_v46  ;;  %v2657_v29 = vadd.f32 %v2656_v28, %v2642_v57 }
 0x28f   :  { %v8575_v1 = vpop.f32.mrb[72].mxu1 }
 0x290   :  { %v2658_v3 = vadd.f32 %v2657_v29, %v2643_v34  ;;  %v2264_v16 = vadd.f32 %v8575_v1, %v10779_v2  ;;  %v10867_v53 = vpop.f32.mrb[88].mxu0  ;;  %v2255_v41 = vpop.f32.mrb[73].mxu1  ;;  %v2621_v51 = vadd.f32 %v10844_v25, %v2620_v43 }
 0x291   :  { %v2256_v32 = vadd.f32 %v2255_v41, %v10773_v55  ;;  %v10871_v59 = vpop.f32.mrb[89].mxu0  ;;  %v8576_v27 = vpop.f32.mrb[74].mxu1  ;;  %v2647_v34 = vmul.f32 %v10867_v53, %v10867_v53 }
 0x292   :  { %2296 = vst [vmem:[%s12933_s30 + $0x50] sm:$0xff] %v2264_v16  ;;  %v2622_v24 = vadd.f32 %v2621_v51, %v10871_v59  ;;  %v2645_v61 = vmul.f32 %v10871_v59, %v10871_v59  ;;  %v2659_v2 = vadd.f32 %v2658_v3, %v2644_v38  ;;  %v2267_v40 = vadd.f32 %v8576_v27, %v10781_v0  ;;  %v10880_v23 = vpop.f32.mrb[90].mxu0  ;;  %v2258_v14 = vpop.f32.mrb[75].mxu1 }
 0x293   :  { %2294 = vst [vmem:[%s12933_s30 + $0x40] sm:$0xff] %v2256_v32  ;;  %v2259_v55 = vadd.f32 %v2258_v14, %v10775_v22  ;;  %v10886_v28 = vpop.f32.mrb[91].mxu0  ;;  %v2648_v1 = vmul.f32 %v10880_v23, %v10880_v23 }
 0x294   :  { %v2660_v46 = vadd.f32 %v2659_v2, %v2645_v61  ;;  %2297 = vst [vmem:[%s12933_s30 + $0x58] sm:$0xff] %v2267_v40  ;;  %v2623_v57 = vadd.f32 %v2622_v24, %v10886_v28  ;;  %v2646_v0 = vmul.f32 %v10886_v28, %v10886_v28 }
 0x295   :  { %2295 = vst [vmem:[%s12933_s30 + $0x48] sm:$0xff] %v2259_v55 }
 0x296   :  { %v2624_v22 = vadd.f32 %v10867_v53, %v2623_v57  ;;  %v2661_v43 = vadd.f32 %v2660_v46, %v2646_v0 }
 0x297   :  { %v8579_v29 = vpop.f32.mrb[76].mxu1 }
 0x298   :  { %v2662_v38 = vadd.f32 %v2661_v43, %v2647_v34  ;;  %v2280_v3 = vadd.f32 %v8579_v29, %v10791_v44  ;;  %v10903_v16 = vpop.f32.mrb[92].mxu0  ;;  %v2271_v41 = vpop.f32.mrb[77].mxu1  ;;  %v2625_v51 = vadd.f32 %v10880_v23, %v2624_v22 }
 0x299   :  { %v2272_v32 = vadd.f32 %v2271_v41, %v10785_v54  ;;  %v10907_v27 = vpop.f32.mrb[93].mxu0  ;;  %v8580_v24 = vpop.f32.mrb[78].mxu1 }
 0x29a   :  { %2300 = vst [vmem:[%s12933_s30 + $0x70] sm:$0xff] %v2280_v3  ;;  %v2626_v61 = vadd.f32 %v2625_v51, %v10907_v27  ;;  %v2649_v2 = vmul.f32 %v10907_v27, %v10907_v27  ;;  %v2663_v44 = vadd.f32 %v2662_v38, %v2648_v1  ;;  %v2283_v40 = vadd.f32 %v8580_v24, %v10793_v58  ;;  %v8612_v14 = vpop.f32.mrb[94].mxu0  ;;  %v2274_v55 = vpop.f32.mrb[79].mxu1 }
 0x29b   :  { %2298 = vst [vmem:[%s12933_s30 + $0x60] sm:$0xff] %v2272_v32  ;;  %v2275_v54 = vadd.f32 %v2274_v55, %v10787_v13  ;;  %v2603_v46 = vpop.f32.mrb[95].mxu0  ;;  %v2651_v58 = vmul.f32 %v10903_v16, %v10903_v16  ;;  %v2652_v29 = vmul.f32 %v8612_v14, %v8612_v14 }
 0x29c   :  { %v2664_v57 = vadd.f32 %v2663_v44, %v2649_v2  ;;  %2301 = vst [vmem:[%s12933_s30 + $0x78] sm:$0xff] %v2283_v40  ;;  %v2627_v0 = vadd.f32 %v2626_v61, %v2603_v46  ;;  %v2650_v34 = vmul.f32 %v2603_v46, %v2603_v46 }
 0x29d   :  { %2299 = vst [vmem:[%s12933_s30 + $0x68] sm:$0xff] %v2275_v54 }
 0x29e   :  { %v2628_v22 = vadd.f32 %v10903_v16, %v2627_v0  ;;  %v2665_v43 = vadd.f32 %v2664_v57, %v2650_v34 }
 0x2a0   :  { %v2629_v13 = vadd.f32 %v8612_v14, %v2628_v22  ;;  %v2666_v1 = vadd.f32 %v2665_v43, %v2651_v58 }
 0x2a2   :  { %v2630_v38 = vrot.slane %v2629_v13, 4  ;;  %v2667_v3 = vadd.f32 %v2666_v1, %v2652_v29 }
 0x2a4   :  { %v2631_v41 = vadd.f32 %v2630_v38, %v2629_v13  ;;  %v2668_v51 = vrot.slane %v2667_v3, 4 }
 0x2a6   :  { %v2632_v32 = vrot.slane %v2631_v41, 2  ;;  %v2669_v24 = vadd.f32 %v2668_v51, %v2667_v3 }
 0x2a8   :  { %v2633_v61 = vadd.f32 %v2632_v32, %v2631_v41  ;;  %v2670_v2 = vrot.slane %v2669_v24, 2 }
 0x2aa   :  { %v2634_v44 = vrot.slane %v2633_v61, 1  ;;  %v2671_v40 = vadd.f32 %v2670_v2, %v2669_v24 }
 0x2ac   :  { %v2635_v55 = vadd.f32 %v2634_v44, %v2633_v61  ;;  %v2672_v54 = vrot.slane %v2671_v40, 1 }
 0x2ae   :  { %v2636_v56 = vmul.f32 0.0078125, %v2635_v55  ;;  %v2673_v39 = vadd.f32 %v2672_v54, %v2671_v40 }
 0x2b0   :  { %v2674_v15 = vmul.f32 0.0078125, %v2673_v39  ;;  %v2675_v0 = vmul.f32 %v2636_v56, %v2636_v56  ;;  %v2690_v57 = vsub.f32 %v10907_v27, %v2636_v56  ;;  %v2691_v34 = vsub.f32 %v2603_v46, %v2636_v56 }
 0x2b1   :  { %v2678_v58 = vsub.f32 %v10799_v48, %v2636_v56  ;;  %v2679_v22 = vsub.f32 %v10811_v33, %v2636_v56  ;;  %v2692_v43 = vsub.f32 %v10903_v16, %v2636_v56  ;;  %v2693_v29 = vsub.f32 %v8612_v14, %v2636_v56 }
 0x2b2   :  { %v2676_v13 = vsub.f32 %v2674_v15, %v2675_v0  ;;  %v2680_v1 = vsub.f32 %v10796_v42, %v2636_v56  ;;  %v2681_v3 = vsub.f32 %v10805_v31, %v2636_v56  ;;  %v2682_v41 = vsub.f32 %v10835_v18, %v2636_v56  ;;  %v7439_v31 = vld [vmem:[%s12934_s13] ss:$0 sm:$0xff] }
 0x2b3   :  { %v2683_v39 = vsub.f32 %v10850_v37, %v2636_v56  ;;  %v2684_v27 = vsub.f32 %v10831_v20, %v2636_v56  ;;  %v2685_v46 = vsub.f32 %v10844_v25, %v2636_v56  ;;  %v2686_v48 = vsub.f32 %v10871_v59, %v2636_v56 }
 0x2b4   :  { %v2677_v38 = vmax.f32 %v2676_v13, 0.0  ;;  %v2687_v16 = vsub.f32 %v10886_v28, %v2636_v56  ;;  %v2688_v15 = vsub.f32 %v10867_v53, %v2636_v56  ;;  %v2689_v42 = vsub.f32 %v10880_v23, %v2636_v56  ;;  %v10951_v56 = vld [vmem:[%s12935_s29] ss:$0 sm:$0xff] }
 0x2b5   :  { %v2712_v18 = vmul.f32 %v7439_v31, %v2690_v57  ;;  %v2713_v37 = vmul.f32 %v7439_v31, %v2691_v34  ;;  %v2700_v14 = vmul.f32 %v7439_v31, %v2678_v58  ;;  %v2701_v20 = vmul.f32 %v7439_v31, %v2679_v22 }
 0x2b6   :  { %v2716_v33 = vadd.f32 1e-05, %v2677_v38  ;;  %v2714_v51 = vmul.f32 %v7439_v31, %v2692_v43  ;;  %v2715_v25 = vmul.f32 %v7439_v31, %v2693_v29  ;;  %v2702_v32 = vmul.f32 %v7439_v31, %v2680_v1 }
 0x2b7   :  { %v2703_v59 = vmul.f32 %v7439_v31, %v2681_v3  ;;  %v2704_v24 = vmul.f32 %v7439_v31, %v2682_v41  ;;  %v2705_v61 = vmul.f32 %v7439_v31, %v2683_v39  ;;  %v2706_v28 = vmul.f32 %v7439_v31, %v2684_v27 }
 0x2b8   :  { %9140 = vrsqrt.f32 %v2716_v33  ;;  %v2707_v2 = vmul.f32 %v7439_v31, %v2685_v46  ;;  %v10953_v53 = vmul.f32 %v7439_v31, %v2686_v48  ;;  %v10955_v23 = vmul.f32 %v7439_v31, %v2687_v16 }
 0x2b9   :  { %v10957_v40 = vmul.f32 %v7439_v31, %v2688_v15  ;;  %v10959_v55 = vmul.f32 %v7439_v31, %v2689_v42 }
 0x2c2   :  { %v10946_v44 = vpop.eup %9140 }
 0x2c3   :  { %v2730_v54 = vmul.f32 %v10946_v44, %v2712_v18  ;;  %v2731_v0 = vmul.f32 %v10946_v44, %v2713_v37  ;;  %v2718_v57 = vmul.f32 %v10946_v44, %v2700_v14  ;;  %v2719_v34 = vmul.f32 %v10946_v44, %v2701_v20 }
 0x2c4   :  { %v2732_v58 = vmul.f32 %v10946_v44, %v2714_v51  ;;  %v2733_v22 = vmul.f32 %v10946_v44, %v2715_v25  ;;  %v2720_v43 = vmul.f32 %v10946_v44, %v2702_v32  ;;  %v2721_v29 = vmul.f32 %v10946_v44, %v2703_v59 }
 0x2c5   :  { %v2752_v13 = vadd.f32 %v10951_v56, %v2730_v54  ;;  %v2753_v1 = vadd.f32 %v10951_v56, %v2731_v0  ;;  %v2740_v38 = vadd.f32 %v10951_v56, %v2718_v57  ;;  %v2741_v3 = vadd.f32 %v10951_v56, %v2719_v34 }
 0x2c6   :  { %v2754_v41 = vadd.f32 %v10951_v56, %v2732_v58  ;;  %v2755_v39 = vadd.f32 %v10951_v56, %v2733_v22  ;;  %v2742_v27 = vadd.f32 %v10951_v56, %v2720_v43  ;;  %v2743_v46 = vadd.f32 %v10951_v56, %v2721_v29 }
 0x2c7   :  { %v2768_v48 = vmax.f32 %v2752_v13, 0.0  ;;  %v2769_v33 = vmax.f32 %v2753_v1, 0.0  ;;  %v2756_v16 = vmax.f32 %v2740_v38, 0.0  ;;  %v2757_v15 = vmax.f32 %v2741_v3, 0.0 }
 0x2c8   :  { %v2770_v42 = vmax.f32 %v2754_v41, 0.0  ;;  %v2771_v31 = vmax.f32 %v2755_v39, 0.0  ;;  %v2758_v18 = vmax.f32 %v2742_v27, 0.0  ;;  %v2759_v37 = vmax.f32 %v2743_v46, 0.0  ;;  %v12938_v27 = vld [vmem:[#allocation30_spill] sm:$0xff] }
 0x2c9   :  { %v10977_v14 = vpack.c.bf16 %v2769_v33, %v2768_v48  ;;  %v10979_v20 = vpack.c.bf16 %v2757_v15, %v2756_v16  ;;  %v2722_v51 = vmul.f32 %v10946_v44, %v2704_v24  ;;  %v2723_v25 = vmul.f32 %v10946_v44, %v2705_v61 }
 0x2ca   :  { %v10983_v32 = vpack.c.bf16 %v2771_v31, %v2770_v42  ;;  %v10985_v59 = vpack.c.bf16 %v2759_v37, %v2758_v18  ;;  %v2724_v54 = vmul.f32 %v10946_v44, %v2706_v28  ;;  %v2725_v0 = vmul.f32 %v10946_v44, %v2707_v2  ;;  %v12939_v42 = vld [vmem:[#allocation37_spill] sm:$0xff] }
 0x2cb   :  { %v2878_v57 = vrot.slane %v10979_v20, 4  ;;  %v10991_v34 = vshrl.u32 %v10979_v20, 16  ;;  %v10994_v58 = vshll.u32 %v10979_v20, 16  ;;  %v2744_v24 = vadd.f32 %v10951_v56, %v2722_v51 }
 0x2cc   :  { %12936 = vst [vmem:[#allocation38_spill] sm:$0xff] %v10985_v59  ;;  %v12768_v61 = vrot.slane %v10983_v32, 4  ;;  %v10999_v22 = vshrl.u32 %v10983_v32, 16  ;;  %v11002_v43 = vshll.u32 %v10983_v32, 16  ;;  %v2879_v28 = vrot.slane %v10985_v59, 4 }
 0x2cd   :  { %v2792_v2 = vrot.slane %v10991_v34, 3  ;;  %v2795_v29 = vrot.slane %v10994_v58, 4  ;;  %v2962_v13 = vrot.slane %v10991_v34, 7  ;;  %v2915_v1 = vrot.slane %v10991_v34, 4 }
 0x2ce   :  { %v11012_v38 = vsel %vm740_vm0, %v12768_v61, %v2878_v57  ;;  %v2783_v3 = vrot.slane %v10999_v22, 3  ;;  %v2786_v41 = vrot.slane %v11002_v43, 4  ;;  %v12769_v39 = vrot.slane %v10999_v22, 7 }
 0x2cf   :  { %12937 = vst [vmem:[#allocation57_spill] sm:$0xff] %v11012_v38  ;;  %v2903_v46 = vmul.bf16 %v11012_v38, %v12938_v27  ;;  %v2796_v48 = vor.u32 %v2795_v29, %v2792_v2  ;;  %v2963_v33 = vor.u32 %v2962_v13, %v10994_v58  ;;  %v11021_v16 = vsel %vm740_vm0, %v2878_v57, %v2879_v28 }
 0x2d0   :  { %v11023_v15 = vor.u32 %v2786_v41, %v2783_v3  ;;  %v2904_v31 = vmul.bf16 %v11021_v16, %v12939_v42  ;;  %v2911_v18 = vrot.slane %v10999_v22, 4  ;;  %v2912_v37 = vrot.slane %v11002_v43, 5  ;;  %v12943_v42 = vld [vmem:[#allocation2_spill] sm:$0xff] }
 0x2d1   :  { %3078 = vmatprep.subr.bf16.mxu1 %v2903_v46  ;;  %v2992_v2 = vsel %vm10089_vm6, %v12769_v39, %v2963_v33  ;;  %v2916_v29 = vrot.slane %v10994_v58, 5  ;;  %v11035_v57 = vshrl.u32 %v10985_v59, 16  ;;  %v11038_v3 = vshll.u32 %v10985_v59, 16  ;;  %v12944_v33 = vld [vmem:[#allocation35_spill] sm:$0xff] }
 0x2d2   :  { %v11043_v27 = vsel %vm10113_vm7, %v11023_v15, %v2796_v48  ;;  %v2993_v46 = vmul.bf16 %v2992_v2, %v12943_v42  ;;  %v11046_v61 = vor.u32 %v2912_v37, %v2911_v18  ;;  %v2745_v51 = vadd.f32 %v10951_v56, %v2723_v25 }
 0x2d3   :  { %12942 = vst [vmem:[#allocation30_spill] sm:$0xff] %v11043_v27  ;;  %v2861_v39 = vmul.bf16 %v11043_v27, %v12944_v33  ;;  %v2917_v38 = vor.u32 %v2916_v29, %v2915_v1  ;;  %v2964_v47 = vrot.slane %v11035_v57, 7  ;;  %v2800_v49 = vrot.slane %v11035_v57, 3  ;;  %v12947_v29 = vld [vmem:[#allocation4_spill] sm:$0xff] }
 0x2d4   :  { %3131 = vmatprep.subr.bf16.mxu0 %v2993_v46  ;;  %v2803_v35 = vrot.slane %v11038_v3, 4  ;;  %v2760_v41 = vmax.f32 %v2744_v24, 0.0  ;;  %v2761_v30 = vmax.f32 %v2745_v51, 0.0  ;;  %v2918_v62 = vrot.slane %v11035_v57, 4 }
 0x2d5   :  { %3079 = vmatpush1.bf16.msra.mxu1 %v2861_v39  ;;  %v11058_v25 = vsel %vm10127_vm8, %v11046_v61, %v2917_v38  ;;  %v2965_v37 = vor.u32 %v2964_v47, %v11038_v3  ;;  %v2919_v1 = vrot.slane %v11038_v3, 5  ;;  %v2746_v2 = vadd.f32 %v10951_v56, %v2724_v54 }
 0x2d6   :  { %12946 = vst [vmem:[#allocation37_spill] sm:$0xff] %v11058_v25  ;;  %3080 = vmatprep.subr.bf16.mxu1 %v2904_v31  ;;  %v2952_v42 = vmul.bf16 %v11058_v25, %v12947_v29  ;;  %v2804_v24 = vor.u32 %v2803_v35, %v2800_v49  ;;  %v11065_v51 = vpack.c.bf16 %v2761_v30, %v2760_v41  ;;  %v12950_v35 = vld [vmem:[#allocation40_spill] sm:$0xff]  ;;  %vm4235_vm7 = vcmask 1046528  }
 0x2d7   :  { %v2747_v39 = vadd.f32 %v10951_v56, %v2725_v0  ;;  %v2966_v46 = vsel %vm908_vm3, %v2962_v13, %v2965_v37  ;;  %v2920_v33 = vor.u32 %v2919_v1, %v2918_v62  ;;  %v2762_v18 = vmax.f32 %v2746_v2, 0.0  ;;  %v12952_v13 = vld [vmem:[#allocation5_spill] sm:$0xff] }
 0x2d8   :  { %12948 = vst [vmem:[#allocation33_spill] sm:$0xff] %v11065_v51  ;;  %v2726_v27 = vmul.f32 %v10946_v44, %v10953_v53  ;;  %3132 = vmatpush1.bf16.msra.mxu0 %v2952_v42  ;;  %v2994_v63 = vmul.bf16 %v2966_v46, %v12949_v50  ;;  %v11073_v54 = vsel %vm608_vm4, %v2796_v48, %v2804_v24  ;;  %v2881_v31 = vrot.slane %v11065_v51, 4  ;;  %v12953_v1 = vld [vmem:[#allocation41_spill] sm:$0xff] }
 0x2d9   :  { %v11077_v30 = vshrl.u32 %v11065_v51, 16  ;;  %v2862_v49 = vmul.bf16 %v11073_v54, %v12950_v35  ;;  %v11082_v62 = vsel %vm819_vm5, %v2917_v38, %v2920_v33  ;;  %v11085_v0 = vshll.u32 %v11065_v51, 16  ;;  %v12959_v51 = vld [vmem:[#allocation45_spill] sm:$0xff] }
 0x2da   :  { %12951 = vst [vmem:[#allocation2_spill] sm:$0xff] %v11082_v62  ;;  %v2763_v53 = vmax.f32 %v2747_v39, 0.0  ;;  %3133 = vmatprep.subr.bf16.mxu0 %v2994_v63  ;;  %v11088_v50 = vsel %vm740_vm0, %v2879_v28, %v2881_v31  ;;  %v2953_v48 = vmul.bf16 %v11082_v62, %v12952_v13  ;;  %v2727_v39 = vmul.f32 %v10946_v44, %v10955_v23  ;;  %v12955_v62 = vld [vmem:[#allocation6_spill] sm:$0xff] }
 0x2db   :  { %v2967_v41 = vrot.slane %v11077_v30, 7  ;;  %v2809_v37 = vrot.slane %v11077_v30, 3  ;;  %3081 = vmatpush1.bf16.msra.mxu1 %v2862_v49  ;;  %v2905_v38 = vmul.bf16 %v11088_v50, %v12953_v1  ;;  %v2812_v2 = vrot.slane %v11085_v0, 4 }
 0x2dc   :  { %v11097_v29 = vpack.c.bf16 %v2763_v53, %v2762_v18  ;;  %v2922_v63 = vrot.slane %v11077_v30, 4  ;;  %3134 = vmatpush1.bf16.msra.mxu0 %v2953_v48  ;;  %v2923_v42 = vrot.slane %v11085_v0, 5  ;;  %v2748_v46 = vadd.f32 %v10951_v56, %v2726_v27 }
 0x2dd   :  { %v2968_v28 = vor.u32 %v2967_v41, %v11085_v0  ;;  %3082 = vmatprep.subr.bf16.mxu1 %v2905_v38  ;;  %v2813_v35 = vor.u32 %v2812_v2, %v2809_v37  ;;  %v2749_v1 = vadd.f32 %v10951_v56, %v2727_v39  ;;  %v12958_v2 = vld [vmem:[#allocation44_spill] sm:$0xff] }
 0x2de   :  { %12954 = vst [vmem:[#allocation35_spill] sm:$0xff] %v11097_v29  ;;  %v2883_v49 = vrot.slane %v11097_v29, 4  ;;  %v11107_v13 = vshrl.u32 %v11097_v29, 16  ;;  %v11110_v18 = vshll.u32 %v11097_v29, 16  ;;  %v2924_v48 = vor.u32 %v2923_v42, %v2922_v63 }
 0x2df   :  { %v2969_v53 = vsel %vm908_vm3, %v2964_v47, %v2968_v28  ;;  %v2764_v25 = vmax.f32 %v2748_v46, 0.0  ;;  %v11116_v27 = vsel %vm608_vm4, %v2804_v24, %v2813_v35  ;;  %v2765_v39 = vmax.f32 %v2749_v1, 0.0  ;;  %v12971_v1 = vld [vmem:[#allocation10_spill] sm:$0xff] }
 0x2e0   :  { %v2995_v23 = vmul.bf16 %v2969_v53, %v12955_v62  ;;  %12956 = vst [vmem:[#allocation4_spill] sm:$0xff] %v11116_v27  ;;  %v11119_v37 = vsel %vm740_vm0, %v2881_v31, %v2883_v49  ;;  %v2970_v38 = vrot.slane %v11107_v13, 7  ;;  %v2863_v29 = vmul.bf16 %v11116_v27, %v12958_v2  ;;  %v12961_v62 = vld [vmem:[#allocation7_spill] sm:$0xff] }
 0x2e1   :  { %12957 = vst [vmem:[#allocation3_spill] sm:$0xff] %v11119_v37  ;;  %v2906_v47 = vmul.bf16 %v11119_v37, %v12959_v51  ;;  %v11127_v63 = vsel %vm819_vm5, %v2920_v33, %v2924_v48  ;;  %v2818_v28 = vrot.slane %v11107_v13, 3  ;;  %v2821_v42 = vrot.slane %v11110_v18, 4 }
 0x2e2   :  { %12960 = vst [vmem:[#allocation40_spill] sm:$0xff] %v11127_v63  ;;  %3135 = vmatprep.subr.bf16.mxu0 %v2995_v23  ;;  %v2954_v24 = vmul.bf16 %v11127_v63, %v12961_v62  ;;  %v2971_v31 = vor.u32 %v2970_v38, %v11110_v18  ;;  %3083 = vmatpush1.bf16.msra.mxu1 %v2863_v29  ;;  %v2926_v46 = vrot.slane %v11107_v13, 4  ;;  %v2927_v53 = vrot.slane %v11110_v18, 5  ;;  %v12963_v29 = vld [vmem:[#allocation8_spill] sm:$0xff] }
 0x2e3   :  { %v2728_v51 = vmul.f32 %v10946_v44, %v10957_v40  ;;  %v2729_v33 = vmul.f32 %v10946_v44, %v10959_v55  ;;  %3084 = vmatprep.subr.bf16.mxu1 %v2906_v47  ;;  %v2822_v2 = vor.u32 %v2821_v42, %v2818_v28  ;;  %v11141_v62 = vpack.c.bf16 %v2765_v39, %v2764_v25 }
 0x2e4   :  { %3136 = vmatpush1.bf16.msra.mxu0 %v2954_v24  ;;  %v2972_v23 = vsel %vm908_vm3, %v2967_v41, %v2971_v31  ;;  %v2928_v37 = vor.u32 %v2927_v53, %v2926_v46  ;;  %v12965_v41 = vld [vmem:[#allocation48_spill] sm:$0xff]  ;;  %v12968_v31 = vld [vmem:[#allocation9_spill] sm:$0xff] }
 0x2e5   :  { %12962 = vst [vmem:[#allocation5_spill] sm:$0xff] %v11141_v62  ;;  %v2996_v63 = vmul.bf16 %v2972_v23, %v12963_v29  ;;  %v2750_v59 = vadd.f32 %v10951_v56, %v2728_v51  ;;  %v2751_v27 = vadd.f32 %v10951_v56, %v2729_v33  ;;  %v11148_v40 = vsel %vm608_vm4, %v2813_v35, %v2822_v2 }
 0x2e6   :  { %12964 = vst [vmem:[#allocation41_spill] sm:$0xff] %v11148_v40  ;;  %v2885_v44 = vrot.slane %v11141_v62, 4  ;;  %v11152_v55 = vshrl.u32 %v11141_v62, 16  ;;  %v11155_v25 = vshll.u32 %v11141_v62, 16  ;;  %v2864_v47 = vmul.bf16 %v11148_v40, %v12965_v41  ;;  %v12974_v62 = vld [vmem:[#allocation52_spill] sm:$0xff] }
 0x2e7   :  { %3137 = vmatprep.subr.bf16.mxu0 %v2996_v63  ;;  %v11160_v28 = vsel %vm819_vm5, %v2924_v48, %v2928_v37  ;;  %v2766_v24 = vmax.f32 %v2750_v59, 0.0  ;;  %v2767_v56 = vmax.f32 %v2751_v27, 0.0  ;;  %v12969_v63 = vld [vmem:[#allocation49_spill] sm:$0xff]  ;;  %v11178_v33 = vshrl.u32 %v10977_v14, 16 }
 0x2e8   :  { %12966 = vst [vmem:[#allocation6_spill] sm:$0xff] %v11160_v28  ;;  %v11163_v35 = vsel %vm740_vm0, %v2883_v49, %v2885_v44  ;;  %v2955_v42 = vmul.bf16 %v11160_v28, %v12968_v31  ;;  %v2973_v39 = vrot.slane %v11152_v55, 7  ;;  %v2827_v46 = vrot.slane %v11152_v55, 3  ;;  %3085 = vmatpush1.bf16.msra.mxu1 %v2864_v47 }
 0x2e9   :  { %12967 = vst [vmem:[#allocation44_spill] sm:$0xff] %v11163_v35  ;;  %v2907_v53 = vmul.bf16 %v11163_v35, %v12969_v63  ;;  %v2830_v51 = vrot.slane %v11155_v25, 4  ;;  %v11172_v48 = vpack.c.bf16 %v2767_v56, %v2766_v24  ;;  %v2930_v59 = vrot.slane %v11152_v55, 4 }
 0x2ea   :  { %3138 = vmatpush1.bf16.msra.mxu0 %v2955_v42  ;;  %v2974_v49 = vor.u32 %v2973_v39, %v11155_v25  ;;  %v2931_v27 = vrot.slane %v11155_v25, 5  ;;  %v11181_v23 = vshll.u32 %v10977_v14, 16  ;;  %v2979_v42 = vrot.slane %v11178_v33, 7 }
 0x2eb   :  { %12970 = vst [vmem:[#allocation45_spill] sm:$0xff] %v11172_v48  ;;  %3086 = vmatprep.subr.bf16.mxu1 %v2907_v53  ;;  %v2831_v29 = vor.u32 %v2830_v51, %v2827_v46  ;;  %v2887_v41 = vrot.slane %v11172_v48, 4  ;;  %v11185_v47 = vshrl.u32 %v11172_v48, 16  ;;  %v11188_v24 = vshll.u32 %v11172_v48, 16 }
 0x2ec   :  { %v2975_v56 = vsel %vm908_vm3, %v2970_v38, %v2974_v49  ;;  %v2932_v31 = vor.u32 %v2931_v27, %v2930_v59  ;;  %v2845_v63 = vrot.slane %v11178_v33, 3 }
 0x2ed   :  { %v2997_v28 = vmul.bf16 %v2975_v56, %v12971_v1  ;;  %v11195_v53 = vsel %vm608_vm4, %v2822_v2, %v2831_v29  ;;  %v11198_v46 = vsel %vm740_vm0, %v2885_v44, %v2887_v41  ;;  %v2976_v51 = vrot.slane %v11185_v47, 7  ;;  %v12976_v1 = vld [vmem:[#allocation11_spill] sm:$0xff] }
 0x2ee   :  { %12972 = vst [vmem:[#allocation7_spill] sm:$0xff] %v11195_v53  ;;  %12973 = vst [vmem:[#allocation8_spill] sm:$0xff] %v11198_v46  ;;  %v2865_v48 = vmul.bf16 %v11195_v53, %v10425_v19  ;;  %v2908_v38 = vmul.bf16 %v11198_v46, %v12974_v62  ;;  %v11206_v59 = vsel %vm819_vm5, %v2928_v37, %v2932_v31  ;;  %v2836_v49 = vrot.slane %v11185_v47, 3  ;;  %v12978_v53 = vld [vmem:[#allocation12_spill] sm:$0xff] }
 0x2ef   :  { %12975 = vst [vmem:[#allocation48_spill] sm:$0xff] %v11206_v59  ;;  %3139 = vmatprep.subr.bf16.mxu0 %v2997_v28  ;;  %v2956_v2 = vmul.bf16 %v11206_v59, %v12976_v1  ;;  %v2977_v44 = vor.u32 %v2976_v51, %v11188_v24  ;;  %v2839_v27 = vrot.slane %v11188_v24, 4  ;;  %v12977_v56 = vrot.slane %v10977_v14, 4 }
 0x2f0   :  { %3087 = vmatpush1.bf16.msra.mxu1 %v2865_v48  ;;  %v2934_v62 = vrot.slane %v11185_v47, 4  ;;  %v2935_v37 = vrot.slane %v11188_v24, 5  ;;  %v2980_v46 = vor.u32 %v2979_v42, %v11181_v23  ;;  %v2848_v59 = vrot.slane %v11181_v23, 4 }
 0x2f1   :  { %v11216_v19 = vsel %vm740_vm0, %v2887_v41, %v12977_v56  ;;  %3088 = vmatprep.subr.bf16.mxu1 %v2908_v38  ;;  %3140 = vmatpush1.bf16.msra.mxu0 %v2956_v2  ;;  %v2978_v28 = vsel %vm908_vm3, %v2973_v39, %v2977_v44  ;;  %v2840_v1 = vor.u32 %v2839_v27, %v2836_v49  ;;  %v12979_v56 = vld [vmem:[#allocation54_spill] sm:$0xff]  ;;  %v2938_v38 = vrot.slane %v11178_v33, 4  ;;  %v12980_v2 = vld [vmem:[#allocation53_spill] sm:$0xff] }
 0x2f2   :  { %v2998_v35 = vmul.bf16 %v2978_v28, %v12978_v53  ;;  %v2936_v40 = vor.u32 %v2935_v37, %v2934_v62  ;;  %v2981_v41 = vsel %vm908_vm3, %v2976_v51, %v2980_v46  ;;  %v2909_v11 = vmul.bf16 %v11216_v19, %v12979_v56  ;;  %v12982_v51 = vld [vmem:[#allocation13_spill] sm:$0xff] }
 0x2f3   :  { %v11226_v48 = vsel %vm608_vm4, %v2831_v29, %v2840_v1  ;;  %v2849_v21 = vor.u32 %v2848_v59, %v2845_v63  ;;  %v2939_v53 = vrot.slane %v11181_v23, 5  ;;  %v12981_v46 = vrot.slane %v10999_v22, 7 }
 0x2f4   :  { %3141 = vmatprep.subr.bf16.mxu0 %v2998_v35  ;;  %v2866_v39 = vmul.bf16 %v11226_v48, %v12980_v2  ;;  %v11234_v49 = vsel %vm819_vm5, %v2932_v31, %v2936_v40  ;;  %v12983_v35 = vrot.slane %v10983_v32, 4  ;;  %v12984_v59 = vrot.slane %v10977_v14, 4 }
 0x2f5   :  { %v2982_v29 = vor.u32 %v12981_v46, %v11002_v43  ;;  %v2957_v44 = vmul.bf16 %v11234_v49, %v12982_v51  ;;  %v11243_v63 = vsel %vm608_vm4, %v2840_v1, %v2849_v21  ;;  %v3001_v31 = vrot.slane %v10994_v58, 1 }
 0x2f6   :  { %v11250_v27 = vsel %vm740_vm0, %v12984_v59, %v12983_v35  ;;  %3089 = vmatpush1.bf16.msra.mxu1 %v2866_v39  ;;  %v2999_v62 = vmul.bf16 %v2981_v41, %v9976_v4  ;;  %v2940_v37 = vor.u32 %v2939_v53, %v2938_v38  ;;  %v3003_v56 = vrot.slane %v11038_v3, 1  ;;  %v12990_v53 = vld [vmem:[#allocation15_spill] sm:$0xff]  ;;  %v12993_v59 = vld [vmem:[#allocation16_spill] sm:$0xff] }
 0x2f7   :  { %3090 = vmatprep.subr.bf16.mxu1 %v2909_v11  ;;  %3142 = vmatpush1.bf16.msra.mxu0 %v2957_v44  ;;  %v2983_v28 = vsel %vm908_vm3, %v2979_v42, %v2982_v29  ;;  %v3002_v1 = vor.u32 %v3001_v31, %v10991_v34  ;;  %v2867_v2 = vmul.bf16 %v11243_v63, %v10486_v60  ;;  %v3006_v4 = vrot.slane %v11085_v0, 1  ;;  %v12991_v29 = vld [vmem:[#allocation3_spill] sm:$0xff] }
 0x2f8   :  { %3143 = vmatprep.subr.bf16.mxu0 %v2999_v62  ;;  %v2910_v46 = vmul.bf16 %v11250_v27, %v10489_v26  ;;  %v11262_v58 = vsel %vm819_vm5, %v2936_v40, %v2940_v37  ;;  %v11269_v34 = vsel %vm608_vm4, %v2849_v21, %v11023_v15  ;;  %v3005_v42 = vor.u32 %v3003_v56, %v11035_v57  ;;  %v12992_v44 = vld [vmem:[#allocation43_spill] sm:$0xff] }
 0x2f9   :  { %v2958_v11 = vmul.bf16 %v11262_v58, %v9978_v5  ;;  %v3004_v3 = vsel %vm990_vm9, %v3002_v1, %v3003_v56  ;;  %v3000_v60 = vmul.bf16 %v2983_v28, %v9980_v6  ;;  %v11276_v26 = vsel %vm819_vm5, %v2940_v37, %v11046_v61  ;;  %v12995_v37 = vld [vmem:[#allocation33_spill] sm:$0xff]  ;;  %v12997_v1 = vld [vmem:[#allocation44_spill] sm:$0xff] }
 0x2fa   :  { %3091 = vmatpush1.bf16.msra.mxu1 %v2867_v2  ;;  %v3008_v0 = vor.u32 %v3006_v4, %v11077_v30  ;;  %v3009_v40 = vrot.slane %v11110_v18, 1  ;;  %v3007_v5 = vsel %vm990_vm9, %v3005_v42, %v3006_v4  ;;  %v3012_v21 = vrot.slane %v11155_v25, 1  ;;  %v11292_v18 = vld [vmem:[%s12985_s5] sm:$0xff]   ;;  %v12996_v28 = vld [vmem:[#allocation17_spill] sm:$0xff]  ;;  %v13001_v42 = vld [vmem:[#allocation35_spill] sm:$0xff] }
 0x2fb   :  { %3092 = vmatprep.subr.bf16.mxu1 %v2910_v46  ;;  %3144 = vmatpush1.bf16.msra.mxu0 %v2958_v11  ;;  %v2868_v15 = vmul.bf16 %v11269_v34, %v10511_v17  ;;  %v2959_v61 = vmul.bf16 %v11276_v26, %v9982_v7  ;;  %v3034_v30 = vmul.bf16 %v3004_v3, %v10513_v36  ;;  %v3015_v41 = vrot.slane %v11188_v24, 1  ;;  %v12998_v2 = vld [vmem:[#allocation46_spill] sm:$0xff]  ;;  %v13000_v11 = vld [vmem:[#allocation7_spill] sm:$0xff] }
 0x2fc   :  { %3145 = vmatprep.subr.bf16.mxu0 %v3000_v60  ;;  %v3010_v6 = vsel %vm990_vm9, %v3008_v0, %v3009_v40  ;;  %v3011_v57 = vor.u32 %v3009_v40, %v11107_v13  ;;  %v3014_v25 = vor.u32 %v3012_v21, %v11152_v55  ;;  %v3050_v17 = vmul.bf16 %v11021_v16, %v9984_v8  ;;  %v12999_v4 = vld [vmem:[#allocation18_spill] sm:$0xff]  ;;  %v13002_v60 = vld [vmem:[#allocation19_spill] sm:$0xff]  ;;  %v13003_v0 = vld [vmem:[#allocation8_spill] sm:$0xff] }
 0x2fd   :  { %v3018_v38 = vrot.slane %v11181_v23, 1  ;;  %v3017_v36 = vor.u32 %v3015_v41, %v11185_v47  ;;  %v3021_v39 = vrot.slane %v11002_v43, 1  ;;  %v3035_v24 = vmul.bf16 %v3007_v5, %v10525_v12  ;;  %v11318_v12 = vld [vmem:[%s12985_s5 + $0x8] sm:$0xff]   ;;  %v12988_v47 = vld [vmem:[#allocation4_spill] sm:$0xff] }
 0x2fe   :  { %3093 = vmatpush1.bf16.msra.mxu1 %v2868_v15  ;;  %v3013_v13 = vsel %vm990_vm9, %v3011_v57, %v3012_v21  ;;  %v3016_v7 = vsel %vm990_vm9, %v3014_v25, %v3015_v41  ;;  %v3042_v8 = vmul.bf16 %v11073_v54, %v9986_v9  ;;  %v3051_v43 = vmul.bf16 %v11088_v50, %v9988_v10  ;;  %v12987_v54 = vld [vmem:[#allocation14_spill] sm:$0xff]  ;;  %v13004_v5 = vld [vmem:[#allocation23_spill] sm:$0xff]  ;;  %v13005_v15 = vld [vmem:[#allocation20_spill] sm:$0xff] }
 0x2ff   :  { %3146 = vmatpush1.bf16.msra.mxu0 %v2959_v61  ;;  %3184 = vmatprep.subr.bf16.mxu1 %v3034_v30  ;;  %v3020_v55 = vor.u32 %v3018_v38, %v11178_v33  ;;  %v3019_v16 = vsel %vm990_vm9, %v3017_v36, %v3018_v38  ;;  %v3023_v23 = vor.u32 %v3021_v39, %v10999_v22  ;;  %v12986_v22 = vld [vmem:[#allocation55_spill] sm:$0xff]  ;;  %v12989_v50 = vld [vmem:[#allocation38_spill] sm:$0xff]  ;;  %v13006_v57 = vld [vmem:[#allocation5_spill] sm:$0xff]  ;;  %vm4161_vm0 = vsmask.f32 1280 }
 0x300   :  { %3237 = vmatprep.subr.bf16.mxu0 %v3050_v17  ;;  %v3043_v10 = vmul.bf16 %v12988_v47, %v12987_v54  ;;  %v3052_v51 = vmul.bf16 %v12991_v29, %v12990_v53  ;;  %v3037_v35 = vmul.bf16 %v3013_v13, %v12992_v44  ;;  %v3053_v56 = vmul.bf16 %v12997_v1, %v12996_v28  ;;  %v13007_v61 = vld [vmem:[#allocation22_spill] sm:$0xff]  ;;  %v13008_v25 = vld [vmem:[#allocation21_spill] sm:$0xff]  ;;  %v13009_v17 = vld [vmem:[#allocation24_spill] sm:$0xff] }
 0x301   :  { %3111 = vmatmul.mubr.bf16.vlgmr.msra.gmra.mrb[80].mxu1 %v11292_v18  ;;  %v3022_v33 = vsel %vm990_vm9, %v3020_v55, %v3021_v39  ;;  %v3033_v9 = vsel %vm10632_vm11, %v3023_v23, %v3001_v31  ;;  %v12994_v31 = vld [vmem:[#allocation41_spill] sm:$0xff]  ;;  %v3038_v46 = vmul.bf16 %v3016_v7, %v12998_v2  ;;  %v3045_v3 = vmul.bf16 %v13000_v11, %v12999_v4  ;;  %v13013_v55 = vld [vmem:[#allocation27_spill] sm:$0xff]  ;;  %v13017_v23 = vld [vmem:[#allocation30_spill] sm:$0xff] }
 0x302   :  { %3164 = vmatmul.mubr.bf16.vlgmr.msra.gmra.mrb[96].mxu0 %v11292_v18  ;;  %3185 = vmatpush1.bf16.msra.mxu1 %v10979_v20  ;;  %v3036_v20 = vmul.bf16 %v3010_v6, %v12986_v22  ;;  %v3044_v62 = vmul.bf16 %v12994_v31, %v12993_v59  ;;  %v3054_v40 = vmul.bf16 %v13003_v0, %v13002_v60  ;;  %v13010_v38 = vld [vmem:[#allocation45_spill] sm:$0xff]  ;;  %v8848_v47 = vld [vmem:[%s12671_s9 + $0x48] sm:$0xff]   ;;  %v8852_v29 = vld [vmem:[%s12671_s9 + $0x50] sm:$0xff]   ;;  %vm4250_vm4 = vcmask 1045504  }
 0x303   :  { %3186 = vmatprep.subr.bf16.mxu1 %v3035_v24  ;;  %3238 = vmatpush1.bf16.msra.mxu0 %v3042_v8  ;;  %v3039_v21 = vmul.bf16 %v3019_v16, %v13004_v5  ;;  %v3046_v6 = vmul.bf16 %v11226_v48, %v13005_v15  ;;  %v3055_v30 = vmul.bf16 %v11216_v19, %v13007_v61  ;;  %v13011_v7 = vld [vmem:[#allocation25_spill] sm:$0xff]  ;;  %v13012_v48 = vld [vmem:[#allocation50_spill] sm:$0xff]  ;;  %v13014_v24 = vld [vmem:[#allocation28_spill] sm:$0xff]  ;;  %vm4224_vm5 = vsmask.f32 6400 }
 0x304   :  { %3239 = vmatprep.subr.bf16.mxu0 %v3051_v43  ;;  %3120 = vmatprep.mubr.bf16.mxu1 %v12931_v45  ;;  %v3040_v41 = vmul.bf16 %v3022_v33, %v13008_v25  ;;  %v3047_v13 = vmul.bf16 %v11243_v63, %v13009_v17  ;;  %v3056_v36 = vmul.bf16 %v11250_v27, %v13011_v7  ;;  %v13015_v8 = vld [vmem:[#allocation57_spill] sm:$0xff]  ;;  %v8844_v63 = vld [vmem:[%s12671_s9 + $0x40] sm:$0xff]   ;;  %v13024_v44 = vld [vmem:[#allocation36_spill] sm:$0xff] }
 0x305   :  { %3173 = vmatprep.mubr.bf16.mxu0 %v12931_v45  ;;  %v3041_v39 = vmul.bf16 %v3033_v9, %v13012_v48  ;;  %v3048_v19 = vmul.bf16 %v11269_v34, %v13013_v55  ;;  %v3057_v16 = vmul.bf16 %v13015_v8, %v13014_v24  ;;  %v13016_v27 = vld [vmem:[#allocation29_spill] sm:$0xff]  ;;  %v13018_v33 = vld [vmem:[#allocation26_spill] sm:$0xff]  ;;  %v13020_v34 = vld [vmem:[#allocation51_spill] sm:$0xff] }
 0x306   :  { %3187 = vmatpush1.bf16.msra.mxu1 %v12989_v50  ;;  %v3049_v43 = vmul.bf16 %v13017_v23, %v13016_v27  ;;  %v13019_v9 = vld [vmem:[#allocation2_spill] sm:$0xff]  ;;  %v8856_v31 = vld [vmem:[%s12671_s9 + $0x58] sm:$0xff]   ;;  %v13028_v4 = vld [vmem:[#allocation47_spill] sm:$0xff] }
 0x307   :  { %3188 = vmatprep.subr.bf16.mxu1 %v3036_v20  ;;  %3240 = vmatpush1.bf16.msra.mxu0 %v3043_v10  ;;  %v3058_v22 = vmul.bf16 %v13019_v9, %v13018_v33  ;;  %v13021_v20 = vld [vmem:[#allocation40_spill] sm:$0xff]  ;;  %v13023_v50 = vld [vmem:[#allocation6_spill] sm:$0xff]  ;;  %v3064_v11 = vmul.bf16 %v11276_v26, %v13028_v4  ;;  %v8851_v5 = vld [vmem:[%s12671_s9 + $0x88] sm:$0xff]  }
 0x308   :  { %3241 = vmatprep.subr.bf16.mxu0 %v3052_v51  ;;  %v3059_v54 = vmul.bf16 %v13021_v20, %v13020_v34  ;;  %v13022_v10 = vld [vmem:[#allocation32_spill] sm:$0xff]  ;;  %v8860_v1 = vld [vmem:[%s12671_s9 + $0x60] sm:$0xff]   ;;  %v8867_v25 = vld [vmem:[%s12671_s9 + $0xa8] sm:$0xff]  }
 0x309   :  { %3121 = vmatmul.mubr.bf16.gmra.mrb[84].mxu1 %v11318_v12  ;;  %v3060_v53 = vmul.bf16 %v13023_v50, %v13022_v10  ;;  %v8853_v51 = vld [vmem:[%s12671_s9 + $0x10] sm:$0xff]   ;;  %v8846_v0 = vld [vmem:[%s12671_s9 + $0xc0] sm:$0xff]   ;;  %v8873_v7 = vld [vmem:[%s12671_s9 + $0x38] sm:$0xff]  }
 0x30a   :  { %3189 = vmatpush1.bf16.msra.mxu1 %v12995_v37  ;;  %3174 = vmatmul.mubr.bf16.gmra.mrb[100].mxu0 %v11318_v12  ;;  %v13026_v37 = vld [vmem:[#allocation39_spill] sm:$0xff]  ;;  %v8847_v26 = vld [vmem:[%s12671_s9 + $0x80] sm:$0xff]   ;;  %v8855_v15 = vld [vmem:[%s12671_s9 + $0x90] sm:$0xff]  }
 0x30b   :  { %3190 = vmatprep.subr.bf16.mxu1 %v3037_v35  ;;  %3242 = vmatpush1.bf16.msra.mxu0 %v3044_v62  ;;  %v13025_v35 = vld [vmem:[#allocation48_spill] sm:$0xff]  ;;  %v8857_v62 = vld [vmem:[%s12671_s9 + $0x18] sm:$0xff]   ;;  %v3062_v28 = vmul.bf16 %v11234_v49, %v13026_v37  ;;  %v8864_v49 = vld [vmem:[%s12671_s9 + $0x68] sm:$0xff]  }
 0x30c   :  { %3243 = vmatprep.subr.bf16.mxu0 %v3053_v56  ;;  %3216 = vmatprep.mubr.bf16.mxu1 %v12931_v45  ;;  %v3061_v59 = vmul.bf16 %v13025_v35, %v13024_v44  ;;  %v13027_v56 = vld [vmem:[#allocation42_spill] sm:$0xff]  ;;  %v8870_v17 = vld [vmem:[%s12671_s9 + $0xf0] sm:$0xff]   ;;  %v8875_v48 = vld [vmem:[%s12671_s9 + $0xb8] sm:$0xff]  }
 0x30d   :  { %3269 = vmatprep.mubr.bf16.mxu0 %v12931_v45  ;;  %v3063_v2 = vmul.bf16 %v11262_v58, %v13027_v56  ;;  %v8868_v58 = vld [vmem:[%s12671_s9 + $0x70] sm:$0xff]   ;;  %v8863_v61 = vld [vmem:[%s12671_s9 + $0xa0] sm:$0xff]   ;;  %v8883_v50 = vld [vmem:[%s12671_s9 + $0x188] sm:$0xff]  }
 0x30e   :  { %3191 = vmatpush1.bf16.msra.mxu1 %v13001_v42  ;;  %v13030_v42 = vld [vmem:[#allocation37_spill] sm:$0xff]  ;;  %v8878_v55 = vld [vmem:[%s12671_s9 + $0x1c0] sm:$0xff]   ;;  %v8886_v44 = vld [vmem:[%s12671_s9 + $0x1d0] sm:$0xff]  }
 0x30f   :  { %3192 = vmatprep.subr.bf16.mxu1 %v3038_v46  ;;  %3244 = vmatpush1.bf16.msra.mxu0 %v3045_v3  ;;  %v8865_v46 = vld [vmem:[%s12671_s9 + $0x28] sm:$0xff]   ;;  %v13029_v3 = vld [vmem:[#allocation56_spill] sm:$0xff]  ;;  %v8879_v20 = vld [vmem:[%s12671_s9 + $0x180] sm:$0xff]  }
 0x310   :  { %3245 = vmatprep.subr.bf16.mxu0 %v3054_v40  ;;  %v3065_v60 = vmul.bf16 %v13030_v42, %v13029_v3  ;;  %v8850_v40 = vld [vmem:[%s12671_s9 + $0xc8] sm:$0xff]   ;;  %v8890_v4 = vld [vmem:[%s12671_s9 + $0x1d8] sm:$0xff]   ;;  %v8892_v3 = vld [vmem:[%s12671_s9 + $0x160] sm:$0xff]  }
 0x311   :  { %v8894_v42 = vld [vmem:[%s12671_s9 + $0x1e0] sm:$0xff]   ;;  %vm11790_vm2 = vmand %vm4136_vm12, %vm4161_vm0 }
 0x312   :  { %3193 = vmatpush1.bf16.msra.mxu1 %v13006_v57  ;;  %v8862_v57 = vld [vmem:[%s12671_s9 + $0xe0] sm:$0xff]   ;;  %vm11962_vm14 = vmand %vm4235_vm7, %vm4224_vm5 }
 0x313   :  { %3194 = vmatprep.subr.bf16.mxu1 %v3039_v21  ;;  %3246 = vmatpush1.bf16.msra.mxu0 %v3046_v6  ;;  %v8854_v21 = vld [vmem:[%s12671_s9 + $0xd0] sm:$0xff]   ;;  %v8859_v6 = vld [vmem:[%s12671_s9 + $0x98] sm:$0xff]   ;;  %vm12009_vm7 = vmand %vm4250_vm4, %vm4272_vm10 }
 0x314   :  { %3247 = vmatprep.subr.bf16.mxu0 %v3055_v30  ;;  %v8866_v30 = vld [vmem:[%s12671_s9 + $0xe8] sm:$0xff]  }
 0x316   :  { %3195 = vmatpush1.bf16.msra.mxu1 %v13010_v38  ;;  %v8872_v38 = vld [vmem:[%s12671_s9 + $0x78] sm:$0xff]  }
 0x317   :  { %3196 = vmatprep.subr.bf16.mxu1 %v3040_v41  ;;  %3248 = vmatpush1.bf16.msra.mxu0 %v3047_v13  ;;  %v8869_v41 = vld [vmem:[%s12671_s9 + $0x30] sm:$0xff]  }
 0x318   :  { %3249 = vmatprep.subr.bf16.mxu0 %v3056_v36  ;;  %v8871_v13 = vld [vmem:[%s12671_s9 + $0xb0] sm:$0xff]   ;;  %v8874_v36 = vld [vmem:[%s12671_s9 + $0xf8] sm:$0xff]  }
 0x31a   :  { %3197 = vmatpush1.bf16.msra.mxu1 %v10977_v14  ;;  %v8845_v14 = vld [vmem:[%s12671_s9] sm:$0xff]  }
 0x31b   :  { %3198 = vmatprep.subr.bf16.mxu1 %v3041_v39  ;;  %3250 = vmatpush1.bf16.msra.mxu0 %v3048_v19  ;;  %v8876_v39 = vld [vmem:[%s12671_s9 + $0x140] sm:$0xff]  }
 0x31c   :  { %3251 = vmatprep.subr.bf16.mxu0 %v3057_v16 }
 0x31e   :  { %3199 = vmatpush1.bf16.msra.mxu1 %v10983_v32  ;;  %v8849_v32 = vld [vmem:[%s12671_s9 + $0x8] sm:$0xff]  }
 0x31f   :  { %3252 = vmatpush1.bf16.msra.mxu0 %v3049_v43  ;;  %8613 = vmatprep.subr.bf16.mxu1 %v3058_v22 }
 0x320   :  { %8066 = vmatprep.subr.bf16.mxu0 %v8844_v63 }
 0x321   :  { %3217 = vmatmul.mubr.bf16.vlgmr.msra.gmra.mrb[88].mxu1 %v11292_v18 }
 0x322   :  { %8614 = vmatpush3.bf16.msra.mxu1 %v3058_v22  ;;  %3270 = vmatmul.mubr.bf16.vlgmr.msra.gmra.mrb[104].mxu0 %v11292_v18 }
 0x323   :  { %8615 = vmatprep.subr.bf16.mxu1 %v3059_v54  ;;  %3226 = vmatprep.mubr.bf16.mxu1 %v12931_v45 }
 0x324   :  { %3279 = vmatprep.mubr.bf16.mxu0 %v12931_v45  ;;  %8067 = vmatpush3.bf16.msra.mxu0 %v8845_v14  ;;  %v8877_v14 = vld [vmem:[%s12671_s9 + $0x100] sm:$0xff]  }
 0x325   :  { %8068 = vmatprep.subr.bf16.mxu0 %v8848_v47  ;;  %v8882_v47 = vld [vmem:[%s12671_s9 + $0x1c8] sm:$0xff]  }
 0x326   :  { %8616 = vmatpush3.bf16.msra.mxu1 %v3059_v54  ;;  %v8880_v54 = vld [vmem:[%s12671_s9 + $0x148] sm:$0xff]  }
 0x327   :  { %8617 = vmatprep.subr.bf16.mxu1 %v3060_v53 }
 0x328   :  { %8069 = vmatpush3.bf16.msra.mxu0 %v8849_v32  ;;  %v8881_v32 = vld [vmem:[%s12671_s9 + $0x108] sm:$0xff]  }
 0x329   :  { %3227 = vmatmul.mubr.bf16.gmra.mrb[92].mxu1 %v11318_v12  ;;  %8070 = vmatprep.subr.bf16.mxu0 %v8852_v29 }
 0x32a   :  { %8618 = vmatpush3.bf16.msra.mxu1 %v3060_v53  ;;  %3280 = vmatmul.mubr.bf16.gmra.mrb[108].mxu0 %v11318_v12  ;;  %v8884_v53 = vld [vmem:[%s12671_s9 + $0x150] sm:$0xff]  }
 0x32b   :  { %8619 = vmatprep.subr.bf16.mxu1 %v3061_v59  ;;  %8629 = vmatprep.mubr.bf16.mxu1 %v11292_v18  ;;  %v8861_v18 = vld [vmem:[%s12671_s9 + $0x20] sm:$0xff]  }
 0x32c   :  { %8071 = vmatpush3.bf16.msra.mxu0 %v8853_v51 }
 0x32d   :  { %8072 = vmatprep.subr.bf16.mxu0 %v8856_v31 }
 0x32e   :  { %8620 = vmatpush3.bf16.msra.mxu1 %v3061_v59 }
 0x32f   :  { %8621 = vmatprep.subr.bf16.mxu1 %v3062_v28 }
 0x330   :  { %8073 = vmatpush3.bf16.msra.mxu0 %v8857_v62 }
 0x331   :  { %8074 = vmatprep.subr.bf16.mxu0 %v8860_v1 }
 0x332   :  { %8622 = vmatpush3.bf16.msra.mxu1 %v3062_v28  ;;  %v8885_v28 = vld [vmem:[%s12671_s9 + $0x110] sm:$0xff]  }
 0x333   :  { %8623 = vmatprep.subr.bf16.mxu1 %v3063_v2 }
 0x334   :  { %8075 = vmatpush3.bf16.msra.mxu0 %v8861_v18 }
 0x335   :  { %8076 = vmatprep.subr.bf16.mxu0 %v8864_v49  ;;  %v8888_v49 = vld [vmem:[%s12671_s9 + $0x158] sm:$0xff]  }
 0x336   :  { %8624 = vmatpush3.bf16.msra.mxu1 %v3063_v2  ;;  %v8887_v2 = vld [vmem:[%s12671_s9 + $0x190] sm:$0xff]  }
 0x337   :  { %8625 = vmatprep.subr.bf16.mxu1 %v3064_v11 }
 0x338   :  { %8077 = vmatpush3.bf16.msra.mxu0 %v8865_v46 }
 0x339   :  { %8078 = vmatprep.subr.bf16.mxu0 %v8868_v58  ;;  %v8891_v58 = vld [vmem:[%s12671_s9 + $0x198] sm:$0xff]  }
 0x33a   :  { %8626 = vmatpush3.bf16.msra.mxu1 %v3064_v11  ;;  %v8889_v11 = vld [vmem:[%s12671_s9 + $0x118] sm:$0xff]  }
 0x33b   :  { %8627 = vmatprep.subr.bf16.mxu1 %v3065_v60 }
 0x33c   :  { %8079 = vmatpush3.bf16.msra.mxu0 %v8869_v41  ;;  %v8905_v41 = vld [vmem:[%s12671_s9 + $0x138] sm:$0xff]  }
 0x33d   :  { %8080 = vmatprep.subr.bf16.mxu0 %v8872_v38  ;;  %v8907_v38 = vld [vmem:[%s12671_s9 + $0x1b8] sm:$0xff]  }
 0x33e   :  { %8628 = vmatpush3.bf16.msra.mxu1 %v3065_v60  ;;  %v8893_v60 = vld [vmem:[%s12671_s9 + $0x120] sm:$0xff]  }
 0x33f   :  { %8094 = vmatprep.subr.bf16.mxu1 %v8846_v0  ;;  %v8895_v0 = vld [vmem:[%s12671_s9 + $0x1a0] sm:$0xff]  }
 0x340   :  { %8081 = vmatpush3.bf16.msra.mxu0 %v8873_v7  ;;  %v8908_v7 = vld [vmem:[%s12671_s9 + $0x200] sm:$0xff]  }
 0x341   :  { %8630 = vmatmul.mubr.bf16.vlgmr.msra.gmra.mrb[96].mxu1 %v11318_v12  ;;  %v8858_v12 = vld [vmem:[%s12671_s9 + $0xd8] sm:$0xff]   ;;  %8122 = vmatprep.subr.bf16.mxu0 %v8876_v39 }
 0x342   :  { %8095 = vmatpush3.bf16.msra.mxu1 %v8847_v26  ;;  %v8896_v26 = vld [vmem:[%s12671_s9 + $0x168] sm:$0xff]  }
 0x343   :  { %8096 = vmatprep.subr.bf16.mxu1 %v8850_v40  ;;  %v8898_v40 = vld [vmem:[%s12671_s9 + $0x1e8] sm:$0xff]  }
 0x346   :  { %8097 = vmatpush3.bf16.msra.mxu1 %v8851_v5  ;;  %v8897_v5 = vld [vmem:[%s12671_s9 + $0x128] sm:$0xff]  }
 0x347   :  { %8098 = vmatprep.subr.bf16.mxu1 %v8854_v21  ;;  %v8899_v21 = vld [vmem:[%s12671_s9 + $0x1a8] sm:$0xff]  }
 0x34a   :  { %8099 = vmatpush3.bf16.msra.mxu1 %v8855_v15  ;;  %v8900_v15 = vld [vmem:[%s12671_s9 + $0x170] sm:$0xff]  }
 0x34b   :  { %8100 = vmatprep.subr.bf16.mxu1 %v8858_v12  ;;  %v8902_v12 = vld [vmem:[%s12671_s9 + $0x1f0] sm:$0xff]  }
 0x34e   :  { %8101 = vmatpush3.bf16.msra.mxu1 %v8859_v6  ;;  %v8901_v6 = vld [vmem:[%s12671_s9 + $0x130] sm:$0xff]  }
 0x34f   :  { %8102 = vmatprep.subr.bf16.mxu1 %v8862_v57  ;;  %v8903_v57 = vld [vmem:[%s12671_s9 + $0x1b0] sm:$0xff]  }
 0x352   :  { %8103 = vmatpush3.bf16.msra.mxu1 %v8863_v61  ;;  %v8904_v61 = vld [vmem:[%s12671_s9 + $0x178] sm:$0xff]  }
 0x353   :  { %8104 = vmatprep.subr.bf16.mxu1 %v8866_v30  ;;  %v8906_v30 = vld [vmem:[%s12671_s9 + $0x1f8] sm:$0xff]  }
 0x356   :  { %8105 = vmatpush3.bf16.msra.mxu1 %v8867_v25 }
 0x357   :  { %8106 = vmatprep.subr.bf16.mxu1 %v8870_v17 }
 0x35a   :  { %8107 = vmatpush3.bf16.msra.mxu1 %v8871_v13 }
 0x35b   :  { %8108 = vmatprep.subr.bf16.mxu1 %v8874_v36 }
 0x35e   :  { %8109 = vmatpush3.bf16.msra.mxu1 %v8875_v48 }
 0x35f   :  { %8150 = vmatprep.subr.bf16.mxu1 %v8878_v55 }
 0x3d4   :  { %v3112_v19 = vpop.f32.mrb[80].mxu1 }
 0x3d5   :  { %v3114_v24 = vpop.f32.mrb[81].mxu1  ;;  %v3165_v8 = vpop.f32.mrb[96].mxu0 }
 0x3d6   :  { %v3116_v16 = vpop.f32.mrb[82].mxu1  ;;  %v3167_v63 = vpop.f32.mrb[97].mxu0 }
 0x3d7   :  { %v3339_v27 = vpack.c.bf16 %v3116_v16, %v3112_v19  ;;  %v3118_v23 = vpop.f32.mrb[83].mxu1  ;;  %v3169_v43 = vpop.f32.mrb[98].mxu0 }
 0x3d8   :  { %v3340_v33 = vpack.c.bf16 %v3118_v23, %v3114_v24  ;;  %v3341_v9 = vpack.c.bf16 %v3169_v43, %v3165_v8  ;;  %v3171_v22 = vpop.f32.mrb[99].mxu0 }
 0x3d9   :  { %v3342_v34 = vpack.c.bf16 %v3171_v22, %v3167_v63 }
 0x3da   :  { %3821 = vmatprep.mubr.bf16.mxu0 %v3340_v33 }
 0x3db   :  { %3822 = vmatmul.mubr.bf16.vlgmr.msra.gmra.mrb[112].mxu0 %v3339_v27  ;;  %3870 = vmatprep.mubr.bf16.mxu1 %v3342_v34  ;;  %v8909_v27 = vld [vmem:[%s12671_s9 + $0x208] sm:$0xff]  }
 0x3dc   :  { %3871 = vmatmul.mubr.bf16.vlgmr.msra.gmra.mrb[100].mxu1 %v3341_v9  ;;  %8123 = vmatpush3.bf16.msra.mxu0 %v8877_v14  ;;  %v3122_v10 = vpop.f32.mrb[84].mxu1  ;;  %v8910_v9 = vld [vmem:[%s12671_s9 + $0x210] sm:$0xff]  }
 0x3dd   :  { %8151 = vmatpush3.bf16.msra.mxu1 %v8879_v20  ;;  %8124 = vmatprep.subr.bf16.mxu0 %v8880_v54  ;;  %v3175_v29 = vpop.f32.mrb[100].mxu0  ;;  %v3124_v51 = vpop.f32.mrb[85].mxu1 }
 0x3de   :  { %8152 = vmatprep.subr.bf16.mxu1 %v8882_v47  ;;  %v3177_v35 = vpop.f32.mrb[101].mxu0  ;;  %v3126_v59 = vpop.f32.mrb[86].mxu1 }
 0x3df   :  { %v3348_v31 = vpack.c.bf16 %v3126_v59, %v3122_v10  ;;  %v3179_v62 = vpop.f32.mrb[102].mxu0  ;;  %v3128_v37 = vpop.f32.mrb[87].mxu1 }
 0x3e0   :  { %8125 = vmatpush3.bf16.msra.mxu0 %v8881_v32  ;;  %v3350_v1 = vpack.c.bf16 %v3179_v62, %v3175_v29  ;;  %v3349_v18 = vpack.c.bf16 %v3128_v37, %v3124_v51  ;;  %v3181_v56 = vpop.f32.mrb[103].mxu0  ;;  %v8912_v29 = vld [vmem:[%s12671_s9 + $0x220] sm:$0xff]   ;;  %v8913_v51 = vld [vmem:[%s12671_s9 + $0x228] sm:$0xff]  }
 0x3e1   :  { %8153 = vmatpush3.bf16.msra.mxu1 %v8883_v50  ;;  %8126 = vmatprep.subr.bf16.mxu0 %v8884_v53  ;;  %v3351_v46 = vpack.c.bf16 %v3181_v56, %v3177_v35  ;;  %v8911_v53 = vld [vmem:[%s12671_s9 + $0x218] sm:$0xff]   ;;  %v8917_v56 = vld [vmem:[%s12672_s14] sm:$0xff]  }
 0x3e2   :  { %8154 = vmatprep.subr.bf16.mxu1 %v8886_v44  ;;  %3829 = vmatprep.mubr.bf16.mxu0 %v3349_v18  ;;  %v8914_v44 = vld [vmem:[%s12671_s9 + $0x230] sm:$0xff]   ;;  %v8915_v35 = vld [vmem:[%s12671_s9 + $0x238] sm:$0xff]   ;;  %v8916_v18 = vld [vmem:[%s12672_s14 + $0x40] sm:$0xff]  }
 0x3e3   :  { %3878 = vmatprep.mubr.bf16.mxu1 %v3351_v46  ;;  %3830 = vmatmul.mubr.bf16.gmra.mrb[116].mxu0 %v3348_v31  ;;  %v8920_v46 = vld [vmem:[%s12672_s14 + $0x48] sm:$0xff]  }
 0x3e4   :  { %8127 = vmatpush3.bf16.msra.mxu0 %v8885_v28  ;;  %3879 = vmatmul.mubr.bf16.gmra.mrb[104].mxu1 %v3350_v1 }
 0x3e5   :  { %8155 = vmatpush3.bf16.msra.mxu1 %v8887_v2  ;;  %8128 = vmatprep.subr.bf16.mxu0 %v8888_v49  ;;  %v8918_v2 = vld [vmem:[%s12672_s14 + $0xc0] sm:$0xff]  }
 0x3e6   :  { %8156 = vmatprep.subr.bf16.mxu1 %v8890_v4  ;;  %v8919_v49 = vld [vmem:[%s12672_s14 + $0x80] sm:$0xff]   ;;  %v8921_v4 = vld [vmem:[%s12672_s14 + $0x8] sm:$0xff]  }
 0x3e8   :  { %8129 = vmatpush3.bf16.msra.mxu0 %v8889_v11  ;;  %v8922_v11 = vld [vmem:[%s12672_s14 + $0xc8] sm:$0xff]  }
 0x3e9   :  { %8157 = vmatpush3.bf16.msra.mxu1 %v8891_v58  ;;  %8130 = vmatprep.subr.bf16.mxu0 %v8892_v3  ;;  %v8923_v58 = vld [vmem:[%s12672_s14 + $0x88] sm:$0xff]   ;;  %v8924_v3 = vld [vmem:[%s12672_s14 + $0x50] sm:$0xff]  }
 0x3ea   :  { %8158 = vmatprep.subr.bf16.mxu1 %v8894_v42  ;;  %v8925_v42 = vld [vmem:[%s12672_s14 + $0x10] sm:$0xff]  }
 0x3ec   :  { %8131 = vmatpush3.bf16.msra.mxu0 %v8893_v60 }
 0x3ed   :  { %8159 = vmatpush3.bf16.msra.mxu1 %v8895_v0  ;;  %8132 = vmatprep.subr.bf16.mxu0 %v8896_v26  ;;  %v8926_v0 = vld [vmem:[%s12672_s14 + $0xd0] sm:$0xff]  }
 0x3ee   :  { %8160 = vmatprep.subr.bf16.mxu1 %v8898_v40 }
 0x3f0   :  { %8133 = vmatpush3.bf16.msra.mxu0 %v8897_v5 }
 0x3f1   :  { %8161 = vmatpush3.bf16.msra.mxu1 %v8899_v21  ;;  %8134 = vmatprep.subr.bf16.mxu0 %v8900_v15 }
 0x3f2   :  { %8162 = vmatprep.subr.bf16.mxu1 %v8902_v12  ;;  %v8927_v12 = vld [vmem:[%s12672_s14 + $0x90] sm:$0xff]  }
 0x3f4   :  { %v3218_v25 = vpop.f32.mrb[88].mxu1  ;;  %8135 = vmatpush3.bf16.msra.mxu0 %v8901_v6  ;;  %v8928_v6 = vld [vmem:[%s12672_s14 + $0x58] sm:$0xff]  }
 0x3f5   :  { %v3220_v17 = vpop.f32.mrb[89].mxu1  ;;  %v3271_v13 = vpop.f32.mrb[104].mxu0  ;;  %8163 = vmatpush3.bf16.msra.mxu1 %v8903_v57  ;;  %8136 = vmatprep.subr.bf16.mxu0 %v8904_v61 }
 0x3f6   :  { %v3222_v36 = vpop.f32.mrb[90].mxu1  ;;  %v3273_v48 = vpop.f32.mrb[105].mxu0  ;;  %8164 = vmatprep.subr.bf16.mxu1 %v8906_v30 }
 0x3f7   :  { %v3343_v39 = vpack.c.bf16 %v3222_v36, %v3218_v25  ;;  %v3224_v55 = vpop.f32.mrb[91].mxu1  ;;  %v3275_v19 = vpop.f32.mrb[106].mxu0  ;;  %v8931_v36 = vld [vmem:[%s12672_s14 + $0x98] sm:$0xff]  }
 0x3f8   :  { %v3344_v24 = vpack.c.bf16 %v3224_v55, %v3220_v17  ;;  %v3345_v8 = vpack.c.bf16 %v3275_v19, %v3271_v13  ;;  %8137 = vmatpush3.bf16.msra.mxu0 %v8905_v41  ;;  %v3277_v16 = vpop.f32.mrb[107].mxu0  ;;  %v8929_v17 = vld [vmem:[%s12672_s14 + $0x18] sm:$0xff]   ;;  %v8933_v19 = vld [vmem:[%s12672_s14 + $0x20] sm:$0xff]  }
 0x3f9   :  { %v3346_v63 = vpack.c.bf16 %v3277_v16, %v3273_v48  ;;  %8165 = vmatpush3.bf16.msra.mxu1 %v8907_v38  ;;  %8633 = vmatprep.subr.bf16.mxu0 %v8908_v7  ;;  %v8934_v16 = vld [vmem:[%s12672_s14 + $0xe0] sm:$0xff]  }
 0x3fa   :  { %3919 = vmatprep.mubr.bf16.mxu0 %v3344_v24  ;;  %8188 = vmatprep.subr.bf16.mxu1 %v8916_v18 }
 0x3fb   :  { %3920 = vmatmul.mubr.bf16.vlgmr.msra.gmra.mrb[120].mxu0 %v3343_v39  ;;  %3968 = vmatprep.mubr.bf16.mxu1 %v3346_v63  ;;  %v8932_v39 = vld [vmem:[%s12672_s14 + $0x60] sm:$0xff]  }
 0x3fc   :  { %v3228_v23 = vpop.f32.mrb[92].mxu1  ;;  %8634 = vmatpush3.bf16.msra.mxu0 %v8908_v7  ;;  %3969 = vmatmul.mubr.bf16.vlgmr.msra.gmra.mrb[108].mxu1 %v3345_v8  ;;  %v8930_v7 = vld [vmem:[%s12672_s14 + $0xd8] sm:$0xff]   ;;  %v8935_v63 = vld [vmem:[%s12672_s14 + $0xa0] sm:$0xff]  }
 0x3fd   :  { %v3230_v43 = vpop.f32.mrb[93].mxu1  ;;  %v3281_v33 = vpop.f32.mrb[108].mxu0  ;;  %8635 = vmatprep.subr.bf16.mxu0 %v8909_v27  ;;  %8189 = vmatpush3.bf16.msra.mxu1 %v8917_v56 }
 0x3fe   :  { %v3232_v22 = vpop.f32.mrb[94].mxu1  ;;  %v3283_v14 = vpop.f32.mrb[109].mxu0  ;;  %8190 = vmatprep.subr.bf16.mxu1 %v8920_v46 }
 0x3ff   :  { %v3352_v34 = vpack.c.bf16 %v3232_v22, %v3228_v23  ;;  %v3234_v20 = vpop.f32.mrb[95].mxu1  ;;  %v3285_v54 = vpop.f32.mrb[110].mxu0 }
 0x400   :  { %v3353_v47 = vpack.c.bf16 %v3234_v20, %v3230_v43  ;;  %v3354_v32 = vpack.c.bf16 %v3285_v54, %v3281_v33  ;;  %8636 = vmatpush3.bf16.msra.mxu0 %v8909_v27  ;;  %v3287_v10 = vpop.f32.mrb[111].mxu0  ;;  %v8936_v20 = vld [vmem:[%s12672_s14 + $0x68] sm:$0xff]  }
 0x401   :  { %v3355_v50 = vpack.c.bf16 %v3287_v10, %v3283_v14  ;;  %8637 = vmatprep.subr.bf16.mxu0 %v8910_v9  ;;  %8191 = vmatpush3.bf16.msra.mxu1 %v8921_v4  ;;  %v8938_v10 = vld [vmem:[%s12672_s14 + $0xe8] sm:$0xff]  }
 0x402   :  { %3927 = vmatprep.mubr.bf16.mxu0 %v3353_v47  ;;  %8192 = vmatprep.subr.bf16.mxu1 %v8924_v3 }
 0x403   :  { %3928 = vmatmul.mubr.bf16.gmra.mrb[124].mxu0 %v3352_v34  ;;  %3976 = vmatprep.mubr.bf16.mxu1 %v3355_v50 }
 0x404   :  { %8638 = vmatpush3.bf16.msra.mxu0 %v8910_v9  ;;  %3977 = vmatmul.mubr.bf16.gmra.mrb[112].mxu1 %v3354_v32  ;;  %v8937_v32 = vld [vmem:[%s12672_s14 + $0x28] sm:$0xff]  }
 0x405   :  { %8639 = vmatprep.subr.bf16.mxu0 %v8911_v53  ;;  %8193 = vmatpush3.bf16.msra.mxu1 %v8925_v42 }
 0x406   :  { %8194 = vmatprep.subr.bf16.mxu1 %v8928_v6 }
 0x408   :  { %8640 = vmatpush3.bf16.msra.mxu0 %v8911_v53  ;;  %v8939_v53 = vld [vmem:[%s12672_s14 + $0xa8] sm:$0xff]  }
 0x409   :  { %8641 = vmatprep.subr.bf16.mxu0 %v8912_v29  ;;  %8195 = vmatpush3.bf16.msra.mxu1 %v8929_v17 }
 0x40a   :  { %8196 = vmatprep.subr.bf16.mxu1 %v8932_v39 }
 0x40c   :  { %8642 = vmatpush3.bf16.msra.mxu0 %v8912_v29  ;;  %v8940_v29 = vld [vmem:[%s12672_s14 + $0x70] sm:$0xff]  }
 0x40d   :  { %8643 = vmatprep.subr.bf16.mxu0 %v8913_v51  ;;  %8197 = vmatpush3.bf16.msra.mxu1 %v8933_v19 }
 0x40e   :  { %8198 = vmatprep.subr.bf16.mxu1 %v8936_v20 }
 0x410   :  { %8644 = vmatpush3.bf16.msra.mxu0 %v8913_v51  ;;  %v8941_v51 = vld [vmem:[%s12672_s14 + $0x30] sm:$0xff]  }
 0x411   :  { %8645 = vmatprep.subr.bf16.mxu0 %v8914_v44  ;;  %8199 = vmatpush3.bf16.msra.mxu1 %v8937_v32 }
 0x412   :  { %8200 = vmatprep.subr.bf16.mxu1 %v8940_v29 }
 0x414   :  { %v8631_v59 = vpop.f32.mrb[96].mxu1  ;;  %8646 = vmatpush3.bf16.msra.mxu0 %v8914_v44  ;;  %v8942_v44 = vld [vmem:[%s12672_s14 + $0xf0] sm:$0xff]  }
 0x415   :  { %v3324_v31 = vpop.f32.mrb[97].mxu1  ;;  %8647 = vmatprep.subr.bf16.mxu0 %v8915_v35  ;;  %8201 = vmatpush3.bf16.msra.mxu1 %v8941_v51 }
 0x416   :  { %v8632_v62 = vpop.f32.mrb[98].mxu1 }
 0x417   :  { %v3356_v37 = vpack.c.bf16 %v8632_v62, %v8631_v59  ;;  %v3327_v28 = vpop.f32.mrb[99].mxu1  ;;  %v8944_v59 = vld [vmem:[%s12672_s14 + $0x78] sm:$0xff]  }
 0x418   :  { %v3347_v1 = vpack.c.bf16 %v3327_v28, %v3324_v31  ;;  %8648 = vmatpush3.bf16.msra.mxu0 %v8915_v35  ;;  %v8943_v35 = vld [vmem:[%s12672_s14 + $0xb0] sm:$0xff]   ;;  %v8945_v31 = vld [vmem:[%s12672_s14 + $0x38] sm:$0xff]   ;;  %8202 = vmatprep.subr.bf16.mxu1 %v8944_v59  ;;  %v8948_v28 = vld [vmem:[%s12672_s14 + $0x140] sm:$0xff]  }
 0x419   :  { %8216 = vmatprep.subr.bf16.mxu0 %v8918_v2  ;;  %v8946_v62 = vld [vmem:[%s12672_s14 + $0xf8] sm:$0xff]   ;;  %8203 = vmatpush3.bf16.msra.mxu1 %v8945_v31 }
 0x41a   :  { %8649 = vmatprep.mubr.bf16.mxu0 %v3347_v1  ;;  %8244 = vmatprep.subr.bf16.mxu1 %v8948_v28  ;;  %v8950_v1 = vld [vmem:[%s12672_s14 + $0x1c0] sm:$0xff]  }
 0x41b   :  { %8650 = vmatmul.mubr.bf16.vlgmr.msra.gmra.mrb[128].mxu0 %v3356_v37  ;;  %v8947_v37 = vld [vmem:[%s12672_s14 + $0xb8] sm:$0xff]  }
 0x41c   :  { %8217 = vmatpush3.bf16.msra.mxu0 %v8919_v49 }
 0x41d   :  { %8218 = vmatprep.subr.bf16.mxu0 %v8922_v11 }
 0x420   :  { %8219 = vmatpush3.bf16.msra.mxu0 %v8923_v58 }
 0x421   :  { %8220 = vmatprep.subr.bf16.mxu0 %v8926_v0 }
 0x424   :  { %8221 = vmatpush3.bf16.msra.mxu0 %v8927_v12 }
 0x425   :  { %8222 = vmatprep.subr.bf16.mxu0 %v8930_v7 }
 0x428   :  { %8223 = vmatpush3.bf16.msra.mxu0 %v8931_v36 }
 0x429   :  { %8224 = vmatprep.subr.bf16.mxu0 %v8934_v16 }
 0x42c   :  { %8225 = vmatpush3.bf16.msra.mxu0 %v8935_v63 }
 0x42d   :  { %8226 = vmatprep.subr.bf16.mxu0 %v8938_v10 }
 0x430   :  { %8227 = vmatpush3.bf16.msra.mxu0 %v8939_v53 }
 0x431   :  { %8228 = vmatprep.subr.bf16.mxu0 %v8942_v44 }
 0x434   :  { %8229 = vmatpush3.bf16.msra.mxu0 %v8943_v35 }
 0x435   :  { %8230 = vmatprep.subr.bf16.mxu0 %v8946_v62 }
 0x438   :  { %8231 = vmatpush3.bf16.msra.mxu0 %v8947_v37 }
 0x439   :  { %8272 = vmatprep.subr.bf16.mxu0 %v8950_v1 }
 0x4ae   :  { %v8082_v60 = vpop.f32.mrb[112].mxu0 }
 0x4af   :  { %v8083_v26 = vpop.f32.mrb[113].mxu0  ;;  %v8110_v40 = vpop.f32.mrb[100].mxu1 }
 0x4b0   :  { %v8084_v5 = vadd.f32 %v8083_v26, %v8082_v60  ;;  %v8085_v21 = vpop.f32.mrb[114].mxu0  ;;  %v8111_v15 = vpop.f32.mrb[101].mxu1 }
 0x4b1   :  { %v8112_v57 = vadd.f32 %v8111_v15, %v8110_v40  ;;  %v8086_v61 = vpop.f32.mrb[115].mxu0  ;;  %v8113_v30 = vpop.f32.mrb[102].mxu1 }
 0x4b2   :  { %v8087_v25 = vadd.f32 %v8086_v61, %v8085_v21  ;;  %v8114_v41 = vpop.f32.mrb[103].mxu1 }
 0x4b3   :  { %v11649_v13 = vadd.f32 %v8112_v57, %v8084_v5  ;;  %v8115_v38 = vadd.f32 %v8114_v41, %v8113_v30 }
 0x4b5   :  { %v11657_v48 = vadd.f32 %v8115_v38, %v8087_v25 }
 0x4b6   :  { %v8088_v55 = vpop.f32.mrb[116].mxu0 }
 0x4b7   :  { %v8116_v24 = vpop.f32.mrb[104].mxu1  ;;  %v8089_v8 = vpop.f32.mrb[117].mxu0 }
 0x4b8   :  { %v8090_v27 = vadd.f32 %v8089_v8, %v8088_v55  ;;  %v8117_v23 = vpop.f32.mrb[105].mxu1  ;;  %v8091_v43 = vpop.f32.mrb[118].mxu0 }
 0x4b9   :  { %v8118_v33 = vadd.f32 %v8117_v23, %v8116_v24  ;;  %v8119_v9 = vpop.f32.mrb[106].mxu1  ;;  %v8092_v22 = vpop.f32.mrb[119].mxu0 }
 0x4ba   :  { %v8093_v14 = vadd.f32 %v8092_v22, %v8091_v43  ;;  %v8120_v34 = vpop.f32.mrb[107].mxu1 }
 0x4bb   :  { %v3881_v54 = vadd.f32 %v8118_v33, %v8090_v27  ;;  %v8121_v47 = vadd.f32 %v8120_v34, %v8119_v9 }
 0x4bd   :  { %v3884_v50 = vadd.f32 %v8121_v47, %v8093_v14 }
 0x4ce   :  { %v8138_v18 = vpop.f32.mrb[120].mxu0 }
 0x4cf   :  { %v8139_v56 = vpop.f32.mrb[121].mxu0  ;;  %v8166_v2 = vpop.f32.mrb[108].mxu1 }
 0x4d0   :  { %v8140_v49 = vadd.f32 %v8139_v56, %v8138_v18  ;;  %v8141_v46 = vpop.f32.mrb[122].mxu0  ;;  %v8167_v4 = vpop.f32.mrb[109].mxu1 }
 0x4d1   :  { %v8142_v11 = vpop.f32.mrb[123].mxu0  ;;  %v8168_v58 = vadd.f32 %v8167_v4, %v8166_v2  ;;  %v8169_v3 = vpop.f32.mrb[110].mxu1 }
 0x4d2   :  { %v3922_v42 = vadd.f32 %v8140_v49, %v11649_v13  ;;  %v8143_v60 = vadd.f32 %v8142_v11, %v8141_v46  ;;  %v8170_v0 = vpop.f32.mrb[111].mxu1 }
 0x4d3   :  { %v8171_v26 = vadd.f32 %v8170_v0, %v8169_v3  ;;  %v11717_v0 = vpop.permute.xlu1 %4172 }
 0x4d4   :  { %v3925_v40 = vadd.f32 %v8143_v60, %v11657_v48  ;;  %v3971_v5 = vadd.f32 %v8168_v58, %v3922_v42  ;;  %v11715_v42 = vpop.permute.xlu0 %4193 }
 0x4d6   :  { %v8144_v21 = vpop.f32.mrb[124].mxu0  ;;  %v3974_v15 = vadd.f32 %v8171_v26, %v3925_v40  ;;  %v7515_v40 = vld [vmem:[%s12674_s10] ss:$0 sm:$0xff] }
 0x4d7   :  { %v8145_v12 = vpop.f32.mrb[125].mxu0  ;;  %v8172_v6 = vpop.f32.mrb[112].mxu1 }
 0x4d8   :  { %v8146_v57 = vadd.f32 %v8145_v12, %v8144_v21  ;;  %v8147_v61 = vpop.f32.mrb[126].mxu0  ;;  %v8173_v30 = vpop.f32.mrb[113].mxu1 }
 0x4d9   :  { %v8148_v25 = vpop.f32.mrb[127].mxu0  ;;  %v8174_v41 = vadd.f32 %v8173_v30, %v8172_v6  ;;  %v8175_v17 = vpop.f32.mrb[114].mxu1  ;;  %v7516_v30 = vld [vmem:[%s12675_s11] ss:$0 sm:$0xff] }
 0x4da   :  { %v3930_v38 = vadd.f32 %v8146_v57, %v3881_v54  ;;  %v8149_v7 = vadd.f32 %v8148_v25, %v8147_v61  ;;  %v8176_v36 = vpop.f32.mrb[115].mxu1  ;;  %v11719_v26 = vpop.permute.xlu0 %4198 }
 0x4db   :  { %v8177_v13 = vadd.f32 %v8176_v36, %v8175_v17 }
 0x4dc   :  { %v3933_v39 = vadd.f32 %v8149_v7, %v3884_v50  ;;  %v3979_v55 = vadd.f32 %v8174_v41, %v3930_v38 }
 0x4de   :  { %v3982_v19 = vadd.f32 %v8177_v13, %v3933_v39  ;;  %v11726_v21 = vpop.permute.xlu0 %4262 }
 0x4ee   :  { %v8651_v24 = vpop.f32.mrb[128].mxu0 }
 0x4ef   :  { %v4028_v48 = vadd.f32 %v8651_v24, %v3979_v55  ;;  %v4019_v8 = vpop.f32.mrb[129].mxu0 }
 0x4f0   :  { %v4020_v16 = vadd.f32 %v4019_v8, %v3971_v5  ;;  %v8652_v63 = vpop.f32.mrb[130].mxu0  ;;  %v11724_v5 = vpop.permute.xlu1 %4177 }
 0x4f1   :  { %v4031_v27 = vadd.f32 %v8652_v63, %v3982_v19  ;;  %v4022_v23 = vpop.f32.mrb[131].mxu0  ;;  %v4046_v14 = vmul.f32 %v4028_v48, %v4028_v48  ;;  %v11733_v19 = vpop.permute.xlu0 %4267 }
 0x4f2   :  { %v4023_v43 = vadd.f32 %v4022_v23, %v3974_v15  ;;  %v4044_v33 = vmul.f32 %v4020_v16, %v4020_v16 }
 0x4f3   :  { %v4047_v54 = vmul.f32 %v4031_v27, %v4031_v27 }
 0x4f4   :  { %v4034_v9 = vadd.f32 %v4023_v43, %v4020_v16  ;;  %v4045_v22 = vmul.f32 %v4023_v43, %v4023_v43  ;;  %v11731_v55 = vpop.permute.xlu1 %4240 }
 0x4f6   :  { %v4035_v34 = vadd.f32 %v4034_v9, %v4028_v48  ;;  %v4048_v20 = vadd.f32 %v4045_v22, %v4044_v33 }
 0x4f8   :  { %v4036_v47 = vadd.f32 %v4035_v34, %v4031_v27  ;;  %v4049_v32 = vadd.f32 %v4048_v20, %v4046_v14  ;;  %v11747_v22 = vpop.permute.xlu1 %4245  ;;  %v11755_v20 = vpop.permute.xlu0 %4147 }
 0x4fa   :  { %v4037_v10 = vrot.slane %v4036_v47, 4  ;;  %v4050_v50 = vadd.f32 %v4049_v32, %v4047_v54 }
 0x4fc   :  { %v4038_v53 = vadd.f32 %v4037_v10, %v4036_v47  ;;  %v4051_v29 = vrot.slane %v4050_v50, 4 }
 0x4fe   :  { %v4039_v51 = vrot.slane %v4038_v53, 2  ;;  %v4052_v44 = vadd.f32 %v4051_v29, %v4050_v50 }
 0x500   :  { %v4040_v35 = vadd.f32 %v4039_v51, %v4038_v53  ;;  %v4053_v59 = vrot.slane %v4052_v44, 2 }
 0x502   :  { %v4041_v31 = vrot.slane %v4040_v35, 1  ;;  %v4054_v62 = vadd.f32 %v4053_v59, %v4052_v44 }
 0x504   :  { %v4042_v37 = vadd.f32 %v4041_v31, %v4040_v35  ;;  %v4055_v28 = vrot.slane %v4054_v62, 1 }
 0x506   :  { %v4043_v1 = vmul.f32 0.03125, %v4042_v37  ;;  %v4056_v18 = vadd.f32 %v4055_v28, %v4054_v62 }
 0x508   :  { %v4057_v56 = vmul.f32 0.03125, %v4056_v18  ;;  %v4058_v2 = vmul.f32 %v4043_v1, %v4043_v1  ;;  %v4061_v49 = vsub.f32 %v4020_v16, %v4043_v1  ;;  %v4062_v46 = vsub.f32 %v4023_v43, %v4043_v1 }
 0x509   :  { %v4063_v4 = vsub.f32 %v4028_v48, %v4043_v1  ;;  %v4064_v11 = vsub.f32 %v4031_v27, %v4043_v1 }
 0x50a   :  { %v4059_v58 = vsub.f32 %v4057_v56, %v4058_v2  ;;  %v4071_v15 = vmul.f32 %v7515_v40, %v4061_v49  ;;  %v4072_v12 = vmul.f32 %v7515_v40, %v4062_v46  ;;  %v11780_v46 = vpop.permute.xlu1 %4123 }
 0x50b   :  { %v4073_v6 = vmul.f32 %v7515_v40, %v4063_v4  ;;  %v4074_v57 = vmul.f32 %v7515_v40, %v4064_v11 }
 0x50c   :  { %v4060_v3 = vmax.f32 %v4059_v58, 0.0  ;;  %v8949_v58 = vld [vmem:[%s12672_s14 + $0x100] sm:$0xff]  }
 0x50e   :  { %v4075_v60 = vadd.f32 1e-05, %v4060_v3 }
 0x510   :  { %9142 = vrsqrt.f32 %v4075_v60  ;;  %v9103_v60 = vld [vmem:[%s12682_s24 + $0x180] sm:$0xff]  }
 0x51a   :  { %v9143_v61 = vpop.eup %9142 }
 0x51b   :  { %v4077_v25 = vmul.f32 %v9143_v61, %v4071_v15  ;;  %v4078_v41 = vmul.f32 %v9143_v61, %v4072_v12  ;;  %v4079_v17 = vmul.f32 %v9143_v61, %v4073_v6  ;;  %v4080_v38 = vmul.f32 %v9143_v61, %v4074_v57  ;;  %v11795_v15 = vpop.permute.xlu0 %4152  ;;  %v8952_v57 = vld [vmem:[%s12672_s14 + $0x148] sm:$0xff]  }
 0x51d   :  { %v4087_v7 = vadd.f32 %v7516_v30, %v4077_v25  ;;  %v4088_v36 = vadd.f32 %v7516_v30, %v4078_v41  ;;  %v4089_v13 = vadd.f32 %v7516_v30, %v4079_v17  ;;  %v4090_v39 = vadd.f32 %v7516_v30, %v4080_v38  ;;  %v8951_v41 = vld [vmem:[%s12672_s14 + $0x180] sm:$0xff]   ;;  %v8953_v38 = vld [vmem:[%s12672_s14 + $0x108] sm:$0xff]  }
 0x51f   :  { %v4091_v24 = vmax.f32 %v4087_v7, 0.0  ;;  %v4092_v48 = vmax.f32 %v4088_v36, 0.0  ;;  %v4093_v8 = vmax.f32 %v4089_v13, 0.0  ;;  %v4094_v16 = vmax.f32 %v4090_v39, 0.0  ;;  %v8954_v7 = vld [vmem:[%s12672_s14 + $0x1c8] sm:$0xff]   ;;  %v8956_v39 = vld [vmem:[%s12672_s14 + $0x150] sm:$0xff]  }
 0x521   :  { %v11735_v63 = vpack.c.bf16 %v4092_v48, %v4091_v24  ;;  %v11737_v27 = vpack.c.bf16 %v4094_v16, %v4093_v8 }
 0x523   :  { %v11740_v23 = vshrl.u32 %v11735_v63, 16  ;;  %v11743_v43 = vshll.u32 %v11735_v63, 16  ;;  %v4134_v33 = vrot.slane %v11737_v27, 6  ;;  %v4137_v9 = vrot.slane %v11735_v63, 6 }
 0x524   :  { %v11750_v14 = vshrl.u32 %v11737_v27, 16  ;;  %v11753_v34 = vshll.u32 %v11737_v27, 16  ;;  %v4251_v8 = vrot.slane %v11735_v63, 2  ;;  %v4252_v16 = vrot.slane %v11737_v27, 2 }
 0x525   :  { %v4143_v54 = vsel %vm4136_vm12, %v4134_v33, %v4137_v9  ;;  %v4110_v47 = vrot.slane %v11740_v23, 5  ;;  %v4113_v32 = vrot.slane %v11743_v43, 6  ;;  %v4184_v10 = vrot.slane %v11740_v23, 7 }
 0x526   :  { %v4155_v50 = vmul.bf16 %v11755_v20, %v4143_v54  ;;  %v4100_v53 = vrot.slane %v11750_v14, 5  ;;  %v4103_v29 = vrot.slane %v11753_v34, 6  ;;  %v4182_v51 = vrot.slane %v11750_v14, 7  ;;  %v8957_v54 = vld [vmem:[%s12672_s14 + $0x110] sm:$0xff]  }
 0x527   :  { %v4114_v44 = vor.u32 %v4113_v32, %v4110_v47  ;;  %v4185_v59 = vor.u32 %v4184_v10, %v11743_v43  ;;  %v4157_v31 = vrot.slane %v11750_v14, 6  ;;  %v4158_v37 = vrot.slane %v11753_v34, 7  ;;  %v8958_v47 = vld [vmem:[%s12672_s14 + $0x1d0] sm:$0xff]  }
 0x528   :  { %4912 = vmatprep.mubr.bf16.mxu1 %v4155_v50  ;;  %v4104_v62 = vor.u32 %v4103_v29, %v4100_v53  ;;  %v4162_v28 = vrot.slane %v11740_v23, 6  ;;  %v4138_v56 = vsel %vm4136_vm12, %v4137_v9, %v4134_v33  ;;  %v4163_v2 = vrot.slane %v11743_v43, 7  ;;  %v8955_v33 = vld [vmem:[%s12672_s14 + $0x188] sm:$0xff]   ;;  %v11829_v9 = vpop.permute.xlu1 %4128  ;;  %v8960_v53 = vld [vmem:[%s12672_s14 + $0x158] sm:$0xff]   ;;  %v11845_v29 = vpop.permute.xlu0 %4214 }
 0x529   :  { %v4190_v18 = vsel %vm10089_vm6, %v4182_v51, %v4185_v59  ;;  %v4186_v49 = vor.u32 %v4182_v51, %v11753_v34  ;;  %v4159_v3 = vor.u32 %v4158_v37, %v4157_v31  ;;  %v4203_v40 = vrot.slane %v11743_v43, 1  ;;  %v8959_v59 = vld [vmem:[%s12672_s14 + $0x190] sm:$0xff]   ;;  %v8962_v37 = vld [vmem:[%s12672_s14 + $0x1d8] sm:$0xff]  }
 0x52a   :  { %v4120_v4 = vsel %vm11767_vm15, %v4104_v62, %v4114_v44  ;;  %v4201_v11 = vmul.bf16 %v11715_v42, %v4190_v18  ;;  %v4164_v6 = vor.u32 %v4163_v2, %v4162_v28  ;;  %v4156_v61 = vmul.bf16 %v11795_v15, %v4138_v56  ;;  %v8964_v18 = vld [vmem:[%s12672_s14 + $0x160] sm:$0xff]   ;;  %v8963_v56 = vld [vmem:[%s12672_s14 + $0x198] sm:$0xff]  }
 0x52b   :  { %v4131_v12 = vmul.bf16 %v11780_v46, %v4120_v4  ;;  %v4187_v30 = vsel %vm908_vm3, %v4184_v10, %v4186_v49  ;;  %v4204_v36 = vor.u32 %v4203_v40, %v11740_v23  ;;  %v4115_v24 = vsel %vm4106_vm13, %v4114_v44, %v4104_v62  ;;  %v8961_v62 = vld [vmem:[%s12672_s14 + $0x118] sm:$0xff]   ;;  %v8965_v2 = vld [vmem:[%s12672_s14 + $0x120] sm:$0xff]   ;;  %v8968_v4 = vld [vmem:[%s12672_s14 + $0x168] sm:$0xff]  }
 0x52c   :  { %4961 = vmatprep.mubr.bf16.mxu0 %v4201_v11  ;;  %v4169_v25 = vsel %vm11790_vm2, %v4159_v3, %v4164_v6  ;;  %v4202_v13 = vmul.bf16 %v11719_v26, %v4187_v30  ;;  %v4205_v48 = vrot.slane %v11753_v34, 1  ;;  %v4132_v10 = vmul.bf16 %v11829_v9, %v4115_v24  ;;  %v8966_v49 = vld [vmem:[%s12672_s14 + $0x1e0] sm:$0xff]   ;;  %v8976_v30 = vld [vmem:[%s12672_s14 + $0x178] sm:$0xff]  }
 0x52d   :  { %4913 = vmatmul.mubr.bf16.vlgmr.msra.gmra.mrb[116].mxu1 %v4131_v12  ;;  %v4180_v17 = vmul.bf16 %v11717_v0, %v4169_v25  ;;  %v4165_v50 = vsel %vm4161_vm0, %v4164_v6, %v4159_v3  ;;  %v4253_v51 = vsel %vm4250_vm4, %v4251_v8, %v4252_v16  ;;  %v8967_v11 = vld [vmem:[%s12672_s14 + $0x1a0] sm:$0xff]   ;;  %v8970_v3 = vld [vmem:[%s12672_s14 + $0x1e8] sm:$0xff]   ;;  %v8972_v12 = vld [vmem:[%s12672_s14 + $0x170] sm:$0xff]   ;;  %v4225_v25 = vrot.slane %v11740_v23, 1 }
 0x52e   :  { %8245 = vmatpush3.bf16.msra.mxu1 %v8949_v58  ;;  %4920 = vmatprep.mubr.bf16.mxu1 %v4156_v61  ;;  %v4206_v32 = vsel %vm990_vm9, %v4204_v36, %v4205_v48  ;;  %v4181_v31 = vmul.bf16 %v11724_v5, %v4165_v50  ;;  %v4270_v28 = vmul.bf16 %v11726_v21, %v4253_v51  ;;  %v8969_v58 = vld [vmem:[%s12672_s14 + $0x128] sm:$0xff]   ;;  %v8974_v61 = vld [vmem:[%s12672_s14 + $0x1f0] sm:$0xff]   ;;  %v8980_v24 = vld [vmem:[%s12672_s14 + $0x200] sm:$0xff]   ;;  %v4276_v50 = vrot.slane %v11750_v14, 2  ;;  %v11933_v51 = vpop.permute.xlu1 %4219 }
 0x52f   :  { %8246 = vmatprep.subr.bf16.mxu1 %v8952_v57  ;;  %4962 = vmatmul.mubr.bf16.vlgmr.msra.gmra.mrb[132].mxu0 %v4180_v17  ;;  %v4222_v44 = vmul.bf16 %v11845_v29, %v4206_v32  ;;  %v8971_v6 = vld [vmem:[%s12672_s14 + $0x1a8] sm:$0xff]   ;;  %v8973_v57 = vld [vmem:[%s12672_s14 + $0x130] sm:$0xff]   ;;  %v4228_v17 = vrot.slane %v11750_v14, 1  ;;  %v4207_v36 = vor.u32 %v4205_v48, %v11750_v14  ;;  %v4273_v48 = vrot.slane %v11740_v23, 2 }
 0x530   :  { %8273 = vmatpush3.bf16.msra.mxu0 %v8951_v41  ;;  %4969 = vmatprep.mubr.bf16.mxu0 %v4202_v13  ;;  %v4226_v41 = vrot.slane %v11743_v43, 2  ;;  %v8977_v13 = vld [vmem:[%s12672_s14 + $0x138] sm:$0xff]   ;;  %v4258_v14 = vsel %vm4250_vm4, %v4252_v16, %v4251_v8  ;;  %v8984_v16 = vld [vmem:[%s12672_s14 + $0x210] sm:$0xff]  }
 0x531   :  { %8274 = vmatprep.subr.bf16.mxu0 %v8954_v7  ;;  %v8975_v7 = vld [vmem:[%s12672_s14 + $0x1b0] sm:$0xff]   ;;  %v4211_v32 = vsel %vm10632_vm11, %v4207_v36, %v4203_v40  ;;  %v8982_v40 = vld [vmem:[%s12672_s14 + $0x208] sm:$0xff]   ;;  %v4271_v8 = vmul.bf16 %v11733_v19, %v4258_v14  ;;  %v9149_v36 = vmov 0.0  }
 0x532   :  { %8247 = vmatpush3.bf16.msra.mxu1 %v8953_v38  ;;  %v4229_v38 = vrot.slane %v11753_v34, 2 }
 0x533   :  { %8248 = vmatprep.subr.bf16.mxu1 %v8956_v39  ;;  %v8978_v39 = vld [vmem:[%s12672_s14 + $0x1f8] sm:$0xff]  }
 0x534   :  { %8275 = vmatpush3.bf16.msra.mxu0 %v8955_v33  ;;  %v4227_v33 = vor.u32 %v4226_v41, %v4225_v25  ;;  %v8995_v41 = vld [vmem:[%s12673_s16 + $0x38] sm:$0xff]  }
 0x535   :  { %4921 = vmatmul.mubr.bf16.gmra.mrb[120].mxu1 %v4132_v10  ;;  %8276 = vmatprep.subr.bf16.mxu0 %v8958_v47  ;;  %v8979_v47 = vld [vmem:[%s12672_s14 + $0x1b8] sm:$0xff]   ;;  %v4274_v10 = vrot.slane %v11743_v43, 3  ;;  %v4223_v43 = vmul.bf16 %v11933_v51, %v4211_v32 }
 0x536   :  { %8249 = vmatpush3.bf16.msra.mxu1 %v8957_v54  ;;  %5010 = vmatprep.mubr.bf16.mxu1 %v4222_v44  ;;  %v4230_v54 = vor.u32 %v4229_v38, %v4228_v17  ;;  %v8981_v44 = vld [vmem:[%s12673_s16] sm:$0xff]   ;;  %v12020_v38 = vpop.permute.xlu1 %4292 }
 0x537   :  { %8250 = vmatprep.subr.bf16.mxu1 %v8960_v53  ;;  %4970 = vmatmul.mubr.bf16.gmra.mrb[136].mxu0 %v4181_v31  ;;  %v4277_v53 = vrot.slane %v11753_v34, 3  ;;  %v11949_v34 = vor.u32 %v4274_v10, %v4273_v48 }
 0x538   :  { %8277 = vmatpush3.bf16.msra.mxu0 %v8959_v59  ;;  %5059 = vmatprep.mubr.bf16.mxu0 %v4270_v28  ;;  %v4231_v23 = vsel %vm4224_vm5, %v4227_v33, %v4230_v54 }
 0x539   :  { %8278 = vmatprep.subr.bf16.mxu0 %v8962_v37  ;;  %v11951_v59 = vor.u32 %v4277_v53, %v4276_v50  ;;  %v4248_v31 = vmul.bf16 %v11731_v55, %v4231_v23 }
 0x53a   :  { %8251 = vmatpush3.bf16.msra.mxu1 %v8961_v62  ;;  %v8983_v62 = vld [vmem:[%s12673_s16 + $0x8] sm:$0xff]  }
 0x53b   :  { %8252 = vmatprep.subr.bf16.mxu1 %v8964_v18  ;;  %v4279_v28 = vsel %vm4272_vm10, %v11949_v34, %v11951_v59  ;;  %v11969_v18 = vpop.permute.xlu0 %4287  ;;  %v4284_v17 = vsel %vm12009_vm7, %v11951_v59, %v11949_v34 }
 0x53c   :  { %8279 = vmatpush3.bf16.msra.mxu0 %v8963_v56  ;;  %v4237_v56 = vsel %vm11962_vm14, %v4230_v54, %v4227_v33 }
 0x53d   :  { %8280 = vmatprep.subr.bf16.mxu0 %v8966_v49  ;;  %v8986_v49 = vld [vmem:[%s12672_s14 + $0x218] sm:$0xff]  }
 0x53e   :  { %8253 = vmatpush3.bf16.msra.mxu1 %v8965_v2  ;;  %v8985_v2 = vld [vmem:[%s12673_s16 + $0x10] sm:$0xff]  }
 0x53f   :  { %8254 = vmatprep.subr.bf16.mxu1 %v8968_v4  ;;  %v4295_v4 = vmul.bf16 %v11969_v18, %v4279_v28 }
 0x540   :  { %8281 = vmatpush3.bf16.msra.mxu0 %v8967_v11  ;;  %v4249_v11 = vmul.bf16 %v11747_v22, %v4237_v56 }
 0x541   :  { %8282 = vmatprep.subr.bf16.mxu0 %v8970_v3  ;;  %v8988_v3 = vld [vmem:[%s12672_s14 + $0x220] sm:$0xff]  }
 0x542   :  { %8255 = vmatpush3.bf16.msra.mxu1 %v8969_v58  ;;  %v8987_v58 = vld [vmem:[%s12673_s16 + $0x18] sm:$0xff]  }
 0x543   :  { %8256 = vmatprep.subr.bf16.mxu1 %v8972_v12  ;;  %v8989_v12 = vld [vmem:[%s12673_s16 + $0x20] sm:$0xff]  }
 0x544   :  { %8283 = vmatpush3.bf16.msra.mxu0 %v8971_v6  ;;  %v8990_v6 = vld [vmem:[%s12672_s14 + $0x228] sm:$0xff]  }
 0x545   :  { %8284 = vmatprep.subr.bf16.mxu0 %v8974_v61  ;;  %v8993_v61 = vld [vmem:[%s12673_s16 + $0x30] sm:$0xff]  }
 0x546   :  { %8257 = vmatpush3.bf16.msra.mxu1 %v8973_v57  ;;  %v8991_v57 = vld [vmem:[%s12673_s16 + $0x28] sm:$0xff]  }
 0x547   :  { %8258 = vmatprep.subr.bf16.mxu1 %v8976_v30  ;;  %v8994_v30 = vld [vmem:[%s12672_s14 + $0x238] sm:$0xff]  }
 0x548   :  { %8285 = vmatpush3.bf16.msra.mxu0 %v8975_v7  ;;  %v4296_v7 = vmul.bf16 %v12020_v38, %v4284_v17 }
 0x549   :  { %8286 = vmatprep.subr.bf16.mxu0 %v8978_v39  ;;  %v7517_v39 = vld [vmem:[%s12676_s15] ss:$0 sm:$0xff] }
 0x54a   :  { %8259 = vmatpush3.bf16.msra.mxu1 %v8977_v13 }
 0x54b   :  { %8653 = vmatprep.subr.bf16.mxu1 %v8980_v24 }
 0x54c   :  { %8287 = vmatpush3.bf16.msra.mxu0 %v8979_v47 }
 0x54d   :  { %5011 = vmatmul.mubr.bf16.vlgmr.msra.gmra.mrb[124].mxu1 %v11735_v63  ;;  %8673 = vmatprep.subr.bf16.mxu0 %v8981_v44 }
 0x54e   :  { %5018 = vmatprep.mubr.bf16.mxu1 %v4223_v43  ;;  %8654 = vmatpush3.bf16.msra.mxu1 %v8980_v24 }
 0x54f   :  { %8655 = vmatprep.subr.bf16.mxu1 %v8982_v40  ;;  %5060 = vmatmul.mubr.bf16.vlgmr.msra.gmra.mrb[140].mxu0 %v4248_v31 }
 0x550   :  { %5067 = vmatprep.mubr.bf16.mxu0 %v4271_v8  ;;  %8674 = vmatpush3.bf16.msra.mxu0 %v8981_v44 }
 0x551   :  { %8675 = vmatprep.subr.bf16.mxu0 %v8983_v62 }
 0x552   :  { %8656 = vmatpush3.bf16.msra.mxu1 %v8982_v40 }
 0x553   :  { %8657 = vmatprep.subr.bf16.mxu1 %v8984_v16 }
 0x554   :  { %8676 = vmatpush3.bf16.msra.mxu0 %v8983_v62 }
 0x555   :  { %5019 = vmatmul.mubr.bf16.gmra.mrb[128].mxu1 %v11737_v27  ;;  %8677 = vmatprep.subr.bf16.mxu0 %v8985_v2 }
 0x556   :  { %8658 = vmatpush3.bf16.msra.mxu1 %v8984_v16  ;;  %8669 = vmatprep.mubr.bf16.mxu1 %v4295_v4 }
 0x557   :  { %8659 = vmatprep.subr.bf16.mxu1 %v8986_v49  ;;  %5068 = vmatmul.mubr.bf16.gmra.mrb[144].mxu0 %v4249_v11 }
 0x558   :  { %8678 = vmatpush3.bf16.msra.mxu0 %v8985_v2  ;;  %8689 = vmatprep.mubr.bf16.mxu0 %v11735_v63  ;;  %v8992_v63 = vld [vmem:[%s12672_s14 + $0x230] sm:$0xff]  }
 0x559   :  { %8679 = vmatprep.subr.bf16.mxu0 %v8987_v58 }
 0x55a   :  { %8660 = vmatpush3.bf16.msra.mxu1 %v8986_v49 }
 0x55b   :  { %8661 = vmatprep.subr.bf16.mxu1 %v8988_v3 }
 0x55c   :  { %8680 = vmatpush3.bf16.msra.mxu0 %v8987_v58 }
 0x55d   :  { %8681 = vmatprep.subr.bf16.mxu0 %v8989_v12 }
 0x55e   :  { %8662 = vmatpush3.bf16.msra.mxu1 %v8988_v3 }
 0x55f   :  { %8663 = vmatprep.subr.bf16.mxu1 %v8990_v6 }
 0x560   :  { %8682 = vmatpush3.bf16.msra.mxu0 %v8989_v12 }
 0x561   :  { %8683 = vmatprep.subr.bf16.mxu0 %v8991_v57 }
 0x562   :  { %8664 = vmatpush3.bf16.msra.mxu1 %v8990_v6 }
 0x563   :  { %8665 = vmatprep.subr.bf16.mxu1 %v8992_v63 }
 0x564   :  { %8684 = vmatpush3.bf16.msra.mxu0 %v8991_v57 }
 0x565   :  { %8685 = vmatprep.subr.bf16.mxu0 %v8993_v61 }
 0x566   :  { %8666 = vmatpush3.bf16.msra.mxu1 %v8992_v63 }
 0x567   :  { %8667 = vmatprep.subr.bf16.mxu1 %v8994_v30 }
 0x568   :  { %8686 = vmatpush3.bf16.msra.mxu0 %v8993_v61 }
 0x569   :  { %8687 = vmatprep.subr.bf16.mxu0 %v8995_v41 }
 0x56a   :  { %8668 = vmatpush3.bf16.msra.mxu1 %v8994_v30 }
 0x56c   :  { %8688 = vmatpush3.bf16.msra.mxu0 %v8995_v41 }
 0x56d   :  { %8670 = vmatmul.mubr.bf16.vlgmr.msra.gmra.mrb[132].mxu1 %v4296_v7  ;;  %8693 = vmatprep.subr.bf16.mxu0 %v9149_v36 }
 0x56e   :  { %5596 = vmatprep.mubr.bf16.mxu1 %v12931_v45 }
 0x56f   :  { %8690 = vmatmul.mubr.bf16.vlgmr.msra.gmra.mrb[148].mxu0 %v11737_v27 }
 0x570   :  { %8697 = vmatprep.mubr.msk.bf16.mxu0 %vm9150_vm1, %v9149_v36 }
 0x600   :  { %v8204_v13 = vpop.f32.mrb[116].mxu1 }
 0x601   :  { %v8205_v24 = vpop.f32.mrb[117].mxu1 }
 0x602   :  { %v8206_v33 = vadd.f32 %v8205_v24, %v8204_v13  ;;  %v8207_v54 = vpop.f32.mrb[118].mxu1  ;;  %v8232_v48 = vpop.f32.mrb[132].mxu0 }
 0x603   :  { %v8208_v47 = vpop.f32.mrb[119].mxu1  ;;  %v8233_v10 = vpop.f32.mrb[133].mxu0 }
 0x604   :  { %v4915_v32 = vadd.f32 %v8206_v33, %v7517_v39  ;;  %v8209_v50 = vadd.f32 %v8208_v47, %v8207_v54  ;;  %v8234_v53 = vadd.f32 %v8233_v10, %v8232_v48  ;;  %v8235_v23 = vpop.f32.mrb[134].mxu0 }
 0x605   :  { %v8236_v27 = vpop.f32.mrb[135].mxu0 }
 0x606   :  { %v4918_v44 = vadd.f32 %v8209_v50, %v7517_v39  ;;  %v4964_v40 = vadd.f32 %v8234_v53, %v4915_v32  ;;  %v8237_v43 = vadd.f32 %v8236_v27, %v8235_v23 }
 0x608   :  { %v8210_v14 = vpop.f32.mrb[120].mxu1  ;;  %v4967_v34 = vadd.f32 %v8237_v43, %v4918_v44 }
 0x609   :  { %v8211_v59 = vpop.f32.mrb[121].mxu1 }
 0x60a   :  { %v8212_v31 = vadd.f32 %v8211_v59, %v8210_v14  ;;  %v8213_v62 = vpop.f32.mrb[122].mxu1  ;;  %v8238_v8 = vpop.f32.mrb[136].mxu0 }
 0x60b   :  { %v8214_v16 = vpop.f32.mrb[123].mxu1  ;;  %v8239_v56 = vpop.f32.mrb[137].mxu0 }
 0x60c   :  { %v4923_v28 = vadd.f32 %v8212_v31, %v7517_v39  ;;  %v8215_v2 = vadd.f32 %v8214_v16, %v8213_v62  ;;  %v8240_v49 = vadd.f32 %v8239_v56, %v8238_v8  ;;  %v8241_v4 = vpop.f32.mrb[138].mxu0 }
 0x60d   :  { %v8242_v58 = vpop.f32.mrb[139].mxu0 }
 0x60e   :  { %v4926_v11 = vadd.f32 %v8215_v2, %v7517_v39  ;;  %v4972_v3 = vadd.f32 %v8240_v49, %v4923_v28  ;;  %v8243_v12 = vadd.f32 %v8242_v58, %v8241_v4 }
 0x610   :  { %v4975_v6 = vadd.f32 %v8243_v12, %v4926_v11 }
 0x620   :  { %v8260_v57 = vpop.f32.mrb[124].mxu1 }
 0x621   :  { %v8261_v63 = vpop.f32.mrb[125].mxu1 }
 0x622   :  { %v8262_v61 = vadd.f32 %v8261_v63, %v8260_v57  ;;  %v8263_v30 = vpop.f32.mrb[126].mxu1  ;;  %v8288_v41 = vpop.f32.mrb[140].mxu0 }
 0x623   :  { %v8264_v17 = vpop.f32.mrb[127].mxu1  ;;  %v8289_v13 = vpop.f32.mrb[141].mxu0 }
 0x624   :  { %v5013_v7 = vadd.f32 %v8262_v61, %v4964_v40  ;;  %v8265_v24 = vadd.f32 %v8264_v17, %v8263_v30  ;;  %v8290_v33 = vadd.f32 %v8289_v13, %v8288_v41  ;;  %v8291_v54 = vpop.f32.mrb[142].mxu0 }
 0x625   :  { %v8292_v48 = vpop.f32.mrb[143].mxu0 }
 0x626   :  { %v5016_v39 = vadd.f32 %v8265_v24, %v4967_v34  ;;  %v8293_v47 = vadd.f32 %v8292_v48, %v8291_v54  ;;  %v5062_v32 = vadd.f32 %v8290_v33, %v5013_v7 }
 0x628   :  { %v8266_v10 = vpop.f32.mrb[128].mxu1  ;;  %v5065_v53 = vadd.f32 %v8293_v47, %v5016_v39 }
 0x629   :  { %v8267_v50 = vpop.f32.mrb[129].mxu1 }
 0x62a   :  { %v8268_v23 = vadd.f32 %v8267_v50, %v8266_v10  ;;  %v8269_v44 = vpop.f32.mrb[130].mxu1  ;;  %v8294_v27 = vpop.f32.mrb[144].mxu0 }
 0x62b   :  { %v8270_v43 = vpop.f32.mrb[131].mxu1  ;;  %v8295_v59 = vpop.f32.mrb[145].mxu0 }
 0x62c   :  { %v5021_v14 = vadd.f32 %v8268_v23, %v4972_v3  ;;  %v8271_v31 = vadd.f32 %v8270_v43, %v8269_v44  ;;  %v8296_v62 = vadd.f32 %v8295_v59, %v8294_v27  ;;  %v8297_v40 = vpop.f32.mrb[146].mxu0 }
 0x62d   :  { %v8298_v16 = vpop.f32.mrb[147].mxu0 }
 0x62e   :  { %v5024_v8 = vadd.f32 %v8271_v31, %v4975_v6  ;;  %v8299_v28 = vadd.f32 %v8298_v16, %v8297_v40  ;;  %v5070_v56 = vadd.f32 %v8296_v62, %v5021_v14 }
 0x630   :  { %v5073_v34 = vadd.f32 %v8299_v28, %v5024_v8 }
 0x640   :  { %v8671_v2 = vpop.f32.mrb[132].mxu1 }
 0x641   :  { %v5119_v49 = vadd.f32 %v8671_v2, %v5070_v56  ;;  %v5110_v4 = vpop.f32.mrb[133].mxu1 }
 0x642   :  { %v5111_v11 = vadd.f32 %v5110_v4, %v5062_v32  ;;  %v8672_v58 = vpop.f32.mrb[134].mxu1  ;;  %v8691_v12 = vpop.f32.mrb[148].mxu0 }
 0x643   :  { %5127 = vst [vmem:[%s12678_s27 + $0x10] sm:$0xff] %v5119_v49  ;;  %v5122_v3 = vadd.f32 %v8672_v58, %v5073_v34  ;;  %v5113_v57 = vpop.f32.mrb[135].mxu1  ;;  %v5376_v6 = vpop.f32.mrb[149].mxu0  ;;  %v5403_v13 = vmul.f32 %v8691_v12, %v8691_v12  ;;  %v7598_v58 = vld [vmem:[%s12679_s17] ss:$0 sm:$0xff] }
 0x644   :  { %5125 = vst [vmem:[%s12678_s27] sm:$0xff] %v5111_v11  ;;  %v5114_v63 = vadd.f32 %v5113_v57, %v5065_v53  ;;  %v8692_v61 = vpop.f32.mrb[150].mxu0  ;;  %v5401_v41 = vmul.f32 %v5376_v6, %v5376_v6 }
 0x645   :  { %5128 = vst [vmem:[%s12678_s27 + $0x18] sm:$0xff] %v5122_v3  ;;  %v5379_v30 = vpop.f32.mrb[151].mxu0  ;;  %v5404_v54 = vmul.f32 %v8692_v61, %v8692_v61 }
 0x646   :  { %5126 = vst [vmem:[%s12678_s27 + $0x8] sm:$0xff] %v5114_v63  ;;  %v5391_v17 = vadd.f32 %v5379_v30, %v5376_v6  ;;  %v5402_v7 = vmul.f32 %v5379_v30, %v5379_v30 }
 0x648   :  { %v5392_v24 = vadd.f32 %v8691_v12, %v5391_v17  ;;  %v5405_v33 = vadd.f32 %v5402_v7, %v5401_v41 }
 0x64a   :  { %v5393_v39 = vadd.f32 %v8692_v61, %v5392_v24  ;;  %v5406_v48 = vadd.f32 %v5405_v33, %v5403_v13 }
 0x64c   :  { %v5394_v47 = vrot.slane %v5393_v39, 4  ;;  %v5407_v32 = vadd.f32 %v5406_v48, %v5404_v54 }
 0x64e   :  { %v5395_v10 = vadd.f32 %v5394_v47, %v5393_v39  ;;  %v5408_v50 = vrot.slane %v5407_v32, 4 }
 0x650   :  { %v5396_v53 = vrot.slane %v5395_v10, 2  ;;  %v5409_v23 = vadd.f32 %v5408_v50, %v5407_v32 }
 0x652   :  { %v5397_v44 = vadd.f32 %v5396_v53, %v5395_v10  ;;  %v5410_v27 = vrot.slane %v5409_v23, 2 }
 0x654   :  { %v5398_v43 = vrot.slane %v5397_v44, 1  ;;  %v5411_v14 = vadd.f32 %v5410_v27, %v5409_v23 }
 0x656   :  { %v5399_v59 = vadd.f32 %v5398_v43, %v5397_v44  ;;  %v5412_v31 = vrot.slane %v5411_v14, 1 }
 0x658   :  { %v5400_v62 = vmul.f32 0.03125, %v5399_v59  ;;  %v5413_v40 = vadd.f32 %v5412_v31, %v5411_v14 }
 0x65a   :  { %v5414_v8 = vmul.f32 0.03125, %v5413_v40  ;;  %v5415_v16 = vmul.f32 %v5400_v62, %v5400_v62  ;;  %v5418_v28 = vsub.f32 %v5376_v6, %v5400_v62  ;;  %v5419_v56 = vsub.f32 %v5379_v30, %v5400_v62  ;;  %v7599_v6 = vld [vmem:[%s12680_s18] ss:$0 sm:$0xff] }
 0x65b   :  { %v5420_v34 = vsub.f32 %v8691_v12, %v5400_v62  ;;  %v5421_v2 = vsub.f32 %v8692_v61, %v5400_v62 }
 0x65c   :  { %v5416_v49 = vsub.f32 %v5414_v8, %v5415_v16  ;;  %v5428_v3 = vmul.f32 %v7598_v58, %v5418_v28  ;;  %v5429_v57 = vmul.f32 %v7598_v58, %v5419_v56 }
 0x65d   :  { %v5430_v63 = vmul.f32 %v7598_v58, %v5420_v34  ;;  %v5431_v41 = vmul.f32 %v7598_v58, %v5421_v2 }
 0x65e   :  { %v5417_v4 = vmax.f32 %v5416_v49, 0.0 }
 0x660   :  { %v5432_v11 = vadd.f32 1e-05, %v5417_v4 }
 0x662   :  { %9144 = vrsqrt.f32 %v5432_v11 }
 0x66c   :  { %v9145_v17 = vpop.eup %9144 }
 0x66d   :  { %v5434_v30 = vmul.f32 %v9145_v17, %v5428_v3  ;;  %v5435_v12 = vmul.f32 %v9145_v17, %v5429_v57  ;;  %v5436_v61 = vmul.f32 %v9145_v17, %v5430_v63  ;;  %v5437_v7 = vmul.f32 %v9145_v17, %v5431_v41 }
 0x66f   :  { %v5444_v13 = vadd.f32 %v7599_v6, %v5434_v30  ;;  %v5445_v24 = vadd.f32 %v7599_v6, %v5435_v12  ;;  %v5446_v33 = vadd.f32 %v7599_v6, %v5436_v61  ;;  %v5447_v54 = vadd.f32 %v7599_v6, %v5437_v7 }
 0x671   :  { %v5448_v39 = vmax.f32 %v5444_v13, 0.0  ;;  %v5449_v48 = vmax.f32 %v5445_v24, 0.0  ;;  %v5450_v47 = vmax.f32 %v5446_v33, 0.0  ;;  %v5451_v32 = vmax.f32 %v5447_v54, 0.0 }
 0x673   :  { %v12049_v10 = vpack.c.bf16 %v5449_v48, %v5448_v39  ;;  %v12051_v50 = vpack.c.bf16 %v5451_v32, %v5450_v47 }
 0x675   :  { %v12054_v53 = vshrl.u32 %v12051_v50, 16  ;;  %v12057_v23 = vshll.u32 %v12051_v50, 16  ;;  %v12060_v44 = vshrl.u32 %v12049_v10, 16  ;;  %v12063_v27 = vshll.u32 %v12049_v10, 16 }
 0x676   :  { %v5478_v43 = vrot.slane %v12051_v50, 6  ;;  %v5480_v14 = vrot.slane %v12049_v10, 6  ;;  %v5537_v59 = vrot.slane %v12049_v10, 2  ;;  %v5538_v63 = vrot.slane %v12051_v50, 2 }
 0x677   :  { %v5457_v31 = vrot.slane %v12054_v53, 5  ;;  %v5460_v62 = vrot.slane %v12057_v23, 6  ;;  %v5466_v40 = vrot.slane %v12060_v44, 5  ;;  %v5469_v8 = vrot.slane %v12063_v27, 6 }
 0x678   :  { %v5485_v16 = vsel %vm4136_vm12, %v5478_v43, %v5480_v14  ;;  %v5547_v28 = vrot.slane %v12060_v44, 2  ;;  %v5548_v56 = vrot.slane %v12063_v27, 3  ;;  %v5550_v34 = vrot.slane %v12054_v53, 2 }
 0x679   :  { %v5487_v2 = vmul.bf16 %v5485_v16, %v11755_v20  ;;  %v5461_v49 = vor.u32 %v5460_v62, %v5457_v31  ;;  %v5470_v4 = vor.u32 %v5469_v8, %v5466_v40  ;;  %v5551_v11 = vrot.slane %v12057_v23, 3  ;;  %v9001_v16 = vld [vmem:[%s12677_s19 + $0xc0] sm:$0xff]  }
 0x67a   :  { %v5549_v58 = vor.u32 %v5548_v56, %v5547_v28  ;;  %v5481_v3 = vsel %vm4136_vm12, %v5480_v14, %v5478_v43  ;;  %v5504_v57 = vrot.slane %v12060_v44, 7  ;;  %v5502_v20 = vrot.slane %v12054_v53, 7  ;;  %v12118_v56 = vld [vmem:[%s12681_s22] sm:$0xf] }
 0x67b   :  { %5564 = vmatprep.subr.bf16.mxu1 %v5487_v2  ;;  %v5474_v41 = vsel %vm11767_vm15, %v5461_v49, %v5470_v4  ;;  %v5552_v17 = vor.u32 %v5551_v11, %v5550_v34  ;;  %v5471_v6 = vsel %vm4106_vm13, %v5470_v4, %v5461_v49  ;;  %v5488_v12 = vmul.bf16 %v5481_v3, %v11795_v15 }
 0x67c   :  { %v5475_v30 = vmul.bf16 %v5474_v41, %v11780_v46  ;;  %v5505_v61 = vor.u32 %v5504_v57, %v12063_v27  ;;  %v5489_v7 = vrot.slane %v12054_v53, 6  ;;  %v5490_v33 = vrot.slane %v12057_v23, 7  ;;  %v9009_v41 = vld [vmem:[%s12677_s19 + $0xd0] sm:$0xff]  }
 0x67d   :  { %v5553_v13 = vsel %vm4272_vm10, %v5549_v58, %v5552_v17  ;;  %v5557_v24 = vsel %vm12009_vm7, %v5552_v17, %v5549_v58  ;;  %v5493_v54 = vrot.slane %v12060_v44, 6  ;;  %vm5560_vm12 = vcmask 261120   ;;  %v9003_v58 = vld [vmem:[%s12677_s19 + $0x80] sm:$0xff]   ;;  %v9015_v17 = vld [vmem:[%s12677_s19 + $0x98] sm:$0xff]  }
 0x67e   :  { %5565 = vmatpush1.bf16.msra.mxu1 %v5475_v30  ;;  %v5558_v39 = vmul.bf16 %v5553_v13, %v11969_v18  ;;  %v5510_v46 = vsel %vm10089_vm6, %v5502_v20, %v5505_v61  ;;  %v5494_v15 = vrot.slane %v12063_v27, 7  ;;  %v5476_v48 = vmul.bf16 %v5471_v6, %v11829_v9  ;;  %v8997_v30 = vld [vmem:[%s12677_s19] sm:$0xff]   ;;  %v9004_v61 = vld [vmem:[%s12677_s19 + $0x58] sm:$0xff]  }
 0x67f   :  { %5566 = vmatprep.subr.bf16.mxu1 %v5488_v12  ;;  %v5491_v47 = vor.u32 %v5490_v33, %v5489_v7  ;;  %v5506_v25 = vor.u32 %v5502_v20, %v12057_v23  ;;  %v5513_v32 = vrot.slane %v12063_v27, 1  ;;  %v5515_v14 = vrot.slane %v12057_v23, 1  ;;  %v9019_v20 = vld [vmem:[%s12677_s19 + $0xa0] sm:$0xff]   ;;  %v9002_v12 = vld [vmem:[%s12677_s19 + $0x10] sm:$0xff]   ;;  %v9006_v7 = vld [vmem:[%s12677_s19 + $0x18] sm:$0xff]  }
 0x680   :  { %8694 = vmatpush3.bf16.msra.mxu0 %v5558_v39  ;;  %v5495_v43 = vor.u32 %v5494_v15, %v5493_v54  ;;  %v5539_v18 = vsel %vm4250_vm4, %v5537_v59, %v5538_v63  ;;  %v5524_v31 = vrot.slane %v12060_v44, 1  ;;  %v5511_v62 = vmul.bf16 %v5510_v46, %v11715_v42  ;;  %v9008_v13 = vld [vmem:[%s12677_s19 + $0x60] sm:$0xff]   ;;  %v9012_v33 = vld [vmem:[%s12677_s19 + $0x68] sm:$0xff]   ;;  %v9016_v39 = vld [vmem:[%s12677_s19 + $0x70] sm:$0xff]  }
 0x681   :  { %8695 = vmatprep.subr.bf16.mxu0 %v9149_v36  ;;  %v5507_v9 = vsel %vm908_vm3, %v5504_v57, %v5506_v25  ;;  %v5514_v40 = vor.u32 %v5513_v32, %v12060_v44  ;;  %v5525_v8 = vrot.slane %v12063_v27, 2  ;;  %v5559_v28 = vmul.bf16 %v5557_v24, %v12020_v38  ;;  %v9007_v57 = vld [vmem:[%s12677_s19 + $0x88] sm:$0xff]   ;;  %v9010_v24 = vld [vmem:[%s12677_s19 + $0x20] sm:$0xff]   ;;  %v9018_v46 = vld [vmem:[%s12677_s19 + $0x30] sm:$0xff]  }
 0x682   :  { %5567 = vmatpush1.bf16.msra.mxu1 %v5476_v48  ;;  %v5499_v42 = vsel %vm11790_vm2, %v5491_v47, %v5495_v43  ;;  %v5496_v34 = vsel %vm4161_vm0, %v5495_v43, %v5491_v47  ;;  %v5517_v44 = vor.u32 %v5515_v14, %v12054_v53  ;;  %v5527_v4 = vrot.slane %v12054_v53, 1  ;;  %v9014_v54 = vld [vmem:[%s12677_s19 + $0x28] sm:$0xff]   ;;  %v9020_v15 = vld [vmem:[%s12677_s19 + $0x78] sm:$0xff]   ;;  %v9025_v43 = vld [vmem:[%s12677_s19 + $0x140] sm:$0xff]  }
 0x683   :  { %5605 = vmatprep.subr.bf16.mxu1 %v5511_v62  ;;  %v5500_v27 = vmul.bf16 %v5499_v42, %v11717_v0  ;;  %v5516_v2 = vsel %vm990_vm9, %v5514_v40, %v5515_v14  ;;  %v5526_v49 = vor.u32 %v5525_v8, %v5524_v31  ;;  %v5528_v11 = vrot.slane %v12057_v23, 2  ;;  %v9021_v48 = vld [vmem:[%s12677_s19 + $0xe8] sm:$0xff]   ;;  %v9022_v47 = vld [vmem:[%s12677_s19 + $0x38] sm:$0xff]   ;;  %v9026_v14 = vld [vmem:[%s12677_s19 + $0xb0] sm:$0xff]  }
 0x684   :  { %8696 = vmatpush3.bf16.msra.mxu0 %v5559_v28  ;;  %v5521_v38 = vsel %vm10632_vm11, %v5517_v44, %v5513_v32  ;;  %v5512_v0 = vmul.bf16 %v5507_v9, %v11719_v26  ;;  %v5543_v3 = vsel %vm4250_vm4, %v5538_v63, %v5537_v59  ;;  %v5501_v23 = vmul.bf16 %v5496_v34, %v11724_v5  ;;  %v9011_v5 = vld [vmem:[%s12677_s19 + $0x90] sm:$0xff]   ;;  %v9023_v25 = vld [vmem:[%s12677_s19 + $0xa8] sm:$0xff]   ;;  %v9030_v31 = vld [vmem:[%s12677_s19 + $0xb8] sm:$0xff]  }
 0x685   :  { %7600 = vmatmul.mubr.msk.bf16.vlgmr.msra.gmra.mrb[136].mxu1 %vm5560_vm12, %v12118_v56  ;;  %8345 = vmatprep.subr.bf16.mxu0 %v9001_v16  ;;  %v5529_v53 = vor.u32 %v5528_v11, %v5527_v4  ;;  %v5522_v63 = vmul.bf16 %v5516_v2, %v11845_v29  ;;  %v5523_v37 = vmul.bf16 %v5521_v38, %v11933_v51  ;;  %v9013_v29 = vld [vmem:[%s12677_s19 + $0xd8] sm:$0xff]   ;;  %v9017_v51 = vld [vmem:[%s12677_s19 + $0xe0] sm:$0xff]   ;;  %v9024_v32 = vld [vmem:[%s12677_s19 + $0xf0] sm:$0xff]   ;;  %vm13040_vm3 = vcmask 1040384  }
 0x686   :  { %5606 = vmatpush1.bf16.msra.mxu1 %v5500_v27  ;;  %5637 = vmatprep.mubr.bf16.mxu1 %v12931_v45  ;;  %v5545_v6 = vmul.bf16 %v5539_v18, %v11726_v21  ;;  %v5546_v21 = vmul.bf16 %v5543_v3, %v11733_v19  ;;  %v8998_v19 = vld [vmem:[%s12677_s19 + $0x48] sm:$0xff]   ;;  %v9028_v18 = vld [vmem:[%s12677_s19 + $0xf8] sm:$0xff]   ;;  %v9033_v62 = vld [vmem:[%s12677_s19 + $0x1c0] sm:$0xff]   ;;  %vm13041_vm9 = vcmask 1042432  }
 0x687   :  { %5607 = vmatprep.subr.bf16.mxu1 %v5512_v0  ;;  %8698 = vmatmul.mubr.msk.bf16.vlgmr.msra.gmra.mrb[152].mxu0 %vm5560_vm12, %v12118_v56  ;;  %v5530_v26 = vsel %vm4224_vm5, %v5526_v49, %v5529_v53  ;;  %v5534_v59 = vsel %vm11962_vm14, %v5529_v53, %v5526_v49  ;;  %v9027_v28 = vld [vmem:[%s12677_s19 + $0x100] sm:$0xff]   ;;  %v9029_v44 = vld [vmem:[%s12677_s19 + $0x148] sm:$0xff]   ;;  %v9032_v4 = vld [vmem:[%s12677_s19 + $0x150] sm:$0xff]  }
 0x688   :  { %8346 = vmatpush3.bf16.msra.mxu0 %v9003_v58  ;;  %v9031_v49 = vld [vmem:[%s12677_s19 + $0x108] sm:$0xff]   ;;  %v9035_v53 = vld [vmem:[%s12677_s19 + $0x180] sm:$0xff]  }
 0x689   :  { %8347 = vmatprep.subr.bf16.mxu0 %v9005_v52  ;;  %v9034_v52 = vld [vmem:[%s12677_s19 + $0x110] sm:$0xff]  }
 0x68a   :  { %5608 = vmatpush1.bf16.msra.mxu1 %v5501_v23 }
 0x68b   :  { %5646 = vmatprep.subr.bf16.mxu1 %v5522_v63  ;;  %v9038_v63 = vld [vmem:[%s12677_s19 + $0x118] sm:$0xff]  }
 0x68c   :  { %8348 = vmatpush3.bf16.msra.mxu0 %v9007_v57 }
 0x68d   :  { %7601 = vmatmul.mubr.msk.bf16.vlgmr.msra.gmra.mrb[140].mxu1 %vm5560_vm12, %v12118_v56  ;;  %8349 = vmatprep.subr.bf16.mxu0 %v9009_v41  ;;  %v9039_v41 = vld [vmem:[%s12677_s19 + $0x188] sm:$0xff]  }
 0x68e   :  { %5647 = vmatpush1.bf16.msra.mxu1 %v12049_v10  ;;  %5678 = vmatprep.mubr.bf16.mxu1 %v12931_v45  ;;  %v5535_v10 = vmul.bf16 %v5530_v26, %v11731_v55  ;;  %v5536_v55 = vmul.bf16 %v5534_v59, %v11747_v22  ;;  %v9000_v22 = vld [vmem:[%s12677_s19 + $0x50] sm:$0xff]   ;;  %v9036_v26 = vld [vmem:[%s12677_s19 + $0x158] sm:$0xff]   ;;  %v9037_v59 = vld [vmem:[%s12677_s19 + $0x1c8] sm:$0xff]  }
 0x68f   :  { %5648 = vmatprep.subr.bf16.mxu1 %v5523_v37  ;;  %v9041_v37 = vld [vmem:[%s12677_s19 + $0x1d0] sm:$0xff]  }
 0x690   :  { %8350 = vmatpush3.bf16.msra.mxu0 %v9011_v5  ;;  %v9040_v5 = vld [vmem:[%s12677_s19 + $0x160] sm:$0xff]  }
 0x691   :  { %8351 = vmatprep.subr.bf16.mxu0 %v9013_v29 }
 0x692   :  { %5649 = vmatpush1.bf16.msra.mxu1 %v12051_v50  ;;  %v8996_v50 = vld [vmem:[%s12677_s19 + $0x40] sm:$0xff]  }
 0x693   :  { %5687 = vmatprep.subr.bf16.mxu1 %v5545_v6  ;;  %v9042_v6 = vld [vmem:[%s12677_s19 + $0x120] sm:$0xff]  }
 0x694   :  { %8352 = vmatpush3.bf16.msra.mxu0 %v9015_v17 }
 0x695   :  { %7602 = vmatmul.mubr.msk.bf16.vlgmr.msra.gmra.mrb[144].mxu1 %vm5560_vm12, %v12118_v56  ;;  %8353 = vmatprep.subr.bf16.mxu0 %v9017_v51  ;;  %v9043_v51 = vld [vmem:[%s12677_s19 + $0x190] sm:$0xff]  }
 0x696   :  { %5688 = vmatpush1.bf16.msra.mxu1 %v5535_v10  ;;  %5719 = vmatprep.mubr.bf16.mxu1 %v12931_v45  ;;  %v8999_v45 = vld [vmem:[%s12677_s19 + $0x8] sm:$0xff]  }
 0x697   :  { %5689 = vmatprep.subr.bf16.mxu1 %v5546_v21  ;;  %v9044_v21 = vld [vmem:[%s12677_s19 + $0x168] sm:$0xff]  }
 0x698   :  { %8354 = vmatpush3.bf16.msra.mxu0 %v9019_v20 }
 0x699   :  { %8355 = vmatprep.subr.bf16.mxu0 %v9021_v48  ;;  %v9055_v48 = vld [vmem:[%s12677_s19 + $0x1a8] sm:$0xff]  }
 0x69a   :  { %5690 = vmatpush1.bf16.msra.mxu1 %v5536_v55 }
 0x69b   :  { %8323 = vmatprep.subr.bf16.mxu1 %v8996_v50  ;;  %v9045_v50 = vld [vmem:[%s12677_s19 + $0x1d8] sm:$0xff]  }
 0x69c   :  { %8356 = vmatpush3.bf16.msra.mxu0 %v9023_v25 }
 0x69d   :  { %7603 = vmatmul.mubr.msk.bf16.vlgmr.msra.gmra.mrb[148].mxu1 %vm5560_vm12, %v12118_v56  ;;  %8357 = vmatprep.subr.bf16.mxu0 %v9024_v32  ;;  %v9057_v32 = vld [vmem:[%s12677_s19 + $0x1b0] sm:$0xff]  }
 0x69e   :  { %8324 = vmatpush3.bf16.msra.mxu1 %v8997_v30  ;;  %v9046_v30 = vld [vmem:[%s12677_s19 + $0x128] sm:$0xff]  }
 0x69f   :  { %8325 = vmatprep.subr.bf16.mxu1 %v8998_v19  ;;  %v9047_v19 = vld [vmem:[%s12677_s19 + $0x198] sm:$0xff]  }
 0x6a0   :  { %8358 = vmatpush3.bf16.msra.mxu0 %v9026_v14  ;;  %v9059_v14 = vld [vmem:[%s12677_s19 + $0x1f8] sm:$0xff]  }
 0x6a1   :  { %8359 = vmatprep.subr.bf16.mxu0 %v9028_v18  ;;  %v9060_v18 = vld [vmem:[%s12677_s19 + $0x1b8] sm:$0xff]  }
 0x6a2   :  { %8326 = vmatpush3.bf16.msra.mxu1 %v8999_v45  ;;  %v9048_v45 = vld [vmem:[%s12677_s19 + $0x170] sm:$0xff]  }
 0x6a3   :  { %8327 = vmatprep.subr.bf16.mxu1 %v9000_v22  ;;  %v9049_v22 = vld [vmem:[%s12677_s19 + $0x1e0] sm:$0xff]  }
 0x6a4   :  { %8360 = vmatpush3.bf16.msra.mxu0 %v9030_v31  ;;  %v9061_v31 = vld [vmem:[%s12677_s19 + $0x208] sm:$0xff]  }
 0x6a5   :  { %8389 = vmatprep.subr.bf16.mxu0 %v9033_v62 }
 0x6a6   :  { %8328 = vmatpush3.bf16.msra.mxu1 %v9002_v12 }
 0x6a7   :  { %8329 = vmatprep.subr.bf16.mxu1 %v9004_v61 }
 0x6aa   :  { %8330 = vmatpush3.bf16.msra.mxu1 %v9006_v7  ;;  %v9050_v7 = vld [vmem:[%s12677_s19 + $0x130] sm:$0xff]  }
 0x6ab   :  { %8331 = vmatprep.subr.bf16.mxu1 %v9008_v13  ;;  %v9051_v13 = vld [vmem:[%s12677_s19 + $0x1a0] sm:$0xff]  }
 0x6ae   :  { %8332 = vmatpush3.bf16.msra.mxu1 %v9010_v24 }
 0x6af   :  { %8333 = vmatprep.subr.bf16.mxu1 %v9012_v33 }
 0x6b2   :  { %8334 = vmatpush3.bf16.msra.mxu1 %v9014_v54  ;;  %v9052_v54 = vld [vmem:[%s12677_s19 + $0x178] sm:$0xff]  }
 0x6b3   :  { %8335 = vmatprep.subr.bf16.mxu1 %v9016_v39  ;;  %v9053_v39 = vld [vmem:[%s12677_s19 + $0x1e8] sm:$0xff]  }
 0x6b6   :  { %8336 = vmatpush3.bf16.msra.mxu1 %v9018_v46 }
 0x6b7   :  { %8337 = vmatprep.subr.bf16.mxu1 %v9020_v15  ;;  %v9054_v15 = vld [vmem:[%s12677_s19 + $0x138] sm:$0xff]  }
 0x6ba   :  { %8338 = vmatpush3.bf16.msra.mxu1 %v9022_v47  ;;  %v9056_v47 = vld [vmem:[%s12677_s19 + $0x1f0] sm:$0xff]  }
 0x6bb   :  { %8367 = vmatprep.subr.bf16.mxu1 %v9025_v43  ;;  %v9058_v43 = vld [vmem:[%s12677_s19 + $0x200] sm:$0xff]  }
 0x758   :  { %v5598_v9 = vpop.f32.mrb[136].mxu1 }
 0x759   :  { %v5600_v40 = vpop.f32.mrb[137].mxu1  ;;  %v5768_v42 = vpack.c.bf16 %v5598_v9, %v5598_v9  ;;  %v9062_v9 = vld [vmem:[%s12677_s19 + $0x210] sm:$0xff]  }
 0x75a   :  { %v5769_v8 = vpack.c.bf16 %v5600_v40, %v5600_v40  ;;  %v5602_v16 = vpop.f32.mrb[138].mxu1  ;;  %v12261_v56 = vpop.f32.mrb[152].mxu0  ;;  %v9063_v40 = vld [vmem:[%s12677_s19 + $0x218] sm:$0xff]  }
 0x75b   :  { %v5603_v34 = vpop.f32.mrb[139].mxu1  ;;  %v8699_v27 = vpop.f32.mrb[153].mxu0  ;;  %v9065_v16 = vld [vmem:[%s12677_s19 + $0x228] sm:$0xff]  }
 0x75c   :  { %6241 = vmatprep.mubr.bf16.mxu1 %v5769_v8  ;;  %v5765_v2 = vpop.f32.mrb[154].mxu0  ;;  %v9064_v8 = vld [vmem:[%s12677_s19 + $0x220] sm:$0xff]   ;;  %v5776_v34 = vpack.c.bf16 %v12261_v56, %v12261_v56 }
 0x75d   :  { %6242 = vmatmul.mubr.bf16.vlgmr.msra.gmra.mrb[152].mxu1 %v5768_v42  ;;  %v8700_v38 = vpop.f32.mrb[155].mxu0  ;;  %v9067_v42 = vld [vmem:[%s12677_s19 + $0x238] sm:$0xff]   ;;  %v9069_v27 = vld [vmem:[%s12682_s24] sm:$0xff]  }
 0x75e   :  { %8368 = vmatpush3.bf16.msra.mxu1 %v9027_v28  ;;  %v9066_v28 = vld [vmem:[%s12677_s19 + $0x230] sm:$0xff]   ;;  %v9070_v2 = vld [vmem:[%s12682_s24 + $0xc0] sm:$0xff]   ;;  %v9072_v38 = vld [vmem:[%s12682_s24 + $0x48] sm:$0xff]  }
 0x75f   :  { %8369 = vmatprep.subr.bf16.mxu1 %v9029_v44  ;;  %v9068_v44 = vld [vmem:[%s12682_s24 + $0x40] sm:$0xff]  }
 0x760   :  { %v5639_v11 = vpop.f32.mrb[140].mxu1  ;;  %v9071_v56 = vld [vmem:[%s12682_s24 + $0x80] sm:$0xff]  }
 0x761   :  { %v5770_v58 = vpack.c.bf16 %v5639_v11, %v5639_v11  ;;  %v5641_v0 = vpop.f32.mrb[141].mxu1  ;;  %v9075_v11 = vld [vmem:[%s12682_s24 + $0x88] sm:$0xff]  }
 0x762   :  { %v5771_v3 = vpack.c.bf16 %v5641_v0, %v5641_v0  ;;  %8370 = vmatpush3.bf16.msra.mxu1 %v9031_v49  ;;  %v5643_v23 = vpop.f32.mrb[142].mxu1  ;;  %v9073_v49 = vld [vmem:[%s12682_s24 + $0x8] sm:$0xff]   ;;  %v9077_v0 = vld [vmem:[%s12682_s24 + $0x10] sm:$0xff]  }
 0x763   :  { %8371 = vmatprep.subr.bf16.mxu1 %v9032_v4  ;;  %v5644_v57 = vpop.f32.mrb[143].mxu1  ;;  %v9074_v4 = vld [vmem:[%s12682_s24 + $0xc8] sm:$0xff]   ;;  %v9081_v23 = vld [vmem:[%s12682_s24 + $0x18] sm:$0xff]  }
 0x764   :  { %6281 = vmatprep.mubr.bf16.mxu0 %v5771_v3  ;;  %v9078_v3 = vld [vmem:[%s12682_s24 + $0xd0] sm:$0xff]   ;;  %v9084_v57 = vld [vmem:[%s12682_s24 + $0x60] sm:$0xff]  }
 0x765   :  { %6282 = vmatmul.mubr.bf16.vlgmr.msra.gmra.mrb[156].mxu0 %v5770_v58  ;;  %v9076_v58 = vld [vmem:[%s12682_s24 + $0x50] sm:$0xff]  }
 0x766   :  { %8372 = vmatpush3.bf16.msra.mxu1 %v9034_v52  ;;  %8390 = vmatpush3.bf16.msra.mxu0 %v9035_v53  ;;  %v9079_v52 = vld [vmem:[%s12682_s24 + $0x90] sm:$0xff]   ;;  %v9080_v53 = vld [vmem:[%s12682_s24 + $0x58] sm:$0xff]  }
 0x767   :  { %8373 = vmatprep.subr.bf16.mxu1 %v9036_v26  ;;  %8391 = vmatprep.subr.bf16.mxu0 %v9037_v59  ;;  %v9082_v26 = vld [vmem:[%s12682_s24 + $0xd8] sm:$0xff]  }
 0x768   :  { %v5680_v29 = vpop.f32.mrb[144].mxu1  ;;  %v9083_v59 = vld [vmem:[%s12682_s24 + $0x98] sm:$0xff]  }
 0x769   :  { %v5682_v17 = vpop.f32.mrb[145].mxu1  ;;  %v5772_v25 = vpack.c.bf16 %v5680_v29, %v5680_v29 }
 0x76a   :  { %8374 = vmatpush3.bf16.msra.mxu1 %v9038_v63  ;;  %8392 = vmatpush3.bf16.msra.mxu0 %v9039_v41  ;;  %v5773_v10 = vpack.c.bf16 %v5682_v17, %v5682_v17  ;;  %v5684_v20 = vpop.f32.mrb[146].mxu1  ;;  %v9085_v63 = vld [vmem:[%s12682_s24 + $0x20] sm:$0xff]   ;;  %v9089_v17 = vld [vmem:[%s12682_s24 + $0x28] sm:$0xff]  }
 0x76b   :  { %8375 = vmatprep.subr.bf16.mxu1 %v9040_v5  ;;  %8393 = vmatprep.subr.bf16.mxu0 %v9041_v37  ;;  %v5685_v55 = vpop.f32.mrb[147].mxu1  ;;  %v9086_v41 = vld [vmem:[%s12682_s24 + $0xe0] sm:$0xff]   ;;  %v9088_v37 = vld [vmem:[%s12682_s24 + $0x68] sm:$0xff]  }
 0x76c   :  { %6321 = vmatprep.mubr.bf16.mxu1 %v5773_v10  ;;  %v9087_v5 = vld [vmem:[%s12682_s24 + $0xa0] sm:$0xff]   ;;  %v9092_v55 = vld [vmem:[%s12682_s24 + $0x70] sm:$0xff]  }
 0x76e   :  { %8376 = vmatpush3.bf16.msra.mxu1 %v9042_v6  ;;  %8394 = vmatpush3.bf16.msra.mxu0 %v9043_v51  ;;  %v9090_v51 = vld [vmem:[%s12682_s24 + $0xe8] sm:$0xff]  }
 0x76f   :  { %8377 = vmatprep.subr.bf16.mxu1 %v9044_v21  ;;  %8395 = vmatprep.subr.bf16.mxu0 %v9045_v50  ;;  %v9091_v21 = vld [vmem:[%s12682_s24 + $0xa8] sm:$0xff]  }
 0x770   :  { %v5721_v12 = vpop.f32.mrb[148].mxu1 }
 0x771   :  { %v5723_v61 = vpop.f32.mrb[149].mxu1  ;;  %v5774_v62 = vpack.c.bf16 %v5721_v12, %v5721_v12 }
 0x772   :  { %8378 = vmatpush3.bf16.msra.mxu1 %v9046_v30  ;;  %8396 = vmatpush3.bf16.msra.mxu0 %v9047_v19  ;;  %v5775_v24 = vpack.c.bf16 %v5723_v61, %v5723_v61  ;;  %v5725_v33 = vpop.f32.mrb[150].mxu1  ;;  %v9093_v30 = vld [vmem:[%s12682_s24 + $0x30] sm:$0xff]   ;;  %v9097_v61 = vld [vmem:[%s12682_s24 + $0x38] sm:$0xff]  }
 0x773   :  { %8379 = vmatprep.subr.bf16.mxu1 %v9048_v45  ;;  %8397 = vmatprep.subr.bf16.mxu0 %v9049_v22  ;;  %v5726_v46 = vpop.f32.mrb[151].mxu1  ;;  %v9094_v19 = vld [vmem:[%s12682_s24 + $0xf0] sm:$0xff]   ;;  %v9096_v22 = vld [vmem:[%s12682_s24 + $0x78] sm:$0xff]  }
 0x774   :  { %6361 = vmatprep.mubr.bf16.mxu0 %v5775_v24  ;;  %v9095_v45 = vld [vmem:[%s12682_s24 + $0xb0] sm:$0xff]   ;;  %v9100_v46 = vld [vmem:[%s12682_s24 + $0x140] sm:$0xff]  }
 0x776   :  { %8380 = vmatpush3.bf16.msra.mxu1 %v9050_v7  ;;  %8398 = vmatpush3.bf16.msra.mxu0 %v9051_v13  ;;  %v9098_v13 = vld [vmem:[%s12682_s24 + $0xf8] sm:$0xff]  }
 0x777   :  { %8381 = vmatprep.subr.bf16.mxu1 %v9052_v54  ;;  %8399 = vmatprep.subr.bf16.mxu0 %v9053_v39  ;;  %v9099_v54 = vld [vmem:[%s12682_s24 + $0xb8] sm:$0xff]  }
 0x77a   :  { %8382 = vmatpush3.bf16.msra.mxu1 %v9054_v15  ;;  %8400 = vmatpush3.bf16.msra.mxu0 %v9055_v48  ;;  %v9102_v48 = vld [vmem:[%s12682_s24 + $0x1c0] sm:$0xff]  }
 0x77b   :  { %8401 = vmatprep.subr.bf16.mxu0 %v9056_v47  ;;  %8701 = vmatprep.subr.bf16.mxu1 %v9149_v36 }
 0x77d   :  { %6322 = vmatmul.mubr.bf16.vlgmr.msra.gmra.mrb[156].mxu1 %v5772_v25 }
 0x77e   :  { %8402 = vmatpush3.bf16.msra.mxu0 %v9057_v32  ;;  %8702 = vmatpush3.bf16.msra.mxu1 %v9058_v43 }
 0x77f   :  { %8403 = vmatprep.subr.bf16.mxu0 %v9059_v14  ;;  %8703 = vmatprep.subr.bf16.mxu1 %v9149_v36 }
 0x780   :  { %8717 = vmatprep.mubr.msk.bf16.mxu1 %vm9150_vm1, %v9149_v36 }
 0x782   :  { %8404 = vmatpush3.bf16.msra.mxu0 %v9060_v18  ;;  %8704 = vmatpush3.bf16.msra.mxu1 %v9061_v31 }
 0x783   :  { %8705 = vmatprep.subr.bf16.mxu1 %v9149_v36  ;;  %8420 = vmatprep.subr.bf16.mxu0 %v9068_v44 }
 0x785   :  { %6362 = vmatmul.mubr.bf16.vlgmr.msra.gmra.mrb[160].mxu0 %v5774_v62 }
 0x786   :  { %8706 = vmatpush3.bf16.msra.mxu1 %v9062_v9  ;;  %8421 = vmatpush3.bf16.msra.mxu0 %v9069_v27 }
 0x787   :  { %8707 = vmatprep.subr.bf16.mxu1 %v9149_v36  ;;  %8422 = vmatprep.subr.bf16.mxu0 %v9072_v38 }
 0x78a   :  { %8708 = vmatpush3.bf16.msra.mxu1 %v9063_v40  ;;  %8423 = vmatpush3.bf16.msra.mxu0 %v9073_v49 }
 0x78b   :  { %8709 = vmatprep.subr.bf16.mxu1 %v9149_v36  ;;  %8424 = vmatprep.subr.bf16.mxu0 %v9076_v58 }
 0x78e   :  { %8710 = vmatpush3.bf16.msra.mxu1 %v9064_v8  ;;  %8425 = vmatpush3.bf16.msra.mxu0 %v9077_v0 }
 0x78f   :  { %8711 = vmatprep.subr.bf16.mxu1 %v9149_v36  ;;  %8426 = vmatprep.subr.bf16.mxu0 %v9080_v53 }
 0x792   :  { %8712 = vmatpush3.bf16.msra.mxu1 %v9065_v16  ;;  %8427 = vmatpush3.bf16.msra.mxu0 %v9081_v23 }
 0x793   :  { %8713 = vmatprep.subr.bf16.mxu1 %v9149_v36  ;;  %8428 = vmatprep.subr.bf16.mxu0 %v9084_v57 }
 0x796   :  { %8714 = vmatpush3.bf16.msra.mxu1 %v9066_v28  ;;  %8429 = vmatpush3.bf16.msra.mxu0 %v9085_v63 }
 0x797   :  { %8715 = vmatprep.subr.bf16.mxu1 %v9149_v36  ;;  %8430 = vmatprep.subr.bf16.mxu0 %v9088_v37 }
 0x79a   :  { %8716 = vmatpush3.bf16.msra.mxu1 %v9067_v42  ;;  %8431 = vmatpush3.bf16.msra.mxu0 %v9089_v17  ;;  %v7677_v17 = vld [vmem:[%s12683_s20] ss:$0 sm:$0xff] }
 0x79b   :  { %8442 = vmatprep.subr.bf16.mxu1 %v9070_v2  ;;  %8432 = vmatprep.subr.bf16.mxu0 %v9092_v55 }
 0x79d   :  { %8718 = vmatmul.mubr.bf16.vlgmr.msra.gmra.mrb[160].mxu1 %v5776_v34 }
 0x79e   :  { %8443 = vmatpush3.bf16.msra.mxu1 %v9071_v56  ;;  %8433 = vmatpush3.bf16.msra.mxu0 %v9093_v30  ;;  %v6464_v30 = vpop.permute.xlu1 %6463 }
 0x79f   :  { %8444 = vmatprep.subr.bf16.mxu1 %v9074_v4  ;;  %8434 = vmatprep.subr.bf16.mxu0 %v9096_v22 }
 0x7a2   :  { %8445 = vmatpush3.bf16.msra.mxu1 %v9075_v11  ;;  %8435 = vmatpush3.bf16.msra.mxu0 %v9097_v61 }
 0x7a3   :  { %8446 = vmatprep.subr.bf16.mxu1 %v9078_v3  ;;  %8464 = vmatprep.subr.bf16.mxu0 %v9100_v46 }
 0x7a6   :  { %8447 = vmatpush3.bf16.msra.mxu1 %v9079_v52 }
 0x7a7   :  { %8448 = vmatprep.subr.bf16.mxu1 %v9082_v26 }
 0x7aa   :  { %8449 = vmatpush3.bf16.msra.mxu1 %v9083_v59 }
 0x7ab   :  { %8450 = vmatprep.subr.bf16.mxu1 %v9086_v41 }
 0x7ae   :  { %8451 = vmatpush3.bf16.msra.mxu1 %v9087_v5 }
 0x7af   :  { %8452 = vmatprep.subr.bf16.mxu1 %v9090_v51 }
 0x7b2   :  { %8453 = vmatpush3.bf16.msra.mxu1 %v9091_v21 }
 0x7b3   :  { %8454 = vmatprep.subr.bf16.mxu1 %v9094_v19 }
 0x7b6   :  { %8455 = vmatpush3.bf16.msra.mxu1 %v9095_v45 }
 0x7b7   :  { %8456 = vmatprep.subr.bf16.mxu1 %v9098_v13 }
 0x7ba   :  { %8457 = vmatpush3.bf16.msra.mxu1 %v9099_v54 }
 0x7bb   :  { %8486 = vmatprep.subr.bf16.mxu1 %v9102_v48 }
 0x830   :  { %v8339_v29 = vpop.f32.mrb[152].mxu1 }
 0x831   :  { %v8340_v6 = vpop.f32.mrb[153].mxu1 }
 0x832   :  { %v8341_v10 = vadd.f32 %v8340_v6, %v8339_v29  ;;  %v8342_v20 = vpop.f32.mrb[154].mxu1 }
 0x833   :  { %v8343_v50 = vpop.f32.mrb[155].mxu1 }
 0x834   :  { %v6478_v50 = vpop.permute.xlu0 %6477 }
 0x838   :  { %v8361_v12 = vpop.f32.mrb[156].mxu0  ;;  %v6496_v13 = vpop.permute.xlu0 %6495 }
 0x839   :  { %v8362_v7 = vpop.f32.mrb[157].mxu0 }
 0x83a   :  { %v8363_v24 = vadd.f32 %v8362_v7, %v8361_v12  ;;  %v8364_v33 = vpop.f32.mrb[158].mxu0 }
 0x83b   :  { %v8365_v39 = vpop.f32.mrb[159].mxu0 }
 0x83c   :  { %v6284_v15 = vadd.f32 %v8363_v24, %v8341_v10  ;;  %v7678_v10 = vld [vmem:[%s12684_s21] ss:$0 sm:$0xff] }
 0x850   :  { %v8383_v47 = vpop.f32.mrb[156].mxu1 }
 0x851   :  { %v8384_v25 = vpop.f32.mrb[157].mxu1 }
 0x852   :  { %v8385_v32 = vadd.f32 %v8384_v25, %v8383_v47  ;;  %v8386_v43 = vpop.f32.mrb[158].mxu1  ;;  %v6490_v25 = vpop.permute.xlu1 %6489 }
 0x853   :  { %v8387_v14 = vpop.f32.mrb[159].mxu1 }
 0x854   :  { %v6324_v18 = vadd.f32 %v8385_v32, %v6284_v15 }
 0x858   :  { %v8405_v31 = vpop.f32.mrb[160].mxu0 }
 0x859   :  { %v8406_v62 = vpop.f32.mrb[161].mxu0 }
 0x85a   :  { %v8407_v9 = vadd.f32 %v8406_v62, %v8405_v31  ;;  %v8408_v40 = vpop.f32.mrb[162].mxu0 }
 0x85b   :  { %v8409_v8 = vpop.f32.mrb[163].mxu0 }
 0x85c   :  { %v6364_v16 = vadd.f32 %v8407_v9, %v6324_v18 }
 0x870   :  { %v6403_v28 = vpop.f32.mrb[160].mxu1 }
 0x871   :  { %v6404_v42 = vadd.f32 %v6403_v28, %v6364_v16  ;;  %v8719_v34 = vpop.f32.mrb[161].mxu1 }
 0x872   :  { %v6406_v44 = vpop.f32.mrb[162].mxu1 }
 0x873   :  { %v6409_v27 = vrot.slane %v6404_v42, 4  ;;  %v6416_v2 = vmul.f32 %v6404_v42, %v6404_v42  ;;  %v8720_v56 = vpop.f32.mrb[163].mxu1  ;;  %v9101_v44 = vld [vmem:[%s12682_s24 + $0x100] sm:$0xff]  }
 0x875   :  { %v6410_v38 = vadd.f32 %v6409_v27, %v6404_v42  ;;  %v6417_v49 = vrot.slane %v6416_v2, 4 }
 0x877   :  { %v6411_v4 = vrot.slane %v6410_v38, 2  ;;  %v6418_v11 = vadd.f32 %v6417_v49, %v6416_v2  ;;  %v6508_v2 = vpop.permute.xlu0 %6507 }
 0x879   :  { %v6412_v58 = vadd.f32 %v6411_v4, %v6410_v38  ;;  %v6419_v0 = vrot.slane %v6418_v11, 2 }
 0x87b   :  { %v6413_v3 = vrot.slane %v6412_v58, 1  ;;  %v6420_v52 = vadd.f32 %v6419_v0, %v6418_v11 }
 0x87d   :  { %v6414_v53 = vadd.f32 %v6413_v3, %v6412_v58  ;;  %v6421_v23 = vrot.slane %v6420_v52, 1  ;;  %v9104_v58 = vld [vmem:[%s12682_s24 + $0x148] sm:$0xff]  }
 0x87f   :  { %v6415_v26 = vmul.f32 0.125, %v6414_v53  ;;  %v6422_v59 = vadd.f32 %v6421_v23, %v6420_v52  ;;  %v6527_v52 = vpop.permute.xlu1 %6526  ;;  %v9106_v53 = vld [vmem:[%s12682_s24 + $0x1c8] sm:$0xff]  }
 0x881   :  { %v6423_v57 = vmul.f32 0.125, %v6422_v59  ;;  %v6424_v63 = vmul.f32 %v6415_v26, %v6415_v26  ;;  %v6427_v29 = vsub.f32 %v6404_v42, %v6415_v26  ;;  %v9105_v26 = vld [vmem:[%s12682_s24 + $0x108] sm:$0xff]  }
 0x883   :  { %v6425_v41 = vsub.f32 %v6423_v57, %v6424_v63  ;;  %v6434_v6 = vmul.f32 %v7677_v17, %v6427_v29  ;;  %v9107_v57 = vld [vmem:[%s12682_s24 + $0x188] sm:$0xff]   ;;  %v9108_v63 = vld [vmem:[%s12682_s24 + $0x150] sm:$0xff]   ;;  %v9112_v29 = vld [vmem:[%s12682_s24 + $0x158] sm:$0xff]  }
 0x884   :  { %v9114_v17 = vld [vmem:[%s12682_s24 + $0x1d8] sm:$0xff]  }
 0x885   :  { %v6426_v5 = vmax.f32 %v6425_v41, 0.0  ;;  %v9110_v41 = vld [vmem:[%s12682_s24 + $0x1d0] sm:$0xff]  }
 0x887   :  { %v6435_v37 = vadd.f32 1e-05, %v6426_v5  ;;  %v9109_v5 = vld [vmem:[%s12682_s24 + $0x110] sm:$0xff]  }
 0x889   :  { %9146 = vrsqrt.f32 %v6435_v37  ;;  %v9111_v37 = vld [vmem:[%s12682_s24 + $0x190] sm:$0xff]  }
 0x893   :  { %v9147_v51 = vpop.eup %9146 }
 0x894   :  { %v6437_v20 = vmul.f32 %v9147_v51, %v6434_v6  ;;  %v9113_v6 = vld [vmem:[%s12682_s24 + $0x118] sm:$0xff]  }
 0x895   :  { %v9115_v51 = vld [vmem:[%s12682_s24 + $0x198] sm:$0xff]  }
 0x896   :  { %v6444_v21 = vadd.f32 %v7678_v10, %v6437_v20  ;;  %v9116_v10 = vld [vmem:[%s12682_s24 + $0x160] sm:$0xff]  }
 0x897   :  { %v9118_v20 = vld [vmem:[%s12682_s24 + $0x1e0] sm:$0xff]  }
 0x898   :  { %v6445_v55 = vmax.f32 %v6444_v21, 0.0  ;;  %v9117_v21 = vld [vmem:[%s12682_s24 + $0x120] sm:$0xff]  }
 0x89a   :  { %v12494_v19 = vpack.c.bf16 %v6445_v55, %v6445_v55  ;;  %v9120_v55 = vld [vmem:[%s12682_s24 + $0x168] sm:$0xff]  }
 0x89c   :  { %v6468_v45 = vrot.slane %v12494_v19, 3  ;;  %v6469_v22 = vrot.slane %v12494_v19, 7  ;;  %v6448_v12 = vshrl.u32 %v12494_v19, 16  ;;  %v6451_v61 = vshll.u32 %v12494_v19, 16 }
 0x89d   :  { %v6517_v7 = vrot.slane %v12494_v19, 1  ;;  %v6518_v47 = vrot.slane %v12494_v19, 5 }
 0x89e   :  { %v6473_v24 = vsel %vm13040_vm3, %v6468_v45, %v6469_v22  ;;  %v6450_v33 = vrot.slane %v6448_v12, 2  ;;  %v6453_v54 = vrot.slane %v6451_v61, 3  ;;  %v6456_v39 = vrot.slane %v6448_v12, 6  ;;  %v9121_v45 = vld [vmem:[%s12682_s24 + $0x128] sm:$0xff]  }
 0x89f   :  { %v6480_v46 = vmul.bf16 %v6478_v50, %v6473_v24  ;;  %v6457_v15 = vrot.slane %v6451_v61, 7  ;;  %v6483_v48 = vrot.slane %v6448_v12, 7  ;;  %v6481_v43 = vrot.slane %v6448_v12, 3  ;;  %v9119_v50 = vld [vmem:[%s12682_s24 + $0x1a0] sm:$0xff]   ;;  %v9123_v22 = vld [vmem:[%s12682_s24 + $0x1a8] sm:$0xff]   ;;  %v9128_v24 = vld [vmem:[%s12682_s24 + $0x178] sm:$0xff]  }
 0x8a0   :  { %v6454_v32 = vor.u32 %v6453_v54, %v6450_v33  ;;  %v6499_v14 = vrot.slane %v6451_v61, 1  ;;  %v6502_v62 = vrot.slane %v6451_v61, 5  ;;  %v6530_v9 = vrot.slane %v6448_v12, 1  ;;  %v9130_v33 = vld [vmem:[%s12682_s24 + $0x1f8] sm:$0xff]  }
 0x8a1   :  { %7160 = vmatprep.mubr.bf16.mxu0 %v6480_v46  ;;  %v6458_v18 = vor.u32 %v6457_v15, %v6456_v39  ;;  %v6484_v31 = vor.u32 %v6483_v48, %v6451_v61  ;;  %v6531_v8 = vrot.slane %v6451_v61, 2  ;;  %v6534_v16 = vrot.slane %v6448_v12, 5  ;;  %v9129_v54 = vld [vmem:[%s12682_s24 + $0x138] sm:$0xff]   ;;  %v9132_v46 = vld [vmem:[%s12682_s24 + $0x200] sm:$0xff]   ;;  %v6514_v15 = vpop.permute.xlu0 %6513 }
 0x8a2   :  { %v6500_v40 = vor.u32 %v6499_v14, %v6448_v12  ;;  %v6535_v28 = vrot.slane %v6451_v61, 6  ;;  %v6522_v27 = vsel %vm13041_vm9, %v6517_v7, %v6518_v47  ;;  %v9124_v12 = vld [vmem:[%s12682_s24 + $0x170] sm:$0xff]   ;;  %v9131_v39 = vld [vmem:[%s12682_s24 + $0x1b8] sm:$0xff]   ;;  %v9133_v47 = vld [vmem:[%s12682_s24 + $0x208] sm:$0xff]  }
 0x8a3   :  { %v6460_v42 = vsel %vm11790_vm2, %v6454_v32, %v6458_v18  ;;  %v6486_v34 = vsel %vm10089_vm6, %v6481_v43, %v6484_v31  ;;  %v12522_v0 = vor.u32 %v6531_v8, %v6530_v9  ;;  %v6529_v23 = vmul.bf16 %v6527_v52, %v6522_v27  ;;  %v9126_v61 = vld [vmem:[%s12682_s24 + $0x1f0] sm:$0xff]   ;;  %v9136_v32 = vld [vmem:[%s12682_s24 + $0x220] sm:$0xff]   ;;  %v9137_v43 = vld [vmem:[%s12682_s24 + $0x228] sm:$0xff]   ;;  %v6542_v31 = vpop.permute.xlu1 %6541 }
 0x8a4   :  { %v6466_v56 = vmul.bf16 %v6464_v30, %v6460_v42  ;;  %v6492_v38 = vmul.bf16 %v6490_v25, %v6486_v34  ;;  %v6498_v49 = vmul.bf16 %v6496_v13, %v6486_v34  ;;  %v12513_v11 = vsel %vm10127_vm8, %v6500_v40, %v6502_v62  ;;  %v9122_v30 = vld [vmem:[%s12682_s24 + $0x1e8] sm:$0xff]   ;;  %v9125_v7 = vld [vmem:[%s12682_s24 + $0x130] sm:$0xff]   ;;  %v9139_v18 = vld [vmem:[%s12682_s24 + $0x238] sm:$0xff]  }
 0x8a5   :  { %v6510_v1 = vmul.bf16 %v6508_v2, %v12513_v11  ;;  %v12524_v3 = vor.u32 %v6535_v28, %v6534_v16  ;;  %v9127_v13 = vld [vmem:[%s12682_s24 + $0x1b0] sm:$0xff]   ;;  %v6516_v48 = vmul.bf16 %v6514_v15, %v12513_v11  ;;  %v7679_v40 = vld [vmem:[%s12685_s25] ss:$0 sm:$0xff] }
 0x8a6   :  { %7161 = vmatmul.mubr.bf16.vlgmr.msra.gmra.mrb[164].mxu0 %v6466_v56  ;;  %7200 = vmatprep.mubr.bf16.mxu1 %v6498_v49  ;;  %v9134_v25 = vld [vmem:[%s12682_s24 + $0x210] sm:$0xff]  }
 0x8a7   :  { %8465 = vmatpush3.bf16.msra.mxu0 %v9101_v44  ;;  %7201 = vmatmul.mubr.bf16.vlgmr.msra.gmra.mrb[164].mxu1 %v6492_v38  ;;  %v6538_v59 = vsel %vm11767_vm15, %v12522_v0, %v12524_v3  ;;  %v9138_v14 = vld [vmem:[%s12682_s24 + $0x230] sm:$0xff]  }
 0x8a8   :  { %7240 = vmatprep.mubr.bf16.mxu0 %v6510_v1  ;;  %8487 = vmatpush3.bf16.msra.mxu1 %v9103_v60  ;;  %v6544_v62 = vmul.bf16 %v6542_v31, %v6538_v59 }
 0x8a9   :  { %7280 = vmatprep.mubr.bf16.mxu1 %v6529_v23  ;;  %8466 = vmatprep.subr.bf16.mxu0 %v9104_v58 }
 0x8aa   :  { %8488 = vmatprep.subr.bf16.mxu1 %v9106_v53 }
 0x8ab   :  { %8467 = vmatpush3.bf16.msra.mxu0 %v9105_v26 }
 0x8ac   :  { %8489 = vmatpush3.bf16.msra.mxu1 %v9107_v57  ;;  %8468 = vmatprep.subr.bf16.mxu0 %v9108_v63 }
 0x8ad   :  { %8490 = vmatprep.subr.bf16.mxu1 %v9110_v41 }
 0x8af   :  { %8469 = vmatpush3.bf16.msra.mxu0 %v9109_v5 }
 0x8b0   :  { %8491 = vmatpush3.bf16.msra.mxu1 %v9111_v37  ;;  %8470 = vmatprep.subr.bf16.mxu0 %v9112_v29 }
 0x8b1   :  { %8492 = vmatprep.subr.bf16.mxu1 %v9114_v17 }
 0x8b3   :  { %8471 = vmatpush3.bf16.msra.mxu0 %v9113_v6 }
 0x8b4   :  { %8493 = vmatpush3.bf16.msra.mxu1 %v9115_v51  ;;  %8472 = vmatprep.subr.bf16.mxu0 %v9116_v10 }
 0x8b5   :  { %8494 = vmatprep.subr.bf16.mxu1 %v9118_v20 }
 0x8b7   :  { %8473 = vmatpush3.bf16.msra.mxu0 %v9117_v21 }
 0x8b8   :  { %8495 = vmatpush3.bf16.msra.mxu1 %v9119_v50  ;;  %8474 = vmatprep.subr.bf16.mxu0 %v9120_v55 }
 0x8b9   :  { %8496 = vmatprep.subr.bf16.mxu1 %v9122_v30 }
 0x8bb   :  { %8475 = vmatpush3.bf16.msra.mxu0 %v9121_v45 }
 0x8bc   :  { %8497 = vmatpush3.bf16.msra.mxu1 %v9123_v22  ;;  %8476 = vmatprep.subr.bf16.mxu0 %v9124_v12 }
 0x8bd   :  { %8498 = vmatprep.subr.bf16.mxu1 %v9126_v61 }
 0x8bf   :  { %8477 = vmatpush3.bf16.msra.mxu0 %v9125_v7 }
 0x8c0   :  { %8499 = vmatpush3.bf16.msra.mxu1 %v9127_v13  ;;  %8478 = vmatprep.subr.bf16.mxu0 %v9128_v24 }
 0x8c1   :  { %8500 = vmatprep.subr.bf16.mxu1 %v9130_v33 }
 0x8c3   :  { %8479 = vmatpush3.bf16.msra.mxu0 %v9129_v54 }
 0x8c4   :  { %8501 = vmatpush3.bf16.msra.mxu1 %v9131_v39  ;;  %8721 = vmatprep.subr.bf16.mxu0 %v9149_v36 }
 0x8c6   :  { %7241 = vmatmul.mubr.bf16.vlgmr.msra.gmra.mrb[168].mxu0 %v12494_v19  ;;  %v9135_v19 = vld [vmem:[%s12682_s24 + $0x218] sm:$0xff]  }
 0x8c7   :  { %7281 = vmatmul.mubr.bf16.vlgmr.msra.gmra.mrb[168].mxu1 %v6516_v48  ;;  %8722 = vmatpush3.bf16.msra.mxu0 %v9132_v46 }
 0x8c8   :  { %8723 = vmatprep.subr.bf16.mxu0 %v9149_v36  ;;  %8737 = vmatprep.mubr.msk.bf16.mxu0 %vm9150_vm1, %v9149_v36 }
 0x8cb   :  { %8724 = vmatpush3.bf16.msra.mxu0 %v9133_v47 }
 0x8cc   :  { %8725 = vmatprep.subr.bf16.mxu0 %v9149_v36 }
 0x8cf   :  { %8726 = vmatpush3.bf16.msra.mxu0 %v9134_v25 }
 0x8d0   :  { %8727 = vmatprep.subr.bf16.mxu0 %v9149_v36 }
 0x8d3   :  { %8728 = vmatpush3.bf16.msra.mxu0 %v9135_v19 }
 0x8d4   :  { %8729 = vmatprep.subr.bf16.mxu0 %v9149_v36 }
 0x8d7   :  { %8730 = vmatpush3.bf16.msra.mxu0 %v9136_v32 }
 0x8d8   :  { %8731 = vmatprep.subr.bf16.mxu0 %v9149_v36 }
 0x8db   :  { %8732 = vmatpush3.bf16.msra.mxu0 %v9137_v43 }
 0x8dc   :  { %8733 = vmatprep.subr.bf16.mxu0 %v9149_v36 }
 0x8df   :  { %8734 = vmatpush3.bf16.msra.mxu0 %v9138_v14 }
 0x8e0   :  { %8735 = vmatprep.subr.bf16.mxu0 %v9149_v36 }
 0x8e3   :  { %8736 = vmatpush3.bf16.msra.mxu0 %v9139_v18 }
 0x8e6   :  { %8738 = vmatmul.mubr.bf16.vlgmr.msra.gmra.mrb[172].mxu0 %v6544_v62 }
 0x979   :  { %v8436_v9 = vpop.f32.mrb[164].mxu0 }
 0x97a   :  { %v8437_v8 = vpop.f32.mrb[165].mxu0  ;;  %v8458_v16 = vpop.f32.mrb[164].mxu1 }
 0x97b   :  { %v8438_v28 = vadd.f32 %v8437_v8, %v8436_v9  ;;  %v8439_v42 = vpop.f32.mrb[166].mxu0  ;;  %v8459_v34 = vpop.f32.mrb[165].mxu1 }
 0x97c   :  { %v8460_v36 = vadd.f32 %v8459_v34, %v8458_v16  ;;  %v8440_v44 = vpop.f32.mrb[167].mxu0  ;;  %v8461_v27 = vpop.f32.mrb[166].mxu1 }
 0x97d   :  { %v7163_v2 = vadd.f32 %v8438_v28, %v7679_v40  ;;  %v8462_v35 = vpop.f32.mrb[167].mxu1 }
 0x97f   :  { %v7203_v56 = vadd.f32 %v8460_v36, %v7163_v2 }
 0x999   :  { %v8480_v38 = vpop.f32.mrb[168].mxu0 }
 0x99a   :  { %v8481_v49 = vpop.f32.mrb[169].mxu0  ;;  %v8502_v4 = vpop.f32.mrb[168].mxu1 }
 0x99b   :  { %v8482_v11 = vadd.f32 %v8481_v49, %v8480_v38  ;;  %v8483_v60 = vpop.f32.mrb[170].mxu0  ;;  %v8503_v1 = vpop.f32.mrb[169].mxu1 }
 0x99c   :  { %v8504_v58 = vadd.f32 %v8503_v1, %v8502_v4  ;;  %v8484_v0 = vpop.f32.mrb[171].mxu0  ;;  %v8505_v3 = vpop.f32.mrb[170].mxu1 }
 0x99d   :  { %v7243_v52 = vadd.f32 %v8482_v11, %v7203_v56  ;;  %v8506_v53 = vpop.f32.mrb[171].mxu1 }
 0x99f   :  { %v7283_v23 = vadd.f32 %v8504_v58, %v7243_v52 }
 0x9b9   :  { %v7322_v26 = vpop.f32.mrb[172].mxu0 }
 0x9ba   :  { %v7323_v59 = vadd.f32 %v7322_v26, %v7283_v23  ;;  %v8739_v57 = vpop.f32.mrb[173].mxu0 }
 0x9bb   :  { %v7325_v63 = vpop.f32.mrb[174].mxu0 }
 0x9bc   :  { %7328 = vst [vmem:[%s12686_s28] sm:$0xff] %v7323_v59  ;;  %v8740_v41 = vpop.f32.mrb[175].mxu0 }

</bundles_post_ra>
